<compile_context>
chip_gen: v7x
topology: tpu7x:2x2x1
jax: 0.10.0
libtpu: 0.0.40
codegen_flags: <defaults>
</compile_context>

<pallas_src>
import math
from functools import partial

import numpy as np

import jax
import jax.numpy as jnp
from jax.experimental import pallas as pl
from jax.experimental.pallas import tpu as pltpu


def _round_up(x, m):
    return ((x + m - 1) // m) * m


# -----------------------------------------------------------------------------
# Kernel 1: per-batch rotated steerable filters for a whole group of convs
#   basis(theta) (P^2, 2P^2)  @  Wr (2P^2, sum_l outC_l*inC_l)
# -----------------------------------------------------------------------------
def _filter_kernel(theta_ref, inx_ref, iny_ref, fkv_ref, flv_ref, wr_ref, out_ref):
    p2 = inx_ref.shape[0]
    th = theta_ref[...]                                    # (1, 1)
    ct, st = jnp.cos(th), jnp.sin(th)
    xr = ct * inx_ref[...] - st * iny_ref[...]             # (P^2, 1)
    yr = st * inx_ref[...] + ct * iny_ref[...]             # (P^2, 1)
    mask = jnp.exp(-jnp.maximum(xr * xr + yr * yr - 1.0, 0.0) * 5.0)   # == /0.2
    phase = xr * fkv_ref[...] + yr * flv_ref[...]          # (P^2, 2P^2)
    col = jax.lax.broadcasted_iota(jnp.int32, phase.shape, 1)
    basis = jnp.where(col < p2, jnp.cos(phase), jnp.sin(phase)) * mask
    out_ref[...] = jnp.dot(basis, wr_ref[...], preferred_element_type=jnp.float32)


def _gen_filters(theta3, g):
    b = theta3.shape[0]
    p2 = g["inx"].shape[0]
    nc = g["wr"].shape[1]
    return pl.pallas_call(
        _filter_kernel,
        out_shape=jax.ShapeDtypeStruct((b, p2, nc), jnp.float32),
        grid=(b,),
        in_specs=[
            pl.BlockSpec((None, 1, 1), lambda i: (i, 0, 0)),      # theta
            pl.BlockSpec((p2, 1), lambda i: (0, 0)),              # inX column
            pl.BlockSpec((p2, 1), lambda i: (0, 0)),              # inY column
            pl.BlockSpec((1, 2 * p2), lambda i: (0, 0)),          # v * fk
            pl.BlockSpec((1, 2 * p2), lambda i: (0, 0)),          # v * fl
            pl.BlockSpec((2 * p2, nc), lambda i: (0, 0)),         # stacked weights
        ],
        out_specs=pl.BlockSpec((None, p2, nc), lambda i: (i, 0, 0)),
        compiler_params=pltpu.CompilerParams(dimension_semantics=("parallel",)),
    )(theta3, g["inx"], g["iny"], g["fkv"], g["flv"], g["wr"])


# -----------------------------------------------------------------------------
# Kernel 2: fused conv stack (getZ + 4 residual blocks) for one batch element
# -----------------------------------------------------------------------------
def _stack_kernel(xin_ref, b_ref, maskz_ref, maskr_ref, filt0_ref, shift0_ref,
                  filtr_ref, scaler_ref, shiftr_ref, out_rb_ref, out_r_ref,
                  *, shifts_z, shifts_r, n_blocks, change):
    f32 = jnp.float32

    def im2col(x, mask_ref, shifts):
        # (C_pad, HW) activation slab -> (P^2*C_pad, HW) tap-major column slab,
        # built with lane rolls (XLU) + boundary masks (VPU): no HBM im2col.
        cols = []
        for t, sh in enumerate(shifts):
            rolled = pltpu.roll(x, sh, axis=1) if sh else x
            cols.append(mask_ref[t:t + 1, :] * rolled)
        return jnp.concatenate(cols, axis=0)

    # Layer 0: rows [R (3, carried by selector rows) | getZ conv (27) | zero pad]
    x = jnp.dot(filt0_ref[...], im2col(xin_ref[...], maskz_ref, shifts_z),
                preferred_element_type=f32) + shift0_ref[...]

    # 4 residual blocks, each: conv1 -> BN -> ReLU -> conv2 -> BN -> *0.1 + X0.
    for blk in range(n_blocks):
        x0 = x
        for half in range(2):
            li = 2 * blk + half
            y = jnp.dot(filtr_ref[li], im2col(x, maskr_ref, shifts_r),
                        preferred_element_type=f32)
            y = y * scaler_ref[li] + shiftr_ref[li]          # conv bias + BN folded
            x = jnp.maximum(y, 0.0) if half == 0 else y * change + x0

    out_r = x[0:3, :]
    out_r_ref[...] = out_r
    out_rb_ref[...] = out_r + b_ref[...]


# -----------------------------------------------------------------------------
# Static (prep-time / trace-time) helpers
# -----------------------------------------------------------------------------
def _basis_consts(P):
    P2 = P * P
    p = (P - 1) / 2.0
    xs = np.arange(-p, p + 1) / p
    Xg, Yg = np.meshgrid(xs, xs)                     # Xg[i,j]=xs[j], Yg[i,j]=xs[i]
    inx = Xg.reshape(P2, 1)
    iny = Yg.reshape(P2, 1)
    v = math.pi / P * (P - 1)
    half = P / 2.0
    k = np.arange(P)
    fk = k - P * (k > half)                          # [0, 1, ..., -1]
    fk_flat = np.repeat(fk, P)                       # tap index k*P+l -> fk[k]
    fl_flat = np.tile(fk, P)                         # tap index k*P+l -> fl[l]
    fkv = np.concatenate([fk_flat, fk_flat]).reshape(1, 2 * P2) * v
    flv = np.concatenate([fl_flat, fl_flat]).reshape(1, 2 * P2) * v
    return (inx.astype(np.float32), iny.astype(np.float32),
            fkv.astype(np.float32), flv.astype(np.float32))


def _tap_geometry(P, H, W):
    """Per-tap lane-roll amounts and boundary masks for an H*W lane image
    (np.roll semantics: result[p] = x[(p - shift) % N])."""
    pad = P // 2
    HW = H * W
    yy, xx = np.meshgrid(np.arange(H), np.arange(W), indexing="ij")
    shifts, masks = [], []
    for dy in range(P):
        for dx in range(P):
            s = (dy - pad) * W + (dx - pad)
            shifts.append(int((-s) % HW))
            valid = ((yy + dy - pad >= 0) & (yy + dy - pad < H) &
                     (xx + dx - pad >= 0) & (xx + dx - pad < W))
            masks.append(valid.reshape(HW))
    return tuple(shifts), np.stack(masks, axis=0).astype(np.float32)


def prepare_mernet(params, channel_num, kernel_size, eps=1e-5):
    """One-time static prep: stacked basis weights + folded BN constants."""
    f32 = jnp.float32
    C = channel_num
    assert C == 3 + 27, "MerNet structurally forces channel_num == 30"
    C_pad = _round_up(C, 8)
    P_z, P_r = 3, kernel_size

    def wr_of(w):                     # (outC, 2P^2, inC) -> (2P^2, outC*inC)
        outC, k2, inC = w.shape
        return jnp.asarray(w, f32).transpose(1, 0, 2).reshape(k2, outC * inC)

    def group(P, wr_list):
        inx, iny, fkv, flv = _basis_consts(P)
        return dict(inx=jnp.asarray(inx), iny=jnp.asarray(iny),
                    fkv=jnp.asarray(fkv), flv=jnp.asarray(flv),
                    wr=jnp.concatenate(wr_list, axis=1))

    # getZ (sizeP=3, 6 -> 27 channels); its bias lands in the layer-0 shift.
    z_group = group(P_z, [wr_of(params["getZ"]["w"])])
    shift0 = np.zeros((C_pad, 1), np.float32)
    shift0[3:C, 0] = np.asarray(params["getZ"]["c"], np.float32)

    # 8 res convs (sizeP=kernel_size), order res1.conv1, res1.conv2, ... res4.conv2.
    wr_list, scales, shifts = [], [], []
    for bi in range(1, 5):
        blk = params[f"res{bi}"]
        for cname, bname in (("conv1", "bn1"), ("conv2", "bn2")):
            wr_list.append(wr_of(blk[cname]["w"]))
            gamma, beta, mean, var = [np.asarray(t, np.float32) for t in blk[bname]]
            c = np.asarray(blk[cname]["c"], np.float32)
            s = gamma / np.sqrt(var + eps)
            sh = (c - mean) * s + beta                 # conv bias folded into BN shift
            sc_pad = np.zeros((C_pad, 1), np.float32); sc_pad[:C, 0] = s
            sh_pad = np.zeros((C_pad, 1), np.float32); sh_pad[:C, 0] = sh
            scales.append(sc_pad); shifts.append(sh_pad)
    r_group = group(P_r, wr_list)

    return dict(z=z_group, r=r_group,
                shift0=jnp.asarray(shift0),
                scaler=jnp.asarray(np.stack(scales, axis=0)),    # (8, C_pad, 1)
                shiftr=jnp.asarray(np.stack(shifts, axis=0)))    # (8, C_pad, 1)


# -----------------------------------------------------------------------------
# MerNet forward: 2 filter-gen pallas_calls + 1 fused conv-stack pallas_call
# -----------------------------------------------------------------------------
def mernet_forward(prep, R, B, theta):
    f32 = jnp.float32
    b, _, H, W = R.shape
    HW = H * W

    # Static structure derived from prep array shapes (static under jit).
    P2z = prep["z"]["inx"].shape[0]; P_z = int(math.isqrt(P2z))
    P2r = prep["r"]["inx"].shape[0]; P_r = int(math.isqrt(P2r))
    Cin0, Cin0_pad = 6, 8
    outC_z = prep["z"]["wr"].shape[1] // Cin0
    C = outC_z + 3
    C_pad = prep["scaler"].shape[1]
    n_layers = prep["scaler"].shape[0]
    n_blocks = n_layers // 2

    theta3 = theta.reshape(b, 1, 1).astype(f32)

    # ---- per-batch rotated filters (one call per distinct kernel size) ----
    fz = _gen_filters(theta3, prep["z"])          # (b, P2z, outC_z*Cin0)
    fr = _gen_filters(theta3, prep["r"])          # (b, P2r, n_layers*C*C)

    # ---- filter layout glue (tiny XLA): lane-dense (outC_pad, P^2*C_pad) ----
    fz = fz.reshape(b, P2z, outC_z, Cin0).transpose(0, 2, 1, 3)        # (b,n,t,m)
    fz = jnp.pad(fz, ((0, 0), (0, 0), (0, 0), (0, Cin0_pad - Cin0)))
    fz = fz.reshape(b, outC_z, P2z * Cin0_pad)
    # Layer-0 combined filter: rows 0..2 copy R through the (unmasked) centre tap.
    sel = np.zeros((3, P2z * Cin0_pad), np.float32)
    tc = (P_z // 2) * P_z + (P_z // 2)
    for r in range(3):
        sel[r, tc * Cin0_pad + r] = 1.0
    filt0 = jnp.concatenate(
        [jnp.broadcast_to(jnp.asarray(sel), (b, 3, P2z * Cin0_pad)), fz], axis=1)
    filt0 = jnp.pad(filt0, ((0, 0), (0, C_pad - C), (0, 0)))           # (b,C_pad,P2z*8)

    fr = fr.reshape(b, P2r, n_layers, C, C).transpose(0, 2, 3, 1, 4)   # (b,l,n,t,m)
    fr = jnp.pad(fr, ((0, 0), (0, 0), (0, 0), (0, 0), (0, C_pad - C)))
    fr = fr.reshape(b, n_layers, C, P2r * C_pad)
    fr = jnp.pad(fr, ((0, 0), (0, 0), (0, C_pad - C), (0, 0)))         # (b,l,C_pad,K)

    # ---- activations as lane-dense (channels, H*W) slabs ----
    xin = jnp.concatenate([R.reshape(b, 3, HW), (B / 20.0).reshape(b, 3, HW)], axis=1)
    xin = jnp.pad(xin.astype(f32), ((0, 0), (0, Cin0_pad - Cin0), (0, 0)))
    b_flat = B.reshape(b, 3, HW).astype(f32)

    # ---- tap geometry (trace-time constants) ----
    shifts_z, mask_z_np = _tap_geometry(P_z, H, W)
    shifts_r, mask_r_np = _tap_geometry(P_r, H, W)
    mask_z = jnp.asarray(mask_z_np)
    mask_r = jnp.asarray(mask_r_np)

    kernel = partial(_stack_kernel, shifts_z=shifts_z, shifts_r=shifts_r,
                     n_blocks=n_blocks, change=0.1)

    out_rb, out_r = pl.pallas_call(
        kernel,
        out_shape=(jax.ShapeDtypeStruct((b, 3, HW), f32),
                   jax.ShapeDtypeStruct((b, 3, HW), f32)),
        grid=(b,),
        in_specs=[
            pl.BlockSpec((None, Cin0_pad, HW), lambda i: (i, 0, 0)),           # xin
            pl.BlockSpec((None, 3, HW), lambda i: (i, 0, 0)),                  # B
            pl.BlockSpec((P2z, HW), lambda i: (0, 0)),                         # mask_z
            pl.BlockSpec((P2r, HW), lambda i: (0, 0)),                         # mask_r
            pl.BlockSpec((None, C_pad, P2z * Cin0_pad), lambda i: (i, 0, 0)),  # filt0
            pl.BlockSpec((C_pad, 1), lambda i: (0, 0)),                        # shift0
            pl.BlockSpec((None, n_layers, C_pad, P2r * C_pad),
                         lambda i: (i, 0, 0, 0)),                              # filtr
            pl.BlockSpec((n_layers, C_pad, 1), lambda i: (0, 0, 0)),           # scaler
            pl.BlockSpec((n_layers, C_pad, 1), lambda i: (0, 0, 0)),           # shiftr
        ],
        out_specs=(pl.BlockSpec((None, 3, HW), lambda i: (i, 0, 0)),
                   pl.BlockSpec((None, 3, HW), lambda i: (i, 0, 0))),
        compiler_params=pltpu.CompilerParams(dimension_semantics=("parallel",)),
    )(xin, b_flat, mask_z, mask_r, filt0, prep["shift0"], fr,
      prep["scaler"], prep["shiftr"])

    return out_rb.reshape(b, 3, H, W), out_r.reshape(b, 3, H, W)


# -----------------------------------------------------------------------------
# Deterministic parameter init (matches the module's __init__ formulas)
# -----------------------------------------------------------------------------
def init_mernet_params(key, channel_num, kernel_size):
    def rot_conv_params(k, sizeP, inC, outC):
        ka, kb = jax.random.split(k)
        s = 1.0 / sizeP / sizeP / 100.0
        w = jnp.concatenate(
            [jax.random.normal(ka, (outC, sizeP * sizeP, inC), jnp.float32) * s,
             jax.random.normal(kb, (outC, sizeP * sizeP, inC), jnp.float32) * s],
            axis=1)
        return dict(w=w, c=jnp.zeros((outC,), jnp.float32))

    keys = jax.random.split(key, 9)
    params = {"getZ": rot_conv_params(keys[0], 3, 6, 27)}
    ones = jnp.ones((channel_num,), jnp.float32)
    zeros = jnp.zeros((channel_num,), jnp.float32)
    for bi in range(4):
        params[f"res{bi + 1}"] = dict(
            conv1=rot_conv_params(keys[1 + 2 * bi], kernel_size, channel_num,
                                  channel_num),
            bn1=(ones, zeros, zeros, ones),   # (gamma, beta, running_mean, running_var)
            conv2=rot_conv_params(keys[2 + 2 * bi], kernel_size, channel_num,
                                  channel_num),
            bn2=(ones, zeros, zeros, ones),
        )
    return params


# -----------------------------------------------------------------------------
# Pure-JAX reference (mirrors the PyTorch forward, eval-mode BN)
# -----------------------------------------------------------------------------
def _ref_basis(theta, P):
    b = theta.shape[0]
    p = (P - 1) / 2.0
    xs = np.arange(-p, p + 1) / p
    Xg, Yg = np.meshgrid(xs, xs)
    inX = jnp.asarray(Xg, jnp.float32)[None, None]
    inY = jnp.asarray(Yg, jnp.float32)[None, None]
    th = theta.reshape(b, -1, 1, 1)
    Xr = jnp.cos(th) * inX - jnp.sin(th) * inY
    Yr = jnp.sin(th) * inX + jnp.cos(th) * inY
    Xr = Xr[..., None, None]
    Yr = Yr[..., None, None]
    Mask = jnp.exp(-jnp.maximum(Xr ** 2 + Yr ** 2 - 1.0, 0.0) / 0.2)
    k = jnp.arange(P, dtype=jnp.float32).reshape(1, 1, 1, 1, P, 1)
    l = jnp.arange(P, dtype=jnp.float32).reshape(1, 1, 1, 1, 1, P)
    v = math.pi / P * (P - 1)
    half = P / 2.0
    fk = k - P * (k > half)
    fl = l - P * (l > half)
    BC = jnp.cos(fk * v * Xr + fl * v * Yr) * Mask
    BS = jnp.sin(fk * v * Xr + fl * v * Yr) * Mask
    c = th.shape[1]
    BC = BC.reshape(b, c, P, P, P * P)
    BS = BS.reshape(b, c, P, P, P * P)
    return jnp.concatenate([BC, BS], axis=4)


def _ref_rot_conv(X, theta, W, c, P):
    b, inC, H, Wd = X.shape
    outC = W.shape[0]
    Basis = _ref_basis(theta, P)
    Ck = jnp.einsum("bcijk,nkm->bnmij", Basis, W,
                    precision=jax.lax.Precision.HIGHEST)
    Ck = Ck.reshape(b * outC, inC, P, P)
    Xr = X.reshape(1, b * inC, H, Wd)
    out = jax.lax.conv_general_dilated(
        Xr, Ck, window_strides=(1, 1),
        padding=[(P // 2, P // 2), (P // 2, P // 2)],
        dimension_numbers=("NCHW", "OIHW", "NCHW"),
        feature_group_count=b,
        precision=jax.lax.Precision.HIGHEST)
    return out.reshape(b, outC, H, Wd) + c.reshape(1, outC, 1, 1)


def reference_mernet(params, R, B, theta, kernel_size):
    def bn(x, bnp):
        g, bta, m, v = bnp
        inv = 1.0 / jnp.sqrt(v + 1e-5)
        return ((x - m.reshape(1, -1, 1, 1)) * (g * inv).reshape(1, -1, 1, 1)
                + bta.reshape(1, -1, 1, 1))

    Z = _ref_rot_conv(jnp.concatenate([R, B / 20.0], axis=1), theta,
                      params["getZ"]["w"], params["getZ"]["c"], 3)
    X = jnp.concatenate([R, Z], axis=1)
    for bi in range(1, 5):
        blk = params[f"res{bi}"]
        X0 = X
        X = _ref_rot_conv(X, theta, blk["conv1"]["w"], blk["conv1"]["c"], kernel_size)
        X = bn(X, blk["bn1"])
        X = jnp.maximum(X, 0.0)
        X = _ref_rot_conv(X, theta, blk["conv2"]["w"], blk["conv2"]["c"], kernel_size)
        X = bn(X, blk["bn2"])
        X = X * 0.1 + X0
    outR = X[:, :3]
    return outR + B, outR


# -----------------------------------------------------------------------------
if __name__ == "__main__":
    # channel_num is structurally forced to 3 + 27 = 30 by MerNet (cat(R, getZ(.))).
    channel_num = 30
    kernel_size = 3
    batch, H, W = 2, 16, 16          # H*W = 256 -> lane-dense output blocks

    key = jax.random.PRNGKey(0)
    kR, kB, kT, kP = jax.random.split(key, 4)
    R = jax.random.normal(kR, (batch, 3, H, W), jnp.float32)
    B = jax.random.normal(kB, (batch, 3, H, W), jnp.float32)
    theta = jax.random.normal(kT, (batch, 1), jnp.float32)

    params = init_mernet_params(kP, channel_num, kernel_size)
    prep = prepare_mernet(params, channel_num, kernel_size)   # one-time static prep

    fwd = jax.jit(mernet_forward)
    out_rb, out_r = fwd(prep, R, B, theta)
    out_rb = jax.block_until_ready(out_rb)
    out_r = jax.block_until_ready(out_r)

    ref_rb, ref_r = reference_mernet(params, R, B, theta, kernel_size)

    assert out_rb.shape == (batch, 3, H, W), out_rb.shape
    assert out_r.shape == (batch, 3, H, W), out_r.shape
    assert jnp.allclose(out_rb, ref_rb, atol=2e-3, rtol=2e-3), "mismatch (outR + B)"
    assert jnp.allclose(out_r, ref_r, atol=2e-3, rtol=2e-3), "mismatch (outR)"

    print("KERNEL_OK")
</pallas_src>

<mosaic_0001>
module attributes {stable_mosaic.version = 11 : i64} {
  func.func @_filter_kernel(%arg0: i32, %arg1: memref<1x1x1xf32, #tpu.memory_space<vmem>>, %arg2: memref<9x1xf32, #tpu.memory_space<vmem>>, %arg3: memref<9x1xf32, #tpu.memory_space<vmem>>, %arg4: memref<1x18xf32, #tpu.memory_space<vmem>>, %arg5: memref<1x18xf32, #tpu.memory_space<vmem>>, %arg6: memref<18x7200xf32, #tpu.memory_space<vmem>>, %arg7: memref<1x9x7200xf32, #tpu.memory_space<vmem>>) attributes {dimension_semantics = [#tpu.dimension_semantics<parallel>], iteration_bounds = array<i64: 2>, scalar_prefetch = 0 : i64, scratch_operands = 0 : i64, tpu.core_type = #tpu.core_type<tc>, window_params = [{transform_indices = @transform_0, window_bounds = array<i64: 1, 1, 1>}, {pipeline_mode = #tpu.pipeline_mode<synchronous>, transform_indices = @transform_1, window_bounds = array<i64: 9, 1>}, {pipeline_mode = #tpu.pipeline_mode<synchronous>, transform_indices = @transform_2, window_bounds = array<i64: 9, 1>}, {pipeline_mode = #tpu.pipeline_mode<synchronous>, transform_indices = @transform_3, window_bounds = array<i64: 1, 18>}, {pipeline_mode = #tpu.pipeline_mode<synchronous>, transform_indices = @transform_4, window_bounds = array<i64: 1, 18>}, {pipeline_mode = #tpu.pipeline_mode<synchronous>, transform_indices = @transform_5, window_bounds = array<i64: 18, 7200>}, {transform_indices = @transform_6, window_bounds = array<i64: 1, 9, 7200>}]} {
    %c0 = arith.constant 0 : index
    %c0_0 = arith.constant 0 : index
    %c0_1 = arith.constant 0 : index
    %0 = vector.load %arg1[%c0, %c0_0, %c0_1] : memref<1x1x1xf32, #tpu.memory_space<vmem>>, vector<1x1x1xf32>
    %1 = vector.shape_cast %0 : vector<1x1x1xf32> to vector<1x1xf32>
    %2 = math.cos %1 : vector<1x1xf32>
    %3 = math.sin %1 : vector<1x1xf32>
    %c0_2 = arith.constant 0 : index
    %c0_3 = arith.constant 0 : index
    %4 = vector.load %arg2[%c0_2, %c0_3] : memref<9x1xf32, #tpu.memory_space<vmem>>, vector<9x1xf32>
    %5 = vector.broadcast %2 : vector<1x1xf32> to vector<9x1xf32>
    %6 = arith.mulf %5, %4 : vector<9x1xf32>
    %c0_4 = arith.constant 0 : index
    %c0_5 = arith.constant 0 : index
    %7 = vector.load %arg3[%c0_4, %c0_5] : memref<9x1xf32, #tpu.memory_space<vmem>>, vector<9x1xf32>
    %8 = vector.broadcast %3 : vector<1x1xf32> to vector<9x1xf32>
    %9 = arith.mulf %8, %7 : vector<9x1xf32>
    %10 = arith.subf %6, %9 : vector<9x1xf32>
    %c0_6 = arith.constant 0 : index
    %c0_7 = arith.constant 0 : index
    %11 = vector.load %arg2[%c0_6, %c0_7] : memref<9x1xf32, #tpu.memory_space<vmem>>, vector<9x1xf32>
    %12 = vector.broadcast %3 : vector<1x1xf32> to vector<9x1xf32>
    %13 = arith.mulf %12, %11 : vector<9x1xf32>
    %c0_8 = arith.constant 0 : index
    %c0_9 = arith.constant 0 : index
    %14 = vector.load %arg3[%c0_8, %c0_9] : memref<9x1xf32, #tpu.memory_space<vmem>>, vector<9x1xf32>
    %15 = vector.broadcast %2 : vector<1x1xf32> to vector<9x1xf32>
    %16 = arith.mulf %15, %14 : vector<9x1xf32>
    %17 = arith.addf %13, %16 : vector<9x1xf32>
    %18 = arith.mulf %10, %10 : vector<9x1xf32>
    %19 = arith.mulf %17, %17 : vector<9x1xf32>
    %20 = arith.addf %18, %19 : vector<9x1xf32>
    %cst = arith.constant 1.000000e+00 : f32
    %21 = vector.broadcast %cst : f32 to vector<9x1xf32>
    %22 = arith.subf %20, %21 : vector<9x1xf32>
    %cst_10 = arith.constant 0.000000e+00 : f32
    %23 = vector.broadcast %cst_10 : f32 to vector<9x1xf32>
    %24 = arith.maximumf %22, %23 : vector<9x1xf32>
    %cst_11 = arith.constant 0.000000e+00 : f32
    %25 = vector.broadcast %cst_11 : f32 to vector<9x1xf32>
    %26 = arith.subf %25, %24 : vector<9x1xf32>
    %cst_12 = arith.constant 5.000000e+00 : f32
    %27 = vector.broadcast %cst_12 : f32 to vector<9x1xf32>
    %28 = arith.mulf %26, %27 : vector<9x1xf32>
    %29 = math.exp %28 : vector<9x1xf32>
    %c0_13 = arith.constant 0 : index
    %c0_14 = arith.constant 0 : index
    %30 = vector.load %arg4[%c0_13, %c0_14] : memref<1x18xf32, #tpu.memory_space<vmem>>, vector<1x18xf32>
    %31 = vector.broadcast %10 : vector<9x1xf32> to vector<9x18xf32>
    %32 = vector.broadcast %30 : vector<1x18xf32> to vector<9x18xf32>
    %33 = arith.mulf %31, %32 : vector<9x18xf32>
    %c0_15 = arith.constant 0 : index
    %c0_16 = arith.constant 0 : index
    %34 = vector.load %arg5[%c0_15, %c0_16] : memref<1x18xf32, #tpu.memory_space<vmem>>, vector<1x18xf32>
    %35 = vector.broadcast %17 : vector<9x1xf32> to vector<9x18xf32>
    %36 = vector.broadcast %34 : vector<1x18xf32> to vector<9x18xf32>
    %37 = arith.mulf %35, %36 : vector<9x18xf32>
    %38 = arith.addf %33, %37 : vector<9x18xf32>
    %39 = tpu.iota {dimensions = array<i32: 1>} : vector<9x18xi32>
    %c9_i32 = arith.constant 9 : i32
    %40 = vector.broadcast %c9_i32 : i32 to vector<9x18xi32>
    %41 = arith.cmpi slt, %39, %40 : vector<9x18xi32>
    %42 = math.cos %38 : vector<9x18xf32>
    %43 = math.sin %38 : vector<9x18xf32>
    %44 = arith.select %41, %42, %43 : vector<9x18xi1>, vector<9x18xf32>
    %45 = vector.broadcast %29 : vector<9x1xf32> to vector<9x18xf32>
    %46 = arith.mulf %44, %45 : vector<9x18xf32>
    %c0_17 = arith.constant 0 : index
    %c0_18 = arith.constant 0 : index
    %47 = vector.load %arg6[%c0_17, %c0_18] : memref<18x7200xf32, #tpu.memory_space<vmem>>, vector<18x7200xf32>
    %cst_19 = arith.constant dense<0.000000e+00> : vector<9x7200xf32>
    %48 = tpu.matmul %46, %47, %cst_19 {dimension_numbers = #tpu.dot_dimension_numbers<[1], [0], [0], [1], [0, 0, 1, 1], [], []>} : vector<9x18xf32>, vector<18x7200xf32>, vector<9x7200xf32> -> vector<9x7200xf32>
    %c0_20 = arith.constant 0 : index
    %c0_21 = arith.constant 0 : index
    %c0_22 = arith.constant 0 : index
    %49 = vector.load %arg7[%c0_20, %c0_21, %c0_22] : memref<1x9x7200xf32, #tpu.memory_space<vmem>>, vector<1x9x7200xf32>
    %50 = vector.shape_cast %49 : vector<1x9x7200xf32> to vector<9x7200xf32>
    %51 = vector.shape_cast %48 : vector<9x7200xf32> to vector<1x9x7200xf32>
    tpu.vector_store %arg7[%c0_20, %c0_21, %c0_22], %51 {strides = array<i32>} : memref<1x9x7200xf32, #tpu.memory_space<vmem>>, vector<1x9x7200xf32>,
    return
  }
  func.func @transform_0(%arg0: i32) -> (i32, i32, i32) {
    %c0_i32 = arith.constant 0 : i32
    %c0_i32_0 = arith.constant 0 : i32
    %c0_i32_1 = arith.constant 0 : i32
    return %arg0, %c0_i32, %c0_i32_0 : i32, i32, i32
  }
  func.func @transform_1(%arg0: i32) -> (i32, i32) {
    %c0_i32 = arith.constant 0 : i32
    %c0_i32_0 = arith.constant 0 : i32
    %c0_i32_1 = arith.constant 0 : i32
    return %c0_i32, %c0_i32_0 : i32, i32
  }
  func.func @transform_2(%arg0: i32) -> (i32, i32) {
    %c0_i32 = arith.constant 0 : i32
    %c0_i32_0 = arith.constant 0 : i32
    %c0_i32_1 = arith.constant 0 : i32
    return %c0_i32, %c0_i32_0 : i32, i32
  }
  func.func @transform_3(%arg0: i32) -> (i32, i32) {
    %c0_i32 = arith.constant 0 : i32
    %c0_i32_0 = arith.constant 0 : i32
    %c0_i32_1 = arith.constant 0 : i32
    return %c0_i32, %c0_i32_0 : i32, i32
  }
  func.func @transform_4(%arg0: i32) -> (i32, i32) {
    %c0_i32 = arith.constant 0 : i32
    %c0_i32_0 = arith.constant 0 : i32
    %c0_i32_1 = arith.constant 0 : i32
    return %c0_i32, %c0_i32_0 : i32, i32
  }
  func.func @transform_5(%arg0: i32) -> (i32, i32) {
    %c0_i32 = arith.constant 0 : i32
    %c0_i32_0 = arith.constant 0 : i32
    %c0_i32_1 = arith.constant 0 : i32
    return %c0_i32, %c0_i32_0 : i32, i32
  }
  func.func @transform_6(%arg0: i32) -> (i32, i32, i32) {
    %c0_i32 = arith.constant 0 : i32
    %c0_i32_0 = arith.constant 0 : i32
    %c0_i32_1 = arith.constant 0 : i32
    return %arg0, %c0_i32, %c0_i32_0 : i32, i32, i32
  }
}

module attributes {stable_mosaic.version = 11 : i64} {
  func.func @_filter_kernel(%arg0: i32, %arg1: memref<1x1x1xf32, #tpu.memory_space<vmem>>, %arg2: memref<9x1xf32, #tpu.memory_space<vmem>>, %arg3: memref<9x1xf32, #tpu.memory_space<vmem>>, %arg4: memref<1x18xf32, #tpu.memory_space<vmem>>, %arg5: memref<1x18xf32, #tpu.memory_space<vmem>>, %arg6: memref<18x162xf32, #tpu.memory_space<vmem>>, %arg7: memref<1x9x162xf32, #tpu.memory_space<vmem>>) attributes {dimension_semantics = [#tpu.dimension_semantics<parallel>], iteration_bounds = array<i64: 2>, scalar_prefetch = 0 : i64, scratch_operands = 0 : i64, tpu.core_type = #tpu.core_type<tc>, window_params = [{transform_indices = @transform_0, window_bounds = array<i64: 1, 1, 1>}, {pipeline_mode = #tpu.pipeline_mode<synchronous>, transform_indices = @transform_1, window_bounds = array<i64: 9, 1>}, {pipeline_mode = #tpu.pipeline_mode<synchronous>, transform_indices = @transform_2, window_bounds = array<i64: 9, 1>}, {pipeline_mode = #tpu.pipeline_mode<synchronous>, transform_indices = @transform_3, window_bounds = array<i64: 1, 18>}, {pipeline_mode = #tpu.pipeline_mode<synchronous>, transform_indices = @transform_4, window_bounds = array<i64: 1, 18>}, {pipeline_mode = #tpu.pipeline_mode<synchronous>, transform_indices = @transform_5, window_bounds = array<i64: 18, 162>}, {transform_indices = @transform_6, window_bounds = array<i64: 1, 9, 162>}]} {
    %c0 = arith.constant 0 : index
    %c0_0 = arith.constant 0 : index
    %c0_1 = arith.constant 0 : index
    %0 = vector.load %arg1[%c0, %c0_0, %c0_1] : memref<1x1x1xf32, #tpu.memory_space<vmem>>, vector<1x1x1xf32>
    %1 = vector.shape_cast %0 : vector<1x1x1xf32> to vector<1x1xf32>
    %2 = math.cos %1 : vector<1x1xf32>
    %3 = math.sin %1 : vector<1x1xf32>
    %c0_2 = arith.constant 0 : index
    %c0_3 = arith.constant 0 : index
    %4 = vector.load %arg2[%c0_2, %c0_3] : memref<9x1xf32, #tpu.memory_space<vmem>>, vector<9x1xf32>
    %5 = vector.broadcast %2 : vector<1x1xf32> to vector<9x1xf32>
    %6 = arith.mulf %5, %4 : vector<9x1xf32>
    %c0_4 = arith.constant 0 : index
    %c0_5 = arith.constant 0 : index
    %7 = vector.load %arg3[%c0_4, %c0_5] : memref<9x1xf32, #tpu.memory_space<vmem>>, vector<9x1xf32>
    %8 = vector.broadcast %3 : vector<1x1xf32> to vector<9x1xf32>
    %9 = arith.mulf %8, %7 : vector<9x1xf32>
    %10 = arith.subf %6, %9 : vector<9x1xf32>
    %c0_6 = arith.constant 0 : index
    %c0_7 = arith.constant 0 : index
    %11 = vector.load %arg2[%c0_6, %c0_7] : memref<9x1xf32, #tpu.memory_space<vmem>>, vector<9x1xf32>
    %12 = vector.broadcast %3 : vector<1x1xf32> to vector<9x1xf32>
    %13 = arith.mulf %12, %11 : vector<9x1xf32>
    %c0_8 = arith.constant 0 : index
    %c0_9 = arith.constant 0 : index
    %14 = vector.load %arg3[%c0_8, %c0_9] : memref<9x1xf32, #tpu.memory_space<vmem>>, vector<9x1xf32>
    %15 = vector.broadcast %2 : vector<1x1xf32> to vector<9x1xf32>
    %16 = arith.mulf %15, %14 : vector<9x1xf32>
    %17 = arith.addf %13, %16 : vector<9x1xf32>
    %18 = arith.mulf %10, %10 : vector<9x1xf32>
    %19 = arith.mulf %17, %17 : vector<9x1xf32>
    %20 = arith.addf %18, %19 : vector<9x1xf32>
    %cst = arith.constant 1.000000e+00 : f32
    %21 = vector.broadcast %cst : f32 to vector<9x1xf32>
    %22 = arith.subf %20, %21 : vector<9x1xf32>
    %cst_10 = arith.constant 0.000000e+00 : f32
    %23 = vector.broadcast %cst_10 : f32 to vector<9x1xf32>
    %24 = arith.maximumf %22, %23 : vector<9x1xf32>
    %cst_11 = arith.constant 0.000000e+00 : f32
    %25 = vector.broadcast %cst_11 : f32 to vector<9x1xf32>
    %26 = arith.subf %25, %24 : vector<9x1xf32>
    %cst_12 = arith.constant 5.000000e+00 : f32
    %27 = vector.broadcast %cst_12 : f32 to vector<9x1xf32>
    %28 = arith.mulf %26, %27 : vector<9x1xf32>
    %29 = math.exp %28 : vector<9x1xf32>
    %c0_13 = arith.constant 0 : index
    %c0_14 = arith.constant 0 : index
    %30 = vector.load %arg4[%c0_13, %c0_14] : memref<1x18xf32, #tpu.memory_space<vmem>>, vector<1x18xf32>
    %31 = vector.broadcast %10 : vector<9x1xf32> to vector<9x18xf32>
    %32 = vector.broadcast %30 : vector<1x18xf32> to vector<9x18xf32>
    %33 = arith.mulf %31, %32 : vector<9x18xf32>
    %c0_15 = arith.constant 0 : index
    %c0_16 = arith.constant 0 : index
    %34 = vector.load %arg5[%c0_15, %c0_16] : memref<1x18xf32, #tpu.memory_space<vmem>>, vector<1x18xf32>
    %35 = vector.broadcast %17 : vector<9x1xf32> to vector<9x18xf32>
    %36 = vector.broadcast %34 : vector<1x18xf32> to vector<9x18xf32>
    %37 = arith.mulf %35, %36 : vector<9x18xf32>
    %38 = arith.addf %33, %37 : vector<9x18xf32>
    %39 = tpu.iota {dimensions = array<i32: 1>} : vector<9x18xi32>
    %c9_i32 = arith.constant 9 : i32
    %40 = vector.broadcast %c9_i32 : i32 to vector<9x18xi32>
    %41 = arith.cmpi slt, %39, %40 : vector<9x18xi32>
    %42 = math.cos %38 : vector<9x18xf32>
    %43 = math.sin %38 : vector<9x18xf32>
    %44 = arith.select %41, %42, %43 : vector<9x18xi1>, vector<9x18xf32>
    %45 = vector.broadcast %29 : vector<9x1xf32> to vector<9x18xf32>
    %46 = arith.mulf %44, %45 : vector<9x18xf32>
    %c0_17 = arith.constant 0 : index
    %c0_18 = arith.constant 0 : index
    %47 = vector.load %arg6[%c0_17, %c0_18] : memref<18x162xf32, #tpu.memory_space<vmem>>, vector<18x162xf32>
    %cst_19 = arith.constant dense<0.000000e+00> : vector<9x162xf32>
    %48 = tpu.matmul %46, %47, %cst_19 {dimension_numbers = #tpu.dot_dimension_numbers<[1], [0], [0], [1], [0, 0, 1, 1], [], []>} : vector<9x18xf32>, vector<18x162xf32>, vector<9x162xf32> -> vector<9x162xf32>
    %c0_20 = arith.constant 0 : index
    %c0_21 = arith.constant 0 : index
    %c0_22 = arith.constant 0 : index
    %49 = vector.load %arg7[%c0_20, %c0_21, %c0_22] : memref<1x9x162xf32, #tpu.memory_space<vmem>>, vector<1x9x162xf32>
    %50 = vector.shape_cast %49 : vector<1x9x162xf32> to vector<9x162xf32>
    %51 = vector.shape_cast %48 : vector<9x162xf32> to vector<1x9x162xf32>
    tpu.vector_store %arg7[%c0_20, %c0_21, %c0_22], %51 {strides = array<i32>} : memref<1x9x162xf32, #tpu.memory_space<vmem>>, vector<1x9x162xf32>,
    return
  }
  func.func @transform_0(%arg0: i32) -> (i32, i32, i32) {
    %c0_i32 = arith.constant 0 : i32
    %c0_i32_0 = arith.constant 0 : i32
    %c0_i32_1 = arith.constant 0 : i32
    return %arg0, %c0_i32, %c0_i32_0 : i32, i32, i32
  }
  func.func @transform_1(%arg0: i32) -> (i32, i32) {
    %c0_i32 = arith.constant 0 : i32
    %c0_i32_0 = arith.constant 0 : i32
    %c0_i32_1 = arith.constant 0 : i32
    return %c0_i32, %c0_i32_0 : i32, i32
  }
  func.func @transform_2(%arg0: i32) -> (i32, i32) {
    %c0_i32 = arith.constant 0 : i32
    %c0_i32_0 = arith.constant 0 : i32
    %c0_i32_1 = arith.constant 0 : i32
    return %c0_i32, %c0_i32_0 : i32, i32
  }
  func.func @transform_3(%arg0: i32) -> (i32, i32) {
    %c0_i32 = arith.constant 0 : i32
    %c0_i32_0 = arith.constant 0 : i32
    %c0_i32_1 = arith.constant 0 : i32
    return %c0_i32, %c0_i32_0 : i32, i32
  }
  func.func @transform_4(%arg0: i32) -> (i32, i32) {
    %c0_i32 = arith.constant 0 : i32
    %c0_i32_0 = arith.constant 0 : i32
    %c0_i32_1 = arith.constant 0 : i32
    return %c0_i32, %c0_i32_0 : i32, i32
  }
  func.func @transform_5(%arg0: i32) -> (i32, i32) {
    %c0_i32 = arith.constant 0 : i32
    %c0_i32_0 = arith.constant 0 : i32
    %c0_i32_1 = arith.constant 0 : i32
    return %c0_i32, %c0_i32_0 : i32, i32
  }
  func.func @transform_6(%arg0: i32) -> (i32, i32, i32) {
    %c0_i32 = arith.constant 0 : i32
    %c0_i32_0 = arith.constant 0 : i32
    %c0_i32_1 = arith.constant 0 : i32
    return %arg0, %c0_i32, %c0_i32_0 : i32, i32, i32
  }
}

module attributes {stable_mosaic.version = 11 : i64} {
  func.func @_stack_kernel(%arg0: i32, %arg1: memref<1x8x256xf32, #tpu.memory_space<vmem>>, %arg2: memref<1x3x256xf32, #tpu.memory_space<vmem>>, %arg3: memref<9x256xf32, #tpu.memory_space<vmem>>, %arg4: memref<9x256xf32, #tpu.memory_space<vmem>>, %arg5: memref<1x32x72xf32, #tpu.memory_space<vmem>>, %arg6: memref<32x1xf32, #tpu.memory_space<vmem>>, %arg7: memref<1x8x32x288xf32, #tpu.memory_space<vmem>>, %arg8: memref<8x32x1xf32, #tpu.memory_space<vmem>>, %arg9: memref<8x32x1xf32, #tpu.memory_space<vmem>>, %arg10: memref<1x3x256xf32, #tpu.memory_space<vmem>>, %arg11: memref<1x3x256xf32, #tpu.memory_space<vmem>>) attributes {dimension_semantics = [#tpu.dimension_semantics<parallel>], iteration_bounds = array<i64: 2>, scalar_prefetch = 0 : i64, scratch_operands = 0 : i64, tpu.core_type = #tpu.core_type<tc>, window_params = [{transform_indices = @transform_0, window_bounds = array<i64: 1, 8, 256>}, {transform_indices = @transform_1, window_bounds = array<i64: 1, 3, 256>}, {pipeline_mode = #tpu.pipeline_mode<synchronous>, transform_indices = @transform_2, window_bounds = array<i64: 9, 256>}, {pipeline_mode = #tpu.pipeline_mode<synchronous>, transform_indices = @transform_3, window_bounds = array<i64: 9, 256>}, {transform_indices = @transform_4, window_bounds = array<i64: 1, 32, 72>}, {pipeline_mode = #tpu.pipeline_mode<synchronous>, transform_indices = @transform_5, window_bounds = array<i64: 32, 1>}, {transform_indices = @transform_6, window_bounds = array<i64: 1, 8, 32, 288>}, {pipeline_mode = #tpu.pipeline_mode<synchronous>, transform_indices = @transform_7, window_bounds = array<i64: 8, 32, 1>}, {pipeline_mode = #tpu.pipeline_mode<synchronous>, transform_indices = @transform_8, window_bounds = array<i64: 8, 32, 1>}, {transform_indices = @transform_9, window_bounds = array<i64: 1, 3, 256>}, {transform_indices = @transform_10, window_bounds = array<i64: 1, 3, 256>}]} {
    %c0 = arith.constant 0 : index
    %c0_0 = arith.constant 0 : index
    %c0_1 = arith.constant 0 : index
    %0 = vector.load %arg5[%c0, %c0_0, %c0_1] : memref<1x32x72xf32, #tpu.memory_space<vmem>>, vector<1x32x72xf32>
    %1 = vector.shape_cast %0 : vector<1x32x72xf32> to vector<32x72xf32>
    %c0_2 = arith.constant 0 : index
    %c0_3 = arith.constant 0 : index
    %c0_4 = arith.constant 0 : index
    %2 = vector.load %arg1[%c0_2, %c0_3, %c0_4] : memref<1x8x256xf32, #tpu.memory_space<vmem>>, vector<1x8x256xf32>
    %3 = vector.shape_cast %2 : vector<1x8x256xf32> to vector<8x256xf32>
    %c17_i32 = arith.constant 17 : i32
    %4 = tpu.dynamic_rotate %3 by %c17_i32 dim 1 : vector<8x256xf32>, i32 -> vector<8x256xf32>
    %c0_5 = arith.constant 0 : index
    %c0_6 = arith.constant 0 : index
    %5 = vector.load %arg3[%c0_5, %c0_6] : memref<9x256xf32, #tpu.memory_space<vmem>>, vector<1x256xf32>
    %6 = vector.broadcast %5 : vector<1x256xf32> to vector<8x256xf32>
    %7 = arith.mulf %6, %4 : vector<8x256xf32>
    %c16_i32 = arith.constant 16 : i32
    %8 = tpu.dynamic_rotate %3 by %c16_i32 dim 1 : vector<8x256xf32>, i32 -> vector<8x256xf32>
    %c1 = arith.constant 1 : index
    %c0_7 = arith.constant 0 : index
    %9 = vector.load %arg3[%c1, %c0_7] : memref<9x256xf32, #tpu.memory_space<vmem>>, vector<1x256xf32>
    %10 = vector.broadcast %9 : vector<1x256xf32> to vector<8x256xf32>
    %11 = arith.mulf %10, %8 : vector<8x256xf32>
    %c15_i32 = arith.constant 15 : i32
    %12 = tpu.dynamic_rotate %3 by %c15_i32 dim 1 : vector<8x256xf32>, i32 -> vector<8x256xf32>
    %c2 = arith.constant 2 : index
    %c0_8 = arith.constant 0 : index
    %13 = vector.load %arg3[%c2, %c0_8] : memref<9x256xf32, #tpu.memory_space<vmem>>, vector<1x256xf32>
    %14 = vector.broadcast %13 : vector<1x256xf32> to vector<8x256xf32>
    %15 = arith.mulf %14, %12 : vector<8x256xf32>
    %c1_i32 = arith.constant 1 : i32
    %16 = tpu.dynamic_rotate %3 by %c1_i32 dim 1 : vector<8x256xf32>, i32 -> vector<8x256xf32>
    %c3 = arith.constant 3 : index
    %c0_9 = arith.constant 0 : index
    %17 = vector.load %arg3[%c3, %c0_9] : memref<9x256xf32, #tpu.memory_space<vmem>>, vector<1x256xf32>
    %18 = vector.broadcast %17 : vector<1x256xf32> to vector<8x256xf32>
    %19 = arith.mulf %18, %16 : vector<8x256xf32>
    %c4 = arith.constant 4 : index
    %c0_10 = arith.constant 0 : index
    %20 = vector.load %arg3[%c4, %c0_10] : memref<9x256xf32, #tpu.memory_space<vmem>>, vector<1x256xf32>
    %21 = vector.broadcast %20 : vector<1x256xf32> to vector<8x256xf32>
    %22 = arith.mulf %21, %3 : vector<8x256xf32>
    %c255_i32 = arith.constant 255 : i32
    %23 = tpu.dynamic_rotate %3 by %c255_i32 dim 1 : vector<8x256xf32>, i32 -> vector<8x256xf32>
    %c5 = arith.constant 5 : index
    %c0_11 = arith.constant 0 : index
    %24 = vector.load %arg3[%c5, %c0_11] : memref<9x256xf32, #tpu.memory_space<vmem>>, vector<1x256xf32>
    %25 = vector.broadcast %24 : vector<1x256xf32> to vector<8x256xf32>
    %26 = arith.mulf %25, %23 : vector<8x256xf32>
    %c241_i32 = arith.constant 241 : i32
    %27 = tpu.dynamic_rotate %3 by %c241_i32 dim 1 : vector<8x256xf32>, i32 -> vector<8x256xf32>
    %c6 = arith.constant 6 : index
    %c0_12 = arith.constant 0 : index
    %28 = vector.load %arg3[%c6, %c0_12] : memref<9x256xf32, #tpu.memory_space<vmem>>, vector<1x256xf32>
    %29 = vector.broadcast %28 : vector<1x256xf32> to vector<8x256xf32>
    %30 = arith.mulf %29, %27 : vector<8x256xf32>
    %c240_i32 = arith.constant 240 : i32
    %31 = tpu.dynamic_rotate %3 by %c240_i32 dim 1 : vector<8x256xf32>, i32 -> vector<8x256xf32>
    %c7 = arith.constant 7 : index
    %c0_13 = arith.constant 0 : index
    %32 = vector.load %arg3[%c7, %c0_13] : memref<9x256xf32, #tpu.memory_space<vmem>>, vector<1x256xf32>
    %33 = vector.broadcast %32 : vector<1x256xf32> to vector<8x256xf32>
    %34 = arith.mulf %33, %31 : vector<8x256xf32>
    %c239_i32 = arith.constant 239 : i32
    %35 = tpu.dynamic_rotate %3 by %c239_i32 dim 1 : vector<8x256xf32>, i32 -> vector<8x256xf32>
    %c8 = arith.constant 8 : index
    %c0_14 = arith.constant 0 : index
    %36 = vector.load %arg3[%c8, %c0_14] : memref<9x256xf32, #tpu.memory_space<vmem>>, vector<1x256xf32>
    %37 = vector.broadcast %36 : vector<1x256xf32> to vector<8x256xf32>
    %38 = arith.mulf %37, %35 : vector<8x256xf32>
    %39 = tpu.concatenate %7, %11, %15, %19, %22, %26, %30, %34, %38 in 0 : vector<8x256xf32>, vector<8x256xf32>, vector<8x256xf32>, vector<8x256xf32>, vector<8x256xf32>, vector<8x256xf32>, vector<8x256xf32>, vector<8x256xf32>, vector<8x256xf32> -> vector<72x256xf32>
    %cst = arith.constant dense<0.000000e+00> : vector<32x256xf32>
    %40 = tpu.matmul %1, %39, %cst {dimension_numbers = #tpu.dot_dimension_numbers<[1], [0], [0], [1], [0, 0, 1, 1], [], []>} : vector<32x72xf32>, vector<72x256xf32>, vector<32x256xf32> -> vector<32x256xf32>
    %c0_15 = arith.constant 0 : index
    %c0_16 = arith.constant 0 : index
    %41 = vector.load %arg6[%c0_15, %c0_16] : memref<32x1xf32, #tpu.memory_space<vmem>>, vector<32x1xf32>
    %42 = vector.broadcast %41 : vector<32x1xf32> to vector<32x256xf32>
    %43 = arith.addf %40, %42 : vector<32x256xf32>
    %c0_17 = arith.constant 0 : index
    %c0_18 = arith.constant 0 : index
    %c0_19 = arith.constant 0 : index
    %c0_20 = arith.constant 0 : index
    %44 = vector.load %arg7[%c0_17, %c0_18, %c0_19, %c0_20] : memref<1x8x32x288xf32, #tpu.memory_space<vmem>>, vector<1x1x32x288xf32>
    %45 = vector.shape_cast %44 : vector<1x1x32x288xf32> to vector<32x288xf32>
    %c17_i32_21 = arith.constant 17 : i32
    %46 = tpu.dynamic_rotate %43 by %c17_i32_21 dim 1 : vector<32x256xf32>, i32 -> vector<32x256xf32>
    %c0_22 = arith.constant 0 : index
    %c0_23 = arith.constant 0 : index
    %47 = vector.load %arg4[%c0_22, %c0_23] : memref<9x256xf32, #tpu.memory_space<vmem>>, vector<1x256xf32>
    %48 = vector.broadcast %47 : vector<1x256xf32> to vector<32x256xf32>
    %49 = arith.mulf %48, %46 : vector<32x256xf32>
    %c16_i32_24 = arith.constant 16 : i32
    %50 = tpu.dynamic_rotate %43 by %c16_i32_24 dim 1 : vector<32x256xf32>, i32 -> vector<32x256xf32>
    %c1_25 = arith.constant 1 : index
    %c0_26 = arith.constant 0 : index
    %51 = vector.load %arg4[%c1_25, %c0_26] : memref<9x256xf32, #tpu.memory_space<vmem>>, vector<1x256xf32>
    %52 = vector.broadcast %51 : vector<1x256xf32> to vector<32x256xf32>
    %53 = arith.mulf %52, %50 : vector<32x256xf32>
    %c15_i32_27 = arith.constant 15 : i32
    %54 = tpu.dynamic_rotate %43 by %c15_i32_27 dim 1 : vector<32x256xf32>, i32 -> vector<32x256xf32>
    %c2_28 = arith.constant 2 : index
    %c0_29 = arith.constant 0 : index
    %55 = vector.load %arg4[%c2_28, %c0_29] : memref<9x256xf32, #tpu.memory_space<vmem>>, vector<1x256xf32>
    %56 = vector.broadcast %55 : vector<1x256xf32> to vector<32x256xf32>
    %57 = arith.mulf %56, %54 : vector<32x256xf32>
    %c1_i32_30 = arith.constant 1 : i32
    %58 = tpu.dynamic_rotate %43 by %c1_i32_30 dim 1 : vector<32x256xf32>, i32 -> vector<32x256xf32>
    %c3_31 = arith.constant 3 : index
    %c0_32 = arith.constant 0 : index
    %59 = vector.load %arg4[%c3_31, %c0_32] : memref<9x256xf32, #tpu.memory_space<vmem>>, vector<1x256xf32>
    %60 = vector.broadcast %59 : vector<1x256xf32> to vector<32x256xf32>
    %61 = arith.mulf %60, %58 : vector<32x256xf32>
    %c4_33 = arith.constant 4 : index
    %c0_34 = arith.constant 0 : index
    %62 = vector.load %arg4[%c4_33, %c0_34] : memref<9x256xf32, #tpu.memory_space<vmem>>, vector<1x256xf32>
    %63 = vector.broadcast %62 : vector<1x256xf32> to vector<32x256xf32>
    %64 = arith.mulf %63, %43 : vector<32x256xf32>
    %c255_i32_35 = arith.constant 255 : i32
    %65 = tpu.dynamic_rotate %43 by %c255_i32_35 dim 1 : vector<32x256xf32>, i32 -> vector<32x256xf32>
    %c5_36 = arith.constant 5 : index
    %c0_37 = arith.constant 0 : index
    %66 = vector.load %arg4[%c5_36, %c0_37] : memref<9x256xf32, #tpu.memory_space<vmem>>, vector<1x256xf32>
    %67 = vector.broadcast %66 : vector<1x256xf32> to vector<32x256xf32>
    %68 = arith.mulf %67, %65 : vector<32x256xf32>
    %c241_i32_38 = arith.constant 241 : i32
    %69 = tpu.dynamic_rotate %43 by %c241_i32_38 dim 1 : vector<32x256xf32>, i32 -> vector<32x256xf32>
    %c6_39 = arith.constant 6 : index
    %c0_40 = arith.constant 0 : index
    %70 = vector.load %arg4[%c6_39, %c0_40] : memref<9x256xf32, #tpu.memory_space<vmem>>, vector<1x256xf32>
    %71 = vector.broadcast %70 : vector<1x256xf32> to vector<32x256xf32>
    %72 = arith.mulf %71, %69 : vector<32x256xf32>
    %c240_i32_41 = arith.constant 240 : i32
    %73 = tpu.dynamic_rotate %43 by %c240_i32_41 dim 1 : vector<32x256xf32>, i32 -> vector<32x256xf32>
    %c7_42 = arith.constant 7 : index
    %c0_43 = arith.constant 0 : index
    %74 = vector.load %arg4[%c7_42, %c0_43] : memref<9x256xf32, #tpu.memory_space<vmem>>, vector<1x256xf32>
    %75 = vector.broadcast %74 : vector<1x256xf32> to vector<32x256xf32>
    %76 = arith.mulf %75, %73 : vector<32x256xf32>
    %c239_i32_44 = arith.constant 239 : i32
    %77 = tpu.dynamic_rotate %43 by %c239_i32_44 dim 1 : vector<32x256xf32>, i32 -> vector<32x256xf32>
    %c8_45 = arith.constant 8 : index
    %c0_46 = arith.constant 0 : index
    %78 = vector.load %arg4[%c8_45, %c0_46] : memref<9x256xf32, #tpu.memory_space<vmem>>, vector<1x256xf32>
    %79 = vector.broadcast %78 : vector<1x256xf32> to vector<32x256xf32>
    %80 = arith.mulf %79, %77 : vector<32x256xf32>
    %81 = tpu.concatenate %49, %53, %57, %61, %64, %68, %72, %76, %80 in 0 : vector<32x256xf32>, vector<32x256xf32>, vector<32x256xf32>, vector<32x256xf32>, vector<32x256xf32>, vector<32x256xf32>, vector<32x256xf32>, vector<32x256xf32>, vector<32x256xf32> -> vector<288x256xf32>
    %cst_47 = arith.constant dense<0.000000e+00> : vector<32x256xf32>
    %82 = tpu.matmul %45, %81, %cst_47 {dimension_numbers = #tpu.dot_dimension_numbers<[1], [0], [0], [1], [0, 0, 1, 1], [], []>} : vector<32x288xf32>, vector<288x256xf32>, vector<32x256xf32> -> vector<32x256xf32>
    %c0_48 = arith.constant 0 : index
    %c0_49 = arith.constant 0 : index
    %c0_50 = arith.constant 0 : index
    %83 = vector.load %arg8[%c0_48, %c0_49, %c0_50] : memref<8x32x1xf32, #tpu.memory_space<vmem>>, vector<1x32x1xf32>
    %84 = vector.shape_cast %83 : vector<1x32x1xf32> to vector<32x1xf32>
    %85 = vector.broadcast %84 : vector<32x1xf32> to vector<32x256xf32>
    %86 = arith.mulf %82, %85 : vector<32x256xf32>
    %c0_51 = arith.constant 0 : index
    %c0_52 = arith.constant 0 : index
    %c0_53 = arith.constant 0 : index
    %87 = vector.load %arg9[%c0_51, %c0_52, %c0_53] : memref<8x32x1xf32, #tpu.memory_space<vmem>>, vector<1x32x1xf32>
    %88 = vector.shape_cast %87 : vector<1x32x1xf32> to vector<32x1xf32>
    %89 = vector.broadcast %88 : vector<32x1xf32> to vector<32x256xf32>
    %90 = arith.addf %86, %89 : vector<32x256xf32>
    %cst_54 = arith.constant 0.000000e+00 : f32
    %91 = vector.broadcast %cst_54 : f32 to vector<32x256xf32>
    %92 = arith.maximumf %90, %91 : vector<32x256xf32>
    %c0_55 = arith.constant 0 : index
    %c1_56 = arith.constant 1 : index
    %c0_57 = arith.constant 0 : index
    %c0_58 = arith.constant 0 : index
    %93 = vector.load %arg7[%c0_55, %c1_56, %c0_57, %c0_58] : memref<1x8x32x288xf32, #tpu.memory_space<vmem>>, vector<1x1x32x288xf32>
    %94 = vector.shape_cast %93 : vector<1x1x32x288xf32> to vector<32x288xf32>
    %c17_i32_59 = arith.constant 17 : i32
    %95 = tpu.dynamic_rotate %92 by %c17_i32_59 dim 1 : vector<32x256xf32>, i32 -> vector<32x256xf32>
    %c0_60 = arith.constant 0 : index
    %c0_61 = arith.constant 0 : index
    %96 = vector.load %arg4[%c0_60, %c0_61] : memref<9x256xf32, #tpu.memory_space<vmem>>, vector<1x256xf32>
    %97 = vector.broadcast %96 : vector<1x256xf32> to vector<32x256xf32>
    %98 = arith.mulf %97, %95 : vector<32x256xf32>
    %c16_i32_62 = arith.constant 16 : i32
    %99 = tpu.dynamic_rotate %92 by %c16_i32_62 dim 1 : vector<32x256xf32>, i32 -> vector<32x256xf32>
    %c1_63 = arith.constant 1 : index
    %c0_64 = arith.constant 0 : index
    %100 = vector.load %arg4[%c1_63, %c0_64] : memref<9x256xf32, #tpu.memory_space<vmem>>, vector<1x256xf32>
    %101 = vector.broadcast %100 : vector<1x256xf32> to vector<32x256xf32>
    %102 = arith.mulf %101, %99 : vector<32x256xf32>
    %c15_i32_65 = arith.constant 15 : i32
    %103 = tpu.dynamic_rotate %92 by %c15_i32_65 dim 1 : vector<32x256xf32>, i32 -> vector<32x256xf32>
    %c2_66 = arith.constant 2 : index
    %c0_67 = arith.constant 0 : index
    %104 = vector.load %arg4[%c2_66, %c0_67] : memref<9x256xf32, #tpu.memory_space<vmem>>, vector<1x256xf32>
    %105 = vector.broadcast %104 : vector<1x256xf32> to vector<32x256xf32>
    %106 = arith.mulf %105, %103 : vector<32x256xf32>
    %c1_i32_68 = arith.constant 1 : i32
    %107 = tpu.dynamic_rotate %92 by %c1_i32_68 dim 1 : vector<32x256xf32>, i32 -> vector<32x256xf32>
    %c3_69 = arith.constant 3 : index
    %c0_70 = arith.constant 0 : index
    %108 = vector.load %arg4[%c3_69, %c0_70] : memref<9x256xf32, #tpu.memory_space<vmem>>, vector<1x256xf32>
    %109 = vector.broadcast %108 : vector<1x256xf32> to vector<32x256xf32>
    %110 = arith.mulf %109, %107 : vector<32x256xf32>
    %c4_71 = arith.constant 4 : index
    %c0_72 = arith.constant 0 : index
    %111 = vector.load %arg4[%c4_71, %c0_72] : memref<9x256xf32, #tpu.memory_space<vmem>>, vector<1x256xf32>
    %112 = vector.broadcast %111 : vector<1x256xf32> to vector<32x256xf32>
    %113 = arith.mulf %112, %92 : vector<32x256xf32>
    %c255_i32_73 = arith.constant 255 : i32
    %114 = tpu.dynamic_rotate %92 by %c255_i32_73 dim 1 : vector<32x256xf32>, i32 -> vector<32x256xf32>
    %c5_74 = arith.constant 5 : index
    %c0_75 = arith.constant 0 : index
    %115 = vector.load %arg4[%c5_74, %c0_75] : memref<9x256xf32, #tpu.memory_space<vmem>>, vector<1x256xf32>
    %116 = vector.broadcast %115 : vector<1x256xf32> to vector<32x256xf32>
    %117 = arith.mulf %116, %114 : vector<32x256xf32>
    %c241_i32_76 = arith.constant 241 : i32
    %118 = tpu.dynamic_rotate %92 by %c241_i32_76 dim 1 : vector<32x256xf32>, i32 -> vector<32x256xf32>
    %c6_77 = arith.constant 6 : index
    %c0_78 = arith.constant 0 : index
    %119 = vector.load %arg4[%c6_77, %c0_78] : memref<9x256xf32, #tpu.memory_space<vmem>>, vector<1x256xf32>
    %120 = vector.broadcast %119 : vector<1x256xf32> to vector<32x256xf32>
    %121 = arith.mulf %120, %118 : vector<32x256xf32>
    %c240_i32_79 = arith.constant 240 : i32
    %122 = tpu.dynamic_rotate %92 by %c240_i32_79 dim 1 : vector<32x256xf32>, i32 -> vector<32x256xf32>
    %c7_80 = arith.constant 7 : index
    %c0_81 = arith.constant 0 : index
    %123 = vector.load %arg4[%c7_80, %c0_81] : memref<9x256xf32, #tpu.memory_space<vmem>>, vector<1x256xf32>
    %124 = vector.broadcast %123 : vector<1x256xf32> to vector<32x256xf32>
    %125 = arith.mulf %124, %122 : vector<32x256xf32>
    %c239_i32_82 = arith.constant 239 : i32
    %126 = tpu.dynamic_rotate %92 by %c239_i32_82 dim 1 : vector<32x256xf32>, i32 -> vector<32x256xf32>
    %c8_83 = arith.constant 8 : index
    %c0_84 = arith.constant 0 : index
    %127 = vector.load %arg4[%c8_83, %c0_84] : memref<9x256xf32, #tpu.memory_space<vmem>>, vector<1x256xf32>
    %128 = vector.broadcast %127 : vector<1x256xf32> to vector<32x256xf32>
    %129 = arith.mulf %128, %126 : vector<32x256xf32>
    %130 = tpu.concatenate %98, %102, %106, %110, %113, %117, %121, %125, %129 in 0 : vector<32x256xf32>, vector<32x256xf32>, vector<32x256xf32>, vector<32x256xf32>, vector<32x256xf32>, vector<32x256xf32>, vector<32x256xf32>, vector<32x256xf32>, vector<32x256xf32> -> vector<288x256xf32>
    %cst_85 = arith.constant dense<0.000000e+00> : vector<32x256xf32>
    %131 = tpu.matmul %94, %130, %cst_85 {dimension_numbers = #tpu.dot_dimension_numbers<[1], [0], [0], [1], [0, 0, 1, 1], [], []>} : vector<32x288xf32>, vector<288x256xf32>, vector<32x256xf32> -> vector<32x256xf32>
    %c1_86 = arith.constant 1 : index
    %c0_87 = arith.constant 0 : index
    %c0_88 = arith.constant 0 : index
    %132 = vector.load %arg8[%c1_86, %c0_87, %c0_88] : memref<8x32x1xf32, #tpu.memory_space<vmem>>, vector<1x32x1xf32>
    %133 = vector.shape_cast %132 : vector<1x32x1xf32> to vector<32x1xf32>
    %134 = vector.broadcast %133 : vector<32x1xf32> to vector<32x256xf32>
    %135 = arith.mulf %131, %134 : vector<32x256xf32>
    %c1_89 = arith.constant 1 : index
    %c0_90 = arith.constant 0 : index
    %c0_91 = arith.constant 0 : index
    %136 = vector.load %arg9[%c1_89, %c0_90, %c0_91] : memref<8x32x1xf32, #tpu.memory_space<vmem>>, vector<1x32x1xf32>
    %137 = vector.shape_cast %136 : vector<1x32x1xf32> to vector<32x1xf32>
    %138 = vector.broadcast %137 : vector<32x1xf32> to vector<32x256xf32>
    %139 = arith.addf %135, %138 : vector<32x256xf32>
    %cst_92 = arith.constant 1.000000e-01 : f32
    %140 = vector.broadcast %cst_92 : f32 to vector<32x256xf32>
    %141 = arith.mulf %139, %140 : vector<32x256xf32>
    %142 = arith.addf %141, %43 : vector<32x256xf32>
    %c0_93 = arith.constant 0 : index
    %c2_94 = arith.constant 2 : index
    %c0_95 = arith.constant 0 : index
    %c0_96 = arith.constant 0 : index
    %143 = vector.load %arg7[%c0_93, %c2_94, %c0_95, %c0_96] : memref<1x8x32x288xf32, #tpu.memory_space<vmem>>, vector<1x1x32x288xf32>
    %144 = vector.shape_cast %143 : vector<1x1x32x288xf32> to vector<32x288xf32>
    %c17_i32_97 = arith.constant 17 : i32
    %145 = tpu.dynamic_rotate %142 by %c17_i32_97 dim 1 : vector<32x256xf32>, i32 -> vector<32x256xf32>
    %c0_98 = arith.constant 0 : index
    %c0_99 = arith.constant 0 : index
    %146 = vector.load %arg4[%c0_98, %c0_99] : memref<9x256xf32, #tpu.memory_space<vmem>>, vector<1x256xf32>
    %147 = vector.broadcast %146 : vector<1x256xf32> to vector<32x256xf32>
    %148 = arith.mulf %147, %145 : vector<32x256xf32>
    %c16_i32_100 = arith.constant 16 : i32
    %149 = tpu.dynamic_rotate %142 by %c16_i32_100 dim 1 : vector<32x256xf32>, i32 -> vector<32x256xf32>
    %c1_101 = arith.constant 1 : index
    %c0_102 = arith.constant 0 : index
    %150 = vector.load %arg4[%c1_101, %c0_102] : memref<9x256xf32, #tpu.memory_space<vmem>>, vector<1x256xf32>
    %151 = vector.broadcast %150 : vector<1x256xf32> to vector<32x256xf32>
    %152 = arith.mulf %151, %149 : vector<32x256xf32>
    %c15_i32_103 = arith.constant 15 : i32
    %153 = tpu.dynamic_rotate %142 by %c15_i32_103 dim 1 : vector<32x256xf32>, i32 -> vector<32x256xf32>
    %c2_104 = arith.constant 2 : index
    %c0_105 = arith.constant 0 : index
    %154 = vector.load %arg4[%c2_104, %c0_105] : memref<9x256xf32, #tpu.memory_space<vmem>>, vector<1x256xf32>
    %155 = vector.broadcast %154 : vector<1x256xf32> to vector<32x256xf32>
    %156 = arith.mulf %155, %153 : vector<32x256xf32>
    %c1_i32_106 = arith.constant 1 : i32
    %157 = tpu.dynamic_rotate %142 by %c1_i32_106 dim 1 : vector<32x256xf32>, i32 -> vector<32x256xf32>
    %c3_107 = arith.constant 3 : index
    %c0_108 = arith.constant 0 : index
    %158 = vector.load %arg4[%c3_107, %c0_108] : memref<9x256xf32, #tpu.memory_space<vmem>>, vector<1x256xf32>
    %159 = vector.broadcast %158 : vector<1x256xf32> to vector<32x256xf32>
    %160 = arith.mulf %159, %157 : vector<32x256xf32>
    %c4_109 = arith.constant 4 : index
    %c0_110 = arith.constant 0 : index
    %161 = vector.load %arg4[%c4_109, %c0_110] : memref<9x256xf32, #tpu.memory_space<vmem>>, vector<1x256xf32>
    %162 = vector.broadcast %161 : vector<1x256xf32> to vector<32x256xf32>
    %163 = arith.mulf %162, %142 : vector<32x256xf32>
    %c255_i32_111 = arith.constant 255 : i32
    %164 = tpu.dynamic_rotate %142 by %c255_i32_111 dim 1 : vector<32x256xf32>, i32 -> vector<32x256xf32>
    %c5_112 = arith.constant 5 : index
    %c0_113 = arith.constant 0 : index
    %165 = vector.load %arg4[%c5_112, %c0_113] : memref<9x256xf32, #tpu.memory_space<vmem>>, vector<1x256xf32>
    %166 = vector.broadcast %165 : vector<1x256xf32> to vector<32x256xf32>
    %167 = arith.mulf %166, %164 : vector<32x256xf32>
    %c241_i32_114 = arith.constant 241 : i32
    %168 = tpu.dynamic_rotate %142 by %c241_i32_114 dim 1 : vector<32x256xf32>, i32 -> vector<32x256xf32>
    %c6_115 = arith.constant 6 : index
    %c0_116 = arith.constant 0 : index
    %169 = vector.load %arg4[%c6_115, %c0_116] : memref<9x256xf32, #tpu.memory_space<vmem>>, vector<1x256xf32>
    %170 = vector.broadcast %169 : vector<1x256xf32> to vector<32x256xf32>
    %171 = arith.mulf %170, %168 : vector<32x256xf32>
    %c240_i32_117 = arith.constant 240 : i32
    %172 = tpu.dynamic_rotate %142 by %c240_i32_117 dim 1 : vector<32x256xf32>, i32 -> vector<32x256xf32>
    %c7_118 = arith.constant 7 : index
    %c0_119 = arith.constant 0 : index
    %173 = vector.load %arg4[%c7_118, %c0_119] : memref<9x256xf32, #tpu.memory_space<vmem>>, vector<1x256xf32>
    %174 = vector.broadcast %173 : vector<1x256xf32> to vector<32x256xf32>
    %175 = arith.mulf %174, %172 : vector<32x256xf32>
    %c239_i32_120 = arith.constant 239 : i32
    %176 = tpu.dynamic_rotate %142 by %c239_i32_120 dim 1 : vector<32x256xf32>, i32 -> vector<32x256xf32>
    %c8_121 = arith.constant 8 : index
    %c0_122 = arith.constant 0 : index
    %177 = vector.load %arg4[%c8_121, %c0_122] : memref<9x256xf32, #tpu.memory_space<vmem>>, vector<1x256xf32>
    %178 = vector.broadcast %177 : vector<1x256xf32> to vector<32x256xf32>
    %179 = arith.mulf %178, %176 : vector<32x256xf32>
    %180 = tpu.concatenate %148, %152, %156, %160, %163, %167, %171, %175, %179 in 0 : vector<32x256xf32>, vector<32x256xf32>, vector<32x256xf32>, vector<32x256xf32>, vector<32x256xf32>, vector<32x256xf32>, vector<32x256xf32>, vector<32x256xf32>, vector<32x256xf32> -> vector<288x256xf32>
    %cst_123 = arith.constant dense<0.000000e+00> : vector<32x256xf32>
    %181 = tpu.matmul %144, %180, %cst_123 {dimension_numbers = #tpu.dot_dimension_numbers<[1], [0], [0], [1], [0, 0, 1, 1], [], []>} : vector<32x288xf32>, vector<288x256xf32>, vector<32x256xf32> -> vector<32x256xf32>
    %c2_124 = arith.constant 2 : index
    %c0_125 = arith.constant 0 : index
    %c0_126 = arith.constant 0 : index
    %182 = vector.load %arg8[%c2_124, %c0_125, %c0_126] : memref<8x32x1xf32, #tpu.memory_space<vmem>>, vector<1x32x1xf32>
    %183 = vector.shape_cast %182 : vector<1x32x1xf32> to vector<32x1xf32>
    %184 = vector.broadcast %183 : vector<32x1xf32> to vector<32x256xf32>
    %185 = arith.mulf %181, %184 : vector<32x256xf32>
    %c2_127 = arith.constant 2 : index
    %c0_128 = arith.constant 0 : index
    %c0_129 = arith.constant 0 : index
    %186 = vector.load %arg9[%c2_127, %c0_128, %c0_129] : memref<8x32x1xf32, #tpu.memory_space<vmem>>, vector<1x32x1xf32>
    %187 = vector.shape_cast %186 : vector<1x32x1xf32> to vector<32x1xf32>
    %188 = vector.broadcast %187 : vector<32x1xf32> to vector<32x256xf32>
    %189 = arith.addf %185, %188 : vector<32x256xf32>
    %cst_130 = arith.constant 0.000000e+00 : f32
    %190 = vector.broadcast %cst_130 : f32 to vector<32x256xf32>
    %191 = arith.maximumf %189, %190 : vector<32x256xf32>
    %c0_131 = arith.constant 0 : index
    %c3_132 = arith.constant 3 : index
    %c0_133 = arith.constant 0 : index
    %c0_134 = arith.constant 0 : index
    %192 = vector.load %arg7[%c0_131, %c3_132, %c0_133, %c0_134] : memref<1x8x32x288xf32, #tpu.memory_space<vmem>>, vector<1x1x32x288xf32>
    %193 = vector.shape_cast %192 : vector<1x1x32x288xf32> to vector<32x288xf32>
    %c17_i32_135 = arith.constant 17 : i32
    %194 = tpu.dynamic_rotate %191 by %c17_i32_135 dim 1 : vector<32x256xf32>, i32 -> vector<32x256xf32>
    %c0_136 = arith.constant 0 : index
    %c0_137 = arith.constant 0 : index
    %195 = vector.load %arg4[%c0_136, %c0_137] : memref<9x256xf32, #tpu.memory_space<vmem>>, vector<1x256xf32>
    %196 = vector.broadcast %195 : vector<1x256xf32> to vector<32x256xf32>
    %197 = arith.mulf %196, %194 : vector<32x256xf32>
    %c16_i32_138 = arith.constant 16 : i32
    %198 = tpu.dynamic_rotate %191 by %c16_i32_138 dim 1 : vector<32x256xf32>, i32 -> vector<32x256xf32>
    %c1_139 = arith.constant 1 : index
    %c0_140 = arith.constant 0 : index
    %199 = vector.load %arg4[%c1_139, %c0_140] : memref<9x256xf32, #tpu.memory_space<vmem>>, vector<1x256xf32>
    %200 = vector.broadcast %199 : vector<1x256xf32> to vector<32x256xf32>
    %201 = arith.mulf %200, %198 : vector<32x256xf32>
    %c15_i32_141 = arith.constant 15 : i32
    %202 = tpu.dynamic_rotate %191 by %c15_i32_141 dim 1 : vector<32x256xf32>, i32 -> vector<32x256xf32>
    %c2_142 = arith.constant 2 : index
    %c0_143 = arith.constant 0 : index
    %203 = vector.load %arg4[%c2_142, %c0_143] : memref<9x256xf32, #tpu.memory_space<vmem>>, vector<1x256xf32>
    %204 = vector.broadcast %203 : vector<1x256xf32> to vector<32x256xf32>
    %205 = arith.mulf %204, %202 : vector<32x256xf32>
    %c1_i32_144 = arith.constant 1 : i32
    %206 = tpu.dynamic_rotate %191 by %c1_i32_144 dim 1 : vector<32x256xf32>, i32 -> vector<32x256xf32>
    %c3_145 = arith.constant 3 : index
    %c0_146 = arith.constant 0 : index
    %207 = vector.load %arg4[%c3_145, %c0_146] : memref<9x256xf32, #tpu.memory_space<vmem>>, vector<1x256xf32>
    %208 = vector.broadcast %207 : vector<1x256xf32> to vector<32x256xf32>
    %209 = arith.mulf %208, %206 : vector<32x256xf32>
    %c4_147 = arith.constant 4 : index
    %c0_148 = arith.constant 0 : index
    %210 = vector.load %arg4[%c4_147, %c0_148] : memref<9x256xf32, #tpu.memory_space<vmem>>, vector<1x256xf32>
    %211 = vector.broadcast %210 : vector<1x256xf32> to vector<32x256xf32>
    %212 = arith.mulf %211, %191 : vector<32x256xf32>
    %c255_i32_149 = arith.constant 255 : i32
    %213 = tpu.dynamic_rotate %191 by %c255_i32_149 dim 1 : vector<32x256xf32>, i32 -> vector<32x256xf32>
    %c5_150 = arith.constant 5 : index
    %c0_151 = arith.constant 0 : index
    %214 = vector.load %arg4[%c5_150, %c0_151] : memref<9x256xf32, #tpu.memory_space<vmem>>, vector<1x256xf32>
    %215 = vector.broadcast %214 : vector<1x256xf32> to vector<32x256xf32>
    %216 = arith.mulf %215, %213 : vector<32x256xf32>
    %c241_i32_152 = arith.constant 241 : i32
    %217 = tpu.dynamic_rotate %191 by %c241_i32_152 dim 1 : vector<32x256xf32>, i32 -> vector<32x256xf32>
    %c6_153 = arith.constant 6 : index
    %c0_154 = arith.constant 0 : index
    %218 = vector.load %arg4[%c6_153, %c0_154] : memref<9x256xf32, #tpu.memory_space<vmem>>, vector<1x256xf32>
    %219 = vector.broadcast %218 : vector<1x256xf32> to vector<32x256xf32>
    %220 = arith.mulf %219, %217 : vector<32x256xf32>
    %c240_i32_155 = arith.constant 240 : i32
    %221 = tpu.dynamic_rotate %191 by %c240_i32_155 dim 1 : vector<32x256xf32>, i32 -> vector<32x256xf32>
    %c7_156 = arith.constant 7 : index
    %c0_157 = arith.constant 0 : index
    %222 = vector.load %arg4[%c7_156, %c0_157] : memref<9x256xf32, #tpu.memory_space<vmem>>, vector<1x256xf32>
    %223 = vector.broadcast %222 : vector<1x256xf32> to vector<32x256xf32>
    %224 = arith.mulf %223, %221 : vector<32x256xf32>
    %c239_i32_158 = arith.constant 239 : i32
    %225 = tpu.dynamic_rotate %191 by %c239_i32_158 dim 1 : vector<32x256xf32>, i32 -> vector<32x256xf32>
    %c8_159 = arith.constant 8 : index
    %c0_160 = arith.constant 0 : index
    %226 = vector.load %arg4[%c8_159, %c0_160] : memref<9x256xf32, #tpu.memory_space<vmem>>, vector<1x256xf32>
    %227 = vector.broadcast %226 : vector<1x256xf32> to vector<32x256xf32>
    %228 = arith.mulf %227, %225 : vector<32x256xf32>
    %229 = tpu.concatenate %197, %201, %205, %209, %212, %216, %220, %224, %228 in 0 : vector<32x256xf32>, vector<32x256xf32>, vector<32x256xf32>, vector<32x256xf32>, vector<32x256xf32>, vector<32x256xf32>, vector<32x256xf32>, vector<32x256xf32>, vector<32x256xf32> -> vector<288x256xf32>
    %cst_161 = arith.constant dense<0.000000e+00> : vector<32x256xf32>
    %230 = tpu.matmul %193, %229, %cst_161 {dimension_numbers = #tpu.dot_dimension_numbers<[1], [0], [0], [1], [0, 0, 1, 1], [], []>} : vector<32x288xf32>, vector<288x256xf32>, vector<32x256xf32> -> vector<32x256xf32>
    %c3_162 = arith.constant 3 : index
    %c0_163 = arith.constant 0 : index
    %c0_164 = arith.constant 0 : index
    %231 = vector.load %arg8[%c3_162, %c0_163, %c0_164] : memref<8x32x1xf32, #tpu.memory_space<vmem>>, vector<1x32x1xf32>
    %232 = vector.shape_cast %231 : vector<1x32x1xf32> to vector<32x1xf32>
    %233 = vector.broadcast %232 : vector<32x1xf32> to vector<32x256xf32>
    %234 = arith.mulf %230, %233 : vector<32x256xf32>
    %c3_165 = arith.constant 3 : index
    %c0_166 = arith.constant 0 : index
    %c0_167 = arith.constant 0 : index
    %235 = vector.load %arg9[%c3_165, %c0_166, %c0_167] : memref<8x32x1xf32, #tpu.memory_space<vmem>>, vector<1x32x1xf32>
    %236 = vector.shape_cast %235 : vector<1x32x1xf32> to vector<32x1xf32>
    %237 = vector.broadcast %236 : vector<32x1xf32> to vector<32x256xf32>
    %238 = arith.addf %234, %237 : vector<32x256xf32>
    %cst_168 = arith.constant 1.000000e-01 : f32
    %239 = vector.broadcast %cst_168 : f32 to vector<32x256xf32>
    %240 = arith.mulf %238, %239 : vector<32x256xf32>
    %241 = arith.addf %240, %142 : vector<32x256xf32>
    %c0_169 = arith.constant 0 : index
    %c4_170 = arith.constant 4 : index
    %c0_171 = arith.constant 0 : index
    %c0_172 = arith.constant 0 : index
    %242 = vector.load %arg7[%c0_169, %c4_170, %c0_171, %c0_172] : memref<1x8x32x288xf32, #tpu.memory_space<vmem>>, vector<1x1x32x288xf32>
    %243 = vector.shape_cast %242 : vector<1x1x32x288xf32> to vector<32x288xf32>
    %c17_i32_173 = arith.constant 17 : i32
    %244 = tpu.dynamic_rotate %241 by %c17_i32_173 dim 1 : vector<32x256xf32>, i32 -> vector<32x256xf32>
    %c0_174 = arith.constant 0 : index
    %c0_175 = arith.constant 0 : index
    %245 = vector.load %arg4[%c0_174, %c0_175] : memref<9x256xf32, #tpu.memory_space<vmem>>, vector<1x256xf32>
    %246 = vector.broadcast %245 : vector<1x256xf32> to vector<32x256xf32>
    %247 = arith.mulf %246, %244 : vector<32x256xf32>
    %c16_i32_176 = arith.constant 16 : i32
    %248 = tpu.dynamic_rotate %241 by %c16_i32_176 dim 1 : vector<32x256xf32>, i32 -> vector<32x256xf32>
    %c1_177 = arith.constant 1 : index
    %c0_178 = arith.constant 0 : index
    %249 = vector.load %arg4[%c1_177, %c0_178] : memref<9x256xf32, #tpu.memory_space<vmem>>, vector<1x256xf32>
    %250 = vector.broadcast %249 : vector<1x256xf32> to vector<32x256xf32>
    %251 = arith.mulf %250, %248 : vector<32x256xf32>
    %c15_i32_179 = arith.constant 15 : i32
    %252 = tpu.dynamic_rotate %241 by %c15_i32_179 dim 1 : vector<32x256xf32>, i32 -> vector<32x256xf32>
    %c2_180 = arith.constant 2 : index
    %c0_181 = arith.constant 0 : index
    %253 = vector.load %arg4[%c2_180, %c0_181] : memref<9x256xf32, #tpu.memory_space<vmem>>, vector<1x256xf32>
    %254 = vector.broadcast %253 : vector<1x256xf32> to vector<32x256xf32>
    %255 = arith.mulf %254, %252 : vector<32x256xf32>
    %c1_i32_182 = arith.constant 1 : i32
    %256 = tpu.dynamic_rotate %241 by %c1_i32_182 dim 1 : vector<32x256xf32>, i32 -> vector<32x256xf32>
    %c3_183 = arith.constant 3 : index
    %c0_184 = arith.constant 0 : index
    %257 = vector.load %arg4[%c3_183, %c0_184] : memref<9x256xf32, #tpu.memory_space<vmem>>, vector<1x256xf32>
    %258 = vector.broadcast %257 : vector<1x256xf32> to vector<32x256xf32>
    %259 = arith.mulf %258, %256 : vector<32x256xf32>
    %c4_185 = arith.constant 4 : index
    %c0_186 = arith.constant 0 : index
    %260 = vector.load %arg4[%c4_185, %c0_186] : memref<9x256xf32, #tpu.memory_space<vmem>>, vector<1x256xf32>
    %261 = vector.broadcast %260 : vector<1x256xf32> to vector<32x256xf32>
    %262 = arith.mulf %261, %241 : vector<32x256xf32>
    %c255_i32_187 = arith.constant 255 : i32
    %263 = tpu.dynamic_rotate %241 by %c255_i32_187 dim 1 : vector<32x256xf32>, i32 -> vector<32x256xf32>
    %c5_188 = arith.constant 5 : index
    %c0_189 = arith.constant 0 : index
    %264 = vector.load %arg4[%c5_188, %c0_189] : memref<9x256xf32, #tpu.memory_space<vmem>>, vector<1x256xf32>
    %265 = vector.broadcast %264 : vector<1x256xf32> to vector<32x256xf32>
    %266 = arith.mulf %265, %263 : vector<32x256xf32>
    %c241_i32_190 = arith.constant 241 : i32
    %267 = tpu.dynamic_rotate %241 by %c241_i32_190 dim 1 : vector<32x256xf32>, i32 -> vector<32x256xf32>
    %c6_191 = arith.constant 6 : index
    %c0_192 = arith.constant 0 : index
    %268 = vector.load %arg4[%c6_191, %c0_192] : memref<9x256xf32, #tpu.memory_space<vmem>>, vector<1x256xf32>
    %269 = vector.broadcast %268 : vector<1x256xf32> to vector<32x256xf32>
    %270 = arith.mulf %269, %267 : vector<32x256xf32>
    %c240_i32_193 = arith.constant 240 : i32
    %271 = tpu.dynamic_rotate %241 by %c240_i32_193 dim 1 : vector<32x256xf32>, i32 -> vector<32x256xf32>
    %c7_194 = arith.constant 7 : index
    %c0_195 = arith.constant 0 : index
    %272 = vector.load %arg4[%c7_194, %c0_195] : memref<9x256xf32, #tpu.memory_space<vmem>>, vector<1x256xf32>
    %273 = vector.broadcast %272 : vector<1x256xf32> to vector<32x256xf32>
    %274 = arith.mulf %273, %271 : vector<32x256xf32>
    %c239_i32_196 = arith.constant 239 : i32
    %275 = tpu.dynamic_rotate %241 by %c239_i32_196 dim 1 : vector<32x256xf32>, i32 -> vector<32x256xf32>
    %c8_197 = arith.constant 8 : index
    %c0_198 = arith.constant 0 : index
    %276 = vector.load %arg4[%c8_197, %c0_198] : memref<9x256xf32, #tpu.memory_space<vmem>>, vector<1x256xf32>
    %277 = vector.broadcast %276 : vector<1x256xf32> to vector<32x256xf32>
    %278 = arith.mulf %277, %275 : vector<32x256xf32>
    %279 = tpu.concatenate %247, %251, %255, %259, %262, %266, %270, %274, %278 in 0 : vector<32x256xf32>, vector<32x256xf32>, vector<32x256xf32>, vector<32x256xf32>, vector<32x256xf32>, vector<32x256xf32>, vector<32x256xf32>, vector<32x256xf32>, vector<32x256xf32> -> vector<288x256xf32>
    %cst_199 = arith.constant dense<0.000000e+00> : vector<32x256xf32>
    %280 = tpu.matmul %243, %279, %cst_199 {dimension_numbers = #tpu.dot_dimension_numbers<[1], [0], [0], [1], [0, 0, 1, 1], [], []>} : vector<32x288xf32>, vector<288x256xf32>, vector<32x256xf32> -> vector<32x256xf32>
    %c4_200 = arith.constant 4 : index
    %c0_201 = arith.constant 0 : index
    %c0_202 = arith.constant 0 : index
    %281 = vector.load %arg8[%c4_200, %c0_201, %c0_202] : memref<8x32x1xf32, #tpu.memory_space<vmem>>, vector<1x32x1xf32>
    %282 = vector.shape_cast %281 : vector<1x32x1xf32> to vector<32x1xf32>
    %283 = vector.broadcast %282 : vector<32x1xf32> to vector<32x256xf32>
    %284 = arith.mulf %280, %283 : vector<32x256xf32>
    %c4_203 = arith.constant 4 : index
    %c0_204 = arith.constant 0 : index
    %c0_205 = arith.constant 0 : index
    %285 = vector.load %arg9[%c4_203, %c0_204, %c0_205] : memref<8x32x1xf32, #tpu.memory_space<vmem>>, vector<1x32x1xf32>
    %286 = vector.shape_cast %285 : vector<1x32x1xf32> to vector<32x1xf32>
    %287 = vector.broadcast %286 : vector<32x1xf32> to vector<32x256xf32>
    %288 = arith.addf %284, %287 : vector<32x256xf32>
    %cst_206 = arith.constant 0.000000e+00 : f32
    %289 = vector.broadcast %cst_206 : f32 to vector<32x256xf32>
    %290 = arith.maximumf %288, %289 : vector<32x256xf32>
    %c0_207 = arith.constant 0 : index
    %c5_208 = arith.constant 5 : index
    %c0_209 = arith.constant 0 : index
    %c0_210 = arith.constant 0 : index
    %291 = vector.load %arg7[%c0_207, %c5_208, %c0_209, %c0_210] : memref<1x8x32x288xf32, #tpu.memory_space<vmem>>, vector<1x1x32x288xf32>
    %292 = vector.shape_cast %291 : vector<1x1x32x288xf32> to vector<32x288xf32>
    %c17_i32_211 = arith.constant 17 : i32
    %293 = tpu.dynamic_rotate %290 by %c17_i32_211 dim 1 : vector<32x256xf32>, i32 -> vector<32x256xf32>
    %c0_212 = arith.constant 0 : index
    %c0_213 = arith.constant 0 : index
    %294 = vector.load %arg4[%c0_212, %c0_213] : memref<9x256xf32, #tpu.memory_space<vmem>>, vector<1x256xf32>
    %295 = vector.broadcast %294 : vector<1x256xf32> to vector<32x256xf32>
    %296 = arith.mulf %295, %293 : vector<32x256xf32>
    %c16_i32_214 = arith.constant 16 : i32
    %297 = tpu.dynamic_rotate %290 by %c16_i32_214 dim 1 : vector<32x256xf32>, i32 -> vector<32x256xf32>
    %c1_215 = arith.constant 1 : index
    %c0_216 = arith.constant 0 : index
    %298 = vector.load %arg4[%c1_215, %c0_216] : memref<9x256xf32, #tpu.memory_space<vmem>>, vector<1x256xf32>
    %299 = vector.broadcast %298 : vector<1x256xf32> to vector<32x256xf32>
    %300 = arith.mulf %299, %297 : vector<32x256xf32>
    %c15_i32_217 = arith.constant 15 : i32
    %301 = tpu.dynamic_rotate %290 by %c15_i32_217 dim 1 : vector<32x256xf32>, i32 -> vector<32x256xf32>
    %c2_218 = arith.constant 2 : index
    %c0_219 = arith.constant 0 : index
    %302 = vector.load %arg4[%c2_218, %c0_219] : memref<9x256xf32, #tpu.memory_space<vmem>>, vector<1x256xf32>
    %303 = vector.broadcast %302 : vector<1x256xf32> to vector<32x256xf32>
    %304 = arith.mulf %303, %301 : vector<32x256xf32>
    %c1_i32_220 = arith.constant 1 : i32
    %305 = tpu.dynamic_rotate %290 by %c1_i32_220 dim 1 : vector<32x256xf32>, i32 -> vector<32x256xf32>
    %c3_221 = arith.constant 3 : index
    %c0_222 = arith.constant 0 : index
    %306 = vector.load %arg4[%c3_221, %c0_222] : memref<9x256xf32, #tpu.memory_space<vmem>>, vector<1x256xf32>
    %307 = vector.broadcast %306 : vector<1x256xf32> to vector<32x256xf32>
    %308 = arith.mulf %307, %305 : vector<32x256xf32>
    %c4_223 = arith.constant 4 : index
    %c0_224 = arith.constant 0 : index
    %309 = vector.load %arg4[%c4_223, %c0_224] : memref<9x256xf32, #tpu.memory_space<vmem>>, vector<1x256xf32>
    %310 = vector.broadcast %309 : vector<1x256xf32> to vector<32x256xf32>
    %311 = arith.mulf %310, %290 : vector<32x256xf32>
    %c255_i32_225 = arith.constant 255 : i32
    %312 = tpu.dynamic_rotate %290 by %c255_i32_225 dim 1 : vector<32x256xf32>, i32 -> vector<32x256xf32>
    %c5_226 = arith.constant 5 : index
    %c0_227 = arith.constant 0 : index
    %313 = vector.load %arg4[%c5_226, %c0_227] : memref<9x256xf32, #tpu.memory_space<vmem>>, vector<1x256xf32>
    %314 = vector.broadcast %313 : vector<1x256xf32> to vector<32x256xf32>
    %315 = arith.mulf %314, %312 : vector<32x256xf32>
    %c241_i32_228 = arith.constant 241 : i32
    %316 = tpu.dynamic_rotate %290 by %c241_i32_228 dim 1 : vector<32x256xf32>, i32 -> vector<32x256xf32>
    %c6_229 = arith.constant 6 : index
    %c0_230 = arith.constant 0 : index
    %317 = vector.load %arg4[%c6_229, %c0_230] : memref<9x256xf32, #tpu.memory_space<vmem>>, vector<1x256xf32>
    %318 = vector.broadcast %317 : vector<1x256xf32> to vector<32x256xf32>
    %319 = arith.mulf %318, %316 : vector<32x256xf32>
    %c240_i32_231 = arith.constant 240 : i32
    %320 = tpu.dynamic_rotate %290 by %c240_i32_231 dim 1 : vector<32x256xf32>, i32 -> vector<32x256xf32>
    %c7_232 = arith.constant 7 : index
    %c0_233 = arith.constant 0 : index
    %321 = vector.load %arg4[%c7_232, %c0_233] : memref<9x256xf32, #tpu.memory_space<vmem>>, vector<1x256xf32>
    %322 = vector.broadcast %321 : vector<1x256xf32> to vector<32x256xf32>
    %323 = arith.mulf %322, %320 : vector<32x256xf32>
    %c239_i32_234 = arith.constant 239 : i32
    %324 = tpu.dynamic_rotate %290 by %c239_i32_234 dim 1 : vector<32x256xf32>, i32 -> vector<32x256xf32>
    %c8_235 = arith.constant 8 : index
    %c0_236 = arith.constant 0 : index
    %325 = vector.load %arg4[%c8_235, %c0_236] : memref<9x256xf32, #tpu.memory_space<vmem>>, vector<1x256xf32>
    %326 = vector.broadcast %325 : vector<1x256xf32> to vector<32x256xf32>
    %327 = arith.mulf %326, %324 : vector<32x256xf32>
    %328 = tpu.concatenate %296, %300, %304, %308, %311, %315, %319, %323, %327 in 0 : vector<32x256xf32>, vector<32x256xf32>, vector<32x256xf32>, vector<32x256xf32>, vector<32x256xf32>, vector<32x256xf32>, vector<32x256xf32>, vector<32x256xf32>, vector<32x256xf32> -> vector<288x256xf32>
    %cst_237 = arith.constant dense<0.000000e+00> : vector<32x256xf32>
    %329 = tpu.matmul %292, %328, %cst_237 {dimension_numbers = #tpu.dot_dimension_numbers<[1], [0], [0], [1], [0, 0, 1, 1], [], []>} : vector<32x288xf32>, vector<288x256xf32>, vector<32x256xf32> -> vector<32x256xf32>
    %c5_238 = arith.constant 5 : index
    %c0_239 = arith.constant 0 : index
    %c0_240 = arith.constant 0 : index
    %330 = vector.load %arg8[%c5_238, %c0_239, %c0_240] : memref<8x32x1xf32, #tpu.memory_space<vmem>>, vector<1x32x1xf32>
    %331 = vector.shape_cast %330 : vector<1x32x1xf32> to vector<32x1xf32>
    %332 = vector.broadcast %331 : vector<32x1xf32> to vector<32x256xf32>
    %333 = arith.mulf %329, %332 : vector<32x256xf32>
    %c5_241 = arith.constant 5 : index
    %c0_242 = arith.constant 0 : index
    %c0_243 = arith.constant 0 : index
    %334 = vector.load %arg9[%c5_241, %c0_242, %c0_243] : memref<8x32x1xf32, #tpu.memory_space<vmem>>, vector<1x32x1xf32>
    %335 = vector.shape_cast %334 : vector<1x32x1xf32> to vector<32x1xf32>
    %336 = vector.broadcast %335 : vector<32x1xf32> to vector<32x256xf32>
    %337 = arith.addf %333, %336 : vector<32x256xf32>
    %cst_244 = arith.constant 1.000000e-01 : f32
    %338 = vector.broadcast %cst_244 : f32 to vector<32x256xf32>
    %339 = arith.mulf %337, %338 : vector<32x256xf32>
    %340 = arith.addf %339, %241 : vector<32x256xf32>
    %c0_245 = arith.constant 0 : index
    %c6_246 = arith.constant 6 : index
    %c0_247 = arith.constant 0 : index
    %c0_248 = arith.constant 0 : index
    %341 = vector.load %arg7[%c0_245, %c6_246, %c0_247, %c0_248] : memref<1x8x32x288xf32, #tpu.memory_space<vmem>>, vector<1x1x32x288xf32>
    %342 = vector.shape_cast %341 : vector<1x1x32x288xf32> to vector<32x288xf32>
    %c17_i32_249 = arith.constant 17 : i32
    %343 = tpu.dynamic_rotate %340 by %c17_i32_249 dim 1 : vector<32x256xf32>, i32 -> vector<32x256xf32>
    %c0_250 = arith.constant 0 : index
    %c0_251 = arith.constant 0 : index
    %344 = vector.load %arg4[%c0_250, %c0_251] : memref<9x256xf32, #tpu.memory_space<vmem>>, vector<1x256xf32>
    %345 = vector.broadcast %344 : vector<1x256xf32> to vector<32x256xf32>
    %346 = arith.mulf %345, %343 : vector<32x256xf32>
    %c16_i32_252 = arith.constant 16 : i32
    %347 = tpu.dynamic_rotate %340 by %c16_i32_252 dim 1 : vector<32x256xf32>, i32 -> vector<32x256xf32>
    %c1_253 = arith.constant 1 : index
    %c0_254 = arith.constant 0 : index
    %348 = vector.load %arg4[%c1_253, %c0_254] : memref<9x256xf32, #tpu.memory_space<vmem>>, vector<1x256xf32>
    %349 = vector.broadcast %348 : vector<1x256xf32> to vector<32x256xf32>
    %350 = arith.mulf %349, %347 : vector<32x256xf32>
    %c15_i32_255 = arith.constant 15 : i32
    %351 = tpu.dynamic_rotate %340 by %c15_i32_255 dim 1 : vector<32x256xf32>, i32 -> vector<32x256xf32>
    %c2_256 = arith.constant 2 : index
    %c0_257 = arith.constant 0 : index
    %352 = vector.load %arg4[%c2_256, %c0_257] : memref<9x256xf32, #tpu.memory_space<vmem>>, vector<1x256xf32>
    %353 = vector.broadcast %352 : vector<1x256xf32> to vector<32x256xf32>
    %354 = arith.mulf %353, %351 : vector<32x256xf32>
    %c1_i32_258 = arith.constant 1 : i32
    %355 = tpu.dynamic_rotate %340 by %c1_i32_258 dim 1 : vector<32x256xf32>, i32 -> vector<32x256xf32>
    %c3_259 = arith.constant 3 : index
    %c0_260 = arith.constant 0 : index
    %356 = vector.load %arg4[%c3_259, %c0_260] : memref<9x256xf32, #tpu.memory_space<vmem>>, vector<1x256xf32>
    %357 = vector.broadcast %356 : vector<1x256xf32> to vector<32x256xf32>
    %358 = arith.mulf %357, %355 : vector<32x256xf32>
    %c4_261 = arith.constant 4 : index
    %c0_262 = arith.constant 0 : index
    %359 = vector.load %arg4[%c4_261, %c0_262] : memref<9x256xf32, #tpu.memory_space<vmem>>, vector<1x256xf32>
    %360 = vector.broadcast %359 : vector<1x256xf32> to vector<32x256xf32>
    %361 = arith.mulf %360, %340 : vector<32x256xf32>
    %c255_i32_263 = arith.constant 255 : i32
    %362 = tpu.dynamic_rotate %340 by %c255_i32_263 dim 1 : vector<32x256xf32>, i32 -> vector<32x256xf32>
    %c5_264 = arith.constant 5 : index
    %c0_265 = arith.constant 0 : index
    %363 = vector.load %arg4[%c5_264, %c0_265] : memref<9x256xf32, #tpu.memory_space<vmem>>, vector<1x256xf32>
    %364 = vector.broadcast %363 : vector<1x256xf32> to vector<32x256xf32>
    %365 = arith.mulf %364, %362 : vector<32x256xf32>
    %c241_i32_266 = arith.constant 241 : i32
    %366 = tpu.dynamic_rotate %340 by %c241_i32_266 dim 1 : vector<32x256xf32>, i32 -> vector<32x256xf32>
    %c6_267 = arith.constant 6 : index
    %c0_268 = arith.constant 0 : index
    %367 = vector.load %arg4[%c6_267, %c0_268] : memref<9x256xf32, #tpu.memory_space<vmem>>, vector<1x256xf32>
    %368 = vector.broadcast %367 : vector<1x256xf32> to vector<32x256xf32>
    %369 = arith.mulf %368, %366 : vector<32x256xf32>
    %c240_i32_269 = arith.constant 240 : i32
    %370 = tpu.dynamic_rotate %340 by %c240_i32_269 dim 1 : vector<32x256xf32>, i32 -> vector<32x256xf32>
    %c7_270 = arith.constant 7 : index
    %c0_271 = arith.constant 0 : index
    %371 = vector.load %arg4[%c7_270, %c0_271] : memref<9x256xf32, #tpu.memory_space<vmem>>, vector<1x256xf32>
    %372 = vector.broadcast %371 : vector<1x256xf32> to vector<32x256xf32>
    %373 = arith.mulf %372, %370 : vector<32x256xf32>
    %c239_i32_272 = arith.constant 239 : i32
    %374 = tpu.dynamic_rotate %340 by %c239_i32_272 dim 1 : vector<32x256xf32>, i32 -> vector<32x256xf32>
    %c8_273 = arith.constant 8 : index
    %c0_274 = arith.constant 0 : index
    %375 = vector.load %arg4[%c8_273, %c0_274] : memref<9x256xf32, #tpu.memory_space<vmem>>, vector<1x256xf32>
    %376 = vector.broadcast %375 : vector<1x256xf32> to vector<32x256xf32>
    %377 = arith.mulf %376, %374 : vector<32x256xf32>
    %378 = tpu.concatenate %346, %350, %354, %358, %361, %365, %369, %373, %377 in 0 : vector<32x256xf32>, vector<32x256xf32>, vector<32x256xf32>, vector<32x256xf32>, vector<32x256xf32>, vector<32x256xf32>, vector<32x256xf32>, vector<32x256xf32>, vector<32x256xf32> -> vector<288x256xf32>
    %cst_275 = arith.constant dense<0.000000e+00> : vector<32x256xf32>
    %379 = tpu.matmul %342, %378, %cst_275 {dimension_numbers = #tpu.dot_dimension_numbers<[1], [0], [0], [1], [0, 0, 1, 1], [], []>} : vector<32x288xf32>, vector<288x256xf32>, vector<32x256xf32> -> vector<32x256xf32>
    %c6_276 = arith.constant 6 : index
    %c0_277 = arith.constant 0 : index
    %c0_278 = arith.constant 0 : index
    %380 = vector.load %arg8[%c6_276, %c0_277, %c0_278] : memref<8x32x1xf32, #tpu.memory_space<vmem>>, vector<1x32x1xf32>
    %381 = vector.shape_cast %380 : vector<1x32x1xf32> to vector<32x1xf32>
    %382 = vector.broadcast %381 : vector<32x1xf32> to vector<32x256xf32>
    %383 = arith.mulf %379, %382 : vector<32x256xf32>
    %c6_279 = arith.constant 6 : index
    %c0_280 = arith.constant 0 : index
    %c0_281 = arith.constant 0 : index
    %384 = vector.load %arg9[%c6_279, %c0_280, %c0_281] : memref<8x32x1xf32, #tpu.memory_space<vmem>>, vector<1x32x1xf32>
    %385 = vector.shape_cast %384 : vector<1x32x1xf32> to vector<32x1xf32>
    %386 = vector.broadcast %385 : vector<32x1xf32> to vector<32x256xf32>
    %387 = arith.addf %383, %386 : vector<32x256xf32>
    %cst_282 = arith.constant 0.000000e+00 : f32
    %388 = vector.broadcast %cst_282 : f32 to vector<32x256xf32>
    %389 = arith.maximumf %387, %388 : vector<32x256xf32>
    %c0_283 = arith.constant 0 : index
    %c7_284 = arith.constant 7 : index
    %c0_285 = arith.constant 0 : index
    %c0_286 = arith.constant 0 : index
    %390 = vector.load %arg7[%c0_283, %c7_284, %c0_285, %c0_286] : memref<1x8x32x288xf32, #tpu.memory_space<vmem>>, vector<1x1x32x288xf32>
    %391 = vector.shape_cast %390 : vector<1x1x32x288xf32> to vector<32x288xf32>
    %c17_i32_287 = arith.constant 17 : i32
    %392 = tpu.dynamic_rotate %389 by %c17_i32_287 dim 1 : vector<32x256xf32>, i32 -> vector<32x256xf32>
    %c0_288 = arith.constant 0 : index
    %c0_289 = arith.constant 0 : index
    %393 = vector.load %arg4[%c0_288, %c0_289] : memref<9x256xf32, #tpu.memory_space<vmem>>, vector<1x256xf32>
    %394 = vector.broadcast %393 : vector<1x256xf32> to vector<32x256xf32>
    %395 = arith.mulf %394, %392 : vector<32x256xf32>
    %c16_i32_290 = arith.constant 16 : i32
    %396 = tpu.dynamic_rotate %389 by %c16_i32_290 dim 1 : vector<32x256xf32>, i32 -> vector<32x256xf32>
    %c1_291 = arith.constant 1 : index
    %c0_292 = arith.constant 0 : index
    %397 = vector.load %arg4[%c1_291, %c0_292] : memref<9x256xf32, #tpu.memory_space<vmem>>, vector<1x256xf32>
    %398 = vector.broadcast %397 : vector<1x256xf32> to vector<32x256xf32>
    %399 = arith.mulf %398, %396 : vector<32x256xf32>
    %c15_i32_293 = arith.constant 15 : i32
    %400 = tpu.dynamic_rotate %389 by %c15_i32_293 dim 1 : vector<32x256xf32>, i32 -> vector<32x256xf32>
    %c2_294 = arith.constant 2 : index
    %c0_295 = arith.constant 0 : index
    %401 = vector.load %arg4[%c2_294, %c0_295] : memref<9x256xf32, #tpu.memory_space<vmem>>, vector<1x256xf32>
    %402 = vector.broadcast %401 : vector<1x256xf32> to vector<32x256xf32>
    %403 = arith.mulf %402, %400 : vector<32x256xf32>
    %c1_i32_296 = arith.constant 1 : i32
    %404 = tpu.dynamic_rotate %389 by %c1_i32_296 dim 1 : vector<32x256xf32>, i32 -> vector<32x256xf32>
    %c3_297 = arith.constant 3 : index
    %c0_298 = arith.constant 0 : index
    %405 = vector.load %arg4[%c3_297, %c0_298] : memref<9x256xf32, #tpu.memory_space<vmem>>, vector<1x256xf32>
    %406 = vector.broadcast %405 : vector<1x256xf32> to vector<32x256xf32>
    %407 = arith.mulf %406, %404 : vector<32x256xf32>
    %c4_299 = arith.constant 4 : index
    %c0_300 = arith.constant 0 : index
    %408 = vector.load %arg4[%c4_299, %c0_300] : memref<9x256xf32, #tpu.memory_space<vmem>>, vector<1x256xf32>
    %409 = vector.broadcast %408 : vector<1x256xf32> to vector<32x256xf32>
    %410 = arith.mulf %409, %389 : vector<32x256xf32>
    %c255_i32_301 = arith.constant 255 : i32
    %411 = tpu.dynamic_rotate %389 by %c255_i32_301 dim 1 : vector<32x256xf32>, i32 -> vector<32x256xf32>
    %c5_302 = arith.constant 5 : index
    %c0_303 = arith.constant 0 : index
    %412 = vector.load %arg4[%c5_302, %c0_303] : memref<9x256xf32, #tpu.memory_space<vmem>>, vector<1x256xf32>
    %413 = vector.broadcast %412 : vector<1x256xf32> to vector<32x256xf32>
    %414 = arith.mulf %413, %411 : vector<32x256xf32>
    %c241_i32_304 = arith.constant 241 : i32
    %415 = tpu.dynamic_rotate %389 by %c241_i32_304 dim 1 : vector<32x256xf32>, i32 -> vector<32x256xf32>
    %c6_305 = arith.constant 6 : index
    %c0_306 = arith.constant 0 : index
    %416 = vector.load %arg4[%c6_305, %c0_306] : memref<9x256xf32, #tpu.memory_space<vmem>>, vector<1x256xf32>
    %417 = vector.broadcast %416 : vector<1x256xf32> to vector<32x256xf32>
    %418 = arith.mulf %417, %415 : vector<32x256xf32>
    %c240_i32_307 = arith.constant 240 : i32
    %419 = tpu.dynamic_rotate %389 by %c240_i32_307 dim 1 : vector<32x256xf32>, i32 -> vector<32x256xf32>
    %c7_308 = arith.constant 7 : index
    %c0_309 = arith.constant 0 : index
    %420 = vector.load %arg4[%c7_308, %c0_309] : memref<9x256xf32, #tpu.memory_space<vmem>>, vector<1x256xf32>
    %421 = vector.broadcast %420 : vector<1x256xf32> to vector<32x256xf32>
    %422 = arith.mulf %421, %419 : vector<32x256xf32>
    %c239_i32_310 = arith.constant 239 : i32
    %423 = tpu.dynamic_rotate %389 by %c239_i32_310 dim 1 : vector<32x256xf32>, i32 -> vector<32x256xf32>
    %c8_311 = arith.constant 8 : index
    %c0_312 = arith.constant 0 : index
    %424 = vector.load %arg4[%c8_311, %c0_312] : memref<9x256xf32, #tpu.memory_space<vmem>>, vector<1x256xf32>
    %425 = vector.broadcast %424 : vector<1x256xf32> to vector<32x256xf32>
    %426 = arith.mulf %425, %423 : vector<32x256xf32>
    %427 = tpu.concatenate %395, %399, %403, %407, %410, %414, %418, %422, %426 in 0 : vector<32x256xf32>, vector<32x256xf32>, vector<32x256xf32>, vector<32x256xf32>, vector<32x256xf32>, vector<32x256xf32>, vector<32x256xf32>, vector<32x256xf32>, vector<32x256xf32> -> vector<288x256xf32>
    %cst_313 = arith.constant dense<0.000000e+00> : vector<32x256xf32>
    %428 = tpu.matmul %391, %427, %cst_313 {dimension_numbers = #tpu.dot_dimension_numbers<[1], [0], [0], [1], [0, 0, 1, 1], [], []>} : vector<32x288xf32>, vector<288x256xf32>, vector<32x256xf32> -> vector<32x256xf32>
    %c7_314 = arith.constant 7 : index
    %c0_315 = arith.constant 0 : index
    %c0_316 = arith.constant 0 : index
    %429 = vector.load %arg8[%c7_314, %c0_315, %c0_316] : memref<8x32x1xf32, #tpu.memory_space<vmem>>, vector<1x32x1xf32>
    %430 = vector.shape_cast %429 : vector<1x32x1xf32> to vector<32x1xf32>
    %431 = vector.broadcast %430 : vector<32x1xf32> to vector<32x256xf32>
    %432 = arith.mulf %428, %431 : vector<32x256xf32>
    %c7_317 = arith.constant 7 : index
    %c0_318 = arith.constant 0 : index
    %c0_319 = arith.constant 0 : index
    %433 = vector.load %arg9[%c7_317, %c0_318, %c0_319] : memref<8x32x1xf32, #tpu.memory_space<vmem>>, vector<1x32x1xf32>
    %434 = vector.shape_cast %433 : vector<1x32x1xf32> to vector<32x1xf32>
    %435 = vector.broadcast %434 : vector<32x1xf32> to vector<32x256xf32>
    %436 = arith.addf %432, %435 : vector<32x256xf32>
    %cst_320 = arith.constant 1.000000e-01 : f32
    %437 = vector.broadcast %cst_320 : f32 to vector<32x256xf32>
    %438 = arith.mulf %436, %437 : vector<32x256xf32>
    %439 = arith.addf %438, %340 : vector<32x256xf32>
    %440 = vector.extract_strided_slice %439 {offsets = [0, 0], sizes = [3, 256], strides = [1, 1]} : vector<32x256xf32> to vector<3x256xf32>
    %c0_321 = arith.constant 0 : index
    %c0_322 = arith.constant 0 : index
    %c0_323 = arith.constant 0 : index
    %441 = vector.load %arg11[%c0_321, %c0_322, %c0_323] : memref<1x3x256xf32, #tpu.memory_space<vmem>>, vector<1x3x256xf32>
    %442 = vector.shape_cast %441 : vector<1x3x256xf32> to vector<3x256xf32>
    %443 = vector.shape_cast %440 : vector<3x256xf32> to vector<1x3x256xf32>
    tpu.vector_store %arg11[%c0_321, %c0_322, %c0_323], %443 {strides = array<i32>} : memref<1x3x256xf32, #tpu.memory_space<vmem>>, vector<1x3x256xf32>,
    %c0_324 = arith.constant 0 : index
    %c0_325 = arith.constant 0 : index
    %c0_326 = arith.constant 0 : index
    %444 = vector.load %arg2[%c0_324, %c0_325, %c0_326] : memref<1x3x256xf32, #tpu.memory_space<vmem>>, vector<1x3x256xf32>
    %445 = vector.shape_cast %444 : vector<1x3x256xf32> to vector<3x256xf32>
    %446 = arith.addf %440, %445 : vector<3x256xf32>
    %c0_327 = arith.constant 0 : index
    %c0_328 = arith.constant 0 : index
    %c0_329 = arith.constant 0 : index
    %447 = vector.load %arg10[%c0_327, %c0_328, %c0_329] : memref<1x3x256xf32, #tpu.memory_space<vmem>>, vector<1x3x256xf32>
    %448 = vector.shape_cast %447 : vector<1x3x256xf32> to vector<3x256xf32>
    %449 = vector.shape_cast %446 : vector<3x256xf32> to vector<1x3x256xf32>
    tpu.vector_store %arg10[%c0_327, %c0_328, %c0_329], %449 {strides = array<i32>} : memref<1x3x256xf32, #tpu.memory_space<vmem>>, vector<1x3x256xf32>,
    return
  }
  func.func @transform_0(%arg0: i32) -> (i32, i32, i32) {
    %c0_i32 = arith.constant 0 : i32
    %c0_i32_0 = arith.constant 0 : i32
    %c0_i32_1 = arith.constant 0 : i32
    return %arg0, %c0_i32, %c0_i32_0 : i32, i32, i32
  }
  func.func @transform_1(%arg0: i32) -> (i32, i32, i32) {
    %c0_i32 = arith.constant 0 : i32
    %c0_i32_0 = arith.constant 0 : i32
    %c0_i32_1 = arith.constant 0 : i32
    return %arg0, %c0_i32, %c0_i32_0 : i32, i32, i32
  }
  func.func @transform_2(%arg0: i32) -> (i32, i32) {
    %c0_i32 = arith.constant 0 : i32
    %c0_i32_0 = arith.constant 0 : i32
    %c0_i32_1 = arith.constant 0 : i32
    return %c0_i32, %c0_i32_0 : i32, i32
  }
  func.func @transform_3(%arg0: i32) -> (i32, i32) {
    %c0_i32 = arith.constant 0 : i32
    %c0_i32_0 = arith.constant 0 : i32
    %c0_i32_1 = arith.constant 0 : i32
    return %c0_i32, %c0_i32_0 : i32, i32
  }
  func.func @transform_4(%arg0: i32) -> (i32, i32, i32) {
    %c0_i32 = arith.constant 0 : i32
    %c0_i32_0 = arith.constant 0 : i32
    %c0_i32_1 = arith.constant 0 : i32
    return %arg0, %c0_i32, %c0_i32_0 : i32, i32, i32
  }
  func.func @transform_5(%arg0: i32) -> (i32, i32) {
    %c0_i32 = arith.constant 0 : i32
    %c0_i32_0 = arith.constant 0 : i32
    %c0_i32_1 = arith.constant 0 : i32
    return %c0_i32, %c0_i32_0 : i32, i32
  }
  func.func @transform_6(%arg0: i32) -> (i32, i32, i32, i32) {
    %c0_i32 = arith.constant 0 : i32
    %c0_i32_0 = arith.constant 0 : i32
    %c0_i32_1 = arith.constant 0 : i32
    %c0_i32_2 = arith.constant 0 : i32
    return %arg0, %c0_i32, %c0_i32_0, %c0_i32_1 : i32, i32, i32, i32
  }
  func.func @transform_7(%arg0: i32) -> (i32, i32, i32) {
    %c0_i32 = arith.constant 0 : i32
    %c0_i32_0 = arith.constant 0 : i32
    %c0_i32_1 = arith.constant 0 : i32
    %c0_i32_2 = arith.constant 0 : i32
    return %c0_i32, %c0_i32_0, %c0_i32_1 : i32, i32, i32
  }
  func.func @transform_8(%arg0: i32) -> (i32, i32, i32) {
    %c0_i32 = arith.constant 0 : i32
    %c0_i32_0 = arith.constant 0 : i32
    %c0_i32_1 = arith.constant 0 : i32
    %c0_i32_2 = arith.constant 0 : i32
    return %c0_i32, %c0_i32_0, %c0_i32_1 : i32, i32, i32
  }
  func.func @transform_9(%arg0: i32) -> (i32, i32, i32) {
    %c0_i32 = arith.constant 0 : i32
    %c0_i32_0 = arith.constant 0 : i32
    %c0_i32_1 = arith.constant 0 : i32
    return %arg0, %c0_i32, %c0_i32_0 : i32, i32, i32
  }
  func.func @transform_10(%arg0: i32) -> (i32, i32, i32) {
    %c0_i32 = arith.constant 0 : i32
    %c0_i32_0 = arith.constant 0 : i32
    %c0_i32_1 = arith.constant 0 : i32
    return %arg0, %c0_i32, %c0_i32_0 : i32, i32, i32
  }
}

</mosaic_0001>

<bundles_post_ra>
// kernel: mernet_forward.4
= control target key start
LH: loop header
LB: loop body
LE: loop exit
PB: predicated region body
PF: predicated region fallthrough
CT: control target
= control target key end

     0   :  { %11 = vsyncpa [#allocation3], 0  ;;  %s4908_s0 = inlined_call_operand.vmem [shape: f32[2,1,1], index: 0, kind: input, shape index: {}]   ;;  %s4909_s1 = inlined_call_operand.vmem [shape: f32[9,1], index: 1, kind: input, shape index: {}]   ;;  %s4910_s2 = inlined_call_operand.vmem [shape: f32[9,1], index: 2, kind: input, shape index: {}]   ;;  %s4911_s3 = inlined_call_operand.hbm [shape: f32[1,18], index: 3, kind: input, shape index: {}]   ;;  %s4912_s4 = inlined_call_operand.hbm [shape: f32[1,18], index: 4, kind: input, shape index: {}]   ;;  %s4913_s5 = inlined_call_operand.hbm [shape: f32[18,7200], index: 5, kind: input, shape index: {}]   ;;  %s4914_s6 = inlined_call_operand.vmem [shape: f32[2,9,7200], index: 6, kind: output, shape index: {}]  }
   0x1   :  { %12 = vsyncpa [#allocation5], 0  ;;  %s4306_s21 = smov 0  }
   0x2 LB: > { %s4312_s22 = sadd.s32 4294967295, %s4256_s21   ;;  %p3793_p0 = scmp.ge.s32.totalorder %s4256_s21, 1  ;;  %s4256_s21 = sphi %s4306_s21, %s18_s21  }
   0x3   : > { %p180_p1 = scmp.lt.s32.totalorder %s4256_s21, 3  ;;  %p4915_p2 = scmp.eq.s32.totalorder %s4312_s22, 0 }
   0x4   : > { %s4258_s23 = smov [#allocation4]   ;;  %s4259_s26 = smov [#allocation2]  }
   0x5   : > { %s210_s24 = sshll.u32 %s4258_s23, 4  ;;  %p4317_p3 = pnand %p3793_p0, %p180_p1  ;;  %s211_s24 = int_to_ptr.vmem [resolvable:$true] %s210_s24 }
   0x6   : > { %s199_s27 = sshll.u32 %s4259_s26, 4  ;;  %s4260_s28 = smov [#allocation6]   ;;  %s4329_s27 = int_to_ptr.vmem [resolvable:$true] %s199_s27 }
   0x7   : > { %s4917_s25 = scalar_select %p4317_p3, 1, 0 }
   0x8   : > { %p4103_p4 = pneg %p4317_p3  ;;  %s220_s29 = sshll.u32 %s4260_s28, 4  ;;  %s4331_s29 = int_to_ptr.vmem [resolvable:$true] %s220_s29 }
   0x9   : > { %s4158_s9 = scalar_lea.hbm %s4912_s4, 16 }
   0xa   : > { %p4325_p5 = pnand %p4915_p2, %p4103_p4  ;;  %p4159_p6 = scmp.ne.s32.totalorder %s4912_s4, %s4158_s9 }
   0xb   : > { %p4165_p10 = scmp.lt.u32.totalorder %s4158_s9, %s4912_s4 }
   0xc   : > { %p4341_p7 = pneg %p4325_p5 }
   0xe   : > { %p4161_p8 = pnand %p4341_p7, %p4159_p6 }
  0x10   : > { %p4162_p9 = pneg %p4161_p8 }
  0x12   : > { %p4167_p11 = pnand %p4165_p10, %p4162_p9 }
  0x14   : > { %4170 = shalt.err (!%p4167_p11)
}
  0x15   : > { %s4171_s15 = scalar_lea.vmem %s211_s24, 16  ;;  %s4178_s16 = scalar_lea.vmem %s211_s24, 32 }
  0x16   : > { %p4172_p12 = scmp.ne.s32.totalorder %s211_s24, %s4171_s15  ;;  %p4179_p1 = scmp.lt.s32.totalorder %s211_s24, %s211_s24 }
  0x17   : > { %p4180_p4 = scmp.lt.s32.totalorder %s4178_s16, %s4171_s15 }
  0x18   : > { %p4174_p13 = pnand %p4172_p12, %p4341_p7 }
  0x19   : > { %p4181_p2 = por %p4180_p4, %p4179_p1 }
  0x1a   : > { %p4175_p0 = pneg %p4174_p13 }
  0x1c   : > { %p4182_p3 = pnand %p4181_p2, %p4175_p0 }
  0x1e   : > { %4185 = shalt.err (!%p4182_p3)
}
  0x1f   : > { %4109 = dma.hbm_to_vmem [thread:$0]  (!%p4325_p5), %s4912_s4, 16, %s211_s24, [#allocation5]  }
  0x20   : > { %s4186_s23 = scalar_lea.hbm %s4911_s3, 16 }
  0x21   : > { %p4187_p6 = scmp.ne.s32.totalorder %s4911_s3, %s4186_s23  ;;  %p4193_p2 = scmp.lt.u32.totalorder %s4186_s23, %s4911_s3 }
  0x23   : > { %p4189_p8 = pnand %p4187_p6, %p4341_p7 }
  0x25   : > { %p4190_p9 = pneg %p4189_p8 }
  0x27   : > { %p4195_p3 = pnand %p4193_p2, %p4190_p9 }
  0x29   : > { %4198 = shalt.err (!%p4195_p3)
}
  0x2a   : > { %s4199_s24 = scalar_lea.vmem %s4329_s27, 16  ;;  %s4206_s9 = scalar_lea.vmem %s4329_s27, 32 }
  0x2b   : > { %p4200_p10 = scmp.ne.s32.totalorder %s4329_s27, %s4199_s24  ;;  %p4207_p13 = scmp.lt.s32.totalorder %s4329_s27, %s4329_s27 }
  0x2c   : > { %p4208_p0 = scmp.lt.s32.totalorder %s4206_s9, %s4199_s24 }
  0x2d   : > { %p4202_p11 = pnand %p4200_p10, %p4341_p7 }
  0x2e   : > { %p4209_p1 = por %p4208_p0, %p4207_p13 }
  0x2f   : > { %p4203_p12 = pneg %p4202_p11 }
  0x31   : > { %p4210_p4 = pnand %p4209_p1, %p4203_p12 }
  0x33   : > { %4213 = shalt.err (!%p4210_p4)
}
  0x34   : > { %4106 = dma.hbm_to_vmem [thread:$0]  (!%p4325_p5), %s4911_s3, 16, %s4329_s27, [#allocation3]  }
  0x35   : > { %s4214_s15 = scalar_lea.hbm %s4913_s5, 21888 }
  0x36   : > { %p4215_p6 = scmp.ne.s32.totalorder %s4913_s5, %s4214_s15  ;;  %p4221_p2 = scmp.lt.u32.totalorder %s4214_s15, %s4913_s5 }
  0x38   : > { %p4217_p8 = pnand %p4215_p6, %p4341_p7 }
  0x3a   : > { %p4218_p9 = pneg %p4217_p8 }
  0x3c   : > { %p4223_p3 = pnand %p4221_p2, %p4218_p9 }
  0x3e   : > { %4226 = shalt.err (!%p4223_p3)
}
  0x3f   : > { %s4227_s27 = scalar_lea.vmem %s4331_s29, 21888  ;;  %p4235_p13 = scmp.lt.s32.totalorder %s4331_s29, %s4331_s29 }
  0x40   : > { %p4228_p10 = scmp.ne.s32.totalorder %s4331_s29, %s4227_s27  ;;  %p4236_p0 = scmp.lt.s32.totalorder %s4227_s27, %s4227_s27 }
  0x42   : > { %p4230_p11 = pnand %p4228_p10, %p4341_p7  ;;  %p4237_p1 = por %p4236_p0, %p4235_p13 }
  0x44   : > { %p4231_p12 = pneg %p4230_p11 }
  0x46   : > { %p4238_p4 = pnand %p4237_p1, %p4231_p12 }
  0x48   : > { %4241 = shalt.err (!%p4238_p4)
}
  0x49   : > { %s4261_s20 = smov 7296   ;;  %s4262_s23 = smov 456  }
  0x4a   : > { %4112 = dma.hbm_to_vmem [thread:$0]  (!%p4325_p5), %s4913_s5, 21888, %s4331_s29, [#allocation5], %s4261_s20, %s4261_s20, %s4262_s23  }
  0x4b   : > { %p4920_p6 = scmp.ne.s32.totalorder %s4917_s25, 0 }
  0x4c   : > { %p4921_p7 = scmp.eq.s32.totalorder (!%p4920_p6), %s4312_s22, 0 }
  0x4d   : > { %242 = sbr.rel (%p4920_p6) target bundleno = 733 (0x2dd), region = 44 }
  0x54   : > { %4247 = dma.done.wait (%p4921_p7), [#allocation3], 16   ;;  %p4922_p8 = pmov %p4921_p7 }
  0x55   : > { %p4923_p9 = pmov %p4921_p7 }
  0x56   : > { %4249 = vsyncadd (%p4922_p8), [#allocation3], 4294967280 }
  0x57   : > { %4251 = dma.done.wait (%p4923_p9), [#allocation5], 21904   ;;  %p4924_p2 = pmov %p4921_p7 }
  0x58   : > { %p278_p3 = scmp.lt.s32.totalorder %s4312_s22, 1  ;;  %v4263_v0 = vmov 0   ;;  %v4264_v13 = vmov 683565275   ;;  %v4265_v15 = vmov 2475754826  }
  0x59   : > { %4253 = vsyncadd (%p4924_p2), [#allocation5], 4294945392  ;;  %4141 = vset.pattern.permute.xlu1 %v4263_v0  ;;  %4140 = vset.pattern.permute.xlu0 %v4263_v0  ;;  %v4266_v17 = vmov 2131351028   ;;  %v4267_v19 = vmov 2102212464  }
  0x5a   : > { %s4926_s22 = smov (!%p278_p3, %s4312_s22), 1  ;;  %v4268_v21 = vmov 920167782   ;;  %v4269_v28 = vmov 1326507024  }
  0x5b   : > { %s280_s30 = scalar_lea.vmem %s4908_s0, %s4926_s22  ;;  %s4078_s14 = smul.u32 912, %s4926_s22 }
  0x5c   : > { %v4422_v1 = vld [vmem:[%s280_s30] sm:$0x1] }
  0x5d   : > { %v290_v2 = vand.u32 2139095040, %v4422_v1  ;;  %v287_v4 = vand.u32 2147483647, %v4422_v1  ;;  %vm289_vm7 = vcmp.lt.s32.totalorder %v4422_v1, 0  ;;  %vm379_vm15 = vweird.f32 %v4422_v1  ;;  %s4789_s17 = scalar_lea.vmem %s4914_s6, %s4078_s14 }
  0x5f   : > { %v291_v3 = vshrl.u32 %v290_v2, 23  ;;  %v294_v7 = vand.u32 8388607, %v287_v4  ;;  %vm288_vm8 = vcmp.le.f32.partialorder %v287_v4, 0.7853982 }
  0x61   : > { %v3803_v5 = vadd.s32 4294967169, %v291_v3  ;;  %v295_v10 = vor.u32 8388608, %v294_v7 }
  0x63   : > { %v297_v6 = vadd.s32 1, %v3803_v5  ;;  %v335_v30 = vshll.u32 %v295_v10, 8 }
  0x65   : > { %vm298_vm0 = vcmp.gt.s32.totalorder %v297_v6, 0 }
  0x66   : > { %v299_v8 = vsel %vm298_vm0, %v297_v6, 0  ;;  %vm1189_vm0 = vcmask 1041408  }
  0x67   : > { %v301_v9 = vand.u32 31, %v299_v8  ;;  %v300_v11 = vshrl.u32 %v299_v8, 5 }
  0x69   : > { %v302_v12 = vsub.s32 32, %v301_v9  ;;  %v304_v14 = vshll.u32 %v4264_v13, %v301_v9  ;;  %v307_v16 = vshll.u32 %v4265_v15, %v301_v9  ;;  %v310_v18 = vshll.u32 %v4266_v17, %v301_v9 }
  0x6a   : > { %v313_v20 = vshll.u32 %v4267_v19, %v301_v9  ;;  %v316_v22 = vshll.u32 %v4268_v21, %v301_v9  ;;  %vm319_vm1 = vcmp.lt.s32.totalorder %v300_v11, 1  ;;  %vm322_vm2 = vcmp.lt.s32.totalorder %v300_v11, 4 }
  0x6b   : > { %v303_v23 = vshrl.u32 %v4264_v13, %v302_v12  ;;  %v305_v24 = vshrl.u32 %v4265_v15, %v302_v12  ;;  %v308_v25 = vshrl.u32 %v4266_v17, %v302_v12  ;;  %v311_v26 = vshrl.u32 %v4267_v19, %v302_v12 }
  0x6c   : > { %v314_v27 = vshrl.u32 %v4268_v21, %v302_v12  ;;  %v317_v29 = vshrl.u32 %v4269_v28, %v302_v12  ;;  %vm320_vm3 = vcmp.lt.s32.totalorder %v300_v11, 2  ;;  %vm321_vm4 = vcmp.lt.s32.totalorder %v300_v11, 3 }
  0x6d   : > { %v306_v31 = vor.u32 %v305_v24, %v304_v14  ;;  %v309_v32 = vor.u32 %v308_v25, %v307_v16  ;;  %v312_v33 = vor.u32 %v311_v26, %v310_v18 }
  0x6e   : > { %v315_v34 = vor.u32 %v314_v27, %v313_v20  ;;  %v318_v35 = vor.u32 %v317_v29, %v316_v22  ;;  %v497_v27 = vlaneseq }
  0x6f   : > { %v323_v36 = vsel %vm319_vm1, %v303_v23, %v306_v31  ;;  %v324_v37 = vsel %vm322_vm2, %v312_v33, 2102212464  ;;  %v327_v38 = vsel %vm319_vm1, %v306_v31, %v309_v32  ;;  %v331_v39 = vsel %vm319_vm1, %v309_v32, %v312_v33 }
  0x70   : > { %v325_v40 = vsel %vm321_vm4, %v309_v32, %v324_v37  ;;  %v328_v41 = vsel %vm322_vm2, %v315_v34, 920167782  ;;  %v332_v42 = vsel %vm322_vm2, %v318_v35, 1326507024  ;;  %v498_v31 = vshrl.u32 %v497_v27, 7 }
  0x71   : > { %v329_v43 = vsel %vm321_vm4, %v312_v33, %v328_v41  ;;  %v333_v44 = vsel %vm321_vm4, %v315_v34, %v332_v42  ;;  %v326_v45 = vsel %vm320_vm3, %v323_v36, %v325_v40 }
  0x72   : > { %v330_v46 = vsel %vm320_vm3, %v327_v38, %v329_v43  ;;  %v334_v47 = vsel %vm320_vm3, %v331_v39, %v333_v44  ;;  %v342_v52 = vmul.u32 %v335_v30, %v326_v45  ;;  %v499_v37 = vsub.s32 0, %v498_v31  ;;  %v495_v44 = vld [vmem:[%s4909_s1 + $0x8] sm:$0x1] }
  0x73   : > { %v4439_v48 = vmul.u32.u64.low %v335_v30, %v334_v47  ;;  %v4440_v49 = vmul.u32.u64.high %v335_v30, %v334_v47, %v4439_v48  ;;  %v4442_v50 = vmul.u32.u64.low %v335_v30, %v330_v46  ;;  %v4443_v51 = vmul.u32.u64.high %v335_v30, %v330_v46, %v4442_v50  ;;  %v505_v45 = vld [vmem:[%s4910_s2 + $0x8] sm:$0x1] }
  0x74   : > { %v504_v48 = vld [vmem:[%s4910_s2] sm:$0xff] }
  0x75   : > { %vm344_vm5 = vc.u32 %v4440_v49, %v4442_v50  ;;  %v345_v53 = vadd.s32 1, %v4443_v51  ;;  %v343_v0 = vadd.s32 %v4442_v50, %v4440_v49 }
  0x77   : > { %v346_v54 = vsel %vm344_vm5, %v345_v53, %v4443_v51 }
  0x78   : > { %v347_v55 = vadd.s32 %v346_v54, %v342_v52 }
  0x7a   : > { %v348_v56 = vadd.s32 536870912, %v347_v55 }
  0x7c   : > { %v349_v57 = vshrl.u32 %v348_v56, 30 }
  0x7e   : > { %v350_v58 = vshll.u32 %v349_v57, 30  ;;  %v373_v16 = vsub.s32 4, %v349_v57 }
  0x80   : > { %v351_v59 = vsub.s32 %v347_v55, %v350_v58  ;;  %v374_v22 = vsel %vm289_vm7, %v373_v16, %v349_v57 }
  0x81   : > { %v376_v25 = vsel %vm288_vm8, 0, %v374_v22  ;;  %v1012_v22 = vld [vmem:[#allocation6 + $0x8] sm:$0xff] }
  0x82   : > { %v353_v60 = vsub.s32 0, %v351_v59  ;;  %v483_v26 = vadd.s32 3, %v376_v25  ;;  %v380_v29 = vand.u32 3, %v376_v25 }
  0x84   : > { %v3804_v61 = vmin.u32 %v353_v60, %v351_v59  ;;  %v484_v30 = vand.u32 3, %v483_v26  ;;  %vm385_vm9 = vcmp.eq.s32.totalorder %v380_v29, 2  ;;  %vm382_vm11 = vcmp.eq.s32.totalorder %v380_v29, 0  ;;  %v1011_v26 = vld [vmem:[#allocation6] sm:$0xff] }
  0x85   : > { %vm381_vm13 = vcmp.lt.s32.totalorder %v380_v29, 2  ;;  %v1068_v29 = vld [vmem:[#allocation6 + $0x1c8] sm:$0xff] }
  0x86   : > { %v355_v62 = vclz %v3804_v61  ;;  %vm489_vm10 = vcmp.eq.s32.totalorder %v484_v30, 2  ;;  %vm486_vm12 = vcmp.eq.s32.totalorder %v484_v30, 0  ;;  %vm485_vm14 = vcmp.lt.s32.totalorder %v484_v30, 2  ;;  %v1071_v30 = vld [vmem:[#allocation6 + $0x1e0] sm:$0xff] }
  0x87   : > { %v3964_v31 = vpack.c.bf16 %v1068_v29, %v1011_v26 }
  0x88   : > { %v3805_v63 = vadd.s32 4294967294, %v355_v62 }
  0x8a   : > { %vm3806_vm6 = vcmp.lt.s32.totalorder %v3805_v63, 0 }
  0x8b   : > { %v358_v2 = vsel %vm3806_vm6, 0, %v3805_v63 }
  0x8c   : > { %v359_v3 = vsub.s32 32, %v358_v2  ;;  %v360_v5 = vshll.u32 %v351_v59, %v358_v2  ;;  %v363_v6 = vsub.s32 4294967266, %v358_v2 }
  0x8e   : > { %v361_v7 = vshrl.u32 %v343_v0, %v359_v3  ;;  %v364_v8 = vadd.s32 127, %v363_v6 }
  0x90   : > { %v362_v9 = vor.u32 %v361_v7, %v360_v5  ;;  %v365_v10 = vshll.u32 %v364_v8, 23 }
  0x92   : > { %v366_v11 = vor.u32 4788187, %v365_v10  ;;  %v369_v12 = vcvt.s32.f32 %v362_v9 }
  0x94   : > { %v367_v14 = vand.u32 2147483647, %v366_v11 }
  0x96   : > { %v370_v18 = vmul.f32 %v369_v12, %v367_v14 }
  0x98   : > { %v371_v20 = vxor.u32 2147483648, %v370_v18 }
  0x9a   : > { %v372_v23 = vsel %vm289_vm7, %v371_v20, %v370_v18 }
  0x9b   : > { %v375_v24 = vsel %vm288_vm8, %v4422_v1, %v372_v23  ;;  %v494_v1 = vld [vmem:[%s4909_s1] sm:$0xff]  ;;  %v1069_v23 = vld [vmem:[#allocation6 + $0x1d0] sm:$0xff] }
  0x9c   : > { %4142 = vcosq.f32 %v375_v24  ;;  %v3962_v25 = vpack.c.bf16 %v1069_v23, %v1012_v22 }
  0x9d   : > { %4144 = vsinq.f32 %v375_v24  ;;  %v1014_v24 = vld [vmem:[#allocation6 + $0x18] sm:$0xff] }
  0x9e   : > { %3963 = vmatprep.subr.bf16.mxu0 %v3962_v25 }
  0x9f   : > { %3965 = vmatpush1.bf16.msra.mxu0 %v3964_v31 }
  0xa6   : > { %v4143_v32 = vpop.eup %4142 }
  0xa7   : > { %v4145_v33 = vpop.eup %4144  ;;  %v386_v4 = vxor.u32 2147483648, %v4143_v32 }
  0xa8   : > { %v383_v34 = vxor.u32 2147483648, %v4145_v33 }
  0xa9   : > { %v387_v35 = vsel %vm385_vm9, %v386_v4, %v4145_v33  ;;  %v491_v36 = vsel %vm489_vm10, %v386_v4, %v4145_v33  ;;  %v1013_v33 = vld [vmem:[#allocation6 + $0x10] sm:$0xff]  ;;  %v1070_v4 = vld [vmem:[#allocation6 + $0x1d8] sm:$0xff] }
  0xaa   : > { %v384_v38 = vsel %vm382_vm11, %v4143_v32, %v383_v34  ;;  %v488_v39 = vsel %vm486_vm12, %v4143_v32, %v383_v34  ;;  %v3966_v32 = vpack.c.bf16 %v1071_v30, %v1014_v24  ;;  %v3968_v34 = vpack.c.bf16 %v1070_v4, %v1013_v33 }
  0xab   : > { %v388_v40 = vsel %vm381_vm13, %v384_v38, %v387_v35  ;;  %v492_v41 = vsel %vm485_vm14, %v488_v39, %v491_v36  ;;  %v1126_v35 = vld [vmem:[#allocation6 + $0x398] sm:$0x3]  ;;  %v1128_v36 = vld [vmem:[#allocation6 + $0x3a8] sm:$0x3]  ;;  %v1125_v38 = vld [vmem:[#allocation6 + $0x390] sm:$0x3] }
  0xac   : > { %v389_v42 = vsel %vm379_vm15, nan, %v388_v40  ;;  %v493_v43 = vsel %vm379_vm15, nan, %v492_v41  ;;  %3967 = vmatprep.subr.bf16.mxu1 %v3966_v32  ;;  %3831 = vmatprep.subr.msk.mxu0 %vm1189_vm0, %v1126_v35  ;;  %v1073_v39 = vld [vmem:[#allocation6 + $0x1f0] sm:$0xff]  ;;  %v4270_v40 = vmov 0.0   ;;  %v1127_v41 = vld [vmem:[#allocation6 + $0x3a0] sm:$0x3] }
  0xad   : > { %v500_v46 = vrot.slane %v389_v42, %v499_v37  ;;  %v510_v47 = vrot.slane %v493_v43, %v499_v37  ;;  %v1016_v37 = vld [vmem:[#allocation6 + $0x28] sm:$0xff]  ;;  %3969 = vmatpush1.bf16.msra.mxu1 %v3968_v34  ;;  %1425 = vmatprep.mubr.f32.mxu0 %v4270_v40  ;;  %v1018_v43 = vld [vmem:[#allocation6 + $0x38] sm:$0xff] }
  0xae   : > { %3835 = vmatprep.subr.msk.mxu1 %vm1189_vm0, %v1128_v36  ;;  %v3970_v42 = vpack.c.bf16 %v1073_v39, %v1016_v37  ;;  %1502 = vmatprep.mubr.f32.mxu1 %v4270_v40 }
  0xaf   : > { %v503_v49 = vmul.f32 %v500_v46, %v495_v44  ;;  %v513_v50 = vmul.f32 %v510_v47, %v505_v45  ;;  %v517_v51 = vmul.f32 %v510_v47, %v495_v44  ;;  %v519_v52 = vmul.f32 %v505_v45, %v500_v46  ;;  %v1075_v44 = vld [vmem:[#allocation6 + $0x200] sm:$0xff]  ;;  %3832 = vmatpush1.msk.msra.mxu0 %vm1189_vm0, %v1125_v38 }
  0xb0   : > { %v502_v53 = vmul.f32 %v500_v46, %v494_v1  ;;  %v512_v54 = vmul.f32 %v510_v47, %v504_v48  ;;  %v516_v55 = vmul.f32 %v510_v47, %v494_v1  ;;  %v518_v56 = vmul.f32 %v504_v48, %v500_v46  ;;  %3971 = vmatprep.subr.bf16.mxu0 %v3970_v42  ;;  %v3813_v1 = vld [vmem:[#allocation2] ss:$0 sm:$0xff]  ;;  %v3814_v48 = vld [vmem:[#allocation4] ss:$0 sm:$0xff] }
  0xb1   : > { %v515_v57 = vsub.f32 %v503_v49, %v513_v50  ;;  %v521_v58 = vadd.f32 %v519_v52, %v517_v51  ;;  %v3974_v45 = vpack.c.bf16 %v1075_v44, %v1018_v43  ;;  %3836 = vmatpush1.msk.msra.mxu1 %vm1189_vm0, %v1127_v41 }
  0xb2   : > { %v514_v59 = vsub.f32 %v502_v53, %v512_v54  ;;  %v520_v60 = vadd.f32 %v518_v56, %v516_v55 }
  0xb3   : > { %548 = vperm.xlu1 %4141, %v515_v57   ;;  %v523_v61 = vmul.f32 %v515_v57, %v515_v57  ;;  %v525_v62 = vmul.f32 %v521_v58, %v521_v58  ;;  %3975 = vmatprep.subr.bf16.mxu1 %v3974_v45 }
  0xb4   : > { %543 = vperm.xlu0 %4140, %v514_v59   ;;  %v522_v63 = vmul.f32 %v514_v59, %v514_v59  ;;  %v524_v0 = vmul.f32 %v520_v60, %v520_v60 }
  0xb5   : > { %v527_v2 = vadd.f32 %v525_v62, %v523_v61 }
  0xb6   : > { %v526_v3 = vadd.f32 %v524_v0, %v522_v63 }
  0xb7   : > { %567 = vperm.xlu1 %4141, %v521_v58   ;;  %v3812_v5 = vadd.f32 -1.0, %v527_v2 }
  0xb8   : > { %562 = vperm.xlu0 %4140, %v520_v60   ;;  %v3811_v6 = vadd.f32 -1.0, %v526_v3 }
  0xb9   : > { %v531_v7 = vmax.f32 %v3812_v5, 0.0 }
  0xba   : > { %v530_v8 = vmax.f32 %v3811_v6, 0.0 }
  0xbb   : > { %v533_v9 = vsub.f32 0.0, %v531_v7 }
  0xbc   : > { %v532_v10 = vsub.f32 0.0, %v530_v8 }
  0xbd   : > { %v535_v11 = vmul.f32 5.0, %v533_v9 }
  0xbe   : > { %v534_v12 = vmul.f32 5.0, %v532_v10 }
  0xbf   : > { %v538_v14 = vmul.f32 1.442695, %v535_v11 }
  0xc0   : > { %v536_v16 = vmul.f32 1.442695, %v534_v12 }
  0xc1   : > { %4146 = vpow2.f32 %v538_v14 }
  0xc2   : > { %4148 = vpow2.f32 %v536_v16 }
  0xcb   : > { %v4147_v18 = vpop.eup %4146 }
  0xcc   : > { %v4149_v20 = vpop.eup %4148  ;;  %1006 = vperm.xlu1 %4141, %v4147_v18  }
  0xcd   : > { %1001 = vperm.xlu0 %4140, %v4149_v20  }
 0x132   : > { %v549_v46 = vpop.permute.xlu1 %548 }
 0x133   : > { %v544_v47 = vpop.permute.xlu0 %543  ;;  %v558_v49 = vmul.f32 %v3813_v1, %v549_v46 }
 0x134   : > { %v557_v53 = vmul.f32 %v3813_v1, %v544_v47 }
 0x136   : > { %v568_v50 = vpop.permute.xlu1 %567 }
 0x137   : > { %v577_v51 = vmul.f32 %v3814_v48, %v568_v50  ;;  %v563_v52 = vpop.permute.xlu0 %562 }
 0x138   : > { %v576_v54 = vmul.f32 %v3814_v48, %v563_v52 }
 0x139   : > { %v4473_v55 = vadd.f32 %v577_v51, %v558_v49 }
 0x13a   : > { %v4475_v56 = vadd.f32 %v576_v54, %v557_v53 }
 0x13b   : > { %v686_v57 = vand.u32 2147483647, %v4473_v55  ;;  %v689_v58 = vand.u32 2139095040, %v4473_v55  ;;  %vm688_vm15 = vcmp.lt.s32.totalorder %v4473_v55, 0 }
 0x13c   : > { %v586_v59 = vand.u32 2139095040, %v4475_v56  ;;  %v583_v62 = vand.u32 2147483647, %v4475_v56 }
 0x13d   : > { %v690_v60 = vshrl.u32 %v689_v58, 23  ;;  %v693_v61 = vand.u32 8388607, %v686_v57 }
 0x13e   : > { %v587_v63 = vshrl.u32 %v586_v59, 23  ;;  %v590_v6 = vand.u32 8388607, %v583_v62 }
 0x13f   : > { %v3819_v0 = vadd.s32 4294967169, %v690_v60  ;;  %v694_v5 = vor.u32 8388608, %v693_v61 }
 0x140   : > { %v3815_v2 = vadd.s32 4294967169, %v587_v63  ;;  %v591_v14 = vor.u32 8388608, %v590_v6 }
 0x141   : > { %v696_v3 = vadd.s32 1, %v3819_v0  ;;  %v4485_v12 = vshll.u32 %v694_v5, 8 }
 0x142   : > { %v593_v7 = vadd.s32 1, %v3815_v2 }
 0x143   : > { %vm697_vm1 = vcmp.gt.s32.totalorder %v696_v3, 0 }
 0x144   : > { %v698_v8 = vsel %vm697_vm1, %v696_v3, 0  ;;  %vm594_vm2 = vcmp.gt.s32.totalorder %v593_v7, 0  ;;  %vm687_vm1 = vcmp.le.f32.partialorder %v686_v57, 0.7853982 }
 0x145   : > { %v699_v9 = vshrl.u32 %v698_v8, 5  ;;  %v700_v10 = vand.u32 31, %v698_v8  ;;  %v595_v11 = vsel %vm594_vm2, %v593_v7, 0  ;;  %v631_v8 = vshll.u32 %v591_v14, 8 }
 0x146   : > { %v4488_v20 = vshrl.u32 %v595_v11, 5  ;;  %v597_v22 = vand.u32 31, %v595_v11  ;;  %vm585_vm2 = vcmp.lt.s32.totalorder %v4475_v56, 0 }
 0x147   : > { %v701_v16 = vsub.s32 32, %v700_v10  ;;  %v703_v18 = vshll.u32 %v4264_v13, %v700_v10  ;;  %v706_v23 = vshll.u32 %v4265_v15, %v700_v10  ;;  %v709_v24 = vshll.u32 %v4266_v17, %v700_v10 }
 0x148   : > { %v712_v25 = vshll.u32 %v4267_v19, %v700_v10  ;;  %v715_v26 = vshll.u32 %v4268_v21, %v700_v10  ;;  %vm718_vm3 = vcmp.lt.s32.totalorder %v699_v9, 1  ;;  %vm719_vm4 = vcmp.lt.s32.totalorder %v699_v9, 2 }
 0x149   : > { %v704_v29 = vshrl.u32 %v4265_v15, %v701_v16  ;;  %v707_v30 = vshrl.u32 %v4266_v17, %v701_v16  ;;  %v710_v31 = vshrl.u32 %v4267_v19, %v701_v16  ;;  %v702_v32 = vshrl.u32 %v4264_v13, %v701_v16 }
 0x14a   : > { %v713_v33 = vshrl.u32 %v4268_v21, %v701_v16  ;;  %v716_v4 = vshrl.u32 %v4269_v28, %v701_v16  ;;  %v598_v37 = vsub.s32 32, %v597_v22  ;;  %vm720_vm5 = vcmp.lt.s32.totalorder %v699_v9, 3 }
 0x14b   : > { %v705_v34 = vor.u32 %v704_v29, %v703_v18  ;;  %v708_v35 = vor.u32 %v707_v30, %v706_v23  ;;  %v711_v36 = vor.u32 %v710_v31, %v709_v24  ;;  %vm721_vm6 = vcmp.lt.s32.totalorder %v699_v9, 4 }
 0x14c   : > { %v714_v38 = vor.u32 %v713_v33, %v712_v25  ;;  %v717_v39 = vor.u32 %v716_v4, %v715_v26  ;;  %v600_v1 = vshll.u32 %v4264_v13, %v597_v22  ;;  %v601_v50 = vshrl.u32 %v4265_v15, %v598_v37 }
 0x14d   : > { %v722_v41 = vsel %vm718_vm3, %v702_v32, %v705_v34  ;;  %v723_v42 = vsel %vm721_vm6, %v711_v36, 2102212464  ;;  %v726_v43 = vsel %vm718_vm3, %v705_v34, %v708_v35  ;;  %v730_v44 = vsel %vm718_vm3, %v708_v35, %v711_v36 }
 0x14e   : > { %v724_v45 = vsel %vm720_vm5, %v708_v35, %v723_v42  ;;  %v727_v46 = vsel %vm721_vm6, %v714_v38, 920167782  ;;  %v731_v47 = vsel %vm721_vm6, %v717_v39, 1326507024  ;;  %v603_v51 = vshll.u32 %v4265_v15, %v597_v22 }
 0x14f   : > { %v728_v48 = vsel %vm720_vm5, %v711_v36, %v727_v46  ;;  %v732_v49 = vsel %vm720_vm5, %v714_v38, %v731_v47  ;;  %v725_v52 = vsel %vm719_vm4, %v722_v41, %v724_v45  ;;  %v604_v58 = vshrl.u32 %v4266_v17, %v598_v37 }
 0x150   : > { %v729_v53 = vsel %vm719_vm4, %v726_v43, %v728_v48  ;;  %v733_v54 = vsel %vm719_vm4, %v730_v44, %v732_v49  ;;  %v602_v0 = vor.u32 %v601_v50, %v600_v1  ;;  %v606_v15 = vshll.u32 %v4266_v17, %v597_v22 }
 0x151   : > { %v4511_v59 = vmul.u32.u64.low %v4485_v12, %v733_v54  ;;  %v4512_v60 = vmul.u32.u64.high %v4485_v12, %v733_v54, %v4511_v59  ;;  %v4515_v61 = vmul.u32.u64.low %v4485_v12, %v729_v53  ;;  %v4516_v63 = vmul.u32.u64.high %v4485_v12, %v729_v53, %v4515_v61 }
 0x152   : > { %v605_v2 = vor.u32 %v604_v58, %v603_v51  ;;  %v607_v3 = vshrl.u32 %v4267_v19, %v598_v37  ;;  %v609_v5 = vshll.u32 %v4267_v19, %v597_v22  ;;  %v610_v6 = vshrl.u32 %v4268_v21, %v598_v37 }
 0x153   : > { %v613_v7 = vshrl.u32 %v4269_v28, %v598_v37  ;;  %v741_v9 = vmul.u32 %v4485_v12, %v725_v52  ;;  %v599_v10 = vshrl.u32 %v4264_v13, %v598_v37  ;;  %v612_v16 = vshll.u32 %v4268_v21, %v597_v22 }
 0x154   : > { %v608_v11 = vor.u32 %v607_v3, %v606_v15  ;;  %vm743_vm7 = vc.u32 %v4512_v60, %v4515_v61  ;;  %v744_v17 = vadd.s32 1, %v4516_v63  ;;  %v611_v18 = vor.u32 %v610_v6, %v609_v5 }
 0x155   : > { %vm615_vm8 = vcmp.lt.s32.totalorder %v4488_v20, 1  ;;  %v614_v19 = vor.u32 %v613_v7, %v612_v16  ;;  %vm617_vm9 = vcmp.lt.s32.totalorder %v4488_v20, 3  ;;  %vm618_vm10 = vcmp.lt.s32.totalorder %v4488_v20, 4 }
 0x156   : > { %v623_v28 = vsel %vm615_vm8, %v602_v0, %v605_v2  ;;  %v745_v12 = vsel %vm743_vm7, %v744_v17, %v4516_v63  ;;  %v620_v14 = vsel %vm618_vm10, %v608_v11, 2102212464  ;;  %v624_v13 = vsel %vm618_vm10, %v611_v18, 920167782 }
 0x157   : > { %v627_v23 = vsel %vm615_vm8, %v605_v2, %v608_v11  ;;  %v746_v24 = vadd.s32 %v745_v12, %v741_v9  ;;  %vm616_vm11 = vcmp.lt.s32.totalorder %v4488_v20, 2  ;;  %v625_v21 = vsel %vm617_vm9, %v608_v11, %v624_v13 }
 0x158   : > { %v628_v22 = vsel %vm618_vm10, %v614_v19, 1326507024  ;;  %v619_v25 = vsel %vm615_vm8, %v599_v10, %v602_v0  ;;  %v621_v26 = vsel %vm617_vm9, %v605_v2, %v620_v14  ;;  %v626_v29 = vsel %vm616_vm11, %v623_v28, %v625_v21 }
 0x159   : > { %v629_v30 = vsel %vm617_vm9, %v611_v18, %v628_v22  ;;  %v747_v31 = vadd.s32 536870912, %v746_v24  ;;  %v4533_v33 = vmul.u32.u64.low %v631_v8, %v626_v29  ;;  %v4534_v4 = vmul.u32.u64.high %v631_v8, %v626_v29, %v4533_v33 }
 0x15a   : > { %v630_v32 = vsel %vm616_vm11, %v627_v23, %v629_v30  ;;  %v622_v37 = vsel %vm616_vm11, %v619_v25, %v621_v26  ;;  %v742_v53 = vadd.s32 %v4515_v61, %v4512_v60  ;;  %vm584_vm3 = vcmp.le.f32.partialorder %v583_v62, 0.7853982 }
 0x15b   : > { %v4536_v34 = vmul.u32.u64.low %v631_v8, %v630_v32  ;;  %v4537_v35 = vmul.u32.u64.high %v631_v8, %v630_v32, %v4536_v34  ;;  %v748_v36 = vshrl.u32 %v747_v31, 30  ;;  %v641_v39 = vadd.s32 1, %v4534_v4 }
 0x15c   : > { %v638_v20 = vmul.u32 %v631_v8, %v622_v37 }
 0x15d   : > { %v749_v38 = vshll.u32 %v748_v36, 30  ;;  %vm640_vm12 = vc.u32 %v4537_v35, %v4533_v33  ;;  %v639_v11 = vadd.s32 %v4533_v33, %v4537_v35  ;;  %v772_v21 = vsub.s32 4, %v748_v36 }
 0x15e   : > { %v642_v42 = vsel %vm640_vm12, %v641_v39, %v4534_v4  ;;  %v581_v39 = vand.u32 127, %v497_v27 }
 0x15f   : > { %v750_v41 = vsub.s32 %v746_v24, %v749_v38  ;;  %v643_v43 = vadd.s32 %v642_v42, %v638_v20  ;;  %v773_v30 = vsel %vm688_vm15, %v772_v21, %v748_v36  ;;  %v1079_v21 = vld [vmem:[#allocation6 + $0x220] sm:$0xff] }
 0x160   : > { %v775_v33 = vsel %vm687_vm1, 0, %v773_v30  ;;  %vm582_vm4 = vcmp.lt.s32.totalorder %v581_v39, 9  ;;  %v1026_v39 = vld [vmem:[#allocation6 + $0x78] sm:$0xff] }
 0x161   : > { %v752_v44 = vsub.s32 0, %v750_v41  ;;  %v644_v45 = vadd.s32 536870912, %v643_v43  ;;  %v986_v34 = vadd.s32 3, %v775_v33  ;;  %v779_v20 = vand.u32 3, %v775_v33  ;;  %v1134_v33 = vld [vmem:[#allocation6 + $0x3d8] sm:$0x3] }
 0x163   : > { %v3820_v46 = vmin.u32 %v752_v44, %v750_v41  ;;  %v645_v47 = vshrl.u32 %v644_v45, 30  ;;  %vm781_vm5 = vcmp.eq.s32.totalorder %v779_v20, 0  ;;  %vm784_vm6 = vcmp.eq.s32.totalorder %v779_v20, 2 }
 0x164   : > { %vm780_vm9 = vcmp.lt.s32.totalorder %v779_v20, 2 }
 0x165   : > { %v754_v1 = vclz %v3820_v46  ;;  %v646_v48 = vshll.u32 %v645_v47, 30  ;;  %v669_v29 = vsub.s32 4, %v645_v47 }
 0x167   : > { %v3821_v49 = vadd.s32 4294967294, %v754_v1  ;;  %v647_v50 = vsub.s32 %v643_v43, %v646_v48  ;;  %v670_v57 = vsel %vm585_vm2, %v669_v29, %v645_v47  ;;  %v1078_v29 = vld [vmem:[#allocation6 + $0x218] sm:$0xff] }
 0x168   : > { %v672_v35 = vsel %vm584_vm3, 0, %v670_v57  ;;  %v1024_v57 = vld [vmem:[#allocation6 + $0x68] sm:$0xff] }
 0x169   : > { %vm3822_vm13 = vcmp.lt.s32.totalorder %v3821_v49, 0  ;;  %v649_v52 = vsub.s32 0, %v647_v50  ;;  %v882_v36 = vadd.s32 3, %v672_v35  ;;  %v676_v44 = vand.u32 3, %v672_v35  ;;  %v1136_v35 = vld [vmem:[#allocation6 + $0x3e8] sm:$0x3] }
 0x16a   : > { %v757_v51 = vsel %vm3822_vm13, 0, %v3821_v49 }
 0x16b   : > { %v758_v54 = vsub.s32 32, %v757_v51  ;;  %v762_v58 = vsub.s32 4294967266, %v757_v51  ;;  %v3816_v59 = vmin.u32 %v649_v52, %v647_v50  ;;  %v759_v63 = vshll.u32 %v750_v41, %v757_v51 }
 0x16c   : > { %v987_v41 = vand.u32 3, %v986_v34  ;;  %v883_v45 = vand.u32 3, %v882_v36  ;;  %vm678_vm11 = vcmp.eq.s32.totalorder %v676_v44, 0  ;;  %vm681_vm12 = vcmp.eq.s32.totalorder %v676_v44, 2  ;;  %v1133_v34 = vld [vmem:[#allocation6 + $0x3d0] sm:$0x3] }
 0x16d   : > { %v760_v0 = vshrl.u32 %v742_v53, %v758_v54  ;;  %v763_v2 = vadd.s32 127, %v762_v58  ;;  %v651_v15 = vclz %v3816_v59  ;;  %v1083_v36 = vld [vmem:[#allocation6 + $0x240] sm:$0xff] }
 0x16e   : > { %vm989_vm7 = vcmp.eq.s32.totalorder %v987_v41, 0  ;;  %vm992_vm8 = vcmp.eq.s32.totalorder %v987_v41, 2  ;;  %vm988_vm10 = vcmp.lt.s32.totalorder %v987_v41, 2  ;;  %vm885_vm13 = vcmp.eq.s32.totalorder %v883_v45, 0  ;;  %v1135_v41 = vld [vmem:[#allocation6 + $0x3e0] sm:$0x3] }
 0x16f   : > { %v761_v3 = vor.u32 %v760_v0, %v759_v63  ;;  %v764_v5 = vshll.u32 %v763_v2, 23  ;;  %v3817_v6 = vadd.s32 4294967294, %v651_v15  ;;  %v1015_v63 = vld [vmem:[#allocation6 + $0x20] sm:$0xff]  ;;  %v1072_v0 = vld [vmem:[#allocation6 + $0x1e8] sm:$0xff] }
 0x171   : > { %v765_v7 = vor.u32 4788187, %v764_v5  ;;  %vm3818_vm14 = vcmp.lt.s32.totalorder %v3817_v6, 0  ;;  %v768_v9 = vcvt.s32.f32 %v761_v3 }
 0x172   : > { %v654_v10 = vsel %vm3818_vm14, 0, %v3817_v6  ;;  %vm888_vm14 = vcmp.eq.s32.totalorder %v883_v45, 2 }
 0x173   : > { %v766_v8 = vand.u32 2147483647, %v765_v7  ;;  %v655_v16 = vsub.s32 32, %v654_v10  ;;  %v659_v17 = vsub.s32 4294967266, %v654_v10  ;;  %v656_v61 = vshll.u32 %v647_v50, %v654_v10 }
 0x175   : > { %v769_v60 = vmul.f32 %v768_v9, %v766_v8  ;;  %v657_v18 = vshrl.u32 %v639_v11, %v655_v16  ;;  %v660_v19 = vadd.s32 127, %v659_v17  ;;  %v1017_v8 = vld [vmem:[#allocation6 + $0x30] sm:$0xff]  ;;  %v1074_v9 = vld [vmem:[#allocation6 + $0x1f8] sm:$0xff]  ;;  %v1002_v11 = vpop.permute.xlu0 %1001  ;;  %v3972_v16 = vpack.c.bf16 %v1072_v0, %v1015_v63 }
 0x177   : > { %v770_v28 = vxor.u32 2147483648, %v769_v60  ;;  %v658_v12 = vor.u32 %v657_v18, %v656_v61  ;;  %v661_v14 = vshll.u32 %v660_v19, 23  ;;  %v3976_v61 = vpack.c.bf16 %v1074_v9, %v1017_v8  ;;  %v1077_v18 = vld [vmem:[#allocation6 + $0x210] sm:$0xff]  ;;  %v1007_v19 = vpop.permute.xlu1 %1006  ;;  %v1031_v8 = vld [vmem:[#allocation6 + $0xa0] sm:$0xff]  ;;  %v1088_v9 = vld [vmem:[#allocation6 + $0x268] sm:$0xff] }
 0x179   : > { %v771_v13 = vsel %vm688_vm15, %v770_v28, %v769_v60  ;;  %v662_v23 = vor.u32 4788187, %v661_v14  ;;  %v665_v25 = vcvt.s32.f32 %v658_v12  ;;  %vm677_vm15 = vcmp.lt.s32.totalorder %v676_v44, 2  ;;  %v1129_v28 = vld [vmem:[#allocation6 + $0x3b0] sm:$0x3]  ;;  %v1019_v14 = vld [vmem:[#allocation6 + $0x40] sm:$0xff] }
 0x17a   : > { %v774_v24 = vsel %vm687_vm1, %v4473_v55, %v771_v13  ;;  %vm884_vm1 = vcmp.lt.s32.totalorder %v883_v45, 2  ;;  %v1132_v12 = vld [vmem:[#allocation6 + $0x3c8] sm:$0x3]  ;;  %v3990_v45 = vpack.c.bf16 %v1083_v36, %v1026_v39  ;;  %v1039_v36 = vld [vmem:[#allocation6 + $0xe0] sm:$0xff] }
 0x17b   : > { %v663_v22 = vand.u32 2147483647, %v662_v23  ;;  %4150 = vcosq.f32 %v774_v24  ;;  %v1076_v23 = vld [vmem:[#allocation6 + $0x208] sm:$0xff] }
 0x17c   : > { %4152 = vsinq.f32 %v774_v24  ;;  %v1022_v24 = vld [vmem:[#allocation6 + $0x58] sm:$0xff]  ;;  %v3980_v30 = vpack.c.bf16 %v1076_v23, %v1019_v14  ;;  %v1093_v14 = vld [vmem:[#allocation6 + $0x290] sm:$0xff]  ;;  %v1152_v39 = vld [vmem:[#allocation6 + $0x468] sm:$0x3] }
 0x17d   : > { %v666_v26 = vmul.f32 %v665_v25, %v663_v22  ;;  %v1131_v25 = vld [vmem:[#allocation6 + $0x3c0] sm:$0x3]  ;;  %v1145_v23 = vld [vmem:[#allocation6 + $0x430] sm:$0x3] }
 0x17f   : > { %v667_v31 = vxor.u32 2147483648, %v666_v26 }
 0x181   : > { %v668_v32 = vsel %vm585_vm2, %v667_v31, %v666_v26  ;;  %vm778_vm2 = vweird.f32 %v4473_v55  ;;  %v1130_v55 = vld [vmem:[#allocation6 + $0x3b8] sm:$0x3]  ;;  %v1021_v26 = vld [vmem:[#allocation6 + $0x50] sm:$0xff]  ;;  %v3982_v31 = vpack.c.bf16 %v1079_v21, %v1022_v24  ;;  %v1148_v24 = vld [vmem:[#allocation6 + $0x448] sm:$0x3] }
 0x182   : > { %v671_v4 = vsel %vm584_vm3, %v4475_v56, %v668_v32  ;;  %vm675_vm3 = vweird.f32 %v4475_v56  ;;  %v1020_v56 = vld [vmem:[#allocation6 + $0x48] sm:$0xff]  ;;  %v3984_v32 = vpack.c.bf16 %v1078_v29, %v1021_v26  ;;  %v1035_v21 = vld [vmem:[#allocation6 + $0xc0] sm:$0xff] }
 0x183   : > { %4154 = vcosq.f32 %v671_v4  ;;  %v3978_v22 = vpack.c.bf16 %v1077_v18, %v1020_v56  ;;  %v4004_v56 = vpack.c.bf16 %v1088_v9, %v1031_v8  ;;  %v1095_v26 = vld [vmem:[#allocation6 + $0x2a0] sm:$0xff]  ;;  %v1105_v8 = vld [vmem:[#allocation6 + $0x2f0] sm:$0xff] }
 0x184   : > { %4156 = vsinq.f32 %v671_v4  ;;  %v1081_v4 = vld [vmem:[#allocation6 + $0x230] sm:$0xff] }
 0x185   : > { %v4151_v37 = vpop.eup %4150  ;;  %v3986_v20 = vpack.c.bf16 %v1081_v4, %v1024_v57  ;;  %v1157_v9 = vld [vmem:[#allocation6 + $0x490] sm:$0x3] }
 0x186   : > { %v4153_v38 = vpop.eup %4152  ;;  %v785_v43 = vxor.u32 2147483648, %v4151_v37 }
 0x187   : > { %v782_v42 = vxor.u32 2147483648, %v4153_v38 }
 0x188   : > { %v786_v47 = vsel %vm784_vm6, %v785_v43, %v4153_v38  ;;  %v994_v48 = vsel %vm992_vm8, %v785_v43, %v4153_v38  ;;  %v1080_v38 = vld [vmem:[#allocation6 + $0x228] sm:$0xff]  ;;  %v1082_v43 = vld [vmem:[#allocation6 + $0x238] sm:$0xff] }
 0x189   : > { %v783_v46 = vsel %vm781_vm5, %v4151_v37, %v782_v42  ;;  %v991_v1 = vsel %vm989_vm7, %v4151_v37, %v782_v42  ;;  %vm1182_vm5 = vcmask 146432   ;;  %v1023_v37 = vld [vmem:[#allocation6 + $0x60] sm:$0xff]  ;;  %v1025_v42 = vld [vmem:[#allocation6 + $0x70] sm:$0xff] }
 0x18a   : > { %v787_v51 = vsel %vm780_vm9, %v783_v46, %v786_v47  ;;  %v995_v52 = vsel %vm988_vm10, %v991_v1, %v994_v48  ;;  %v3988_v44 = vpack.c.bf16 %v1080_v38, %v1023_v37  ;;  %v1138_v46 = vld [vmem:[#allocation6 + $0x3f8] sm:$0x3]  ;;  %v1028_v47 = vld [vmem:[#allocation6 + $0x88] sm:$0xff]  ;;  %v1085_v1 = vld [vmem:[#allocation6 + $0x250] sm:$0xff] }
 0x18b   : > { %v788_v3 = vsel %vm778_vm2, nan, %v787_v51  ;;  %v996_v5 = vsel %vm778_vm2, nan, %v995_v52  ;;  %v1137_v48 = vld [vmem:[#allocation6 + $0x3f0] sm:$0x3]  ;;  %v1030_v51 = vld [vmem:[#allocation6 + $0x98] sm:$0xff]  ;;  %v1087_v52 = vld [vmem:[#allocation6 + $0x260] sm:$0xff] }
 0x18c   : > { %v998_v60 = vsel %vm582_vm4, %v788_v3, %v996_v5  ;;  %v3998_v0 = vpack.c.bf16 %v1087_v52, %v1030_v51  ;;  %v1032_v3 = vld [vmem:[#allocation6 + $0xa8] sm:$0xff]  ;;  %v1089_v5 = vld [vmem:[#allocation6 + $0x270] sm:$0xff]  ;;  %v1043_v52 = vld [vmem:[#allocation6 + $0x100] sm:$0xff] }
 0x18d   : > { %v4155_v62 = vpop.eup %4154  ;;  %v4564_v13 = vmul.f32 %v1007_v19, %v998_v60  ;;  %v1143_v60 = vld [vmem:[#allocation6 + $0x420] sm:$0x3]  ;;  %v1097_v37 = vld [vmem:[#allocation6 + $0x2b0] sm:$0xff]  ;;  %v1156_v51 = vld [vmem:[#allocation6 + $0x488] sm:$0x3] }
 0x18e   : > { %v4157_v49 = vpop.eup %4156  ;;  %v682_v27 = vxor.u32 2147483648, %v4155_v62  ;;  %v1149_v38 = vld [vmem:[#allocation6 + $0x450] sm:$0x3] }
 0x18f   : > { %v679_v50 = vxor.u32 2147483648, %v4157_v49 }
 0x190   : > { %v683_v53 = vsel %vm681_vm12, %v682_v27, %v4157_v49  ;;  %v890_v54 = vsel %vm888_vm14, %v682_v27, %v4157_v49  ;;  %v1140_v49 = vld [vmem:[#allocation6 + $0x408] sm:$0x3]  ;;  %v1027_v27 = vld [vmem:[#allocation6 + $0x80] sm:$0xff] }
 0x191   : > { %v680_v58 = vsel %vm678_vm11, %v4155_v62, %v679_v50  ;;  %v887_v59 = vsel %vm885_vm13, %v4155_v62, %v679_v50  ;;  %v3992_v62 = vpack.c.bf16 %v1082_v43, %v1025_v42  ;;  %v1084_v50 = vld [vmem:[#allocation6 + $0x248] sm:$0xff]  ;;  %v1099_v42 = vld [vmem:[#allocation6 + $0x2c0] sm:$0xff] }
 0x192   : > { %v684_v2 = vsel %vm677_vm15, %v680_v58, %v683_v53  ;;  %v891_v15 = vsel %vm884_vm1, %v887_v59, %v890_v54  ;;  %v3994_v53 = vpack.c.bf16 %v1085_v1, %v1028_v47  ;;  %v1139_v54 = vld [vmem:[#allocation6 + $0x400] sm:$0x3]  ;;  %v1029_v58 = vld [vmem:[#allocation6 + $0x90] sm:$0xff]  ;;  %v1086_v59 = vld [vmem:[#allocation6 + $0x258] sm:$0xff]  ;;  %v3996_v63 = vpack.c.bf16 %v1084_v50, %v1027_v27 }
 0x193   : > { %v685_v6 = vsel %vm675_vm3, nan, %v684_v2  ;;  %v892_v7 = vsel %vm675_vm3, nan, %v891_v15  ;;  %v4000_v2 = vpack.c.bf16 %v1086_v59, %v1029_v58  ;;  %v1142_v15 = vld [vmem:[#allocation6 + $0x418] sm:$0x3]  ;;  %v1101_v27 = vld [vmem:[#allocation6 + $0x2d0] sm:$0xff]  ;;  %v1103_v58 = vld [vmem:[#allocation6 + $0x2e0] sm:$0xff] }
 0x194   : > { %v997_v10 = vsel %vm582_vm4, %v685_v6, %v892_v7  ;;  %v1141_v6 = vld [vmem:[#allocation6 + $0x410] sm:$0x3]  ;;  %v1144_v7 = vld [vmem:[#allocation6 + $0x428] sm:$0x3]  ;;  %vm3648_vm4 = vcmask 261120  }
 0x195   : > { %v4556_v17 = vmul.f32 %v1002_v11, %v997_v10  ;;  %v1034_v10 = vld [vmem:[#allocation6 + $0xb8] sm:$0xff]  ;;  %v1091_v11 = vld [vmem:[#allocation6 + $0x280] sm:$0xff]  ;;  %v1153_v50 = vld [vmem:[#allocation6 + $0x470] sm:$0x3] }
 0x196   : > { %v4006_v18 = vpack.c.bf16 %v1091_v11, %v1034_v10  ;;  %v1160_v10 = vld [vmem:[#allocation6 + $0x4a8] sm:$0x3]  ;;  %v1047_v11 = vld [vmem:[#allocation6 + $0x120] sm:$0xff] }
 0x197   : > { %3833 = vmatmul.mubr.msk.f32.vlgmr.msra.gmra.mrb[0].mxu0 %vm1182_vm5, %v4556_v17  ;;  %3837 = vmatmul.mubr.msk.f32.vlgmr.msra.gmra.mrb[0].mxu1 %vm1182_vm5, %v4556_v17 }
 0x198   : > { %3973 = vmatpush1.bf16.msra.mxu0 %v3972_v16  ;;  %1431 = vmatprep.mubr.f32.mxu0 %v4270_v40  ;;  %v4002_v16 = vpack.c.bf16 %v1089_v5, %v1032_v3 }
 0x199   : > { %1508 = vmatprep.mubr.f32.mxu1 %v4270_v40  ;;  %3839 = vmatprep.subr.msk.mxu0 %vm1189_vm0, %v1130_v55  ;;  %v1033_v55 = vld [vmem:[#allocation6 + $0xb0] sm:$0xff] }
 0x19a   : > { %3977 = vmatpush1.bf16.msra.mxu1 %v3976_v61  ;;  %v1090_v61 = vld [vmem:[#allocation6 + $0x278] sm:$0xff] }
 0x19b   : > { %3834 = vmatmul.mubr.msk.f32.gmra.mrb[2].mxu0 %vm1182_vm5, %v4564_v13  ;;  %3838 = vmatmul.mubr.msk.f32.gmra.mrb[2].mxu1 %vm1182_vm5, %v4564_v13  ;;  %v4008_v19 = vpack.c.bf16 %v1090_v61, %v1033_v55  ;;  %v1107_v55 = vld [vmem:[#allocation6 + $0x300] sm:$0xff] }
 0x19c   : > { %3840 = vmatpush1.msk.msra.mxu0 %vm1189_vm0, %v1129_v28  ;;  %3843 = vmatprep.subr.msk.mxu1 %vm1189_vm0, %v1132_v12  ;;  %v1146_v28 = vld [vmem:[#allocation6 + $0x438] sm:$0x3]  ;;  %v1036_v12 = vld [vmem:[#allocation6 + $0xc8] sm:$0xff] }
 0x19d   : > { %1579 = vmatprep.mubr.f32.mxu0 %v4270_v40  ;;  %1656 = vmatprep.mubr.f32.mxu1 %v4270_v40  ;;  %v4010_v29 = vpack.c.bf16 %v1093_v14, %v1036_v12 }
 0x19e   : > { %3844 = vmatpush1.msk.msra.mxu1 %vm1189_vm0, %v1131_v25  ;;  %3979 = vmatprep.subr.bf16.mxu0 %v3978_v22  ;;  %v1092_v22 = vld [vmem:[#allocation6 + $0x288] sm:$0xff]  ;;  %v1038_v25 = vld [vmem:[#allocation6 + $0xd8] sm:$0xff] }
 0x19f   : > { %3841 = vmatmul.mubr.msk.f32.vlgmr.msra.gmra.mrb[4].mxu0 %vm1182_vm5, %v4556_v17  ;;  %3845 = vmatmul.mubr.msk.f32.vlgmr.msra.gmra.mrb[4].mxu1 %vm1182_vm5, %v4556_v17  ;;  %v4014_v57 = vpack.c.bf16 %v1095_v26, %v1038_v25  ;;  %v1164_v25 = vld [vmem:[#allocation6 + $0x4c8] sm:$0x3]  ;;  %v1051_v26 = vld [vmem:[#allocation6 + $0x140] sm:$0xff] }
 0x1a0   : > { %3981 = vmatpush1.bf16.msra.mxu0 %v3980_v30  ;;  %3983 = vmatprep.subr.bf16.mxu1 %v3982_v31  ;;  %v1147_v30 = vld [vmem:[#allocation6 + $0x440] sm:$0x3]  ;;  %v1037_v31 = vld [vmem:[#allocation6 + $0xd0] sm:$0xff] }
 0x1a1   : > { %1585 = vmatprep.mubr.f32.mxu0 %v4270_v40  ;;  %1662 = vmatprep.mubr.f32.mxu1 %v4270_v40 }
 0x1a2   : > { %3847 = vmatprep.subr.msk.mxu0 %vm1189_vm0, %v1134_v33  ;;  %3985 = vmatpush1.bf16.msra.mxu1 %v3984_v32  ;;  %v1094_v32 = vld [vmem:[#allocation6 + $0x298] sm:$0xff]  ;;  %v4012_v33 = vpack.c.bf16 %v1092_v22, %v1035_v21  ;;  %v1109_v21 = vld [vmem:[#allocation6 + $0x310] sm:$0xff] }
 0x1a3   : > { %3842 = vmatmul.mubr.msk.f32.gmra.mrb[6].mxu0 %vm1182_vm5, %v4564_v13  ;;  %3846 = vmatmul.mubr.msk.f32.gmra.mrb[6].mxu1 %vm1182_vm5, %v4564_v13  ;;  %v4016_v4 = vpack.c.bf16 %v1094_v32, %v1037_v31  ;;  %v1161_v22 = vld [vmem:[#allocation6 + $0x4b0] sm:$0x3]  ;;  %v1111_v31 = vld [vmem:[#allocation6 + $0x320] sm:$0xff] }
 0x1a4   : > { %3848 = vmatpush1.msk.msra.mxu0 %vm1189_vm0, %v1133_v34  ;;  %3851 = vmatprep.subr.msk.mxu1 %vm1189_vm0, %v1136_v35  ;;  %v1150_v34 = vld [vmem:[#allocation6 + $0x458] sm:$0x3]  ;;  %v1040_v35 = vld [vmem:[#allocation6 + $0xe8] sm:$0xff] }
 0x1a5   : > { %1733 = vmatprep.mubr.f32.mxu0 %v4270_v40  ;;  %1810 = vmatprep.mubr.f32.mxu1 %v4270_v40  ;;  %v4018_v43 = vpack.c.bf16 %v1097_v37, %v1040_v35 }
 0x1a6   : > { %3852 = vmatpush1.msk.msra.mxu1 %vm1189_vm0, %v1135_v41  ;;  %3987 = vmatprep.subr.bf16.mxu0 %v3986_v20  ;;  %v1096_v20 = vld [vmem:[#allocation6 + $0x2a8] sm:$0xff]  ;;  %v1042_v41 = vld [vmem:[#allocation6 + $0xf8] sm:$0xff] }
 0x1a7   : > { %3849 = vmatmul.mubr.msk.f32.vlgmr.msra.gmra.mrb[8].mxu0 %vm1182_vm5, %v4556_v17  ;;  %3853 = vmatmul.mubr.msk.f32.vlgmr.msra.gmra.mrb[8].mxu1 %vm1182_vm5, %v4556_v17  ;;  %v4022_v47 = vpack.c.bf16 %v1099_v42, %v1042_v41  ;;  %v1168_v41 = vld [vmem:[#allocation6 + $0x4e8] sm:$0x3]  ;;  %v1055_v42 = vld [vmem:[#allocation6 + $0x160] sm:$0xff] }
 0x1a8   : > { %3989 = vmatpush1.bf16.msra.mxu0 %v3988_v44  ;;  %3991 = vmatprep.subr.bf16.mxu1 %v3990_v45  ;;  %v1151_v44 = vld [vmem:[#allocation6 + $0x460] sm:$0x3]  ;;  %v1041_v45 = vld [vmem:[#allocation6 + $0xf0] sm:$0xff] }
 0x1a9   : > { %1739 = vmatprep.mubr.f32.mxu0 %v4270_v40  ;;  %1816 = vmatprep.mubr.f32.mxu1 %v4270_v40 }
 0x1aa   : > { %3855 = vmatprep.subr.msk.mxu0 %vm1189_vm0, %v1138_v46  ;;  %3993 = vmatpush1.bf16.msra.mxu1 %v3992_v62  ;;  %v1098_v62 = vld [vmem:[#allocation6 + $0x2b8] sm:$0xff]  ;;  %v4020_v46 = vpack.c.bf16 %v1096_v20, %v1039_v36  ;;  %v1113_v36 = vld [vmem:[#allocation6 + $0x330] sm:$0xff] }
 0x1ab   : > { %3850 = vmatmul.mubr.msk.f32.gmra.mrb[10].mxu0 %vm1182_vm5, %v4564_v13  ;;  %3854 = vmatmul.mubr.msk.f32.gmra.mrb[10].mxu1 %vm1182_vm5, %v4564_v13  ;;  %v4024_v1 = vpack.c.bf16 %v1098_v62, %v1041_v45  ;;  %v1165_v20 = vld [vmem:[#allocation6 + $0x4d0] sm:$0x3]  ;;  %v1115_v45 = vld [vmem:[#allocation6 + $0x340] sm:$0xff] }
 0x1ac   : > { %3856 = vmatpush1.msk.msra.mxu0 %vm1189_vm0, %v1137_v48  ;;  %3859 = vmatprep.subr.msk.mxu1 %vm1189_vm0, %v1140_v49  ;;  %v1154_v48 = vld [vmem:[#allocation6 + $0x478] sm:$0x3]  ;;  %v1044_v49 = vld [vmem:[#allocation6 + $0x108] sm:$0xff] }
 0x1ad   : > { %1887 = vmatprep.mubr.f32.mxu0 %v4270_v40  ;;  %1964 = vmatprep.mubr.f32.mxu1 %v4270_v40  ;;  %v4026_v59 = vpack.c.bf16 %v1101_v27, %v1044_v49 }
 0x1ae   : > { %3860 = vmatpush1.msk.msra.mxu1 %vm1189_vm0, %v1139_v54  ;;  %3995 = vmatprep.subr.bf16.mxu0 %v3994_v53  ;;  %v1100_v53 = vld [vmem:[#allocation6 + $0x2c8] sm:$0xff]  ;;  %v1046_v54 = vld [vmem:[#allocation6 + $0x118] sm:$0xff] }
 0x1af   : > { %3857 = vmatmul.mubr.msk.f32.vlgmr.msra.gmra.mrb[12].mxu0 %vm1182_vm5, %v4556_v17  ;;  %3861 = vmatmul.mubr.msk.f32.vlgmr.msra.gmra.mrb[12].mxu1 %vm1182_vm5, %v4556_v17  ;;  %v4030_v3 = vpack.c.bf16 %v1103_v58, %v1046_v54  ;;  %v1172_v54 = vld [vmem:[#allocation6 + $0x508] sm:$0x3]  ;;  %v1059_v58 = vld [vmem:[#allocation6 + $0x180] sm:$0xff] }
 0x1b0   : > { %3997 = vmatpush1.bf16.msra.mxu0 %v3996_v63  ;;  %3999 = vmatprep.subr.bf16.mxu1 %v3998_v0  ;;  %v1155_v63 = vld [vmem:[#allocation6 + $0x480] sm:$0x3]  ;;  %v1045_v0 = vld [vmem:[#allocation6 + $0x110] sm:$0xff] }
 0x1b1   : > { %1893 = vmatprep.mubr.f32.mxu0 %v4270_v40  ;;  %1970 = vmatprep.mubr.f32.mxu1 %v4270_v40 }
 0x1b2   : > { %3863 = vmatprep.subr.msk.mxu0 %vm1189_vm0, %v1142_v15  ;;  %4001 = vmatpush1.bf16.msra.mxu1 %v4000_v2  ;;  %v1102_v2 = vld [vmem:[#allocation6 + $0x2d8] sm:$0xff]  ;;  %v4028_v15 = vpack.c.bf16 %v1100_v53, %v1043_v52  ;;  %v1117_v52 = vld [vmem:[#allocation6 + $0x350] sm:$0xff] }
 0x1b3   : > { %3858 = vmatmul.mubr.msk.f32.gmra.mrb[14].mxu0 %vm1182_vm5, %v4564_v13  ;;  %3862 = vmatmul.mubr.msk.f32.gmra.mrb[14].mxu1 %vm1182_vm5, %v4564_v13  ;;  %v4032_v5 = vpack.c.bf16 %v1102_v2, %v1045_v0  ;;  %v1169_v53 = vld [vmem:[#allocation6 + $0x4f0] sm:$0x3]  ;;  %v1119_v0 = vld [vmem:[#allocation6 + $0x360] sm:$0xff] }
 0x1b4   : > { %3864 = vmatpush1.msk.msra.mxu0 %vm1189_vm0, %v1141_v6  ;;  %3867 = vmatprep.subr.msk.mxu1 %vm1189_vm0, %v1144_v7  ;;  %v1158_v6 = vld [vmem:[#allocation6 + $0x498] sm:$0x3]  ;;  %v1048_v7 = vld [vmem:[#allocation6 + $0x128] sm:$0xff] }
 0x1b5   : > { %2041 = vmatprep.mubr.f32.mxu0 %v4270_v40  ;;  %2118 = vmatprep.mubr.f32.mxu1 %v4270_v40  ;;  %v4034_v61 = vpack.c.bf16 %v1105_v8, %v1048_v7 }
 0x1b6   : > { %3868 = vmatpush1.msk.msra.mxu1 %vm1189_vm0, %v1143_v60  ;;  %4003 = vmatprep.subr.bf16.mxu0 %v4002_v16  ;;  %v1104_v16 = vld [vmem:[#allocation6 + $0x2e8] sm:$0xff]  ;;  %v1050_v60 = vld [vmem:[#allocation6 + $0x138] sm:$0xff] }
 0x1b7   : > { %3865 = vmatmul.mubr.msk.f32.vlgmr.msra.gmra.mrb[16].mxu0 %vm1182_vm5, %v4556_v17  ;;  %3869 = vmatmul.mubr.msk.f32.vlgmr.msra.gmra.mrb[16].mxu1 %vm1182_vm5, %v4556_v17  ;;  %v4038_v12 = vpack.c.bf16 %v1107_v55, %v1050_v60  ;;  %v1176_v60 = vld [vmem:[#allocation6 + $0x528] sm:$0x3]  ;;  %v1063_v55 = vld [vmem:[#allocation6 + $0x1a0] sm:$0xff] }
 0x1b8   : > { %4005 = vmatpush1.bf16.msra.mxu0 %v4004_v56  ;;  %4007 = vmatprep.subr.bf16.mxu1 %v4006_v18  ;;  %v1159_v56 = vld [vmem:[#allocation6 + $0x4a0] sm:$0x3]  ;;  %v1049_v18 = vld [vmem:[#allocation6 + $0x130] sm:$0xff] }
 0x1b9   : > { %2047 = vmatprep.mubr.f32.mxu0 %v4270_v40  ;;  %2124 = vmatprep.mubr.f32.mxu1 %v4270_v40 }
 0x1ba   : > { %3871 = vmatprep.subr.msk.mxu0 %vm1189_vm0, %v1146_v28  ;;  %4009 = vmatpush1.bf16.msra.mxu1 %v4008_v19  ;;  %v1106_v19 = vld [vmem:[#allocation6 + $0x2f8] sm:$0xff]  ;;  %v4036_v28 = vpack.c.bf16 %v1104_v16, %v1047_v11  ;;  %v1121_v11 = vld [vmem:[#allocation6 + $0x370] sm:$0xff] }
 0x1bb   : > { %3866 = vmatmul.mubr.msk.f32.gmra.mrb[18].mxu0 %vm1182_vm5, %v4564_v13  ;;  %3870 = vmatmul.mubr.msk.f32.gmra.mrb[18].mxu1 %vm1182_vm5, %v4564_v13  ;;  %v4040_v14 = vpack.c.bf16 %v1106_v19, %v1049_v18  ;;  %v1173_v16 = vld [vmem:[#allocation6 + $0x510] sm:$0x3]  ;;  %v1123_v18 = vld [vmem:[#allocation6 + $0x380] sm:$0xff] }
 0x1bc   : > { %3872 = vmatpush1.msk.msra.mxu0 %vm1189_vm0, %v1145_v23  ;;  %3875 = vmatprep.subr.msk.mxu1 %vm1189_vm0, %v1148_v24  ;;  %v1162_v23 = vld [vmem:[#allocation6 + $0x4b8] sm:$0x3]  ;;  %v1052_v24 = vld [vmem:[#allocation6 + $0x148] sm:$0xff] }
 0x1bd   : > { %2195 = vmatprep.mubr.f32.mxu0 %v4270_v40  ;;  %2272 = vmatprep.mubr.f32.mxu1 %v4270_v40  ;;  %v4042_v32 = vpack.c.bf16 %v1109_v21, %v1052_v24 }
 0x1be   : > { %3876 = vmatpush1.msk.msra.mxu1 %vm1189_vm0, %v1147_v30  ;;  %4011 = vmatprep.subr.bf16.mxu0 %v4010_v29  ;;  %v1108_v29 = vld [vmem:[#allocation6 + $0x308] sm:$0xff]  ;;  %v1054_v30 = vld [vmem:[#allocation6 + $0x158] sm:$0xff] }
 0x1bf   : > { %3873 = vmatmul.mubr.msk.f32.vlgmr.msra.gmra.mrb[20].mxu0 %vm1182_vm5, %v4556_v17  ;;  %3877 = vmatmul.mubr.msk.f32.vlgmr.msra.gmra.mrb[20].mxu1 %vm1182_vm5, %v4556_v17  ;;  %v4046_v35 = vpack.c.bf16 %v1111_v31, %v1054_v30  ;;  %v1180_v30 = vld [vmem:[#allocation6 + $0x548] sm:$0x3] }
 0x1c0   : > { %4013 = vmatpush1.bf16.msra.mxu0 %v4012_v33  ;;  %4015 = vmatprep.subr.bf16.mxu1 %v4014_v57  ;;  %v1163_v33 = vld [vmem:[#allocation6 + $0x4c0] sm:$0x3]  ;;  %v1053_v57 = vld [vmem:[#allocation6 + $0x150] sm:$0xff] }
 0x1c1   : > { %2201 = vmatprep.mubr.f32.mxu0 %v4270_v40  ;;  %2278 = vmatprep.mubr.f32.mxu1 %v4270_v40 }
 0x1c2   : > { %3879 = vmatprep.subr.msk.mxu0 %vm1189_vm0, %v1150_v34  ;;  %4017 = vmatpush1.bf16.msra.mxu1 %v4016_v4  ;;  %v1110_v4 = vld [vmem:[#allocation6 + $0x318] sm:$0xff]  ;;  %v4044_v34 = vpack.c.bf16 %v1108_v29, %v1051_v26  ;;  %v1124_v26 = vld [vmem:[#allocation6 + $0x388] sm:$0xff]  ;;  %v1177_v29 = vld [vmem:[#allocation6 + $0x530] sm:$0x3] }
 0x1c3   : > { %3874 = vmatmul.mubr.msk.f32.gmra.mrb[22].mxu0 %vm1182_vm5, %v4564_v13  ;;  %3878 = vmatmul.mubr.msk.f32.gmra.mrb[22].mxu1 %vm1182_vm5, %v4564_v13  ;;  %v4048_v37 = vpack.c.bf16 %v1110_v4, %v1053_v57 }
 0x1c4   : > { %3880 = vmatpush1.msk.msra.mxu0 %vm1189_vm0, %v1149_v38  ;;  %3883 = vmatprep.subr.msk.mxu1 %vm1189_vm0, %v1152_v39  ;;  %v1166_v38 = vld [vmem:[#allocation6 + $0x4d8] sm:$0x3]  ;;  %v1056_v39 = vld [vmem:[#allocation6 + $0x168] sm:$0xff] }
 0x1c5   : > { %2349 = vmatprep.mubr.f32.mxu0 %v4270_v40  ;;  %2426 = vmatprep.mubr.f32.mxu1 %v4270_v40  ;;  %v4050_v62 = vpack.c.bf16 %v1113_v36, %v1056_v39 }
 0x1c6   : > { %3884 = vmatpush1.msk.msra.mxu1 %vm1189_vm0, %v1151_v44  ;;  %4019 = vmatprep.subr.bf16.mxu0 %v4018_v43  ;;  %v1112_v43 = vld [vmem:[#allocation6 + $0x328] sm:$0xff]  ;;  %v1058_v44 = vld [vmem:[#allocation6 + $0x178] sm:$0xff] }
 0x1c7   : > { %3881 = vmatmul.mubr.msk.f32.vlgmr.msra.gmra.mrb[24].mxu0 %vm1182_vm5, %v4556_v17  ;;  %3885 = vmatmul.mubr.msk.f32.vlgmr.msra.gmra.mrb[24].mxu1 %vm1182_vm5, %v4556_v17  ;;  %v4054_v49 = vpack.c.bf16 %v1115_v45, %v1058_v44 }
 0x1c8   : > { %4021 = vmatpush1.bf16.msra.mxu0 %v4020_v46  ;;  %4023 = vmatprep.subr.bf16.mxu1 %v4022_v47  ;;  %v1167_v46 = vld [vmem:[#allocation6 + $0x4e0] sm:$0x3]  ;;  %v1057_v47 = vld [vmem:[#allocation6 + $0x170] sm:$0xff] }
 0x1c9   : > { %2355 = vmatprep.mubr.f32.mxu0 %v4270_v40  ;;  %2432 = vmatprep.mubr.f32.mxu1 %v4270_v40 }
 0x1ca   : > { %3887 = vmatprep.subr.msk.mxu0 %vm1189_vm0, %v1154_v48  ;;  %4025 = vmatpush1.bf16.msra.mxu1 %v4024_v1  ;;  %v1114_v1 = vld [vmem:[#allocation6 + $0x338] sm:$0xff]  ;;  %v4052_v48 = vpack.c.bf16 %v1112_v43, %v1055_v42 }
 0x1cb   : > { %3882 = vmatmul.mubr.msk.f32.gmra.mrb[26].mxu0 %vm1182_vm5, %v4564_v13  ;;  %3886 = vmatmul.mubr.msk.f32.gmra.mrb[26].mxu1 %vm1182_vm5, %v4564_v13  ;;  %v4056_v27 = vpack.c.bf16 %v1114_v1, %v1057_v47 }
 0x1cc   : > { %3888 = vmatpush1.msk.msra.mxu0 %vm1189_vm0, %v1153_v50  ;;  %3891 = vmatprep.subr.msk.mxu1 %vm1189_vm0, %v1156_v51  ;;  %v1170_v50 = vld [vmem:[#allocation6 + $0x4f8] sm:$0x3]  ;;  %v1060_v51 = vld [vmem:[#allocation6 + $0x188] sm:$0xff] }
 0x1cd   : > { %2503 = vmatprep.mubr.f32.mxu0 %v4270_v40  ;;  %2580 = vmatprep.mubr.f32.mxu1 %v4270_v40  ;;  %v4058_v2 = vpack.c.bf16 %v1117_v52, %v1060_v51 }
 0x1ce   : > { %3892 = vmatpush1.msk.msra.mxu1 %vm1189_vm0, %v1155_v63  ;;  %4027 = vmatprep.subr.bf16.mxu0 %v4026_v59  ;;  %v1116_v59 = vld [vmem:[#allocation6 + $0x348] sm:$0xff]  ;;  %v1062_v63 = vld [vmem:[#allocation6 + $0x198] sm:$0xff] }
 0x1cf   : > { %3889 = vmatmul.mubr.msk.f32.vlgmr.msra.gmra.mrb[28].mxu0 %vm1182_vm5, %v4556_v17  ;;  %3893 = vmatmul.mubr.msk.f32.vlgmr.msra.gmra.mrb[28].mxu1 %vm1182_vm5, %v4556_v17  ;;  %v4062_v7 = vpack.c.bf16 %v1119_v0, %v1062_v63 }
 0x1d0   : > { %4029 = vmatpush1.bf16.msra.mxu0 %v4028_v15  ;;  %4031 = vmatprep.subr.bf16.mxu1 %v4030_v3  ;;  %v1171_v15 = vld [vmem:[#allocation6 + $0x500] sm:$0x3]  ;;  %v1061_v3 = vld [vmem:[#allocation6 + $0x190] sm:$0xff] }
 0x1d1   : > { %2509 = vmatprep.mubr.f32.mxu0 %v4270_v40  ;;  %2586 = vmatprep.mubr.f32.mxu1 %v4270_v40 }
 0x1d2   : > { %3895 = vmatprep.subr.msk.mxu0 %vm1189_vm0, %v1158_v6  ;;  %4033 = vmatpush1.bf16.msra.mxu1 %v4032_v5  ;;  %v1118_v5 = vld [vmem:[#allocation6 + $0x358] sm:$0xff]  ;;  %v4060_v6 = vpack.c.bf16 %v1116_v59, %v1059_v58 }
 0x1d3   : > { %3890 = vmatmul.mubr.msk.f32.gmra.mrb[30].mxu0 %vm1182_vm5, %v4564_v13  ;;  %3894 = vmatmul.mubr.msk.f32.gmra.mrb[30].mxu1 %vm1182_vm5, %v4564_v13  ;;  %v4064_v8 = vpack.c.bf16 %v1118_v5, %v1061_v3 }
 0x1d4   : > { %3896 = vmatpush1.msk.msra.mxu0 %vm1189_vm0, %v1157_v9  ;;  %3899 = vmatprep.subr.msk.mxu1 %vm1189_vm0, %v1160_v10  ;;  %v1174_v9 = vld [vmem:[#allocation6 + $0x518] sm:$0x3]  ;;  %v1064_v10 = vld [vmem:[#allocation6 + $0x1a8] sm:$0xff] }
 0x1d5   : > { %2657 = vmatprep.mubr.f32.mxu0 %v4270_v40  ;;  %2734 = vmatprep.mubr.f32.mxu1 %v4270_v40  ;;  %v4066_v19 = vpack.c.bf16 %v1121_v11, %v1064_v10 }
 0x1d6   : > { %3900 = vmatpush1.msk.msra.mxu1 %vm1189_vm0, %v1159_v56  ;;  %4035 = vmatprep.subr.bf16.mxu0 %v4034_v61  ;;  %v1120_v61 = vld [vmem:[#allocation6 + $0x368] sm:$0xff]  ;;  %v1066_v56 = vld [vmem:[#allocation6 + $0x1b8] sm:$0xff] }
 0x1d7   : > { %3897 = vmatmul.mubr.msk.f32.vlgmr.msra.gmra.mrb[32].mxu0 %vm1182_vm5, %v4556_v17  ;;  %3901 = vmatmul.mubr.msk.f32.vlgmr.msra.gmra.mrb[32].mxu1 %vm1182_vm5, %v4556_v17  ;;  %v4070_v24 = vpack.c.bf16 %v1123_v18, %v1066_v56 }
 0x1d8   : > { %4037 = vmatpush1.bf16.msra.mxu0 %v4036_v28  ;;  %4039 = vmatprep.subr.bf16.mxu1 %v4038_v12  ;;  %v1175_v28 = vld [vmem:[#allocation6 + $0x520] sm:$0x3]  ;;  %v1065_v12 = vld [vmem:[#allocation6 + $0x1b0] sm:$0xff] }
 0x1d9   : > { %2663 = vmatprep.mubr.f32.mxu0 %v4270_v40  ;;  %2740 = vmatprep.mubr.f32.mxu1 %v4270_v40 }
 0x1da   : > { %3903 = vmatprep.subr.msk.mxu0 %vm1189_vm0, %v1162_v23  ;;  %4041 = vmatpush1.bf16.msra.mxu1 %v4040_v14  ;;  %v1122_v14 = vld [vmem:[#allocation6 + $0x378] sm:$0xff]  ;;  %v4068_v23 = vpack.c.bf16 %v1120_v61, %v1063_v55 }
 0x1db   : > { %3898 = vmatmul.mubr.msk.f32.gmra.mrb[34].mxu0 %vm1182_vm5, %v4564_v13  ;;  %3902 = vmatmul.mubr.msk.f32.gmra.mrb[34].mxu1 %vm1182_vm5, %v4564_v13  ;;  %v4072_v21 = vpack.c.bf16 %v1122_v14, %v1065_v12 }
 0x1dc   : > { %3904 = vmatpush1.msk.msra.mxu0 %vm1189_vm0, %v1161_v22  ;;  %3907 = vmatprep.subr.msk.mxu1 %vm1189_vm0, %v1164_v25  ;;  %v1178_v22 = vld [vmem:[#allocation6 + $0x538] sm:$0x3]  ;;  %v1067_v25 = vld [vmem:[#allocation6 + $0x1c0] sm:$0xff] }
 0x1dd   : > { %2811 = vmatprep.mubr.f32.mxu0 %v4270_v40  ;;  %2888 = vmatprep.mubr.f32.mxu1 %v4270_v40  ;;  %v4074_v31 = vpack.c.bf16 %v1124_v26, %v1067_v25 }
 0x1de   : > { %3908 = vmatpush1.msk.msra.mxu1 %vm1189_vm0, %v1163_v33  ;;  %4043 = vmatprep.subr.bf16.mxu0 %v4042_v32  ;;  %v1179_v32 = vld [vmem:[#allocation6 + $0x540] sm:$0x3]  ;;  %v1181_v33 = vld [vmem:[#allocation6 + $0x550] sm:$0x3] }
 0x1df   : > { %3905 = vmatmul.mubr.msk.f32.vlgmr.msra.gmra.mrb[36].mxu0 %vm1182_vm5, %v4556_v17  ;;  %3909 = vmatmul.mubr.msk.f32.vlgmr.msra.gmra.mrb[36].mxu1 %vm1182_vm5, %v4556_v17 }
 0x1e0   : > { %4045 = vmatpush1.bf16.msra.mxu0 %v4044_v34  ;;  %4047 = vmatprep.subr.bf16.mxu1 %v4046_v35 }
 0x1e1   : > { %2817 = vmatprep.mubr.f32.mxu0 %v4270_v40  ;;  %2894 = vmatprep.mubr.f32.mxu1 %v4270_v40 }
 0x1e2   : > { %3911 = vmatprep.subr.msk.mxu0 %vm1189_vm0, %v1166_v38  ;;  %4049 = vmatpush1.bf16.msra.mxu1 %v4048_v37 }
 0x1e3   : > { %3906 = vmatmul.mubr.msk.f32.gmra.mrb[38].mxu0 %vm1182_vm5, %v4564_v13  ;;  %3910 = vmatmul.mubr.msk.f32.gmra.mrb[38].mxu1 %vm1182_vm5, %v4564_v13 }
 0x1e4   : > { %3912 = vmatpush1.msk.msra.mxu0 %vm1189_vm0, %v1165_v20  ;;  %3915 = vmatprep.subr.msk.mxu1 %vm1189_vm0, %v1168_v41 }
 0x1e5   : > { %2965 = vmatprep.mubr.f32.mxu0 %v4270_v40  ;;  %3042 = vmatprep.mubr.f32.mxu1 %v4270_v40 }
 0x1e6   : > { %3916 = vmatpush1.msk.msra.mxu1 %vm1189_vm0, %v1167_v46  ;;  %4051 = vmatprep.subr.bf16.mxu0 %v4050_v62 }
 0x1e7   : > { %3913 = vmatmul.mubr.msk.f32.vlgmr.msra.gmra.mrb[40].mxu0 %vm1182_vm5, %v4556_v17  ;;  %3917 = vmatmul.mubr.msk.f32.vlgmr.msra.gmra.mrb[40].mxu1 %vm1182_vm5, %v4556_v17 }
 0x1e8   : > { %4053 = vmatpush1.bf16.msra.mxu0 %v4052_v48  ;;  %4055 = vmatprep.subr.bf16.mxu1 %v4054_v49 }
 0x1e9   : > { %2971 = vmatprep.mubr.f32.mxu0 %v4270_v40  ;;  %3048 = vmatprep.mubr.f32.mxu1 %v4270_v40 }
 0x1ea   : > { %3919 = vmatprep.subr.msk.mxu0 %vm1189_vm0, %v1170_v50  ;;  %4057 = vmatpush1.bf16.msra.mxu1 %v4056_v27 }
 0x1eb   : > { %3914 = vmatmul.mubr.msk.f32.gmra.mrb[42].mxu0 %vm1182_vm5, %v4564_v13  ;;  %3918 = vmatmul.mubr.msk.f32.gmra.mrb[42].mxu1 %vm1182_vm5, %v4564_v13 }
 0x1ec   : > { %3920 = vmatpush1.msk.msra.mxu0 %vm1189_vm0, %v1169_v53  ;;  %3923 = vmatprep.subr.msk.mxu1 %vm1189_vm0, %v1172_v54 }
 0x1ed   : > { %3119 = vmatprep.mubr.f32.mxu0 %v4270_v40  ;;  %3196 = vmatprep.mubr.f32.mxu1 %v4270_v40 }
 0x1ee   : > { %3924 = vmatpush1.msk.msra.mxu1 %vm1189_vm0, %v1171_v15  ;;  %4059 = vmatprep.subr.bf16.mxu0 %v4058_v2 }
 0x1ef   : > { %3921 = vmatmul.mubr.msk.f32.vlgmr.msra.gmra.mrb[44].mxu0 %vm1182_vm5, %v4556_v17  ;;  %3925 = vmatmul.mubr.msk.f32.vlgmr.msra.gmra.mrb[44].mxu1 %vm1182_vm5, %v4556_v17 }
 0x1f0   : > { %4061 = vmatpush1.bf16.msra.mxu0 %v4060_v6  ;;  %4063 = vmatprep.subr.bf16.mxu1 %v4062_v7 }
 0x1f1   : > { %3125 = vmatprep.mubr.f32.mxu0 %v4270_v40  ;;  %3202 = vmatprep.mubr.f32.mxu1 %v4270_v40 }
 0x1f2   : > { %3927 = vmatprep.subr.msk.mxu0 %vm1189_vm0, %v1174_v9  ;;  %4065 = vmatpush1.bf16.msra.mxu1 %v4064_v8 }
 0x1f3   : > { %3922 = vmatmul.mubr.msk.f32.gmra.mrb[46].mxu0 %vm1182_vm5, %v4564_v13  ;;  %3926 = vmatmul.mubr.msk.f32.gmra.mrb[46].mxu1 %vm1182_vm5, %v4564_v13 }
 0x1f4   : > { %3928 = vmatpush1.msk.msra.mxu0 %vm1189_vm0, %v1173_v16  ;;  %3931 = vmatprep.subr.msk.mxu1 %vm1189_vm0, %v1176_v60 }
 0x1f5   : > { %3273 = vmatprep.mubr.f32.mxu0 %v4270_v40  ;;  %3350 = vmatprep.mubr.f32.mxu1 %v4270_v40 }
 0x1f6   : > { %3932 = vmatpush1.msk.msra.mxu1 %vm1189_vm0, %v1175_v28  ;;  %4067 = vmatprep.subr.bf16.mxu0 %v4066_v19 }
 0x1f7   : > { %3929 = vmatmul.mubr.msk.f32.vlgmr.msra.gmra.mrb[48].mxu0 %vm1182_vm5, %v4556_v17  ;;  %3933 = vmatmul.mubr.msk.f32.vlgmr.msra.gmra.mrb[48].mxu1 %vm1182_vm5, %v4556_v17 }
 0x1f8   : > { %4069 = vmatpush1.bf16.msra.mxu0 %v4068_v23  ;;  %4071 = vmatprep.subr.bf16.mxu1 %v4070_v24 }
 0x1f9   : > { %3279 = vmatprep.mubr.f32.mxu0 %v4270_v40  ;;  %3356 = vmatprep.mubr.f32.mxu1 %v4270_v40 }
 0x1fa   : > { %3935 = vmatprep.subr.msk.mxu0 %vm1189_vm0, %v1178_v22  ;;  %4073 = vmatpush1.bf16.msra.mxu1 %v4072_v21 }
 0x1fb   : > { %3930 = vmatmul.mubr.msk.f32.gmra.mrb[50].mxu0 %vm1182_vm5, %v4564_v13  ;;  %3934 = vmatmul.mubr.msk.f32.gmra.mrb[50].mxu1 %vm1182_vm5, %v4564_v13 }
 0x1fc   : > { %3936 = vmatpush1.msk.msra.mxu0 %vm1189_vm0, %v1177_v29  ;;  %3939 = vmatprep.subr.msk.mxu1 %vm1189_vm0, %v1180_v30 }
 0x1fd   : > { %3427 = vmatprep.mubr.f32.mxu0 %v4270_v40  ;;  %3504 = vmatprep.mubr.f32.mxu1 %v4270_v40 }
 0x1fe   : > { %3940 = vmatpush1.msk.msra.mxu1 %vm1189_vm0, %v1179_v32  ;;  %4075 = vmatprep.subr.bf16.mxu0 %v4074_v31 }
 0x1ff   : > { %3937 = vmatmul.mubr.msk.f32.vlgmr.msra.gmra.mrb[52].mxu0 %vm1182_vm5, %v4556_v17  ;;  %3941 = vmatmul.mubr.msk.f32.vlgmr.msra.gmra.mrb[52].mxu1 %vm1182_vm5, %v4556_v17 }
 0x200   : > { %4077 = vmatpush3.bf16.msra.mxu0 %v4074_v31  ;;  %3433 = vmatprep.mubr.f32.mxu0 %v4270_v40 }
 0x201   : > { %3510 = vmatprep.mubr.f32.mxu1 %v4270_v40  ;;  %3957 = vmatprep.subr.msk.mxu0 %vm1189_vm0, %v1181_v33 }
 0x203   : > { %3938 = vmatmul.mubr.msk.f32.gmra.mrb[54].mxu0 %vm1182_vm5, %v4564_v13  ;;  %3942 = vmatmul.mubr.msk.f32.gmra.mrb[54].mxu1 %vm1182_vm5, %v4564_v13 }
 0x204   : > { %3958 = vmatpush3.msk.msra.mxu0 %vm1189_vm0, %v1181_v33  ;;  %3959 = vmatprep.mubr.msk.f32.mxu0 %vm1182_vm5, %v4556_v17  ;;  %vm3706_vm0 = vcmask 253952  }
 0x207   : > { %3960 = vmatmul.mubr.msk.f32.vlgmr.msra.gmra.mrb[56].mxu0 %vm1182_vm5, %v4564_v13 }
 0x26a   : > { %v1427_v40 = vpop.f32.mrb[0].mxu0  ;;  %v1504_v57 = vpop.f32.mrb[0].mxu1 }
 0x26b   : > { %3592 = vst [vmem:[%s4789_s17] sm:$0xff] %v1427_v40  ;;  %3594 = vst [vmem:[%s4789_s17 + $0x10] sm:$0xff] %v1504_v57  ;;  %v1429_v17 = vpop.f32.mrb[1].mxu0  ;;  %v1506_v13 = vpop.f32.mrb[1].mxu1 }
 0x26c   : > { %3593 = vst [vmem:[%s4789_s17 + $0x8] sm:$0xff] %v1429_v17  ;;  %3595 = vst [vmem:[%s4789_s17 + $0x18] sm:$0xff] %v1506_v13 }
 0x26e   : > { %v1433_v4 = vpop.f32.mrb[2].mxu0  ;;  %v1510_v34 = vpop.f32.mrb[2].mxu1 }
 0x26f   : > { %3650 = vst [vmem:[%s4789_s17 + $0x1c8] sm:$0x1] %v1433_v4  ;;  %3652 = vst [vmem:[%s4789_s17 + $0x1d8] sm:$0x1] %v1510_v34  ;;  %v1435_v35 = vpop.f32.mrb[3].mxu0  ;;  %v1512_v37 = vpop.f32.mrb[3].mxu1 }
 0x270   : > { %3651 = vst [vmem:[%s4789_s17 + $0x1d0] sm:$0x1] %v1435_v35  ;;  %3653 = vst [vmem:[%s4789_s17 + $0x1e0] sm:$0x1] %v1512_v37 }
 0x272   : > { %v1581_v38 = vpop.f32.mrb[4].mxu0  ;;  %v1658_v39 = vpop.f32.mrb[4].mxu1 }
 0x273   : > { %3596 = vst [vmem:[%s4789_s17 + $0x20] sm:$0xff] %v1581_v38  ;;  %3598 = vst [vmem:[%s4789_s17 + $0x30] sm:$0xff] %v1658_v39  ;;  %v1583_v36 = vpop.f32.mrb[5].mxu0  ;;  %v1660_v20 = vpop.f32.mrb[5].mxu1 }
 0x274   : > { %3597 = vst [vmem:[%s4789_s17 + $0x28] sm:$0xff] %v1583_v36  ;;  %3599 = vst [vmem:[%s4789_s17 + $0x38] sm:$0xff] %v1660_v20 }
 0x276   : > { %v1587_v41 = vpop.f32.mrb[6].mxu0  ;;  %v1664_v42 = vpop.f32.mrb[6].mxu1 }
 0x277   : > { %3654 = vst [vmem:[%s4789_s17 + $0x1e8] sm:$0x1] %v1587_v41  ;;  %3656 = vst [vmem:[%s4789_s17 + $0x1f8] sm:$0x1] %v1664_v42  ;;  %v1589_v43 = vpop.f32.mrb[7].mxu0  ;;  %v1666_v44 = vpop.f32.mrb[7].mxu1 }
 0x278   : > { %3655 = vst [vmem:[%s4789_s17 + $0x1f0] sm:$0x1] %v1589_v43  ;;  %3657 = vst [vmem:[%s4789_s17 + $0x200] sm:$0x1] %v1666_v44 }
 0x27a   : > { %v1735_v45 = vpop.f32.mrb[8].mxu0  ;;  %v1812_v62 = vpop.f32.mrb[8].mxu1 }
 0x27b   : > { %3600 = vst [vmem:[%s4789_s17 + $0x40] sm:$0xff] %v1735_v45  ;;  %3602 = vst [vmem:[%s4789_s17 + $0x50] sm:$0xff] %v1812_v62  ;;  %v1737_v46 = vpop.f32.mrb[9].mxu0  ;;  %v1814_v47 = vpop.f32.mrb[9].mxu1 }
 0x27c   : > { %3601 = vst [vmem:[%s4789_s17 + $0x48] sm:$0xff] %v1737_v46  ;;  %3603 = vst [vmem:[%s4789_s17 + $0x58] sm:$0xff] %v1814_v47 }
 0x27e   : > { %v1741_v1 = vpop.f32.mrb[10].mxu0  ;;  %v1818_v48 = vpop.f32.mrb[10].mxu1 }
 0x27f   : > { %3658 = vst [vmem:[%s4789_s17 + $0x208] sm:$0x1] %v1741_v1  ;;  %3660 = vst [vmem:[%s4789_s17 + $0x218] sm:$0x1] %v1818_v48  ;;  %v1743_v49 = vpop.f32.mrb[11].mxu0  ;;  %v1820_v27 = vpop.f32.mrb[11].mxu1 }
 0x280   : > { %3659 = vst [vmem:[%s4789_s17 + $0x210] sm:$0x1] %v1743_v49  ;;  %3661 = vst [vmem:[%s4789_s17 + $0x220] sm:$0x1] %v1820_v27 }
 0x282   : > { %v1889_v50 = vpop.f32.mrb[12].mxu0  ;;  %v1966_v51 = vpop.f32.mrb[12].mxu1 }
 0x283   : > { %3604 = vst [vmem:[%s4789_s17 + $0x60] sm:$0xff] %v1889_v50  ;;  %3606 = vst [vmem:[%s4789_s17 + $0x70] sm:$0xff] %v1966_v51  ;;  %v1891_v52 = vpop.f32.mrb[13].mxu0  ;;  %v1968_v53 = vpop.f32.mrb[13].mxu1 }
 0x284   : > { %3605 = vst [vmem:[%s4789_s17 + $0x68] sm:$0xff] %v1891_v52  ;;  %3607 = vst [vmem:[%s4789_s17 + $0x78] sm:$0xff] %v1968_v53 }
 0x286   : > { %v1895_v54 = vpop.f32.mrb[14].mxu0  ;;  %v1972_v58 = vpop.f32.mrb[14].mxu1 }
 0x287   : > { %3662 = vst [vmem:[%s4789_s17 + $0x228] sm:$0x1] %v1895_v54  ;;  %3664 = vst [vmem:[%s4789_s17 + $0x238] sm:$0x1] %v1972_v58  ;;  %v1897_v59 = vpop.f32.mrb[15].mxu0  ;;  %v1974_v63 = vpop.f32.mrb[15].mxu1 }
 0x288   : > { %3663 = vst [vmem:[%s4789_s17 + $0x230] sm:$0x1] %v1897_v59  ;;  %3665 = vst [vmem:[%s4789_s17 + $0x240] sm:$0x1] %v1974_v63 }
 0x28a   : > { %v2043_v0 = vpop.f32.mrb[16].mxu0  ;;  %v2120_v2 = vpop.f32.mrb[16].mxu1 }
 0x28b   : > { %3608 = vst [vmem:[%s4789_s17 + $0x80] sm:$0xff] %v2043_v0  ;;  %3610 = vst [vmem:[%s4789_s17 + $0x90] sm:$0xff] %v2120_v2  ;;  %v2045_v15 = vpop.f32.mrb[17].mxu0  ;;  %v2122_v3 = vpop.f32.mrb[17].mxu1 }
 0x28c   : > { %3609 = vst [vmem:[%s4789_s17 + $0x88] sm:$0xff] %v2045_v15  ;;  %3611 = vst [vmem:[%s4789_s17 + $0x98] sm:$0xff] %v2122_v3 }
 0x28e   : > { %v2049_v5 = vpop.f32.mrb[18].mxu0  ;;  %v2126_v6 = vpop.f32.mrb[18].mxu1 }
 0x28f   : > { %3666 = vst [vmem:[%s4789_s17 + $0x248] sm:$0x1] %v2049_v5  ;;  %3668 = vst [vmem:[%s4789_s17 + $0x258] sm:$0x1] %v2126_v6  ;;  %v2051_v7 = vpop.f32.mrb[19].mxu0  ;;  %v2128_v8 = vpop.f32.mrb[19].mxu1 }
 0x290   : > { %3667 = vst [vmem:[%s4789_s17 + $0x250] sm:$0x1] %v2051_v7  ;;  %3669 = vst [vmem:[%s4789_s17 + $0x260] sm:$0x1] %v2128_v8 }
 0x292   : > { %v2197_v9 = vpop.f32.mrb[20].mxu0  ;;  %v2274_v10 = vpop.f32.mrb[20].mxu1 }
 0x293   : > { %3612 = vst [vmem:[%s4789_s17 + $0xa0] sm:$0xff] %v2197_v9  ;;  %3614 = vst [vmem:[%s4789_s17 + $0xb0] sm:$0xff] %v2274_v10  ;;  %v2199_v11 = vpop.f32.mrb[21].mxu0  ;;  %v2276_v16 = vpop.f32.mrb[21].mxu1 }
 0x294   : > { %3613 = vst [vmem:[%s4789_s17 + $0xa8] sm:$0xff] %v2199_v11  ;;  %3615 = vst [vmem:[%s4789_s17 + $0xb8] sm:$0xff] %v2276_v16 }
 0x296   : > { %v2203_v60 = vpop.f32.mrb[22].mxu0  ;;  %v2280_v55 = vpop.f32.mrb[22].mxu1 }
 0x297   : > { %3670 = vst [vmem:[%s4789_s17 + $0x268] sm:$0x1] %v2203_v60  ;;  %3672 = vst [vmem:[%s4789_s17 + $0x278] sm:$0x1] %v2280_v55  ;;  %v2205_v61 = vpop.f32.mrb[23].mxu0  ;;  %v2282_v56 = vpop.f32.mrb[23].mxu1 }
 0x298   : > { %3671 = vst [vmem:[%s4789_s17 + $0x270] sm:$0x1] %v2205_v61  ;;  %3673 = vst [vmem:[%s4789_s17 + $0x280] sm:$0x1] %v2282_v56 }
 0x29a   : > { %v2351_v18 = vpop.f32.mrb[24].mxu0  ;;  %v2428_v19 = vpop.f32.mrb[24].mxu1 }
 0x29b   : > { %3616 = vst [vmem:[%s4789_s17 + $0xc0] sm:$0xff] %v2351_v18  ;;  %3618 = vst [vmem:[%s4789_s17 + $0xd0] sm:$0xff] %v2428_v19  ;;  %v2353_v28 = vpop.f32.mrb[25].mxu0  ;;  %v2430_v12 = vpop.f32.mrb[25].mxu1 }
 0x29c   : > { %3617 = vst [vmem:[%s4789_s17 + $0xc8] sm:$0xff] %v2353_v28  ;;  %3619 = vst [vmem:[%s4789_s17 + $0xd8] sm:$0xff] %v2430_v12 }
 0x29e   : > { %v2357_v14 = vpop.f32.mrb[26].mxu0  ;;  %v2434_v23 = vpop.f32.mrb[26].mxu1 }
 0x29f   : > { %3674 = vst [vmem:[%s4789_s17 + $0x288] sm:$0x1] %v2357_v14  ;;  %3676 = vst [vmem:[%s4789_s17 + $0x298] sm:$0x1] %v2434_v23  ;;  %v2359_v24 = vpop.f32.mrb[27].mxu0  ;;  %v2436_v21 = vpop.f32.mrb[27].mxu1 }
 0x2a0   : > { %3675 = vst [vmem:[%s4789_s17 + $0x290] sm:$0x1] %v2359_v24  ;;  %3677 = vst [vmem:[%s4789_s17 + $0x2a0] sm:$0x1] %v2436_v21 }
 0x2a2   : > { %v2505_v22 = vpop.f32.mrb[28].mxu0  ;;  %v2582_v25 = vpop.f32.mrb[28].mxu1 }
 0x2a3   : > { %3620 = vst [vmem:[%s4789_s17 + $0xe0] sm:$0xff] %v2505_v22  ;;  %3622 = vst [vmem:[%s4789_s17 + $0xf0] sm:$0xff] %v2582_v25  ;;  %v2507_v26 = vpop.f32.mrb[29].mxu0  ;;  %v2584_v29 = vpop.f32.mrb[29].mxu1 }
 0x2a4   : > { %3621 = vst [vmem:[%s4789_s17 + $0xe8] sm:$0xff] %v2507_v26  ;;  %3623 = vst [vmem:[%s4789_s17 + $0xf8] sm:$0xff] %v2584_v29 }
 0x2a6   : > { %v2511_v30 = vpop.f32.mrb[30].mxu0  ;;  %v2588_v31 = vpop.f32.mrb[30].mxu1 }
 0x2a7   : > { %3678 = vst [vmem:[%s4789_s17 + $0x2a8] sm:$0x1] %v2511_v30  ;;  %3680 = vst [vmem:[%s4789_s17 + $0x2b8] sm:$0x1] %v2588_v31  ;;  %v2513_v32 = vpop.f32.mrb[31].mxu0  ;;  %v2590_v33 = vpop.f32.mrb[31].mxu1 }
 0x2a8   : > { %3679 = vst [vmem:[%s4789_s17 + $0x2b0] sm:$0x1] %v2513_v32  ;;  %3681 = vst [vmem:[%s4789_s17 + $0x2c0] sm:$0x1] %v2590_v33 }
 0x2aa   : > { %v2659_v40 = vpop.f32.mrb[32].mxu0  ;;  %v2736_v57 = vpop.f32.mrb[32].mxu1 }
 0x2ab   : > { %3624 = vst [vmem:[%s4789_s17 + $0x100] sm:$0xff] %v2659_v40  ;;  %3626 = vst [vmem:[%s4789_s17 + $0x110] sm:$0xff] %v2736_v57  ;;  %v2661_v17 = vpop.f32.mrb[33].mxu0  ;;  %v2738_v13 = vpop.f32.mrb[33].mxu1 }
 0x2ac   : > { %3625 = vst [vmem:[%s4789_s17 + $0x108] sm:$0xff] %v2661_v17  ;;  %3627 = vst [vmem:[%s4789_s17 + $0x118] sm:$0xff] %v2738_v13 }
 0x2ae   : > { %v2665_v4 = vpop.f32.mrb[34].mxu0  ;;  %v2742_v34 = vpop.f32.mrb[34].mxu1 }
 0x2af   : > { %3682 = vst [vmem:[%s4789_s17 + $0x2c8] sm:$0x1] %v2665_v4  ;;  %3684 = vst [vmem:[%s4789_s17 + $0x2d8] sm:$0x1] %v2742_v34  ;;  %v2667_v35 = vpop.f32.mrb[35].mxu0  ;;  %v2744_v37 = vpop.f32.mrb[35].mxu1 }
 0x2b0   : > { %3683 = vst [vmem:[%s4789_s17 + $0x2d0] sm:$0x1] %v2667_v35  ;;  %3685 = vst [vmem:[%s4789_s17 + $0x2e0] sm:$0x1] %v2744_v37 }
 0x2b2   : > { %v2813_v38 = vpop.f32.mrb[36].mxu0  ;;  %v2890_v39 = vpop.f32.mrb[36].mxu1 }
 0x2b3   : > { %3628 = vst [vmem:[%s4789_s17 + $0x120] sm:$0xff] %v2813_v38  ;;  %3630 = vst [vmem:[%s4789_s17 + $0x130] sm:$0xff] %v2890_v39  ;;  %v2815_v36 = vpop.f32.mrb[37].mxu0  ;;  %v2892_v20 = vpop.f32.mrb[37].mxu1 }
 0x2b4   : > { %3629 = vst [vmem:[%s4789_s17 + $0x128] sm:$0xff] %v2815_v36  ;;  %3631 = vst [vmem:[%s4789_s17 + $0x138] sm:$0xff] %v2892_v20 }
 0x2b6   : > { %v2819_v41 = vpop.f32.mrb[38].mxu0  ;;  %v2896_v42 = vpop.f32.mrb[38].mxu1 }
 0x2b7   : > { %3686 = vst [vmem:[%s4789_s17 + $0x2e8] sm:$0x1] %v2819_v41  ;;  %3688 = vst [vmem:[%s4789_s17 + $0x2f8] sm:$0x1] %v2896_v42  ;;  %v2821_v43 = vpop.f32.mrb[39].mxu0  ;;  %v2898_v44 = vpop.f32.mrb[39].mxu1 }
 0x2b8   : > { %3687 = vst [vmem:[%s4789_s17 + $0x2f0] sm:$0x1] %v2821_v43  ;;  %3689 = vst [vmem:[%s4789_s17 + $0x300] sm:$0x1] %v2898_v44 }
 0x2ba   : > { %v2967_v45 = vpop.f32.mrb[40].mxu0  ;;  %v3044_v62 = vpop.f32.mrb[40].mxu1 }
 0x2bb   : > { %3632 = vst [vmem:[%s4789_s17 + $0x140] sm:$0xff] %v2967_v45  ;;  %3634 = vst [vmem:[%s4789_s17 + $0x150] sm:$0xff] %v3044_v62  ;;  %v2969_v46 = vpop.f32.mrb[41].mxu0  ;;  %v3046_v47 = vpop.f32.mrb[41].mxu1 }
 0x2bc   : > { %3633 = vst [vmem:[%s4789_s17 + $0x148] sm:$0xff] %v2969_v46  ;;  %3635 = vst [vmem:[%s4789_s17 + $0x158] sm:$0xff] %v3046_v47 }
 0x2be   : > { %v2973_v1 = vpop.f32.mrb[42].mxu0  ;;  %v3050_v48 = vpop.f32.mrb[42].mxu1 }
 0x2bf   : > { %3690 = vst [vmem:[%s4789_s17 + $0x308] sm:$0x1] %v2973_v1  ;;  %3692 = vst [vmem:[%s4789_s17 + $0x318] sm:$0x1] %v3050_v48  ;;  %v2975_v49 = vpop.f32.mrb[43].mxu0  ;;  %v3052_v27 = vpop.f32.mrb[43].mxu1 }
 0x2c0   : > { %3691 = vst [vmem:[%s4789_s17 + $0x310] sm:$0x1] %v2975_v49  ;;  %3693 = vst [vmem:[%s4789_s17 + $0x320] sm:$0x1] %v3052_v27 }
 0x2c2   : > { %v3121_v50 = vpop.f32.mrb[44].mxu0  ;;  %v3198_v51 = vpop.f32.mrb[44].mxu1 }
 0x2c3   : > { %3636 = vst [vmem:[%s4789_s17 + $0x160] sm:$0xff] %v3121_v50  ;;  %3638 = vst [vmem:[%s4789_s17 + $0x170] sm:$0xff] %v3198_v51  ;;  %v3123_v52 = vpop.f32.mrb[45].mxu0  ;;  %v3200_v53 = vpop.f32.mrb[45].mxu1 }
 0x2c4   : > { %3637 = vst [vmem:[%s4789_s17 + $0x168] sm:$0xff] %v3123_v52  ;;  %3639 = vst [vmem:[%s4789_s17 + $0x178] sm:$0xff] %v3200_v53 }
 0x2c6   : > { %v3127_v54 = vpop.f32.mrb[46].mxu0  ;;  %v3204_v58 = vpop.f32.mrb[46].mxu1 }
 0x2c7   : > { %3694 = vst [vmem:[%s4789_s17 + $0x328] sm:$0x1] %v3127_v54  ;;  %3696 = vst [vmem:[%s4789_s17 + $0x338] sm:$0x1] %v3204_v58  ;;  %v3129_v59 = vpop.f32.mrb[47].mxu0  ;;  %v3206_v63 = vpop.f32.mrb[47].mxu1 }
 0x2c8   : > { %3695 = vst [vmem:[%s4789_s17 + $0x330] sm:$0x1] %v3129_v59  ;;  %3697 = vst [vmem:[%s4789_s17 + $0x340] sm:$0x1] %v3206_v63 }
 0x2ca   : > { %v3275_v0 = vpop.f32.mrb[48].mxu0  ;;  %v3352_v2 = vpop.f32.mrb[48].mxu1 }
 0x2cb   : > { %3640 = vst [vmem:[%s4789_s17 + $0x180] sm:$0xff] %v3275_v0  ;;  %3642 = vst [vmem:[%s4789_s17 + $0x190] sm:$0xff] %v3352_v2  ;;  %v3277_v15 = vpop.f32.mrb[49].mxu0  ;;  %v3354_v3 = vpop.f32.mrb[49].mxu1 }
 0x2cc   : > { %3641 = vst [vmem:[%s4789_s17 + $0x188] sm:$0xff] %v3277_v15  ;;  %3643 = vst [vmem:[%s4789_s17 + $0x198] sm:$0xff] %v3354_v3 }
 0x2ce   : > { %v3281_v5 = vpop.f32.mrb[50].mxu0  ;;  %v3358_v6 = vpop.f32.mrb[50].mxu1 }
 0x2cf   : > { %3698 = vst [vmem:[%s4789_s17 + $0x348] sm:$0x1] %v3281_v5  ;;  %3700 = vst [vmem:[%s4789_s17 + $0x358] sm:$0x1] %v3358_v6  ;;  %v3283_v7 = vpop.f32.mrb[51].mxu0  ;;  %v3360_v8 = vpop.f32.mrb[51].mxu1 }
 0x2d0   : > { %3699 = vst [vmem:[%s4789_s17 + $0x350] sm:$0x1] %v3283_v7  ;;  %3701 = vst [vmem:[%s4789_s17 + $0x360] sm:$0x1] %v3360_v8 }
 0x2d2   : > { %v3429_v9 = vpop.f32.mrb[52].mxu0  ;;  %v3506_v10 = vpop.f32.mrb[52].mxu1 }
 0x2d3   : > { %3644 = vst [vmem:[%s4789_s17 + $0x1a0] sm:$0xff] %v3429_v9  ;;  %3646 = vst [vmem:[%s4789_s17 + $0x1b0] sm:$0xff] %v3506_v10  ;;  %v3431_v11 = vpop.f32.mrb[53].mxu0  ;;  %v3508_v16 = vpop.f32.mrb[53].mxu1 }
 0x2d4   : > { %3645 = vst [vmem:[%s4789_s17 + $0x1a8] sm:$0xff] %v3431_v11  ;;  %3647 = vst [vmem:[%s4789_s17 + $0x1b8] sm:$0xff] %v3508_v16 }
 0x2d6   : > { %v3435_v60 = vpop.f32.mrb[54].mxu0  ;;  %v3512_v55 = vpop.f32.mrb[54].mxu1 }
 0x2d7   : > { %3702 = vst [vmem:[%s4789_s17 + $0x368] sm:$0x1] %v3435_v60  ;;  %3704 = vst [vmem:[%s4789_s17 + $0x378] sm:$0x1] %v3512_v55  ;;  %v3437_v61 = vpop.f32.mrb[55].mxu0  ;;  %v3514_v56 = vpop.f32.mrb[55].mxu1 }
 0x2d8   : > { %3703 = vst [vmem:[%s4789_s17 + $0x370] sm:$0x1] %v3437_v61  ;;  %3705 = vst [vmem:[%s4789_s17 + $0x380] sm:$0x1] %v3514_v56 }
 0x2da   : > { %v3961_v18 = vpop.f32.mrb[56].mxu0 }
 0x2db   : > { %3707 = vst.msk [vmem:[%s4789_s17 + $0x388] sm:$0x1] %vm3706_vm0, %v3961_v18  ;;  %v3583_v19 = vpop.f32.mrb[57].mxu0 }
 0x2dc   : > { %3649 = vst.msk [vmem:[%s4789_s17 + $0x1c0] sm:$0xff] %vm3648_vm4, %v3583_v19 }
 0x2dd PF: > { %s18_s21 = sadd.s32 1, %s4256_s21  }
 0x2de   : > { %p15_p5 = scmp.ge.s32.totalorder %s18_s21, 4  }
 0x2e0   :  { %17 = sbr.rel (!%p15_p5) target bundleno = 2 (0x2), region = 87 }
 0x2e7   :  { %3729 = vsyncpa [#allocation3], 1 }
 0x2e8   :  { %3731 = vsyncpa [#allocation3 + $0x1], 1 }
 0x2e9   :  { %3732 = vsyncpa [#allocation5], 1 }

// kernel: mernet_forward.3
= control target key start
LH: loop header
LB: loop body
LE: loop exit
PB: predicated region body
PF: predicated region fallthrough
CT: control target
= control target key end

     0   :  { %s1273_s21 = smov 0   ;;  %s1446_s0 = inlined_call_operand.vmem [shape: f32[2,1,1], index: 0, kind: input, shape index: {}]   ;;  %s1447_s1 = inlined_call_operand.vmem [shape: f32[9,1], index: 1, kind: input, shape index: {}]   ;;  %s1448_s2 = inlined_call_operand.vmem [shape: f32[9,1], index: 2, kind: input, shape index: {}]   ;;  %s1449_s3 = inlined_call_operand.vmem [shape: f32[1,18], index: 3, kind: input, shape index: {}]   ;;  %s1450_s4 = inlined_call_operand.vmem [shape: f32[1,18], index: 4, kind: input, shape index: {}]   ;;  %s1451_s5 = inlined_call_operand.vmem [shape: f32[18,162], index: 5, kind: input, shape index: {}]   ;;  %s1452_s6 = inlined_call_operand.vmem [shape: f32[2,9,162], index: 6, kind: output, shape index: {}]  }
   0x1 LB: > { %s1126_s22 = sadd.s32 4294967295, %s1228_s21   ;;  %p1130_p0 = scmp.ge.s32.totalorder %s1228_s21, 1  ;;  %s1228_s21 = sphi %s1273_s21, %s16_s21  }
   0x2   : > { %p210_p1 = scmp.lt.s32.totalorder %s1228_s21, 3 }
   0x4   : > { %p211_p2 = pnand %p1130_p0, %p210_p1 }
   0x5   : > { %p238_p3 = scmp.lt.s32.totalorder (!%p211_p2), %s1126_s22, 1  ;;  %v1230_v0 = vmov (!%p211_p2), 0   ;;  %v1231_v13 = vmov (!%p211_p2), 683565275   ;;  %v1232_v15 = vmov (!%p211_p2), 2475754826  }
   0x6   : > { %214 = sbr.rel (%p211_p2) target bundleno = 541 (0x21d), region = 44  ;;  %1205 = vset.pattern.permute.xlu1 (!%p211_p2), %v1230_v0  ;;  %1204 = vset.pattern.permute.xlu0 (!%p211_p2), %v1230_v0  ;;  %v1233_v17 = vmov (!%p211_p2), 2131351028   ;;  %v1234_v19 = vmov (!%p211_p2), 2102212464  }
   0x7   : > { %v1235_v21 = vmov (!%p211_p2), 920167782   ;;  %v1236_v28 = vmov (!%p211_p2), 1326507024  }
   0xd   : > { %s1454_s22 = smov (!%p238_p3, %s1126_s22), 1 }
   0xe   : > { %s240_s25 = scalar_lea.vmem %s1446_s0, %s1454_s22  ;;  %s1167_s28 = sshll.u32 %s1454_s22, 5 }
   0xf   : > { %v1287_v1 = vld [vmem:[%s240_s25] sm:$0x1]  ;;  %s245_s7 = scalar_lea.vmem %s1452_s6, %s1167_s28 }
  0x10   : > { %v250_v2 = vand.u32 2139095040, %v1287_v1  ;;  %v247_v4 = vand.u32 2147483647, %v1287_v1  ;;  %vm249_vm7 = vcmp.lt.s32.totalorder %v1287_v1, 0  ;;  %vm339_vm15 = vweird.f32 %v1287_v1 }
  0x12   : > { %v251_v3 = vshrl.u32 %v250_v2, 23  ;;  %v254_v7 = vand.u32 8388607, %v247_v4  ;;  %vm248_vm8 = vcmp.le.f32.partialorder %v247_v4, 0.7853982 }
  0x14   : > { %v1133_v5 = vadd.s32 4294967169, %v251_v3  ;;  %v255_v10 = vor.u32 8388608, %v254_v7 }
  0x16   : > { %v257_v6 = vadd.s32 1, %v1133_v5  ;;  %v295_v30 = vshll.u32 %v255_v10, 8 }
  0x18   : > { %vm258_vm0 = vcmp.gt.s32.totalorder %v257_v6, 0 }
  0x19   : > { %v259_v8 = vsel %vm258_vm0, %v257_v6, 0  ;;  %vm984_vm0 = vcmask 1041408  }
  0x1a   : > { %v261_v9 = vand.u32 31, %v259_v8  ;;  %v260_v11 = vshrl.u32 %v259_v8, 5 }
  0x1c   : > { %v262_v12 = vsub.s32 32, %v261_v9  ;;  %v264_v14 = vshll.u32 %v1231_v13, %v261_v9  ;;  %v267_v16 = vshll.u32 %v1232_v15, %v261_v9  ;;  %v270_v18 = vshll.u32 %v1233_v17, %v261_v9 }
  0x1d   : > { %v273_v20 = vshll.u32 %v1234_v19, %v261_v9  ;;  %v276_v22 = vshll.u32 %v1235_v21, %v261_v9  ;;  %vm279_vm1 = vcmp.lt.s32.totalorder %v260_v11, 1  ;;  %vm282_vm2 = vcmp.lt.s32.totalorder %v260_v11, 4 }
  0x1e   : > { %v263_v23 = vshrl.u32 %v1231_v13, %v262_v12  ;;  %v265_v24 = vshrl.u32 %v1232_v15, %v262_v12  ;;  %v268_v25 = vshrl.u32 %v1233_v17, %v262_v12  ;;  %v271_v26 = vshrl.u32 %v1234_v19, %v262_v12 }
  0x1f   : > { %v274_v27 = vshrl.u32 %v1235_v21, %v262_v12  ;;  %v277_v29 = vshrl.u32 %v1236_v28, %v262_v12  ;;  %vm280_vm3 = vcmp.lt.s32.totalorder %v260_v11, 2  ;;  %vm281_vm4 = vcmp.lt.s32.totalorder %v260_v11, 3 }
  0x20   : > { %v266_v31 = vor.u32 %v265_v24, %v264_v14  ;;  %v269_v32 = vor.u32 %v268_v25, %v267_v16  ;;  %v272_v33 = vor.u32 %v271_v26, %v270_v18 }
  0x21   : > { %v275_v34 = vor.u32 %v274_v27, %v273_v20  ;;  %v278_v35 = vor.u32 %v277_v29, %v276_v22  ;;  %v457_v27 = vlaneseq }
  0x22   : > { %v283_v36 = vsel %vm279_vm1, %v263_v23, %v266_v31  ;;  %v284_v37 = vsel %vm282_vm2, %v272_v33, 2102212464  ;;  %v287_v38 = vsel %vm279_vm1, %v266_v31, %v269_v32  ;;  %v291_v39 = vsel %vm279_vm1, %v269_v32, %v272_v33 }
  0x23   : > { %v285_v40 = vsel %vm281_vm4, %v269_v32, %v284_v37  ;;  %v288_v41 = vsel %vm282_vm2, %v275_v34, 920167782  ;;  %v292_v42 = vsel %vm282_vm2, %v278_v35, 1326507024  ;;  %v458_v31 = vshrl.u32 %v457_v27, 7 }
  0x24   : > { %v289_v43 = vsel %vm281_vm4, %v272_v33, %v288_v41  ;;  %v293_v44 = vsel %vm281_vm4, %v275_v34, %v292_v42  ;;  %v286_v45 = vsel %vm280_vm3, %v283_v36, %v285_v40 }
  0x25   : > { %v290_v46 = vsel %vm280_vm3, %v287_v38, %v289_v43  ;;  %v294_v47 = vsel %vm280_vm3, %v291_v39, %v293_v44  ;;  %v302_v52 = vmul.u32 %v295_v30, %v286_v45  ;;  %v459_v37 = vsub.s32 0, %v458_v31  ;;  %v454_v44 = vld [vmem:[%s1447_s1] sm:$0xff] }
  0x26   : > { %v1304_v48 = vmul.u32.u64.low %v295_v30, %v294_v47  ;;  %v1305_v49 = vmul.u32.u64.high %v295_v30, %v294_v47, %v1304_v48  ;;  %v1307_v50 = vmul.u32.u64.low %v295_v30, %v290_v46  ;;  %v1308_v51 = vmul.u32.u64.high %v295_v30, %v290_v46, %v1307_v50  ;;  %v464_v45 = vld [vmem:[%s1448_s2] sm:$0xff] }
  0x27   : > { %v465_v48 = vld [vmem:[%s1448_s2 + $0x8] sm:$0x1]  ;;  %v975_v31 = vld [vmem:[%s1451_s5 + $0x20] sm:$0x3] }
  0x28   : > { %vm304_vm5 = vc.u32 %v1305_v49, %v1307_v50  ;;  %v305_v53 = vadd.s32 1, %v1308_v51  ;;  %v303_v0 = vadd.s32 %v1307_v50, %v1305_v49 }
  0x2a   : > { %v306_v54 = vsel %vm304_vm5, %v305_v53, %v1308_v51 }
  0x2b   : > { %v307_v55 = vadd.s32 %v306_v54, %v302_v52 }
  0x2d   : > { %v308_v56 = vadd.s32 536870912, %v307_v55 }
  0x2f   : > { %v309_v57 = vshrl.u32 %v308_v56, 30 }
  0x31   : > { %v310_v58 = vshll.u32 %v309_v57, 30  ;;  %v333_v16 = vsub.s32 4, %v309_v57 }
  0x33   : > { %v311_v59 = vsub.s32 %v307_v55, %v310_v58  ;;  %v334_v22 = vsel %vm249_vm7, %v333_v16, %v309_v57 }
  0x34   : > { %v336_v25 = vsel %vm248_vm8, 0, %v334_v22  ;;  %v972_v22 = vld [vmem:[%s1451_s5 + $0x8] sm:$0xff] }
  0x35   : > { %v313_v60 = vsub.s32 0, %v311_v59  ;;  %v443_v26 = vadd.s32 3, %v336_v25  ;;  %v340_v29 = vand.u32 3, %v336_v25  ;;  %v971_v25 = vld [vmem:[%s1451_s5] sm:$0xff] }
  0x37   : > { %v1134_v61 = vmin.u32 %v313_v60, %v311_v59  ;;  %v444_v30 = vand.u32 3, %v443_v26  ;;  %vm345_vm9 = vcmp.eq.s32.totalorder %v340_v29, 2  ;;  %vm342_vm11 = vcmp.eq.s32.totalorder %v340_v29, 0  ;;  %v973_v26 = vld [vmem:[%s1451_s5 + $0x10] sm:$0xff] }
  0x38   : > { %vm341_vm13 = vcmp.lt.s32.totalorder %v340_v29, 2  ;;  %v1170_v29 = vpack.c.bf16 %v973_v26, %v971_v25 }
  0x39   : > { %v315_v62 = vclz %v1134_v61  ;;  %vm449_vm10 = vcmp.eq.s32.totalorder %v444_v30, 2  ;;  %vm446_vm12 = vcmp.eq.s32.totalorder %v444_v30, 0  ;;  %vm445_vm14 = vcmp.lt.s32.totalorder %v444_v30, 2  ;;  %v976_v30 = vld [vmem:[%s1451_s5 + $0x28] sm:$0x3] }
  0x3b   : > { %v1135_v63 = vadd.s32 4294967294, %v315_v62 }
  0x3d   : > { %vm1136_vm6 = vcmp.lt.s32.totalorder %v1135_v63, 0 }
  0x3e   : > { %v318_v2 = vsel %vm1136_vm6, 0, %v1135_v63 }
  0x3f   : > { %v319_v3 = vsub.s32 32, %v318_v2  ;;  %v320_v5 = vshll.u32 %v311_v59, %v318_v2  ;;  %v323_v6 = vsub.s32 4294967266, %v318_v2 }
  0x41   : > { %v321_v7 = vshrl.u32 %v303_v0, %v319_v3  ;;  %v324_v8 = vadd.s32 127, %v323_v6 }
  0x43   : > { %v322_v9 = vor.u32 %v321_v7, %v320_v5  ;;  %v325_v10 = vshll.u32 %v324_v8, 23 }
  0x45   : > { %v326_v11 = vor.u32 4788187, %v325_v10  ;;  %v329_v12 = vcvt.s32.f32 %v322_v9 }
  0x47   : > { %v327_v14 = vand.u32 2147483647, %v326_v11 }
  0x49   : > { %v330_v18 = vmul.f32 %v329_v12, %v327_v14 }
  0x4b   : > { %v331_v20 = vxor.u32 2147483648, %v330_v18 }
  0x4d   : > { %v332_v23 = vsel %vm249_vm7, %v331_v20, %v330_v18 }
  0x4e   : > { %v335_v24 = vsel %vm248_vm8, %v1287_v1, %v332_v23  ;;  %v455_v1 = vld [vmem:[%s1447_s1 + $0x8] sm:$0x1]  ;;  %v974_v23 = vld [vmem:[%s1451_s5 + $0x18] sm:$0xff] }
  0x4f   : > { %1206 = vcosq.f32 %v335_v24 }
  0x50   : > { %1208 = vsinq.f32 %v335_v24  ;;  %v1168_v24 = vpack.c.bf16 %v974_v23, %v972_v22 }
  0x52   : > { %1169 = vmatprep.subr.bf16.mxu0 %v1168_v24  ;;  %1172 = vmatprep.subr.bf16.mxu1 %v1168_v24 }
  0x53   : > { %1171 = vmatpush1.bf16.msra.mxu0 %v1170_v29  ;;  %1174 = vmatpush1.bf16.msra.mxu1 %v1170_v29 }
  0x54   : > { %1161 = vmatprep.subr.msk.mxu0 %vm984_vm0, %v976_v30  ;;  %1173 = vmatprep.subr.msk.mxu1 %vm984_vm0, %v976_v30 }
  0x57   : > { %1162 = vmatpush1.msk.msra.mxu0 %vm984_vm0, %v975_v31  ;;  %1175 = vmatpush1.msk.msra.mxu1 %vm984_vm0, %v975_v31 }
  0x59   : > { %v1207_v32 = vpop.eup %1206 }
  0x5a   : > { %v1209_v33 = vpop.eup %1208  ;;  %v346_v4 = vxor.u32 2147483648, %v1207_v32 }
  0x5b   : > { %v343_v34 = vxor.u32 2147483648, %v1209_v33 }
  0x5c   : > { %v347_v35 = vsel %vm345_vm9, %v346_v4, %v1209_v33  ;;  %v451_v36 = vsel %vm449_vm10, %v346_v4, %v1209_v33  ;;  %v1144_v33 = vld [vmem:[%s1450_s4] ss:$0 sm:$0xff] }
  0x5d   : > { %v344_v38 = vsel %vm342_vm11, %v1207_v32, %v343_v34  ;;  %v448_v39 = vsel %vm446_vm12, %v1207_v32, %v343_v34  ;;  %v1237_v32 = vmov 0.0   ;;  %v1143_v4 = vld [vmem:[%s1449_s3] ss:$0 sm:$0xff] }
  0x5e   : > { %v348_v40 = vsel %vm341_vm13, %v344_v38, %v347_v35  ;;  %v452_v41 = vsel %vm445_vm14, %v448_v39, %v451_v36  ;;  %1055 = vmatprep.mubr.f32.mxu0 %v1237_v32  ;;  %1061 = vmatprep.mubr.f32.mxu1 %v1237_v32 }
  0x5f   : > { %v349_v42 = vsel %vm339_vm15, nan, %v348_v40  ;;  %v453_v43 = vsel %vm339_vm15, nan, %v452_v41 }
  0x60   : > { %v460_v46 = vrot.slane %v349_v42, %v459_v37  ;;  %v470_v47 = vrot.slane %v453_v43, %v459_v37 }
  0x62   : > { %v476_v49 = vmul.f32 %v470_v47, %v454_v44  ;;  %v478_v50 = vmul.f32 %v464_v45, %v460_v46  ;;  %v462_v51 = vmul.f32 %v460_v46, %v454_v44  ;;  %v472_v52 = vmul.f32 %v470_v47, %v464_v45 }
  0x63   : > { %v477_v53 = vmul.f32 %v470_v47, %v455_v1  ;;  %v479_v54 = vmul.f32 %v465_v48, %v460_v46  ;;  %v463_v55 = vmul.f32 %v460_v46, %v455_v1  ;;  %v473_v56 = vmul.f32 %v470_v47, %v465_v48 }
  0x64   : > { %v480_v57 = vadd.f32 %v478_v50, %v476_v49  ;;  %v474_v58 = vsub.f32 %v462_v51, %v472_v52 }
  0x65   : > { %v481_v59 = vadd.f32 %v479_v54, %v477_v53  ;;  %v475_v60 = vsub.f32 %v463_v55, %v473_v56 }
  0x66   : > { %522 = vperm.xlu1 %1205, %v480_v57   ;;  %v484_v61 = vmul.f32 %v480_v57, %v480_v57  ;;  %503 = vperm.xlu0 %1204, %v474_v58   ;;  %v482_v62 = vmul.f32 %v474_v58, %v474_v58 }
  0x67   : > { %v485_v63 = vmul.f32 %v481_v59, %v481_v59  ;;  %v483_v0 = vmul.f32 %v475_v60, %v475_v60 }
  0x68   : > { %v486_v2 = vadd.f32 %v484_v61, %v482_v62 }
  0x69   : > { %v487_v3 = vadd.f32 %v485_v63, %v483_v0 }
  0x6a   : > { %v1141_v5 = vadd.f32 -1.0, %v486_v2  ;;  %527 = vperm.xlu1 %1205, %v481_v59   ;;  %508 = vperm.xlu0 %1204, %v475_v60  }
  0x6b   : > { %v1142_v6 = vadd.f32 -1.0, %v487_v3 }
  0x6c   : > { %v490_v7 = vmax.f32 %v1141_v5, 0.0 }
  0x6d   : > { %v491_v8 = vmax.f32 %v1142_v6, 0.0 }
  0x6e   : > { %v492_v9 = vsub.f32 0.0, %v490_v7 }
  0x6f   : > { %v493_v10 = vsub.f32 0.0, %v491_v8 }
  0x70   : > { %v494_v11 = vmul.f32 5.0, %v492_v9 }
  0x71   : > { %v495_v12 = vmul.f32 5.0, %v493_v10 }
  0x72   : > { %v496_v14 = vmul.f32 1.442695, %v494_v11 }
  0x73   : > { %v498_v16 = vmul.f32 1.442695, %v495_v12 }
  0x74   : > { %1210 = vpow2.f32 %v496_v14 }
  0x75   : > { %1212 = vpow2.f32 %v498_v16 }
  0x7e   : > { %v1211_v18 = vpop.eup %1210 }
  0x7f   : > { %v1213_v20 = vpop.eup %1212  ;;  %961 = vperm.xlu0 %1204, %v1211_v18  }
  0x80   : > { %966 = vperm.xlu1 %1205, %v1213_v20  }
  0xe5   : > { %v523_v34 = vpop.permute.xlu1 %522  ;;  %v504_v35 = vpop.permute.xlu0 %503 }
  0xe6   : > { %v536_v36 = vmul.f32 %v1144_v33, %v523_v34  ;;  %v517_v37 = vmul.f32 %v1143_v4, %v504_v35 }
  0xe8   : > { %v1356_v38 = vadd.f32 %v536_v36, %v517_v37 }
  0xe9   : > { %v528_v39 = vpop.permute.xlu1 %527  ;;  %v509_v40 = vpop.permute.xlu0 %508 }
  0xea   : > { %v543_v41 = vand.u32 2147483647, %v1356_v38  ;;  %v546_v42 = vand.u32 2139095040, %v1356_v38  ;;  %v537_v43 = vmul.f32 %v1144_v33, %v528_v39  ;;  %v518_v44 = vmul.f32 %v1143_v4, %v509_v40 }
  0xeb   : > { %vm545_vm15 = vcmp.lt.s32.totalorder %v1356_v38, 0 }
  0xec   : > { %v547_v45 = vshrl.u32 %v546_v42, 23  ;;  %v550_v46 = vand.u32 8388607, %v543_v41  ;;  %v1362_v47 = vadd.f32 %v537_v43, %v518_v44  ;;  %vm544_vm0 = vcmp.le.f32.partialorder %v543_v41, 0.7853982 }
  0xee   : > { %v1145_v1 = vadd.s32 4294967169, %v547_v45  ;;  %v649_v48 = vand.u32 2139095040, %v1362_v47  ;;  %v551_v50 = vor.u32 8388608, %v550_v46  ;;  %v646_v52 = vand.u32 2147483647, %v1362_v47 }
  0xf0   : > { %v553_v49 = vadd.s32 1, %v1145_v1  ;;  %v650_v51 = vshrl.u32 %v649_v48, 23  ;;  %v1366_v57 = vshll.u32 %v551_v50, 8  ;;  %v653_v60 = vand.u32 8388607, %v646_v52 }
  0xf2   : > { %vm554_vm1 = vcmp.gt.s32.totalorder %v553_v49, 0  ;;  %v1149_v54 = vadd.s32 4294967169, %v650_v51  ;;  %v654_v30 = vor.u32 8388608, %v653_v60 }
  0xf3   : > { %v555_v53 = vsel %vm554_vm1, %v553_v49, 0  ;;  %vm648_vm1 = vcmp.lt.s32.totalorder %v1362_v47, 0 }
  0xf4   : > { %v556_v55 = vshrl.u32 %v555_v53, 5  ;;  %v557_v56 = vand.u32 31, %v555_v53  ;;  %v656_v61 = vadd.s32 1, %v1149_v54  ;;  %v694_v44 = vshll.u32 %v654_v30, 8 }
  0xf6   : > { %v558_v58 = vsub.s32 32, %v557_v56  ;;  %v560_v59 = vshll.u32 %v1231_v13, %v557_v56  ;;  %v563_v62 = vshll.u32 %v1232_v15, %v557_v56  ;;  %v566_v63 = vshll.u32 %v1233_v17, %v557_v56 }
  0xf7   : > { %v569_v0 = vshll.u32 %v1234_v19, %v557_v56  ;;  %v572_v2 = vshll.u32 %v1235_v21, %v557_v56  ;;  %vm575_vm2 = vcmp.lt.s32.totalorder %v556_v55, 1  ;;  %vm577_vm3 = vcmp.lt.s32.totalorder %v556_v55, 3 }
  0xf8   : > { %v561_v3 = vshrl.u32 %v1232_v15, %v558_v58  ;;  %v564_v5 = vshrl.u32 %v1233_v17, %v558_v58  ;;  %v567_v6 = vshrl.u32 %v1234_v19, %v558_v58  ;;  %v559_v7 = vshrl.u32 %v1231_v13, %v558_v58 }
  0xf9   : > { %v570_v8 = vshrl.u32 %v1235_v21, %v558_v58  ;;  %v573_v9 = vshrl.u32 %v1236_v28, %v558_v58  ;;  %vm657_vm4 = vcmp.gt.s32.totalorder %v656_v61, 0  ;;  %vm578_vm5 = vcmp.lt.s32.totalorder %v556_v55, 4 }
  0xfa   : > { %v562_v10 = vor.u32 %v561_v3, %v560_v59  ;;  %v565_v11 = vor.u32 %v564_v5, %v563_v62  ;;  %v568_v12 = vor.u32 %v567_v6, %v566_v63  ;;  %v658_v18 = vsel %vm657_vm4, %v656_v61, 0 }
  0xfb   : > { %v571_v14 = vor.u32 %v570_v8, %v569_v0  ;;  %v574_v16 = vor.u32 %v573_v9, %v572_v2  ;;  %vm576_vm6 = vcmp.lt.s32.totalorder %v556_v55, 2  ;;  %v660_v33 = vand.u32 31, %v658_v18 }
  0xfc   : > { %v579_v20 = vsel %vm575_vm2, %v559_v7, %v562_v10  ;;  %v580_v22 = vsel %vm578_vm5, %v568_v12, 2102212464  ;;  %v583_v23 = vsel %vm575_vm2, %v562_v10, %v565_v11  ;;  %v587_v24 = vsel %vm575_vm2, %v565_v11, %v568_v12 }
  0xfd   : > { %v581_v25 = vsel %vm577_vm3, %v565_v11, %v580_v22  ;;  %v584_v26 = vsel %vm578_vm5, %v571_v14, 920167782  ;;  %v588_v29 = vsel %vm578_vm5, %v574_v16, 1326507024  ;;  %v659_v42 = vshrl.u32 %v658_v18, 5 }
  0xfe   : > { %v585_v31 = vsel %vm577_vm3, %v568_v12, %v584_v26  ;;  %v589_v32 = vsel %vm577_vm3, %v571_v14, %v588_v29  ;;  %v582_v4 = vsel %vm576_vm6, %v579_v20, %v581_v25  ;;  %v661_v43 = vsub.s32 32, %v660_v33 }
  0xff   : > { %v586_v34 = vsel %vm576_vm6, %v583_v23, %v585_v31  ;;  %v590_v35 = vsel %vm576_vm6, %v587_v24, %v589_v32  ;;  %v598_v45 = vmul.u32 %v1366_v57, %v582_v4  ;;  %v663_v46 = vshll.u32 %v1231_v13, %v660_v33 }
 0x100   : > { %v1388_v36 = vmul.u32.u64.low %v1366_v57, %v590_v35  ;;  %v1389_v37 = vmul.u32.u64.high %v1366_v57, %v590_v35, %v1388_v36  ;;  %v1392_v39 = vmul.u32.u64.low %v1366_v57, %v586_v34  ;;  %v1393_v40 = vmul.u32.u64.high %v1366_v57, %v586_v34, %v1392_v39 }
 0x101   : > { %v666_v1 = vshll.u32 %v1232_v15, %v660_v33  ;;  %v669_v48 = vshll.u32 %v1233_v17, %v660_v33  ;;  %v664_v49 = vshrl.u32 %v1232_v15, %v661_v43  ;;  %v667_v50 = vshrl.u32 %v1233_v17, %v661_v43 }
 0x102   : > { %v670_v51 = vshrl.u32 %v1234_v19, %v661_v43  ;;  %v672_v53 = vshll.u32 %v1234_v19, %v660_v33  ;;  %vm600_vm7 = vc.u32 %v1389_v37, %v1392_v39  ;;  %v601_v54 = vadd.s32 1, %v1393_v40 }
 0x103   : > { %v673_v55 = vshrl.u32 %v1235_v21, %v661_v43  ;;  %v675_v56 = vshll.u32 %v1235_v21, %v660_v33  ;;  %v665_v57 = vor.u32 %v664_v49, %v663_v46  ;;  %v668_v58 = vor.u32 %v667_v50, %v666_v1 }
 0x104   : > { %v671_v59 = vor.u32 %v670_v51, %v669_v48  ;;  %v676_v15 = vshrl.u32 %v1236_v28, %v661_v43  ;;  %v602_v17 = vsel %vm600_vm7, %v601_v54, %v1393_v40  ;;  %vm678_vm8 = vcmp.lt.s32.totalorder %v659_v42, 1 }
 0x105   : > { %v674_v60 = vor.u32 %v673_v55, %v672_v53  ;;  %vm681_vm9 = vcmp.lt.s32.totalorder %v659_v42, 4  ;;  %v603_v19 = vadd.s32 %v602_v17, %v598_v45  ;;  %vm680_vm10 = vcmp.lt.s32.totalorder %v659_v42, 3 }
 0x106   : > { %v677_v61 = vor.u32 %v676_v15, %v675_v56  ;;  %v683_v62 = vsel %vm681_vm9, %v671_v59, 2102212464  ;;  %v662_v63 = vshrl.u32 %v1231_v13, %v661_v43  ;;  %v686_v0 = vsel %vm678_vm8, %v665_v57, %v668_v58 }
 0x107   : > { %v687_v2 = vsel %vm681_vm9, %v674_v60, 920167782  ;;  %v690_v3 = vsel %vm678_vm8, %v668_v58, %v671_v59  ;;  %v604_v21 = vadd.s32 536870912, %v603_v19  ;;  %vm679_vm11 = vcmp.lt.s32.totalorder %v659_v42, 2 }
 0x108   : > { %v688_v5 = vsel %vm680_vm10, %v671_v59, %v687_v2  ;;  %v691_v6 = vsel %vm681_vm9, %v677_v61, 1326507024  ;;  %v682_v7 = vsel %vm678_vm8, %v662_v63, %v665_v57  ;;  %v684_v28 = vsel %vm680_vm10, %v668_v58, %v683_v62 }
 0x109   : > { %v689_v8 = vsel %vm679_vm11, %v686_v0, %v688_v5  ;;  %v692_v9 = vsel %vm680_vm10, %v674_v60, %v691_v6  ;;  %v605_v10 = vshrl.u32 %v604_v21, 30  ;;  %v685_v20 = vsel %vm679_vm11, %v682_v7, %v684_v28 }
 0x10a   : > { %v693_v11 = vsel %vm679_vm11, %v690_v3, %v692_v9  ;;  %v1412_v12 = vmul.u32.u64.low %v694_v44, %v689_v8  ;;  %v1413_v14 = vmul.u32.u64.high %v694_v44, %v689_v8, %v1412_v12  ;;  %v701_v24 = vmul.u32 %v694_v44, %v685_v20 }
 0x10b   : > { %v1415_v16 = vmul.u32.u64.low %v694_v44, %v693_v11  ;;  %v1416_v18 = vmul.u32.u64.high %v694_v44, %v693_v11, %v1415_v16  ;;  %v606_v13 = vshll.u32 %v605_v10, 30  ;;  %v599_v40 = vadd.s32 %v1392_v39, %v1389_v37 }
 0x10c   : > { %v704_v23 = vadd.s32 1, %v1413_v14  ;;  %v629_v59 = vsub.s32 4, %v605_v10  ;;  %vm647_vm2 = vcmp.le.f32.partialorder %v646_v52, 0.7853982  ;;  %vm635_vm10 = vweird.f32 %v1356_v38 }
 0x10d   : > { %v607_v22 = vsub.s32 %v603_v19, %v606_v13  ;;  %vm703_vm12 = vc.u32 %v1416_v18, %v1412_v12  ;;  %v702_v37 = vadd.s32 %v1412_v12, %v1416_v18  ;;  %v541_v12 = vand.u32 127, %v457_v27 }
 0x10e   : > { %v705_v26 = vsel %vm703_vm12, %v704_v23, %v1413_v14  ;;  %v630_v63 = vsel %vm545_vm15, %v629_v59, %v605_v10  ;;  %vm977_vm11 = vcmask 146432  }
 0x10f   : > { %v609_v25 = vsub.s32 0, %v607_v22  ;;  %v706_v29 = vadd.s32 %v705_v26, %v701_v24  ;;  %v632_v5 = vsel %vm544_vm0, 0, %v630_v63  ;;  %vm542_vm3 = vcmp.lt.s32.totalorder %v541_v12, 9 }
 0x110   : > { %v842_v28 = vadd.s32 3, %v632_v5  ;;  %v636_v14 = vand.u32 3, %v632_v5 }
 0x111   : > { %v1146_v30 = vmin.u32 %v609_v25, %v607_v22  ;;  %v707_v31 = vadd.s32 536870912, %v706_v29 }
 0x112   : > { %v843_v41 = vand.u32 3, %v842_v28  ;;  %vm641_vm4 = vcmp.eq.s32.totalorder %v636_v14, 2  ;;  %vm638_vm6 = vcmp.eq.s32.totalorder %v636_v14, 0  ;;  %vm637_vm8 = vcmp.lt.s32.totalorder %v636_v14, 2 }
 0x113   : > { %v611_v32 = vclz %v1146_v30  ;;  %v708_v33 = vshrl.u32 %v707_v31, 30 }
 0x114   : > { %vm848_vm5 = vcmp.eq.s32.totalorder %v843_v41, 2  ;;  %vm845_vm7 = vcmp.eq.s32.totalorder %v843_v41, 0  ;;  %vm844_vm9 = vcmp.lt.s32.totalorder %v843_v41, 2 }
 0x115   : > { %v1147_v4 = vadd.s32 4294967294, %v611_v32  ;;  %v709_v34 = vshll.u32 %v708_v33, 30  ;;  %v732_v9 = vsub.s32 4, %v708_v33 }
 0x117   : > { %vm1148_vm13 = vcmp.lt.s32.totalorder %v1147_v4, 0  ;;  %v710_v36 = vsub.s32 %v706_v29, %v709_v34  ;;  %v733_v16 = vsel %vm648_vm1, %v732_v9, %v708_v33  ;;  %v962_v34 = vpop.permute.xlu0 %961 }
 0x118   : > { %v614_v35 = vsel %vm1148_vm13, 0, %v1147_v4  ;;  %v735_v23 = vsel %vm647_vm2, 0, %v733_v16 }
 0x119   : > { %v615_v42 = vsub.s32 32, %v614_v35  ;;  %v619_v43 = vsub.s32 4294967266, %v614_v35  ;;  %v712_v44 = vsub.s32 0, %v710_v36  ;;  %v616_v45 = vshll.u32 %v607_v22, %v614_v35 }
 0x11a   : > { %v946_v29 = vadd.s32 3, %v735_v23 }
 0x11b   : > { %v617_v46 = vshrl.u32 %v599_v40, %v615_v42  ;;  %v620_v1 = vadd.s32 127, %v619_v43  ;;  %v1150_v48 = vmin.u32 %v712_v44, %v710_v36 }
 0x11c   : > { %v947_v40 = vand.u32 3, %v946_v29 }
 0x11d   : > { %v618_v49 = vor.u32 %v617_v46, %v616_v45  ;;  %v621_v50 = vshll.u32 %v620_v1, 23  ;;  %v714_v51 = vclz %v1150_v48 }
 0x11e   : > { %vm952_vm13 = vcmp.eq.s32.totalorder %v947_v40, 2 }
 0x11f   : > { %v622_v53 = vor.u32 4788187, %v621_v50  ;;  %v1151_v54 = vadd.s32 4294967294, %v714_v51  ;;  %v625_v56 = vcvt.s32.f32 %v618_v49 }
 0x121   : > { %v623_v55 = vand.u32 2147483647, %v622_v53  ;;  %vm1152_vm14 = vcmp.lt.s32.totalorder %v1151_v54, 0 }
 0x122   : > { %v717_v58 = vsel %vm1152_vm14, 0, %v1151_v54  ;;  %v967_v54 = vpop.permute.xlu1 %966 }
 0x123   : > { %v626_v57 = vmul.f32 %v625_v56, %v623_v55  ;;  %v718_v39 = vsub.s32 32, %v717_v58  ;;  %v722_v15 = vsub.s32 4294967266, %v717_v58  ;;  %v719_v60 = vshll.u32 %v710_v36, %v717_v58 }
 0x124   : > { %v739_v36 = vand.u32 3, %v735_v23 }
 0x125   : > { %v627_v17 = vxor.u32 2147483648, %v626_v57  ;;  %v720_v19 = vshrl.u32 %v702_v37, %v718_v39  ;;  %v723_v61 = vadd.s32 127, %v722_v15 }
 0x126   : > { %vm744_vm12 = vcmp.eq.s32.totalorder %v739_v36, 2  ;;  %vm741_vm14 = vcmp.eq.s32.totalorder %v739_v36, 0 }
 0x127   : > { %v628_v62 = vsel %vm545_vm15, %v627_v17, %v626_v57  ;;  %v721_v0 = vor.u32 %v720_v19, %v719_v60  ;;  %v724_v2 = vshll.u32 %v723_v61, 23  ;;  %vm949_vm15 = vcmp.eq.s32.totalorder %v947_v40, 0 }
 0x128   : > { %v631_v3 = vsel %vm544_vm0, %v1356_v38, %v628_v62  ;;  %vm740_vm0 = vcmp.lt.s32.totalorder %v739_v36, 2 }
 0x129   : > { %1214 = vcosq.f32 %v631_v3  ;;  %v725_v21 = vor.u32 4788187, %v724_v2  ;;  %v728_v7 = vcvt.s32.f32 %v721_v0 }
 0x12a   : > { %1216 = vsinq.f32 %v631_v3 }
 0x12b   : > { %v726_v6 = vand.u32 2147483647, %v725_v21 }
 0x12d   : > { %v729_v8 = vmul.f32 %v728_v7, %v726_v6 }
 0x12f   : > { %v730_v11 = vxor.u32 2147483648, %v729_v8 }
 0x131   : > { %v731_v10 = vsel %vm648_vm1, %v730_v11, %v729_v8  ;;  %vm948_vm1 = vcmp.lt.s32.totalorder %v947_v40, 2 }
 0x132   : > { %v734_v13 = vsel %vm647_vm2, %v1362_v47, %v731_v10  ;;  %vm738_vm2 = vweird.f32 %v1362_v47 }
 0x133   : > { %v1215_v18 = vpop.eup %1214  ;;  %1218 = vcosq.f32 %v734_v13 }
 0x134   : > { %v1217_v20 = vpop.eup %1216  ;;  %v642_v22 = vxor.u32 2147483648, %v1215_v18  ;;  %1220 = vsinq.f32 %v734_v13 }
 0x135   : > { %v639_v27 = vxor.u32 2147483648, %v1217_v20 }
 0x136   : > { %v643_v24 = vsel %vm641_vm4, %v642_v22, %v1217_v20  ;;  %v850_v25 = vsel %vm848_vm5, %v642_v22, %v1217_v20  ;;  %vm1069_vm4 = vcmask 277504   ;;  %vm1072_vm5 = vcmask 270336  }
 0x137   : > { %v640_v26 = vsel %vm638_vm6, %v1215_v18, %v639_v27  ;;  %v847_v52 = vsel %vm845_vm7, %v1215_v18, %v639_v27 }
 0x138   : > { %v644_v30 = vsel %vm637_vm8, %v640_v26, %v643_v24  ;;  %v851_v31 = vsel %vm844_vm9, %v847_v52, %v850_v25 }
 0x139   : > { %v645_v32 = vsel %vm635_vm10, nan, %v644_v30  ;;  %v852_v33 = vsel %vm635_vm10, nan, %v851_v31 }
 0x13a   : > { %v957_v4 = vsel %vm542_vm3, %v645_v32, %v852_v33 }
 0x13b   : > { %v969_v35 = vmul.f32 %v962_v34, %v957_v4 }
 0x13d   : > { %1163 = vmatmul.mubr.msk.f32.vlgmr.msra.gmra.mrb[0].mxu0 %vm977_vm11, %v969_v35  ;;  %v1219_v42 = vpop.eup %1218 }
 0x13e   : > { %v1221_v43 = vpop.eup %1220  ;;  %v745_v44 = vxor.u32 2147483648, %v1219_v42 }
 0x13f   : > { %v742_v45 = vxor.u32 2147483648, %v1221_v43 }
 0x140   : > { %v746_v38 = vsel %vm744_vm12, %v745_v44, %v1221_v43  ;;  %v954_v46 = vsel %vm952_vm13, %v745_v44, %v1221_v43 }
 0x141   : > { %v743_v1 = vsel %vm741_vm14, %v1219_v42, %v742_v45  ;;  %v951_v48 = vsel %vm949_vm15, %v1219_v42, %v742_v45 }
 0x142   : > { %v747_v49 = vsel %vm740_vm0, %v743_v1, %v746_v38  ;;  %v955_v50 = vsel %vm948_vm1, %v951_v48, %v954_v46 }
 0x143   : > { %v748_v51 = vsel %vm738_vm2, nan, %v747_v49  ;;  %v956_v53 = vsel %vm738_vm2, nan, %v955_v50 }
 0x144   : > { %v958_v55 = vsel %vm542_vm3, %v748_v51, %v956_v53 }
 0x145   : > { %v970_v56 = vmul.f32 %v967_v54, %v958_v55 }
 0x147   : > { %1164 = vmatmul.mubr.msk.f32.vlgmr.msra.gmra.mrb[0].mxu1 %vm977_vm11, %v970_v56 }
 0x210   : > { %v1057_v57 = vpop.f32.mrb[0].mxu0 }
 0x211   : > { %1068 = vst [vmem:[%s245_s7] sm:$0xff] %v1057_v57  ;;  %v1059_v58 = vpop.f32.mrb[1].mxu0 }
 0x212   : > { %1070 = vst.msk [vmem:[%s245_s7 + $0x8] sm:$0xff] %vm1069_vm4, %v1059_v58 }
 0x21a   : > { %v1063_v47 = vpop.f32.mrb[0].mxu1 }
 0x21b   : > { %1071 = vst [vmem:[%s245_s7 + $0x10] sm:$0x1] %v1063_v47  ;;  %v1065_v59 = vpop.f32.mrb[1].mxu1 }
 0x21c   : > { %1073 = vst.msk [vmem:[%s245_s7 + $0x18] sm:$0x1] %vm1072_vm5, %v1065_v59 }
 0x21d PF: > { %s16_s21 = sadd.s32 1, %s1228_s21  }
 0x21e   : > { %p13_p4 = scmp.ge.s32.totalorder %s16_s21, 4  }
 0x220   :  { %15 = sbr.rel (!%p13_p4) target bundleno = 1 (0x1), region = 74 }

// kernel: mernet_forward.5
= control target key start
LH: loop header
LB: loop body
LE: loop exit
PB: predicated region body
PF: predicated region fallthrough
CT: control target
= control target key end

     0   :  { %s6257_s13 = smov 0   ;;  %s10263_s0 = inlined_call_operand.vmem [shape: f32[2,8,256], index: 0, kind: input, shape index: {}]   ;;  %s10264_s1 = inlined_call_operand.vmem [shape: f32[2,3,256], index: 1, kind: input, shape index: {}]   ;;  %s10265_s2 = inlined_call_operand.vmem [shape: f32[9,256], index: 2, kind: input, shape index: {}, may-alias: {2,3}]   ;;  %s10266_s3 = inlined_call_operand.vmem [shape: f32[9,256], index: 3, kind: input, shape index: {}, may-alias: {2,3}]   ;;  %s10267_s4 = inlined_call_operand.vmem [shape: f32[2,32,72], index: 4, kind: input, shape index: {}]   ;;  %s10268_s5 = inlined_call_operand.vmem [shape: f32[32,1], index: 5, kind: input, shape index: {}]   ;;  %s10269_s6 = inlined_call_operand.vmem [shape: f32[2,8,32,288], index: 6, kind: input, shape index: {}]   ;;  %s10270_s7 = inlined_call_operand.vmem [shape: f32[8,32,1], index: 7, kind: input, shape index: {}]   ;;  %s10271_s8 = inlined_call_operand.vmem [shape: f32[8,32,1], index: 8, kind: input, shape index: {}]   ;;  %s10272_s9 = inlined_call_operand.vmem [shape: f32[2,3,256], index: 9, kind: output, shape index: {0}]   ;;  %s10273_s10 = inlined_call_operand.vmem [shape: f32[2,3,256], index: 10, kind: output, shape index: {1}]  }
   0x1 LB: > { %s5299_s14 = sadd.s32 4294967295, %s6190_s13   ;;  %p5303_p0 = scmp.ge.s32.totalorder %s6190_s13, 1  ;;  %s6190_s13 = sphi %s6257_s13, %s21_s13  }
   0x2   : > { %p345_p1 = scmp.lt.s32.totalorder %s6190_s13, 3 }
   0x4   : > { %p346_p2 = pnand %p5303_p0, %p345_p1 }
   0x6   : > { %349 = sbr.rel (%p346_p2) target bundleno = 4157 (0x103d), region = 56 }
   0xd   : > { %p403_p3 = scmp.lt.s32.totalorder %s5299_s14, 1  ;;  %s6192_s19 = smov 16   ;;  %v10274_v2 = vmov 0.0   ;;  %v632_v3 = vld [vmem:[%s10268_s5 + $0x8] sm:$0xff]  ;;  %v631_v4 = vld [vmem:[%s10268_s5] sm:$0xff]  ;;  %v6201_v5 = vmov 0   ;;  %v443_v8 = vlaneseq }
   0xe   : > { %s6193_s20 = smov 17   ;;  %s6194_s21 = smov 15   ;;  %732 = vmatprep.mubr.f32.mxu0 %v10274_v2  ;;  %6182 = vset.pattern.permute.xlu1 %v6201_v5  ;;  %v633_v6 = vld [vmem:[%s10268_s5 + $0x10] sm:$0xff]  ;;  %v634_v7 = vld [vmem:[%s10268_s5 + $0x18] sm:$0xff]  ;;  %vm655_vm8 = vcmask 588800   ;;  %vm1149_vm9 = vcmask 261120  }
   0xf   : > { %s10380_s14 = smov (!%p403_p3, %s5299_s14), 1  ;;  %s6195_s22 = smov 1   ;;  %6181 = vset.pattern.permute.xlu0 %v6201_v5  ;;  %v451_v9 = vshrl.u32 %v443_v8, 7  ;;  %v6320_v10 = vand.u32 127, %v443_v8 }
  0x10   : > { %s5503_s15 = sshll.u32 %s10380_s14, 4  ;;  %s6196_s23 = smov 127   ;;  %v448_v13 = vld [vmem:[%s10265_s2] ss:$8 sm:$0x3] }
  0x11   : > { %s407_s18 = scalar_lea.vmem %s10263_s0, %s5503_s15  ;;  %s6197_s24 = smov 113   ;;  %v6322_v11 = vsub.s32 0, %v451_v9  ;;  %v6324_v12 = vsub.s32 1, %v451_v9  ;;  %v5315_v14 = vld [vmem:[%s10265_s2 + $0x1] ss:$8 sm:$0x3] }
  0x12   : > { %v6271_v0 = vld [vmem:[%s407_s18] sm:$0xff]  ;;  %v6277_v1 = vld [vmem:[%s407_s18 + $0x8] sm:$0xff]  ;;  %s6199_s25 = smov 112   ;;  %s6200_s26 = smov 111   ;;  %vm466_vm0 = vcmp.lt.s32.totalorder %v6320_v10, 16  ;;  %vm445_vm1 = vcmp.lt.s32.totalorder %v6320_v10, 17 }
  0x13   : > { %462 = vrot.lane.b32.xlu1 %v6271_v0, %s6192_s19  ;;  %439 = vrot.lane.b32.xlu0 %v6271_v0, %s6193_s20  ;;  %v457_v17 = vrot.slane %v448_v13, %v6324_v12  ;;  %v479_v18 = vrot.slane %v5315_v14, %v6324_v12  ;;  %v453_v19 = vrot.slane %v448_v13, %v6322_v11  ;;  %v5316_v31 = vld [vmem:[%s10265_s2 + $0x2] ss:$8 sm:$0x3]  ;;  %v5317_v32 = vld [vmem:[%s10265_s2 + $0x3] ss:$8 sm:$0x3] }
  0x14   : > { %v475_v20 = vrot.slane %v5315_v14, %v6322_v11  ;;  %vm488_vm2 = vcmp.lt.s32.totalorder %v6320_v10, 15  ;;  %vm510_vm3 = vcmp.lt.s32.totalorder %v6320_v10, 1  ;;  %v5318_v37 = vld [vmem:[%s10265_s2 + $0x4] ss:$8 sm:$0x3]  ;;  %v497_v38 = vrot.slane %v5316_v31, %v6322_v11  ;;  %s5505_s15 = sshll.u32 %s10380_s14, 5 }
  0x15   : > { %v501_v39 = vrot.slane %v5316_v31, %v6324_v12  ;;  %v519_v40 = vrot.slane %v5317_v32, %v6322_v11  ;;  %v523_v41 = vrot.slane %v5317_v32, %v6324_v12  ;;  %v5319_v42 = vld [vmem:[%s10265_s2 + $0x5] ss:$8 sm:$0x3]  ;;  %vm547_vm4 = vcmp.lt.s32.totalorder %v6320_v10, 127  ;;  %s417_s18 = scalar_lea.vmem %s10267_s4, %s5505_s15  ;;  %s6162_s27 = smul.u32 768, %s10380_s14 }
  0x16   : > { %v538_v47 = vrot.slane %v5318_v37, %v6324_v12  ;;  %v534_v48 = vrot.slane %v5318_v37, %v6322_v11  ;;  %v556_v51 = vrot.slane %v5319_v42, %v6322_v11  ;;  %v560_v52 = vrot.slane %v5319_v42, %v6324_v12 }
  0x17   : > { %464 = vrot.lane.b32.xlu1 %v6277_v1, %s6192_s19  ;;  %441 = vrot.lane.b32.xlu0 %v6277_v1, %s6193_s20  ;;  %vm569_vm5 = vcmp.lt.s32.totalorder %v6320_v10, 113  ;;  %vm591_vm6 = vcmp.lt.s32.totalorder %v6320_v10, 112  ;;  %vm613_vm7 = vcmp.lt.s32.totalorder %v6320_v10, 111  ;;  %s6546_s30 = scalar_lea.vmem %s10269_s6, %s6162_s27 }
  0x18   : > { %v542_v61 = vmul.f32 %v538_v47, %v6277_v1  ;;  %v541_v62 = vmul.f32 %v534_v48, %v6271_v0  ;;  %v5485_v10 = vld [vmem:[%s6546_s30 + $0x2b0] sm:$0xff] }
  0x1b   : > { %486 = vrot.lane.b32.xlu1 %v6277_v1, %s6194_s21  ;;  %484 = vrot.lane.b32.xlu0 %v6271_v0, %s6194_s21 }
  0x1f   : > { %508 = vrot.lane.b32.xlu1 %v6277_v1, %s6195_s22  ;;  %506 = vrot.lane.b32.xlu0 %v6271_v0, %s6195_s22 }
  0x23   : > { %545 = vrot.lane.b32.xlu1 %v6277_v1, %s6196_s23  ;;  %543 = vrot.lane.b32.xlu0 %v6271_v0, %s6196_s23 }
  0x27   : > { %567 = vrot.lane.b32.xlu1 %v6277_v1, %s6197_s24  ;;  %565 = vrot.lane.b32.xlu0 %v6271_v0, %s6197_s24 }
  0x2b   : > { %589 = vrot.lane.b32.xlu1 %v6277_v1, %s6199_s25  ;;  %587 = vrot.lane.b32.xlu0 %v6271_v0, %s6199_s25 }
  0x2f   : > { %611 = vrot.lane.b32.xlu1 %v6277_v1, %s6200_s26  ;;  %609 = vrot.lane.b32.xlu0 %v6271_v0, %s6200_s26  ;;  %v5321_v1 = vld [vmem:[%s10265_s2 + $0x7] ss:$8 sm:$0x3] }
  0x33   : > { %642 = vperm.xlu1 %6182, %v632_v3   ;;  %637 = vperm.xlu0 %6181, %v631_v4  }
  0x37   : > { %647 = vperm.xlu1 %6182, %v633_v6   ;;  %652 = vperm.xlu0 %6181, %v634_v7   ;;  %v5320_v6 = vld [vmem:[%s10265_s2 + $0x6] ss:$8 sm:$0x3] }
  0x38   : > { %v578_v13 = vrot.slane %v5320_v6, %v6322_v11  ;;  %v582_v14 = vrot.slane %v5320_v6, %v6324_v12 }
  0x85   : > { %v463_v15 = vpop.permute.xlu1 %462  ;;  %v440_v16 = vpop.permute.xlu0 %439 }
  0x89   : > { %v465_v21 = vpop.permute.xlu1 %464  ;;  %v442_v22 = vpop.permute.xlu0 %441 }
  0x8a   : > { %v468_v23 = vsel %vm466_vm0, %v465_v21, %v463_v15  ;;  %v447_v24 = vsel %vm445_vm1, %v442_v22, %v440_v16  ;;  %v446_v25 = vsel %vm445_vm1, %v440_v16, %v442_v22  ;;  %v467_v26 = vsel %vm466_vm0, %v463_v15, %v465_v21 }
  0x8b   : > { %v461_v27 = vmul.f32 %v457_v17, %v446_v25  ;;  %v483_v28 = vmul.f32 %v479_v18, %v467_v26  ;;  %v460_v29 = vmul.f32 %v453_v19, %v447_v24  ;;  %v482_v30 = vmul.f32 %v475_v20, %v468_v23  ;;  %v5322_v17 = vld [vmem:[%s10265_s2 + $0x10] ss:$8 sm:$0x3] }
  0x8c   : > { %v600_v15 = vrot.slane %v5321_v1, %v6322_v11  ;;  %v604_v16 = vrot.slane %v5321_v1, %v6324_v12  ;;  %v626_v24 = vrot.slane %v5322_v17, %v6324_v12  ;;  %v1340_v1 = vld [vmem:[%s10270_s7] sm:$0xff] }
  0x8d   : > { %v487_v33 = vpop.permute.xlu1 %486  ;;  %v485_v34 = vpop.permute.xlu0 %484  ;;  %v5508_v35 = vpack.c.bf16 %v483_v28, %v461_v27  ;;  %v5510_v36 = vpack.c.bf16 %v482_v30, %v460_v29  ;;  %v622_v29 = vrot.slane %v5322_v17, %v6322_v11  ;;  %v1342_v17 = vld [vmem:[%s10270_s7 + $0x10] sm:$0xff] }
  0x8e   : > { %v489_v43 = vsel %vm488_vm2, %v485_v34, %v487_v33  ;;  %v490_v44 = vsel %vm488_vm2, %v487_v33, %v485_v34 }
  0x8f   : > { %5509 = vmatprep.subr.bf16.mxu0 %v5508_v35  ;;  %v504_v53 = vmul.f32 %v497_v38, %v490_v44  ;;  %v505_v54 = vmul.f32 %v501_v39, %v489_v43  ;;  %v433_v38 = vld [vmem:[%s417_s18] sm:$0xff]  ;;  %v434_v39 = vld [vmem:[%s417_s18 + $0x8] sm:$0xff] }
  0x90   : > { %5511 = vmatpush1.bf16.msra.mxu0 %v5510_v36 }
  0x91   : > { %v509_v45 = vpop.permute.xlu1 %508  ;;  %v507_v46 = vpop.permute.xlu0 %506 }
  0x92   : > { %v511_v49 = vsel %vm510_vm3, %v507_v46, %v509_v45  ;;  %v512_v50 = vsel %vm510_vm3, %v509_v45, %v507_v46 }
  0x93   : > { %v526_v55 = vmul.f32 %v519_v40, %v512_v50  ;;  %v527_v56 = vmul.f32 %v523_v41, %v511_v49  ;;  %v435_v40 = vld [vmem:[%s417_s18 + $0x10] sm:$0xff]  ;;  %v436_v41 = vld [vmem:[%s417_s18 + $0x18] sm:$0xff] }
  0x95   : > { %v546_v57 = vpop.permute.xlu1 %545  ;;  %v544_v58 = vpop.permute.xlu0 %543  ;;  %v5512_v59 = vpack.c.bf16 %v527_v56, %v505_v54  ;;  %v5514_v60 = vpack.c.bf16 %v526_v55, %v504_v53 }
  0x96   : > { %v548_v63 = vsel %vm547_vm4, %v544_v58, %v546_v57  ;;  %v549_v3 = vsel %vm547_vm4, %v546_v57, %v544_v58 }
  0x97   : > { %v563_v4 = vmul.f32 %v556_v51, %v548_v63  ;;  %v564_v5 = vmul.f32 %v560_v52, %v549_v3  ;;  %5513 = vmatprep.subr.bf16.mxu0 %v5512_v59 }
  0x98   : > { %5515 = vmatpush1.bf16.msra.mxu0 %v5514_v60 }
  0x99   : > { %v568_v0 = vpop.permute.xlu1 %567  ;;  %v566_v7 = vpop.permute.xlu0 %565  ;;  %v5516_v8 = vpack.c.bf16 %v564_v5, %v542_v61  ;;  %v5518_v9 = vpack.c.bf16 %v563_v4, %v541_v62  ;;  %v758_v62 = vld [vmem:[%s6546_s30 + $0x8] sm:$0xff] }
  0x9a   : > { %v570_v18 = vsel %vm569_vm5, %v566_v7, %v568_v0  ;;  %v571_v19 = vsel %vm569_vm5, %v568_v0, %v566_v7  ;;  %1226 = vmatprep.mubr.f32.mxu1 %v758_v62 }
  0x9b   : > { %5517 = vmatprep.subr.bf16.mxu0 %v5516_v8  ;;  %v585_v25 = vmul.f32 %v578_v13, %v570_v18  ;;  %v586_v26 = vmul.f32 %v582_v14, %v571_v19  ;;  %v1341_v8 = vld [vmem:[%s10270_s7 + $0x8] sm:$0xff] }
  0x9c   : > { %5519 = vmatpush1.bf16.msra.mxu0 %v5518_v9  ;;  %v1372_v9 = vld [vmem:[%s10271_s8] sm:$0xff] }
  0x9d   : > { %v590_v20 = vpop.permute.xlu1 %589  ;;  %v588_v21 = vpop.permute.xlu0 %587 }
  0x9e   : > { %v592_v22 = vsel %vm591_vm6, %v588_v21, %v590_v20  ;;  %v593_v23 = vsel %vm591_vm6, %v590_v20, %v588_v21  ;;  %v1343_v21 = vld [vmem:[%s10270_s7 + $0x18] sm:$0xff] }
  0x9f   : > { %v607_v27 = vmul.f32 %v600_v15, %v592_v22  ;;  %v608_v28 = vmul.f32 %v604_v16, %v593_v23  ;;  %v793_v15 = vld [vmem:[%s10266_s3] ss:$8 sm:$0x3]  ;;  %v1374_v22 = vld [vmem:[%s10271_s8 + $0x10] sm:$0xff] }
  0xa0   : > { %v1373_v16 = vld [vmem:[%s10271_s8 + $0x8] sm:$0xff]  ;;  %v6606_v20 = vrot.slane %v793_v15, %v6324_v12 }
  0xa1   : > { %v612_v30 = vpop.permute.xlu1 %611  ;;  %v610_v31 = vpop.permute.xlu0 %609  ;;  %v5520_v32 = vpack.c.bf16 %v608_v28, %v586_v26  ;;  %v5522_v33 = vpack.c.bf16 %v607_v27, %v585_v25  ;;  %v6617_v26 = vrot.slane %v793_v15, %v6322_v11 }
  0xa2   : > { %v614_v34 = vsel %vm613_vm7, %v610_v31, %v612_v30  ;;  %v615_v35 = vsel %vm613_vm7, %v612_v30, %v610_v31 }
  0xa3   : > { %5521 = vmatprep.subr.bf16.mxu0 %v5520_v32  ;;  %v630_v36 = vmul.f32 %v626_v24, %v615_v35  ;;  %v629_v37 = vmul.f32 %v622_v29, %v614_v34  ;;  %v1375_v32 = vld [vmem:[%s10271_s8 + $0x18] sm:$0xff] }
  0xa4   : > { %5523 = vmatpush1.bf16.msra.mxu0 %v5522_v33 }
  0xa5   : > { %684 = vmatprep.subr.mxu0 %v630_v36 }
  0xa8   : > { %685 = vmatpush1.msra.mxu0 %v629_v37 }
  0xa9   : > { %5323 = vmatmul.mubr.msk.f32.vlgmr.msra.gmra.mrb[0].mxu0 %vm655_vm8, %v433_v38 }
  0xaa   : > { %738 = vmatprep.mubr.f32.mxu0 %v10274_v2 }
  0xad   : > { %5324 = vmatmul.mubr.msk.f32.gmra.mrb[2].mxu0 %vm655_vm8, %v434_v39 }
  0xae   : > { %744 = vmatprep.mubr.f32.mxu0 %v10274_v2 }
  0xb1   : > { %5325 = vmatmul.mubr.msk.f32.gmra.mrb[4].mxu0 %vm655_vm8, %v435_v40 }
  0xb2   : > { %750 = vmatprep.mubr.f32.mxu0 %v10274_v2  ;;  %v638_v42 = vpop.permute.xlu0 %637  ;;  %v643_v46 = vpop.permute.xlu1 %642 }
  0xb5   : > { %5326 = vmatmul.mubr.msk.f32.gmra.mrb[6].mxu0 %vm655_vm8, %v436_v41 }
  0xb6   : > { %v648_v56 = vpop.permute.xlu1 %647  ;;  %v653_v58 = vpop.permute.xlu0 %652 }
 0x17c   : > { %v734_v43 = vpop.f32.mrb[0].mxu0 }
 0x17d   : > { %v6420_v44 = vadd.f32 %v734_v43, %v638_v42  ;;  %v736_v45 = vpop.f32.mrb[1].mxu0 }
 0x17e   : > { %v6442_v54 = vadd.f32 %v736_v45, %v638_v42 }
 0x17f   : > { %10314 = vst [vmem:[#allocation2_spill] sm:$0xff] %v6420_v44  ;;  %769 = vrot.lane.b32.xlu1 %v6420_v44, %s6193_s20 }
 0x180   : > { %v740_v47 = vpop.f32.mrb[2].mxu0  ;;  %10316 = vst [vmem:[#allocation4_spill] sm:$0xff] %v6442_v54 }
 0x181   : > { %v6424_v48 = vadd.f32 %v740_v47, %v643_v46  ;;  %v742_v49 = vpop.f32.mrb[3].mxu0 }
 0x182   : > { %v6448_v55 = vadd.f32 %v742_v49, %v643_v46 }
 0x183   : > { %10315 = vst [vmem:[#allocation3_spill] sm:$0xff] %v6424_v48  ;;  %771 = vrot.lane.b32.xlu0 %v6424_v48, %s6193_s20  ;;  %813 = vrot.lane.b32.xlu1 %v6420_v44, %s6192_s19 }
 0x184   : > { %v746_v50 = vpop.f32.mrb[4].mxu0  ;;  %10317 = vst [vmem:[#allocation5_spill] sm:$0xff] %v6448_v55 }
 0x185   : > { %v748_v51 = vpop.f32.mrb[5].mxu0  ;;  %v6462_v57 = vadd.f32 %v746_v50, %v648_v56 }
 0x186   : > { %v6482_v60 = vadd.f32 %v748_v51, %v648_v56  ;;  %v5327_v51 = vld [vmem:[%s10266_s3 + $0x1] ss:$8 sm:$0x3] }
 0x187   : > { %815 = vrot.lane.b32.xlu0 %v6424_v48, %s6192_s19  ;;  %858 = vrot.lane.b32.xlu1 %v6420_v44, %s6194_s21  ;;  %10318 = vst [vmem:[#allocation6_spill] sm:$0xff] %v6462_v57 }
 0x188   : > { %v752_v52 = vpop.f32.mrb[6].mxu0  ;;  %10320 = vst [vmem:[#allocation8_spill] sm:$0xff] %v6482_v60 }
 0x189   : > { %v754_v53 = vpop.f32.mrb[7].mxu0  ;;  %v6468_v59 = vadd.f32 %v752_v52, %v653_v58 }
 0x18a   : > { %v6488_v61 = vadd.f32 %v754_v53, %v653_v58  ;;  %v6653_v58 = vrot.slane %v5327_v51, %v6324_v12 }
 0x18b   : > { %860 = vrot.lane.b32.xlu0 %v6424_v48, %s6194_s21  ;;  %903 = vrot.lane.b32.xlu1 %v6420_v44, %s6195_s22  ;;  %10319 = vst [vmem:[#allocation7_spill] sm:$0xff] %v6468_v59 }
 0x18c   : > { %10321 = vst [vmem:[#allocation9_spill] sm:$0xff] %v6488_v61 }
 0x18f   : > { %905 = vrot.lane.b32.xlu0 %v6424_v48, %s6195_s22  ;;  %969 = vrot.lane.b32.xlu1 %v6420_v44, %s6196_s23 }
 0x193   : > { %971 = vrot.lane.b32.xlu0 %v6424_v48, %s6196_s23  ;;  %777 = vrot.lane.b32.xlu1 %v6442_v54, %s6193_s20 }
 0x197   : > { %779 = vrot.lane.b32.xlu0 %v6448_v55, %s6193_s20  ;;  %821 = vrot.lane.b32.xlu1 %v6442_v54, %s6192_s19 }
 0x19b   : > { %823 = vrot.lane.b32.xlu0 %v6448_v55, %s6192_s19  ;;  %866 = vrot.lane.b32.xlu1 %v6442_v54, %s6194_s21 }
 0x19f   : > { %868 = vrot.lane.b32.xlu0 %v6448_v55, %s6194_s21  ;;  %911 = vrot.lane.b32.xlu1 %v6442_v54, %s6195_s22 }
 0x1a3   : > { %913 = vrot.lane.b32.xlu0 %v6448_v55, %s6195_s22  ;;  %773 = vrot.lane.b32.xlu1 %v6462_v57, %s6193_s20 }
 0x1a7   : > { %775 = vrot.lane.b32.xlu0 %v6468_v59, %s6193_s20  ;;  %817 = vrot.lane.b32.xlu1 %v6462_v57, %s6192_s19 }
 0x1ab   : > { %819 = vrot.lane.b32.xlu0 %v6468_v59, %s6192_s19  ;;  %862 = vrot.lane.b32.xlu1 %v6462_v57, %s6194_s21 }
 0x1af   : > { %864 = vrot.lane.b32.xlu0 %v6468_v59, %s6194_s21  ;;  %907 = vrot.lane.b32.xlu1 %v6462_v57, %s6195_s22 }
 0x1b3   : > { %909 = vrot.lane.b32.xlu0 %v6468_v59, %s6195_s22  ;;  %781 = vrot.lane.b32.xlu1 %v6482_v60, %s6193_s20 }
 0x1b7   : > { %783 = vrot.lane.b32.xlu0 %v6488_v61, %s6193_s20  ;;  %977 = vrot.lane.b32.xlu1 %v6442_v54, %s6196_s23 }
 0x1bb   : > { %979 = vrot.lane.b32.xlu0 %v6448_v55, %s6196_s23  ;;  %825 = vrot.lane.b32.xlu1 %v6482_v60, %s6192_s19 }
 0x1bf   : > { %827 = vrot.lane.b32.xlu0 %v6488_v61, %s6192_s19  ;;  %870 = vrot.lane.b32.xlu1 %v6482_v60, %s6194_s21 }
 0x1c3   : > { %975 = vrot.lane.b32.xlu0 %v6468_v59, %s6196_s23  ;;  %915 = vrot.lane.b32.xlu1 %v6482_v60, %s6195_s22 }
 0x1c7   : > { %872 = vrot.lane.b32.xlu0 %v6488_v61, %s6194_s21  ;;  %973 = vrot.lane.b32.xlu1 %v6462_v57, %s6196_s23 }
 0x1cb   : > { %1016 = vrot.lane.b32.xlu0 %v6424_v48, %s6197_s24  ;;  %981 = vrot.lane.b32.xlu1 %v6482_v60, %s6196_s23 }
 0x1cf   : > { %917 = vrot.lane.b32.xlu0 %v6488_v61, %s6195_s22  ;;  %1014 = vrot.lane.b32.xlu1 %v6420_v44, %s6197_s24 }
 0x1d3   : > { %1024 = vrot.lane.b32.xlu0 %v6448_v55, %s6197_s24  ;;  %1022 = vrot.lane.b32.xlu1 %v6442_v54, %s6197_s24 }
 0x1d7   : > { %1020 = vrot.lane.b32.xlu0 %v6468_v59, %s6197_s24  ;;  %1018 = vrot.lane.b32.xlu1 %v6462_v57, %s6197_s24 }
 0x1db   : > { %1061 = vrot.lane.b32.xlu0 %v6424_v48, %s6199_s25  ;;  %1026 = vrot.lane.b32.xlu1 %v6482_v60, %s6197_s24 }
 0x1df   : > { %983 = vrot.lane.b32.xlu0 %v6488_v61, %s6196_s23  ;;  %1059 = vrot.lane.b32.xlu1 %v6420_v44, %s6199_s25 }
 0x1e3   : > { %1069 = vrot.lane.b32.xlu0 %v6448_v55, %s6199_s25  ;;  %1067 = vrot.lane.b32.xlu1 %v6442_v54, %s6199_s25 }
 0x1e7   : > { %1028 = vrot.lane.b32.xlu0 %v6488_v61, %s6197_s24  ;;  %1063 = vrot.lane.b32.xlu1 %v6462_v57, %s6199_s25 }
 0x1eb   : > { %1065 = vrot.lane.b32.xlu0 %v6468_v59, %s6199_s25  ;;  %1071 = vrot.lane.b32.xlu1 %v6482_v60, %s6199_s25 }
 0x1ef   : > { %1073 = vrot.lane.b32.xlu0 %v6488_v61, %s6199_s25  ;;  %1104 = vrot.lane.b32.xlu1 %v6420_v44, %s6200_s26 }
 0x1f1   : > { %v770_v63 = vpop.permute.xlu1 %769 }
 0x1f3   : > { %1106 = vrot.lane.b32.xlu0 %v6424_v48, %s6200_s26  ;;  %1112 = vrot.lane.b32.xlu1 %v6442_v54, %s6200_s26 }
 0x1f5   : > { %v772_v3 = vpop.permute.xlu0 %771  ;;  %v6561_v4 = vpop.permute.xlu1 %813 }
 0x1f7   : > { %1114 = vrot.lane.b32.xlu0 %v6448_v55, %s6200_s26  ;;  %1108 = vrot.lane.b32.xlu1 %v6462_v57, %s6200_s26 }
 0x1f9   : > { %v6567_v5 = vpop.permute.xlu0 %815  ;;  %v6569_v6 = vpop.permute.xlu1 %858 }
 0x1fb   : > { %1110 = vrot.lane.b32.xlu0 %v6468_v59, %s6200_s26  ;;  %1116 = vrot.lane.b32.xlu1 %v6482_v60, %s6200_s26 }
 0x1fd   : > { %v6578_v0 = vpop.permute.xlu0 %860  ;;  %v6580_v7 = vpop.permute.xlu1 %903 }
 0x1ff   : > { %1118 = vrot.lane.b32.xlu0 %v6488_v61, %s6200_s26  ;;  %1346 = vperm.xlu1 %6182, %v1340_v1  }
 0x201   : > { %v6590_v13 = vpop.permute.xlu0 %905  ;;  %v6592_v14 = vpop.permute.xlu1 %969 }
 0x203   : > { %1351 = vperm.xlu0 %6181, %v1341_v8   ;;  %1378 = vperm.xlu1 %6182, %v1372_v9  }
 0x205   : > { %v6603_v18 = vpop.permute.xlu0 %971  ;;  %v778_v19 = vpop.permute.xlu1 %777 }
 0x206   : > { %v785_v23 = vsel %vm445_vm1, %v770_v63, %v778_v19  ;;  %v789_v29 = vsel %vm445_vm1, %v778_v19, %v770_v63 }
 0x207   : > { %1383 = vperm.xlu0 %6181, %v1373_v16   ;;  %1356 = vperm.xlu1 %6182, %v1342_v17   ;;  %v806_v30 = vmul.f32 %v6606_v20, %v785_v23  ;;  %v805_v37 = vmul.f32 %v6617_v26, %v789_v29 }
 0x209   : > { %v780_v24 = vpop.permute.xlu0 %779  ;;  %v822_v25 = vpop.permute.xlu1 %821 }
 0x20a   : > { %v790_v27 = vsel %vm445_vm1, %v780_v24, %v772_v3  ;;  %v786_v28 = vsel %vm445_vm1, %v772_v3, %v780_v24  ;;  %v6660_v3 = vrot.slane %v5327_v51, %v6322_v11  ;;  %v829_v1 = vsel %vm466_vm0, %v6561_v4, %v822_v25 }
 0x20b   : > { %1361 = vperm.xlu0 %6181, %v1343_v21   ;;  %1388 = vperm.xlu1 %6182, %v1374_v22   ;;  %v808_v31 = vmul.f32 %v6606_v20, %v786_v28  ;;  %v807_v33 = vmul.f32 %v6617_v26, %v790_v27  ;;  %v5328_v27 = vld [vmem:[%s10266_s3 + $0x2] ss:$8 sm:$0x3]  ;;  %v851_v28 = vmul.f32 %v6653_v58, %v829_v1 }
 0x20d   : > { %v824_v34 = vpop.permute.xlu0 %823  ;;  %v6631_v35 = vpop.permute.xlu1 %866  ;;  %v5524_v36 = vpack.c.bf16 %v808_v31, %v806_v30  ;;  %v5526_v38 = vpack.c.bf16 %v807_v33, %v805_v37 }
 0x20e   : > { %v830_v56 = vsel %vm466_vm0, %v6567_v5, %v824_v34  ;;  %v834_v15 = vsel %vm466_vm0, %v824_v34, %v6567_v5  ;;  %v833_v5 = vsel %vm466_vm0, %v822_v25, %v6561_v4  ;;  %v6694_v25 = vrot.slane %v5328_v27, %v6324_v12 }
 0x20f   : > { %1393 = vperm.xlu0 %6181, %v1375_v32   ;;  %5525 = vmatprep.subr.bf16.mxu1 %v5524_v36  ;;  %v853_v16 = vmul.f32 %v6653_v58, %v830_v56  ;;  %v852_v29 = vmul.f32 %v6660_v3, %v834_v15  ;;  %v850_v34 = vmul.f32 %v6660_v3, %v833_v5 }
 0x210   : > { %5527 = vmatpush1.bf16.msra.mxu1 %v5526_v38 }
 0x211   : > { %v869_v39 = vpop.permute.xlu0 %868  ;;  %v6634_v40 = vpop.permute.xlu1 %911  ;;  %v5532_v4 = vpack.c.bf16 %v853_v16, %v851_v28  ;;  %v5534_v56 = vpack.c.bf16 %v852_v29, %v850_v34 }
 0x212   : > { %v875_v36 = vsel %vm488_vm2, %v6578_v0, %v869_v39 }
 0x215   : > { %v6636_v41 = vpop.permute.xlu0 %913  ;;  %v774_v42 = vpop.permute.xlu1 %773 }
 0x219   : > { %v776_v43 = vpop.permute.xlu0 %775  ;;  %v818_v45 = vpop.permute.xlu1 %817 }
 0x21d   : > { %v820_v46 = vpop.permute.xlu0 %819  ;;  %v6638_v47 = vpop.permute.xlu1 %862 }
 0x221   : > { %v6640_v49 = vpop.permute.xlu0 %864  ;;  %v6642_v50 = vpop.permute.xlu1 %907 }
 0x225   : > { %v6647_v52 = vpop.permute.xlu0 %909  ;;  %v782_v53 = vpop.permute.xlu1 %781 }
 0x226   : > { %v787_v62 = vsel %vm445_vm1, %v774_v42, %v782_v53  ;;  %v791_v63 = vsel %vm445_vm1, %v782_v53, %v774_v42  ;;  %v6701_v42 = vrot.slane %v5328_v27, %v6322_v11 }
 0x227   : > { %v809_v21 = vmul.f32 %v6617_v26, %v791_v63  ;;  %v810_v22 = vmul.f32 %v6606_v20, %v787_v62  ;;  %v879_v62 = vsel %vm488_vm2, %v869_v39, %v6578_v0  ;;  %v898_v63 = vmul.f32 %v6694_v25, %v875_v36  ;;  %v5329_v39 = vld [vmem:[%s10266_s3 + $0x3] ss:$8 sm:$0x3] }
 0x228   : > { %v878_v0 = vsel %vm488_vm2, %v6631_v35, %v6569_v6  ;;  %v6736_v27 = vrot.slane %v5329_v39, %v6324_v12  ;;  %v924_v36 = vsel %vm510_vm3, %v6636_v41, %v6590_v13 }
 0x229   : > { %v784_v8 = vpop.permute.xlu0 %783  ;;  %v6665_v9 = vpop.permute.xlu1 %977  ;;  %v895_v5 = vmul.f32 %v6701_v42, %v878_v0 }
 0x22a   : > { %v788_v17 = vsel %vm445_vm1, %v776_v43, %v784_v8  ;;  %v792_v19 = vsel %vm445_vm1, %v784_v8, %v776_v43  ;;  %v874_v43 = vsel %vm488_vm2, %v6569_v6, %v6631_v35  ;;  %v920_v6 = vsel %vm510_vm3, %v6590_v13, %v6636_v41  ;;  %v5330_v41 = vld [vmem:[%s10266_s3 + $0x4] ss:$8 sm:$0x3] }
 0x22b   : > { %v811_v23 = vmul.f32 %v6617_v26, %v792_v19  ;;  %v812_v24 = vmul.f32 %v6606_v20, %v788_v17  ;;  %v897_v19 = vmul.f32 %v6701_v42, %v879_v62  ;;  %v6766_v13 = vrot.slane %v5329_v39, %v6322_v11 }
 0x22d   : > { %v6687_v30 = vpop.permute.xlu0 %979  ;;  %v826_v31 = vpop.permute.xlu1 %825  ;;  %v5528_v32 = vpack.c.bf16 %v812_v24, %v810_v22  ;;  %v5530_v33 = vpack.c.bf16 %v811_v23, %v809_v21  ;;  %v5542_v34 = vpack.c.bf16 %v897_v19, %v895_v5 }
 0x22e   : > { %v831_v37 = vsel %vm466_vm0, %v818_v45, %v826_v31  ;;  %v835_v38 = vsel %vm466_vm0, %v826_v31, %v818_v45  ;;  %v919_v31 = vsel %vm510_vm3, %v6580_v7, %v6634_v40 }
 0x22f   : > { %5529 = vmatprep.subr.bf16.mxu1 %v5528_v32  ;;  %v854_v8 = vmul.f32 %v6660_v3, %v835_v38  ;;  %v855_v15 = vmul.f32 %v6653_v58, %v831_v37 }
 0x230   : > { %5531 = vmatpush1.bf16.msra.mxu1 %v5530_v33 }
 0x231   : > { %v828_v51 = vpop.permute.xlu0 %827  ;;  %5533 = vmatprep.subr.bf16.mxu1 %v5532_v4  ;;  %v871_v53 = vpop.permute.xlu1 %870  ;;  %v943_v4 = vmul.f32 %v6736_v27, %v920_v6 }
 0x232   : > { %v832_v45 = vsel %vm466_vm0, %v820_v46, %v828_v51  ;;  %v836_v1 = vsel %vm466_vm0, %v828_v51, %v820_v46  ;;  %v896_v46 = vmul.f32 %v6694_v25, %v874_v43  ;;  %v876_v28 = vsel %vm488_vm2, %v6638_v47, %v871_v53 }
 0x233   : > { %v856_v16 = vmul.f32 %v6660_v3, %v836_v1  ;;  %v857_v17 = vmul.f32 %v6653_v58, %v832_v45  ;;  %v880_v29 = vsel %vm488_vm2, %v871_v53, %v6638_v47  ;;  %v900_v43 = vmul.f32 %v6694_v25, %v876_v28 }
 0x234   : > { %5535 = vmatpush1.bf16.msra.mxu1 %v5534_v56  ;;  %v5540_v35 = vpack.c.bf16 %v898_v63, %v896_v46  ;;  %v899_v38 = vmul.f32 %v6701_v42, %v880_v29  ;;  %v941_v56 = vmul.f32 %v6736_v27, %v919_v31 }
 0x235   : > { %v6728_v21 = vpop.permute.xlu0 %975  ;;  %v916_v22 = vpop.permute.xlu1 %915  ;;  %v5536_v23 = vpack.c.bf16 %v857_v17, %v855_v15  ;;  %v5538_v24 = vpack.c.bf16 %v856_v16, %v854_v8  ;;  %v942_v8 = vmul.f32 %v6766_v13, %v924_v36  ;;  %v6780_v16 = vrot.slane %v5330_v41, %v6324_v12 }
 0x236   : > { %v5548_v15 = vpack.c.bf16 %v943_v4, %v941_v56  ;;  %v986_v56 = vsel %vm547_vm4, %v6603_v18, %v6687_v30 }
 0x237   : > { %5537 = vmatprep.subr.bf16.mxu1 %v5536_v23 }
 0x238   : > { %5539 = vmatpush1.bf16.msra.mxu1 %v5538_v24  ;;  %v964_v24 = vmul.f32 %v6780_v16, %v6448_v55 }
 0x239   : > { %v873_v32 = vpop.permute.xlu0 %872  ;;  %5541 = vmatprep.subr.bf16.mxu1 %v5540_v35  ;;  %v6748_v33 = vpop.permute.xlu1 %973  ;;  %v6804_v35 = vrot.slane %v5330_v41, %v6322_v11  ;;  %v966_v41 = vmul.f32 %v6780_v16, %v6482_v60 }
 0x23a   : > { %v877_v47 = vsel %vm488_vm2, %v6640_v49, %v873_v32  ;;  %v881_v37 = vsel %vm488_vm2, %v873_v32, %v6640_v49  ;;  %v923_v49 = vsel %vm510_vm3, %v6634_v40, %v6580_v7  ;;  %v921_v7 = vsel %vm510_vm3, %v6642_v50, %v916_v22 }
 0x23b   : > { %v901_v51 = vmul.f32 %v6701_v42, %v881_v37  ;;  %v902_v53 = vmul.f32 %v6694_v25, %v877_v47  ;;  %v940_v17 = vmul.f32 %v6766_v13, %v923_v49  ;;  %v925_v40 = vsel %vm510_vm3, %v916_v22, %v6642_v50 }
 0x23c   : > { %5543 = vmatpush1.bf16.msra.mxu1 %v5542_v34  ;;  %v944_v5 = vmul.f32 %v6766_v13, %v925_v40  ;;  %v945_v50 = vmul.f32 %v6736_v27, %v921_v7  ;;  %v962_v32 = vmul.f32 %v6780_v16, %v6442_v54  ;;  %v5331_v34 = vld [vmem:[%s10266_s3 + $0x5] ss:$8 sm:$0x3]  ;;  %v963_v36 = vmul.f32 %v6804_v35, %v6424_v48  ;;  %v5332_v7 = vld [vmem:[%s10266_s3 + $0x6] ss:$8 sm:$0x3] }
 0x23d   : > { %v6776_v62 = vpop.permute.xlu0 %1016  ;;  %v982_v63 = vpop.permute.xlu1 %981  ;;  %v5544_v45 = vpack.c.bf16 %v902_v53, %v900_v43  ;;  %v5546_v1 = vpack.c.bf16 %v901_v51, %v899_v38  ;;  %v5550_v23 = vpack.c.bf16 %v942_v8, %v940_v17  ;;  %v968_v47 = vmul.f32 %v6780_v16, %v6488_v61 }
 0x23e   : > { %v5556_v4 = vpack.c.bf16 %v964_v24, %v962_v32  ;;  %v990_v37 = vsel %vm547_vm4, %v6687_v30, %v6603_v18  ;;  %v961_v38 = vmul.f32 %v6804_v35, %v6420_v44  ;;  %v6822_v43 = vrot.slane %v5331_v34, %v6324_v12 }
 0x23f   : > { %5545 = vmatprep.subr.bf16.mxu1 %v5544_v45  ;;  %v989_v49 = vsel %vm547_vm4, %v6665_v9, %v6592_v14  ;;  %v6839_v8 = vrot.slane %v5331_v34, %v6322_v11  ;;  %v5560_v17 = vpack.c.bf16 %v968_v47, %v966_v41  ;;  %v985_v40 = vsel %vm547_vm4, %v6592_v14, %v6665_v9 }
 0x240   : > { %5547 = vmatpush1.bf16.msra.mxu1 %v5546_v1  ;;  %v5558_v45 = vpack.c.bf16 %v963_v36, %v961_v38  ;;  %v967_v1 = vmul.f32 %v6804_v35, %v6468_v59  ;;  %v965_v18 = vmul.f32 %v6804_v35, %v6462_v57  ;;  %v1007_v30 = vmul.f32 %v6822_v43, %v989_v49 }
 0x241   : > { %v918_v0 = vpop.permute.xlu0 %917  ;;  %5549 = vmatprep.subr.bf16.mxu1 %v5548_v15  ;;  %v6789_v39 = vpop.permute.xlu1 %1014  ;;  %v1009_v15 = vmul.f32 %v6822_v43, %v990_v37  ;;  %v991_v24 = vsel %vm547_vm4, %v982_v63, %v6748_v33  ;;  %v6860_v9 = vrot.slane %v5332_v7, %v6324_v12 }
 0x242   : > { %v922_v46 = vsel %vm510_vm3, %v6647_v52, %v918_v0  ;;  %v926_v19 = vsel %vm510_vm3, %v918_v0, %v6647_v52  ;;  %v1008_v0 = vmul.f32 %v6839_v8, %v986_v56  ;;  %v5562_v14 = vpack.c.bf16 %v967_v1, %v965_v18 }
 0x243   : > { %v946_v22 = vmul.f32 %v6766_v13, %v926_v19  ;;  %v947_v6 = vmul.f32 %v6736_v27, %v922_v46 }
 0x244   : > { %5551 = vmatpush1.bf16.msra.mxu1 %v5550_v23  ;;  %v987_v23 = vsel %vm547_vm4, %v6748_v33, %v982_v63  ;;  %v1011_v63 = vmul.f32 %v6822_v43, %v991_v24 }
 0x245   : > { %v1025_v28 = vpop.permute.xlu0 %1024  ;;  %v1023_v29 = vpop.permute.xlu1 %1022  ;;  %v5552_v31 = vpack.c.bf16 %v947_v6, %v945_v50  ;;  %v5554_v52 = vpack.c.bf16 %v946_v22, %v944_v5  ;;  %v1006_v5 = vmul.f32 %v6839_v8, %v985_v40  ;;  %v5564_v50 = vpack.c.bf16 %v1009_v15, %v1007_v30 }
 0x246   : > { %v1035_v22 = vsel %vm569_vm5, %v1025_v28, %v6776_v62  ;;  %v1034_v6 = vsel %vm569_vm5, %v1023_v29, %v6789_v39  ;;  %v1010_v33 = vmul.f32 %v6839_v8, %v987_v23  ;;  %v1031_v36 = vsel %vm569_vm5, %v6776_v62, %v1025_v28 }
 0x247   : > { %5553 = vmatprep.subr.bf16.mxu1 %v5552_v31  ;;  %v6870_v31 = vrot.slane %v5332_v7, %v6322_v11  ;;  %v5566_v34 = vpack.c.bf16 %v1008_v0, %v1006_v5  ;;  %v1054_v38 = vmul.f32 %v6860_v9, %v1035_v22  ;;  %v1052_v41 = vmul.f32 %v6860_v9, %v1034_v6 }
 0x248   : > { %5555 = vmatpush1.bf16.msra.mxu1 %v5554_v52 }
 0x249   : > { %v6824_v51 = vpop.permute.xlu0 %1020  ;;  %5557 = vmatprep.subr.bf16.mxu1 %v5556_v4  ;;  %v1019_v53 = vpop.permute.xlu1 %1018  ;;  %v1030_v4 = vsel %vm569_vm5, %v6789_v39, %v1023_v29  ;;  %v5333_v39 = vld [vmem:[%s10266_s3 + $0x7] ss:$8 sm:$0x3]  ;;  %v1053_v28 = vmul.f32 %v6870_v31, %v1031_v36  ;;  %v5572_v40 = vpack.c.bf16 %v1054_v38, %v1052_v41 }
 0x24a   : > { %v1051_v29 = vmul.f32 %v6870_v31, %v1030_v4  ;;  %v6900_v7 = vrot.slane %v5333_v39, %v6324_v12  ;;  %v6907_v0 = vrot.slane %v5333_v39, %v6322_v11 }
 0x24c   : > { %5559 = vmatpush1.bf16.msra.mxu1 %v5558_v45 }
 0x24d   : > { %v1062_v46 = vpop.permute.xlu0 %1061  ;;  %v1027_v19 = vpop.permute.xlu1 %1026  ;;  %5561 = vmatprep.subr.bf16.mxu1 %v5560_v17 }
 0x24e   : > { %v1032_v15 = vsel %vm569_vm5, %v1019_v53, %v1027_v19  ;;  %v1036_v17 = vsel %vm569_vm5, %v1027_v19, %v1019_v53 }
 0x24f   : > { %v1055_v23 = vmul.f32 %v6870_v31, %v1032_v15  ;;  %v1056_v24 = vmul.f32 %v6860_v9, %v1036_v17  ;;  %v5334_v15 = vld [vmem:[%s10266_s3 + $0x10] ss:$8 sm:$0x3] }
 0x250   : > { %5563 = vmatpush1.bf16.msra.mxu1 %v5562_v14  ;;  %v5574_v14 = vpack.c.bf16 %v1053_v28, %v1051_v29 }
 0x251   : > { %v984_v52 = vpop.permute.xlu0 %983  ;;  %v1060_v32 = vpop.permute.xlu1 %1059  ;;  %5565 = vmatprep.subr.bf16.mxu1 %v5564_v50 }
 0x252   : > { %v988_v47 = vsel %vm547_vm4, %v6728_v21, %v984_v52  ;;  %v992_v37 = vsel %vm547_vm4, %v984_v52, %v6728_v21 }
 0x253   : > { %v1012_v49 = vmul.f32 %v6839_v8, %v988_v47  ;;  %v1013_v62 = vmul.f32 %v6822_v43, %v992_v37 }
 0x254   : > { %5567 = vmatpush1.bf16.msra.mxu1 %v5566_v34 }
 0x255   : > { %v1070_v56 = vpop.permute.xlu0 %1069  ;;  %v1068_v45 = vpop.permute.xlu1 %1067  ;;  %v5568_v21 = vpack.c.bf16 %v1013_v62, %v1011_v63  ;;  %v5570_v1 = vpack.c.bf16 %v1012_v49, %v1010_v33 }
 0x256   : > { %v1080_v18 = vsel %vm591_vm6, %v1070_v56, %v1062_v46  ;;  %v1079_v30 = vsel %vm591_vm6, %v1068_v45, %v1060_v32  ;;  %v1076_v5 = vsel %vm591_vm6, %v1062_v46, %v1070_v56  ;;  %v1075_v50 = vsel %vm591_vm6, %v1060_v32, %v1068_v45 }
 0x257   : > { %5569 = vmatprep.subr.bf16.mxu1 %v5568_v21  ;;  %v1099_v33 = vmul.f32 %v6900_v7, %v1080_v18  ;;  %v1097_v63 = vmul.f32 %v6900_v7, %v1079_v30  ;;  %v1098_v47 = vmul.f32 %v6907_v0, %v1076_v5  ;;  %v1096_v37 = vmul.f32 %v6907_v0, %v1075_v50 }
 0x258   : > { %5571 = vmatpush1.bf16.msra.mxu1 %v5570_v1 }
 0x259   : > { %v1029_v53 = vpop.permute.xlu0 %1028  ;;  %v1064_v19 = vpop.permute.xlu1 %1063  ;;  %5573 = vmatprep.subr.bf16.mxu1 %v5572_v40  ;;  %v5580_v38 = vpack.c.bf16 %v1099_v33, %v1097_v63  ;;  %v5582_v29 = vpack.c.bf16 %v1098_v47, %v1096_v37  ;;  %v764_v47 = vld [vmem:[%s6546_s30 + $0x38] sm:$0xff] }
 0x25a   : > { %v1033_v22 = vsel %vm569_vm5, %v6824_v51, %v1029_v53  ;;  %v1037_v6 = vsel %vm569_vm5, %v1029_v53, %v6824_v51 }
 0x25b   : > { %v1057_v52 = vmul.f32 %v6870_v31, %v1033_v22  ;;  %v1058_v34 = vmul.f32 %v6860_v9, %v1037_v6  ;;  %v761_v22 = vld [vmem:[%s6546_s30 + $0x20] sm:$0xff] }
 0x25c   : > { %5575 = vmatpush1.bf16.msra.mxu1 %v5574_v14  ;;  %v757_v14 = vld [vmem:[%s6546_s30] sm:$0xff] }
 0x25d   : > { %v1066_v46 = vpop.permute.xlu0 %1065  ;;  %v1072_v36 = vpop.permute.xlu1 %1071  ;;  %v5576_v32 = vpack.c.bf16 %v1058_v34, %v1056_v24  ;;  %v5578_v4 = vpack.c.bf16 %v1057_v52, %v1055_v23  ;;  %v6943_v23 = vrot.slane %v5334_v15, %v6322_v11  ;;  %v6946_v24 = vrot.slane %v5334_v15, %v6324_v12  ;;  %v760_v34 = vld [vmem:[%s6546_s30 + $0x18] sm:$0xff] }
 0x25e   : > { %v1077_v51 = vsel %vm591_vm6, %v1064_v19, %v1072_v36  ;;  %v1081_v41 = vsel %vm591_vm6, %v1072_v36, %v1064_v19 }
 0x25f   : > { %5577 = vmatprep.subr.bf16.mxu1 %v5576_v32  ;;  %v1100_v56 = vmul.f32 %v6907_v0, %v1077_v51  ;;  %v1101_v45 = vmul.f32 %v6900_v7, %v1081_v41  ;;  %10322 = vst [vmem:[#allocation10_spill] sm:$0xff] %v6946_v24  ;;  %v763_v51 = vld [vmem:[%s6546_s30 + $0x30] sm:$0xff] }
 0x260   : > { %5579 = vmatpush1.bf16.msra.mxu1 %v5578_v4 }
 0x261   : > { %v1074_v49 = vpop.permute.xlu0 %1073  ;;  %v1105_v62 = vpop.permute.xlu1 %1104  ;;  %5581 = vmatprep.subr.bf16.mxu1 %v5580_v38 }
 0x262   : > { %v1078_v39 = vsel %vm591_vm6, %v1066_v46, %v1074_v49  ;;  %v1082_v28 = vsel %vm591_vm6, %v1074_v49, %v1066_v46  ;;  %v767_v49 = vld [vmem:[%s6546_s30 + $0x50] sm:$0xff] }
 0x263   : > { %v1102_v21 = vmul.f32 %v6907_v0, %v1078_v39  ;;  %v1103_v1 = vmul.f32 %v6900_v7, %v1082_v28 }
 0x264   : > { %5583 = vmatpush1.bf16.msra.mxu1 %v5582_v29 }
 0x265   : > { %v1107_v17 = vpop.permute.xlu0 %1106  ;;  %v1113_v40 = vpop.permute.xlu1 %1112  ;;  %v5584_v18 = vpack.c.bf16 %v1103_v1, %v1101_v45  ;;  %v5586_v30 = vpack.c.bf16 %v1102_v21, %v1100_v56  ;;  %v766_v21 = vld [vmem:[%s6546_s30 + $0x48] sm:$0xff] }
 0x266   : > { %v1120_v53 = vsel %vm613_vm7, %v1105_v62, %v1113_v40  ;;  %v1124_v19 = vsel %vm613_vm7, %v1113_v40, %v1105_v62  ;;  %v762_v40 = vld [vmem:[%s6546_s30 + $0x28] sm:$0xff] }
 0x267   : > { %5585 = vmatprep.subr.bf16.mxu1 %v5584_v18  ;;  %v1141_v6 = vmul.f32 %v6943_v23, %v1120_v53  ;;  %v1142_v33 = vmul.f32 %v6946_v24, %v1124_v19  ;;  %v765_v18 = vld [vmem:[%s6546_s30 + $0x40] sm:$0xff] }
 0x268   : > { %5587 = vmatpush1.bf16.msra.mxu1 %v5586_v30  ;;  %v768_v30 = vld [vmem:[%s6546_s30 + $0x58] sm:$0xff] }
 0x269   : > { %v1115_v5 = vpop.permute.xlu0 %1114  ;;  %v1109_v50 = vpop.permute.xlu1 %1108 }
 0x26a   : > { %v1121_v11 = vsel %vm613_vm7, %v1107_v17, %v1115_v5  ;;  %v1125_v12 = vsel %vm613_vm7, %v1115_v5, %v1107_v17  ;;  %v759_v17 = vld [vmem:[%s6546_s30 + $0x10] sm:$0xff] }
 0x26b   : > { %v1143_v63 = vmul.f32 %v6943_v23, %v1121_v11  ;;  %v1144_v52 = vmul.f32 %v6946_v24, %v1125_v12  ;;  %1227 = vmatmul.mubr.f32.vlgmr.msra.gmra.mrb[0].mxu1 %v757_v14 }
 0x26c   : > { %1232 = vmatprep.mubr.f32.mxu1 %v761_v22 }
 0x26d   : > { %v5590_v46 = vpack.c.bf16 %v1143_v63, %v1141_v6  ;;  %v1111_v36 = vpop.permute.xlu0 %1110  ;;  %v1117_v32 = vpop.permute.xlu1 %1116  ;;  %v5588_v4 = vpack.c.bf16 %v1144_v52, %v1142_v33 }
 0x26e   : > { %v1122_v37 = vsel %vm613_vm7, %v1109_v50, %v1117_v32  ;;  %v1126_v38 = vsel %vm613_vm7, %v1117_v32, %v1109_v50 }
 0x26f   : > { %1233 = vmatmul.mubr.f32.gmra.mrb[2].mxu1 %v760_v34  ;;  %5589 = vmatprep.subr.bf16.mxu1 %v5588_v4  ;;  %v1145_v28 = vmul.f32 %v6943_v23, %v1122_v37  ;;  %v1146_v29 = vmul.f32 %v6946_v24, %v1126_v38 }
 0x270   : > { %5591 = vmatpush1.bf16.msra.mxu1 %v5590_v46  ;;  %1238 = vmatprep.mubr.f32.mxu1 %v764_v47 }
 0x271   : > { %v1119_v41 = vpop.permute.xlu0 %1118 }
 0x272   : > { %v1123_v62 = vsel %vm613_vm7, %v1111_v36, %v1119_v41  ;;  %v1127_v39 = vsel %vm613_vm7, %v1119_v41, %v1111_v36 }
 0x273   : > { %v1147_v56 = vmul.f32 %v6943_v23, %v1123_v62  ;;  %v1148_v45 = vmul.f32 %v6946_v24, %v1127_v39  ;;  %1239 = vmatmul.mubr.f32.gmra.mrb[4].mxu1 %v763_v51 }
 0x274   : > { %1244 = vmatprep.mubr.f32.mxu1 %v767_v49 }
 0x275   : > { %v5594_v1 = vpack.c.bf16 %v1147_v56, %v1145_v28  ;;  %v5592_v15 = vpack.c.bf16 %v1148_v45, %v1146_v29 }
 0x277   : > { %1245 = vmatmul.mubr.f32.gmra.mrb[6].mxu1 %v766_v21  ;;  %5593 = vmatprep.subr.bf16.mxu1 %v5592_v15 }
 0x278   : > { %5595 = vmatpush1.bf16.msra.mxu1 %v5594_v1  ;;  %1315 = vmatprep.mubr.f32.mxu1 %v10274_v2 }
 0x27b   : > { %5335 = vmatmul.mubr.msk.f32.vlgmr.msra.gmra.mrb[0].mxu1 %vm1149_vm9, %v759_v17 }
 0x27c   : > { %1321 = vmatprep.mubr.f32.mxu1 %v10274_v2 }
 0x27e   : > { %v1347_v53 = vpop.permute.xlu1 %1346 }
 0x27f   : > { %5336 = vmatmul.mubr.msk.f32.gmra.mrb[2].mxu1 %vm1149_vm9, %v762_v40 }
 0x280   : > { %1327 = vmatprep.mubr.f32.mxu1 %v10274_v2 }
 0x282   : > { %v1352_v19 = vpop.permute.xlu0 %1351  ;;  %v1379_v22 = vpop.permute.xlu1 %1378 }
 0x283   : > { %5337 = vmatmul.mubr.msk.f32.gmra.mrb[4].mxu1 %vm1149_vm9, %v765_v18 }
 0x284   : > { %1333 = vmatprep.mubr.f32.mxu1 %v10274_v2 }
 0x286   : > { %v1384_v52 = vpop.permute.xlu0 %1383  ;;  %v1357_v39 = vpop.permute.xlu1 %1356 }
 0x287   : > { %5338 = vmatmul.mubr.msk.f32.gmra.mrb[6].mxu1 %vm1149_vm9, %v768_v30 }
 0x28a   : > { %v1362_v29 = vpop.permute.xlu0 %1361  ;;  %v1389_v56 = vpop.permute.xlu1 %1388 }
 0x28e   : > { %v1394_v1 = vpop.permute.xlu0 %1393 }
 0x34e   : > { %v1317_v14 = vpop.f32.mrb[0].mxu1 }
 0x34f   : > { %v1364_v5 = vmul.f32 %v1347_v53, %v1317_v14  ;;  %v1319_v50 = vpop.f32.mrb[1].mxu1 }
 0x350   : > { %v1365_v37 = vmul.f32 %v1347_v53, %v1319_v50  ;;  %v5340_v50 = vld [vmem:[%s6546_s30 + $0x68] sm:$0xff] }
 0x351   : > { %v1396_v11 = vadd.f32 %v1379_v22, %v1364_v5  ;;  %1765 = vmatprep.mubr.f32.mxu0 %v5340_v50 }
 0x352   : > { %v1323_v12 = vpop.f32.mrb[2].mxu1  ;;  %v1397_v38 = vadd.f32 %v1379_v22, %v1365_v37 }
 0x353   : > { %v6991_v6 = vmax.f32 %v1396_v11, 0.0  ;;  %v1366_v33 = vmul.f32 %v1352_v19, %v1323_v12  ;;  %v1325_v63 = vpop.f32.mrb[3].mxu1 }
 0x354   : > { %v1367_v51 = vmul.f32 %v1352_v19, %v1325_v63  ;;  %v7013_v41 = vmax.f32 %v1397_v38, 0.0  ;;  %v5357_v38 = vld [vmem:[%s10270_s7 + $0x30] sm:$0xff] }
 0x355   : > { %v1398_v34 = vadd.f32 %v1384_v52, %v1366_v33  ;;  %1425 = vrot.lane.b32.xlu1 %v6991_v6, %s6193_s20 }
 0x356   : > { %v1329_v46 = vpop.f32.mrb[4].mxu1  ;;  %v1399_v49 = vadd.f32 %v1384_v52, %v1367_v51  ;;  %v5355_v52 = vld [vmem:[%s10270_s7 + $0x20] sm:$0xff]  ;;  %v5360_v51 = vld [vmem:[%s10271_s8 + $0x28] sm:$0xff] }
 0x357   : > { %v6995_v36 = vmax.f32 %v1398_v34, 0.0  ;;  %v1331_v32 = vpop.f32.mrb[5].mxu1  ;;  %v1368_v28 = vmul.f32 %v1357_v39, %v1329_v46 }
 0x358   : > { %v7019_v62 = vmax.f32 %v1399_v49, 0.0  ;;  %v1369_v18 = vmul.f32 %v1357_v39, %v1331_v32  ;;  %v5359_v32 = vld [vmem:[%s10271_s8 + $0x20] sm:$0xff] }
 0x359   : > { %1457 = vrot.lane.b32.xlu1 %v6991_v6, %s6192_s19  ;;  %1427 = vrot.lane.b32.xlu0 %v6995_v36, %s6193_s20  ;;  %v1400_v45 = vadd.f32 %v1389_v56, %v1368_v28 }
 0x35a   : > { %v1335_v4 = vpop.f32.mrb[6].mxu1  ;;  %v1401_v30 = vadd.f32 %v1389_v56, %v1369_v18  ;;  %v5361_v56 = vld [vmem:[%s10271_s8 + $0x30] sm:$0xff] }
 0x35b   : > { %v1337_v47 = vpop.f32.mrb[7].mxu1  ;;  %v1370_v21 = vmul.f32 %v1362_v29, %v1335_v4  ;;  %v7033_v15 = vmax.f32 %v1400_v45, 0.0  ;;  %v5356_v4 = vld [vmem:[%s10270_s7 + $0x28] sm:$0xff] }
 0x35c   : > { %v1371_v53 = vmul.f32 %v1362_v29, %v1337_v47  ;;  %v7053_v19 = vmax.f32 %v1401_v30, 0.0 }
 0x35d   : > { %1489 = vrot.lane.b32.xlu1 %v6991_v6, %s6194_s21  ;;  %1459 = vrot.lane.b32.xlu0 %v6995_v36, %s6192_s19  ;;  %v1402_v17 = vadd.f32 %v1394_v1, %v1370_v21 }
 0x35e   : > { %v1403_v14 = vadd.f32 %v1394_v1, %v1371_v53  ;;  %v5358_v1 = vld [vmem:[%s10270_s7 + $0x38] sm:$0xff] }
 0x35f   : > { %v7039_v40 = vmax.f32 %v1402_v17, 0.0 }
 0x360   : > { %v7059_v5 = vmax.f32 %v1403_v14, 0.0 }
 0x361   : > { %1521 = vrot.lane.b32.xlu1 %v6991_v6, %s6195_s22  ;;  %1491 = vrot.lane.b32.xlu0 %v6995_v36, %s6194_s21 }
 0x365   : > { %1561 = vrot.lane.b32.xlu1 %v6991_v6, %s6196_s23  ;;  %1523 = vrot.lane.b32.xlu0 %v6995_v36, %s6195_s22 }
 0x369   : > { %1433 = vrot.lane.b32.xlu1 %v7013_v41, %s6193_s20  ;;  %1563 = vrot.lane.b32.xlu0 %v6995_v36, %s6196_s23 }
 0x36d   : > { %1465 = vrot.lane.b32.xlu1 %v7013_v41, %s6192_s19  ;;  %1435 = vrot.lane.b32.xlu0 %v7019_v62, %s6193_s20 }
 0x371   : > { %1497 = vrot.lane.b32.xlu1 %v7013_v41, %s6194_s21  ;;  %1467 = vrot.lane.b32.xlu0 %v7019_v62, %s6192_s19 }
 0x375   : > { %1529 = vrot.lane.b32.xlu1 %v7013_v41, %s6195_s22  ;;  %1499 = vrot.lane.b32.xlu0 %v7019_v62, %s6194_s21 }
 0x379   : > { %1531 = vrot.lane.b32.xlu0 %v7019_v62, %s6195_s22  ;;  %1429 = vrot.lane.b32.xlu1 %v7033_v15, %s6193_s20 }
 0x37d   : > { %1461 = vrot.lane.b32.xlu1 %v7033_v15, %s6192_s19  ;;  %1431 = vrot.lane.b32.xlu0 %v7039_v40, %s6193_s20 }
 0x381   : > { %1493 = vrot.lane.b32.xlu1 %v7033_v15, %s6194_s21  ;;  %1463 = vrot.lane.b32.xlu0 %v7039_v40, %s6192_s19 }
 0x385   : > { %1525 = vrot.lane.b32.xlu1 %v7033_v15, %s6195_s22  ;;  %1495 = vrot.lane.b32.xlu0 %v7039_v40, %s6194_s21 }
 0x389   : > { %1437 = vrot.lane.b32.xlu1 %v7053_v19, %s6193_s20  ;;  %1527 = vrot.lane.b32.xlu0 %v7039_v40, %s6195_s22 }
 0x38d   : > { %1569 = vrot.lane.b32.xlu1 %v7013_v41, %s6196_s23  ;;  %1439 = vrot.lane.b32.xlu0 %v7059_v5, %s6193_s20 }
 0x391   : > { %1469 = vrot.lane.b32.xlu1 %v7053_v19, %s6192_s19  ;;  %1571 = vrot.lane.b32.xlu0 %v7019_v62, %s6196_s23 }
 0x395   : > { %1501 = vrot.lane.b32.xlu1 %v7053_v19, %s6194_s21  ;;  %1471 = vrot.lane.b32.xlu0 %v7059_v5, %s6192_s19 }
 0x399   : > { %1533 = vrot.lane.b32.xlu1 %v7053_v19, %s6195_s22  ;;  %1567 = vrot.lane.b32.xlu0 %v7039_v40, %s6196_s23 }
 0x39d   : > { %1565 = vrot.lane.b32.xlu1 %v7033_v15, %s6196_s23  ;;  %1503 = vrot.lane.b32.xlu0 %v7059_v5, %s6194_s21 }
 0x3a1   : > { %1573 = vrot.lane.b32.xlu1 %v7053_v19, %s6196_s23  ;;  %1595 = vrot.lane.b32.xlu0 %v6995_v36, %s6197_s24 }
 0x3a5   : > { %1593 = vrot.lane.b32.xlu1 %v6991_v6, %s6197_s24  ;;  %1535 = vrot.lane.b32.xlu0 %v7059_v5, %s6195_s22 }
 0x3a9   : > { %1601 = vrot.lane.b32.xlu1 %v7013_v41, %s6197_s24  ;;  %1603 = vrot.lane.b32.xlu0 %v7019_v62, %s6197_s24 }
 0x3ad   : > { %1597 = vrot.lane.b32.xlu1 %v7033_v15, %s6197_s24  ;;  %1599 = vrot.lane.b32.xlu0 %v7039_v40, %s6197_s24 }
 0x3b1   : > { %1605 = vrot.lane.b32.xlu1 %v7053_v19, %s6197_s24  ;;  %1627 = vrot.lane.b32.xlu0 %v6995_v36, %s6199_s25 }
 0x3b5   : > { %1625 = vrot.lane.b32.xlu1 %v6991_v6, %s6199_s25  ;;  %1575 = vrot.lane.b32.xlu0 %v7059_v5, %s6196_s23 }
 0x3b9   : > { %1633 = vrot.lane.b32.xlu1 %v7013_v41, %s6199_s25  ;;  %1635 = vrot.lane.b32.xlu0 %v7019_v62, %s6199_s25 }
 0x3bd   : > { %1629 = vrot.lane.b32.xlu1 %v7033_v15, %s6199_s25  ;;  %1607 = vrot.lane.b32.xlu0 %v7059_v5, %s6197_s24 }
 0x3c1   : > { %1637 = vrot.lane.b32.xlu1 %v7053_v19, %s6199_s25  ;;  %1631 = vrot.lane.b32.xlu0 %v7039_v40, %s6199_s25 }
 0x3c5   : > { %1657 = vrot.lane.b32.xlu1 %v6991_v6, %s6200_s26  ;;  %1639 = vrot.lane.b32.xlu0 %v7059_v5, %s6199_s25 }
 0x3c7   : > { %v1426_v22 = vpop.permute.xlu1 %1425 }
 0x3c9   : > { %1665 = vrot.lane.b32.xlu1 %v7013_v41, %s6200_s26  ;;  %1659 = vrot.lane.b32.xlu0 %v6995_v36, %s6200_s26 }
 0x3cb   : > { %v7126_v11 = vpop.permute.xlu1 %1457  ;;  %v1428_v12 = vpop.permute.xlu0 %1427 }
 0x3cd   : > { %1661 = vrot.lane.b32.xlu1 %v7033_v15, %s6200_s26  ;;  %1667 = vrot.lane.b32.xlu0 %v7019_v62, %s6200_s26 }
 0x3cf   : > { %v7132_v33 = vpop.permute.xlu1 %1489  ;;  %v1460_v63 = vpop.permute.xlu0 %1459 }
 0x3d1   : > { %1669 = vrot.lane.b32.xlu1 %v7053_v19, %s6200_s26  ;;  %1663 = vrot.lane.b32.xlu0 %v7039_v40, %s6200_s26 }
 0x3d3   : > { %v7141_v34 = vpop.permute.xlu1 %1521  ;;  %v7143_v46 = vpop.permute.xlu0 %1491 }
 0x3d5   : > { %1886 = vperm.xlu1 %6182, %v5355_v52   ;;  %1671 = vrot.lane.b32.xlu0 %v7059_v5, %s6200_s26 }
 0x3d7   : > { %v7153_v47 = vpop.permute.xlu1 %1561  ;;  %v7155_v37 = vpop.permute.xlu0 %1523 }
 0x3d9   : > { %1919 = vperm.xlu1 %6182, %v5359_v32   ;;  %1891 = vperm.xlu0 %6181, %v5356_v4  }
 0x3db   : > { %v1434_v49 = vpop.permute.xlu1 %1433  ;;  %v7163_v39 = vpop.permute.xlu0 %1563 }
 0x3dc   : > { %v1441_v28 = vsel %vm445_vm1, %v1426_v22, %v1434_v49  ;;  %v1445_v29 = vsel %vm445_vm1, %v1434_v49, %v1426_v22 }
 0x3dd   : > { %1896 = vperm.xlu1 %6182, %v5357_v38   ;;  %1924 = vperm.xlu0 %6181, %v5360_v51   ;;  %v1449_v30 = vmul.f32 %v1445_v29, %v6617_v26  ;;  %v1450_v53 = vmul.f32 %v1441_v28, %v6606_v20  ;;  %v5362_v38 = vld [vmem:[%s10271_s8 + $0x38] sm:$0xff] }
 0x3df   : > { %v1466_v45 = vpop.permute.xlu1 %1465  ;;  %v1436_v21 = vpop.permute.xlu0 %1435 }
 0x3e0   : > { %v1442_v17 = vsel %vm445_vm1, %v1428_v12, %v1436_v21  ;;  %v1446_v18 = vsel %vm445_vm1, %v1436_v21, %v1428_v12 }
 0x3e1   : > { %v1451_v14 = vmul.f32 %v1446_v18, %v6617_v26  ;;  %v1452_v50 = vmul.f32 %v1442_v17, %v6606_v20  ;;  %1929 = vperm.xlu1 %6182, %v5361_v56   ;;  %1901 = vperm.xlu0 %6181, %v5358_v1  }
 0x3e3   : > { %v5598_v22 = vpack.c.bf16 %v1451_v14, %v1449_v30  ;;  %v1498_v52 = vpop.permute.xlu1 %1497  ;;  %v1468_v32 = vpop.permute.xlu0 %1467  ;;  %v5596_v4 = vpack.c.bf16 %v1452_v50, %v1450_v53 }
 0x3e4   : > { %v1474_v14 = vsel %vm466_vm0, %v1460_v63, %v1468_v32  ;;  %v1478_v61 = vsel %vm466_vm0, %v1468_v32, %v1460_v63  ;;  %v1477_v63 = vsel %vm466_vm0, %v1466_v45, %v7126_v11 }
 0x3e5   : > { %5597 = vmatprep.subr.bf16.mxu0 %v5596_v4  ;;  %1934 = vperm.xlu0 %6181, %v5362_v38   ;;  %v1473_v4 = vsel %vm466_vm0, %v7126_v11, %v1466_v45  ;;  %v1484_v60 = vmul.f32 %v1474_v14, %v6653_v58  ;;  %v1483_v14 = vmul.f32 %v1478_v61, %v6660_v3 }
 0x3e6   : > { %5599 = vmatpush1.bf16.msra.mxu0 %v5598_v22  ;;  %v1482_v32 = vmul.f32 %v1473_v4, %v6653_v58 }
 0x3e7   : > { %v7186_v12 = vpop.permute.xlu1 %1529  ;;  %v1500_v51 = vpop.permute.xlu0 %1499 }
 0x3eb   : > { %v7188_v49 = vpop.permute.xlu0 %1531  ;;  %v1430_v28 = vpop.permute.xlu1 %1429 }
 0x3ef   : > { %v1462_v29 = vpop.permute.xlu1 %1461  ;;  %v1432_v56 = vpop.permute.xlu0 %1431 }
 0x3f3   : > { %v1494_v21 = vpop.permute.xlu1 %1493  ;;  %v1464_v1 = vpop.permute.xlu0 %1463 }
 0x3f7   : > { %v7190_v17 = vpop.permute.xlu1 %1525  ;;  %v7192_v18 = vpop.permute.xlu0 %1495 }
 0x3fb   : > { %v1438_v30 = vpop.permute.xlu1 %1437  ;;  %v7194_v53 = vpop.permute.xlu0 %1527 }
 0x3fc   : > { %v1443_v50 = vsel %vm445_vm1, %v1430_v28, %v1438_v30  ;;  %v1447_v22 = vsel %vm445_vm1, %v1438_v30, %v1430_v28 }
 0x3fd   : > { %v1453_v28 = vmul.f32 %v1447_v22, %v6617_v26  ;;  %v1454_v30 = vmul.f32 %v1443_v50, %v6606_v20  ;;  %v1510_v22 = vsel %vm488_vm2, %v1500_v51, %v7143_v46 }
 0x3ff   : > { %v7205_v38 = vpop.permute.xlu1 %1569  ;;  %v1440_v2 = vpop.permute.xlu0 %1439 }
 0x400   : > { %v1444_v59 = vsel %vm445_vm1, %v1432_v56, %v1440_v2  ;;  %v1448_v57 = vsel %vm445_vm1, %v1440_v2, %v1432_v56  ;;  %v1481_v56 = vmul.f32 %v1477_v63, %v6660_v3  ;;  %v1515_v63 = vmul.f32 %v1510_v22, %v6701_v42 }
 0x401   : > { %v1455_v55 = vmul.f32 %v1448_v57, %v6617_v26  ;;  %v1456_v54 = vmul.f32 %v1444_v59, %v6606_v20  ;;  %v1506_v57 = vsel %vm488_vm2, %v7143_v46, %v1500_v51  ;;  %v5604_v59 = vpack.c.bf16 %v1484_v60, %v1482_v32 }
 0x402   : > { %v1516_v60 = vmul.f32 %v1506_v57, %v6694_v25  ;;  %v1509_v46 = vsel %vm488_vm2, %v1498_v52, %v7132_v33  ;;  %v1538_v57 = vsel %vm510_vm3, %v7155_v37, %v7188_v49 }
 0x403   : > { %v5602_v48 = vpack.c.bf16 %v1455_v55, %v1453_v28  ;;  %v1470_v44 = vpop.permute.xlu1 %1469  ;;  %v7223_v24 = vpop.permute.xlu0 %1571  ;;  %v5600_v2 = vpack.c.bf16 %v1456_v54, %v1454_v30  ;;  %v1505_v55 = vsel %vm488_vm2, %v7132_v33, %v1498_v52  ;;  %v5606_v54 = vpack.c.bf16 %v1483_v14, %v1481_v56 }
 0x404   : > { %v1475_v11 = vsel %vm466_vm0, %v1462_v29, %v1470_v44  ;;  %v1479_v45 = vsel %vm466_vm0, %v1470_v44, %v1462_v29  ;;  %v1514_v51 = vmul.f32 %v1505_v55, %v6694_v25  ;;  %v1513_v56 = vmul.f32 %v1509_v46, %v6701_v42 }
 0x405   : > { %5601 = vmatprep.subr.bf16.mxu0 %v5600_v2  ;;  %v1486_v29 = vmul.f32 %v1475_v11, %v6653_v58  ;;  %v1537_v11 = vsel %vm510_vm3, %v7141_v34, %v7186_v12  ;;  %v1548_v22 = vmul.f32 %v1538_v57, %v6736_v27 }
 0x406   : > { %5603 = vmatpush1.bf16.msra.mxu0 %v5602_v48  ;;  %v1485_v48 = vmul.f32 %v1479_v45, %v6660_v3  ;;  %v5614_v45 = vpack.c.bf16 %v1515_v63, %v1513_v56 }
 0x407   : > { %v1502_v61 = vpop.permute.xlu1 %1501  ;;  %5605 = vmatprep.subr.bf16.mxu0 %v5604_v59  ;;  %v1472_v50 = vpop.permute.xlu0 %1471  ;;  %v5612_v59 = vpack.c.bf16 %v1516_v60, %v1514_v51 }
 0x408   : > { %v1476_v4 = vsel %vm466_vm0, %v1464_v1, %v1472_v50  ;;  %v1480_v44 = vsel %vm466_vm0, %v1472_v50, %v1464_v1  ;;  %v1507_v33 = vsel %vm488_vm2, %v1494_v21, %v1502_v61  ;;  %v1511_v52 = vsel %vm488_vm2, %v1502_v61, %v1494_v21 }
 0x409   : > { %v1487_v28 = vmul.f32 %v1480_v44, %v6660_v3  ;;  %v1488_v30 = vmul.f32 %v1476_v4, %v6653_v58  ;;  %v1542_v50 = vsel %vm510_vm3, %v7188_v49, %v7155_v37  ;;  %v1517_v60 = vmul.f32 %v1511_v52, %v6701_v42 }
 0x40a   : > { %5607 = vmatpush1.bf16.msra.mxu0 %v5606_v54  ;;  %v1518_v4 = vmul.f32 %v1507_v33, %v6694_v25  ;;  %v1541_v37 = vsel %vm510_vm3, %v7186_v12, %v7141_v34  ;;  %v1546_v49 = vmul.f32 %v1537_v11, %v6736_v27  ;;  %v1547_v46 = vmul.f32 %v1542_v50, %v6766_v13 }
 0x40b   : > { %v5610_v32 = vpack.c.bf16 %v1487_v28, %v1485_v48  ;;  %v1534_v14 = vpop.permute.xlu1 %1533  ;;  %v7253_v1 = vpop.permute.xlu0 %1567  ;;  %v5608_v2 = vpack.c.bf16 %v1488_v30, %v1486_v29  ;;  %v1545_v63 = vmul.f32 %v1541_v37, %v6766_v13  ;;  %v1556_v33 = vmul.f32 %v7019_v62, %v6780_v16 }
 0x40c   : > { %v5620_v51 = vpack.c.bf16 %v1548_v22, %v1546_v49  ;;  %v1543_v34 = vsel %vm510_vm3, %v1534_v14, %v7190_v17 }
 0x40d   : > { %5609 = vmatprep.subr.bf16.mxu0 %v5608_v2  ;;  %v5622_v56 = vpack.c.bf16 %v1547_v46, %v1545_v63  ;;  %v1549_v52 = vmul.f32 %v1543_v34, %v6766_v13 }
 0x40e   : > { %5611 = vmatpush1.bf16.msra.mxu0 %v5610_v32  ;;  %v1539_v32 = vsel %vm510_vm3, %v7190_v17, %v1534_v14 }
 0x40f   : > { %v7268_v55 = vpop.permute.xlu1 %1565  ;;  %5613 = vmatprep.subr.bf16.mxu0 %v5612_v59  ;;  %v1504_v54 = vpop.permute.xlu0 %1503  ;;  %v1550_v17 = vmul.f32 %v1539_v32, %v6736_v27 }
 0x410   : > { %v1508_v21 = vsel %vm488_vm2, %v7192_v18, %v1504_v54  ;;  %v1512_v61 = vsel %vm488_vm2, %v1504_v54, %v7192_v18 }
 0x411   : > { %v1519_v44 = vmul.f32 %v1512_v61, %v6701_v42  ;;  %v1520_v48 = vmul.f32 %v1508_v21, %v6694_v25  ;;  %v1554_v21 = vmul.f32 %v7013_v41, %v6780_v16  ;;  %v1560_v61 = vmul.f32 %v7059_v5, %v6780_v16 }
 0x412   : > { %5615 = vmatpush1.bf16.msra.mxu0 %v5614_v45  ;;  %v1581_v5 = vsel %vm547_vm4, %v7205_v38, %v7153_v47 }
 0x413   : > { %v5618_v29 = vpack.c.bf16 %v1519_v44, %v1517_v60  ;;  %v1574_v28 = vpop.permute.xlu1 %1573  ;;  %v7290_v30 = vpop.permute.xlu0 %1595  ;;  %v5616_v18 = vpack.c.bf16 %v1520_v48, %v1518_v4  ;;  %v5628_v62 = vpack.c.bf16 %v1556_v33, %v1554_v21  ;;  %v1582_v60 = vsel %vm547_vm4, %v7223_v24, %v7163_v39 }
 0x414   : > { %v1553_v4 = vmul.f32 %v6991_v6, %v6804_v35  ;;  %v1578_v48 = vsel %vm547_vm4, %v7163_v39, %v7223_v24  ;;  %v1559_v6 = vmul.f32 %v7039_v40, %v6804_v35  ;;  %v1588_v49 = vmul.f32 %v1582_v60, %v6822_v43 }
 0x415   : > { %5617 = vmatprep.subr.bf16.mxu0 %v5616_v18  ;;  %v1557_v18 = vmul.f32 %v7033_v15, %v6804_v35  ;;  %v1586_v46 = vmul.f32 %v1581_v5, %v6822_v43  ;;  %v1587_v24 = vmul.f32 %v1578_v48, %v6839_v8  ;;  %v1579_v40 = vsel %vm547_vm4, %v7268_v55, %v1574_v28 }
 0x416   : > { %5619 = vmatpush1.bf16.msra.mxu0 %v5618_v29  ;;  %v1583_v63 = vsel %vm547_vm4, %v1574_v28, %v7268_v55 }
 0x417   : > { %v1594_v12 = vpop.permute.xlu1 %1593  ;;  %5621 = vmatprep.subr.bf16.mxu0 %v5620_v51  ;;  %v1536_v2 = vpop.permute.xlu0 %1535  ;;  %v5636_v32 = vpack.c.bf16 %v1588_v49, %v1586_v46 }
 0x418   : > { %v1540_v57 = vsel %vm510_vm3, %v7194_v53, %v1536_v2  ;;  %v1544_v59 = vsel %vm510_vm3, %v1536_v2, %v7194_v53  ;;  %v1555_v53 = vmul.f32 %v6995_v36, %v6804_v35  ;;  %v1558_v36 = vmul.f32 %v7053_v19, %v6780_v16 }
 0x419   : > { %v1551_v14 = vmul.f32 %v1544_v59, %v6766_v13  ;;  %v1552_v11 = vmul.f32 %v1540_v57, %v6736_v27  ;;  %v1577_v19 = vsel %vm547_vm4, %v7153_v47, %v7205_v38  ;;  %v5634_v47 = vpack.c.bf16 %v1559_v6, %v1557_v18 }
 0x41a   : > { %5623 = vmatpush1.bf16.msra.mxu0 %v5622_v56  ;;  %v5630_v37 = vpack.c.bf16 %v1555_v53, %v1553_v4  ;;  %v5632_v29 = vpack.c.bf16 %v1560_v61, %v1558_v36  ;;  %v1585_v38 = vmul.f32 %v1577_v19, %v6839_v8  ;;  %v1589_v56 = vmul.f32 %v1579_v40, %v6839_v8 }
 0x41b   : > { %v5626_v45 = vpack.c.bf16 %v1551_v14, %v1549_v52  ;;  %v1602_v54 = vpop.permute.xlu1 %1601  ;;  %v1604_v50 = vpop.permute.xlu0 %1603  ;;  %v5624_v22 = vpack.c.bf16 %v1552_v11, %v1550_v17  ;;  %v1590_v57 = vmul.f32 %v1583_v63, %v6822_v43 }
 0x41c   : > { %v1613_v15 = vsel %vm569_vm5, %v1602_v54, %v1594_v12  ;;  %v1614_v34 = vsel %vm569_vm5, %v1604_v50, %v7290_v30  ;;  %v5638_v2 = vpack.c.bf16 %v1587_v24, %v1585_v38  ;;  %v1609_v55 = vsel %vm569_vm5, %v1594_v12, %v1602_v54 }
 0x41d   : > { %5625 = vmatprep.subr.bf16.mxu0 %v5624_v22  ;;  %v1610_v28 = vsel %vm569_vm5, %v7290_v30, %v1604_v50  ;;  %v1618_v14 = vmul.f32 %v1613_v15, %v6860_v9  ;;  %v1620_v11 = vmul.f32 %v1614_v34, %v6860_v9  ;;  %v1617_v54 = vmul.f32 %v1609_v55, %v6870_v31 }
 0x41e   : > { %5627 = vmatpush1.bf16.msra.mxu0 %v5626_v45  ;;  %v1619_v30 = vmul.f32 %v1610_v28, %v6870_v31 }
 0x41f   : > { %v1598_v44 = vpop.permute.xlu1 %1597  ;;  %5629 = vmatprep.subr.bf16.mxu0 %v5628_v62  ;;  %v1600_v41 = vpop.permute.xlu0 %1599  ;;  %v5644_v61 = vpack.c.bf16 %v1620_v11, %v1618_v14 }
 0x420   : > { %v5646_v36 = vpack.c.bf16 %v1619_v30, %v1617_v54 }
 0x422   : > { %5631 = vmatpush1.bf16.msra.mxu0 %v5630_v37 }
 0x423   : > { %v1606_v39 = vpop.permute.xlu1 %1605  ;;  %v1628_v51 = vpop.permute.xlu0 %1627  ;;  %5633 = vmatprep.subr.bf16.mxu0 %v5632_v29 }
 0x424   : > { %v1615_v62 = vsel %vm569_vm5, %v1606_v39, %v1598_v44 }
 0x425   : > { %v1622_v48 = vmul.f32 %v1615_v62, %v6860_v9 }
 0x426   : > { %5635 = vmatpush1.bf16.msra.mxu0 %v5634_v47 }
 0x427   : > { %v1626_v59 = vpop.permute.xlu1 %1625  ;;  %v1576_v33 = vpop.permute.xlu0 %1575  ;;  %5637 = vmatprep.subr.bf16.mxu0 %v5636_v32 }
 0x428   : > { %v1580_v52 = vsel %vm547_vm4, %v7253_v1, %v1576_v33  ;;  %v1584_v17 = vsel %vm547_vm4, %v1576_v33, %v7253_v1  ;;  %v1611_v1 = vsel %vm569_vm5, %v1598_v44, %v1606_v39 }
 0x429   : > { %v1591_v45 = vmul.f32 %v1580_v52, %v6839_v8  ;;  %v1592_v12 = vmul.f32 %v1584_v17, %v6822_v43  ;;  %v1621_v5 = vmul.f32 %v1611_v1, %v6870_v31 }
 0x42a   : > { %5639 = vmatpush1.bf16.msra.mxu0 %v5638_v2 }
 0x42b   : > { %v5642_v50 = vpack.c.bf16 %v1591_v45, %v1589_v56  ;;  %v1634_v22 = vpop.permute.xlu1 %1633  ;;  %v1636_v21 = vpop.permute.xlu0 %1635  ;;  %v5640_v53 = vpack.c.bf16 %v1592_v12, %v1590_v57 }
 0x42c   : > { %v1645_v60 = vsel %vm591_vm6, %v1634_v22, %v1626_v59  ;;  %v1646_v4 = vsel %vm591_vm6, %v1636_v21, %v1628_v51  ;;  %v1641_v44 = vsel %vm591_vm6, %v1626_v59, %v1634_v22  ;;  %v1642_v49 = vsel %vm591_vm6, %v1628_v51, %v1636_v21 }
 0x42d   : > { %5641 = vmatprep.subr.bf16.mxu0 %v5640_v53  ;;  %v1650_v18 = vmul.f32 %v1645_v60, %v6900_v7  ;;  %v1652_v46 = vmul.f32 %v1646_v4, %v6900_v7  ;;  %v1649_v51 = vmul.f32 %v1641_v44, %v6907_v0  ;;  %v1651_v32 = vmul.f32 %v1642_v49, %v6907_v0  ;;  %v5343_v53 = vld [vmem:[%s6546_s30 + $0x80] sm:$0xff] }
 0x42e   : > { %5643 = vmatpush1.bf16.msra.mxu0 %v5642_v50  ;;  %v5339_v50 = vld [vmem:[%s6546_s30 + $0x60] sm:$0xff] }
 0x42f   : > { %v1630_v37 = vpop.permute.xlu1 %1629  ;;  %v1608_v6 = vpop.permute.xlu0 %1607  ;;  %5645 = vmatprep.subr.bf16.mxu0 %v5644_v61  ;;  %v5652_v15 = vpack.c.bf16 %v1652_v46, %v1650_v18  ;;  %v5654_v57 = vpack.c.bf16 %v1651_v32, %v1649_v51  ;;  %v10323_v60 = vld [vmem:[#allocation10_spill] sm:$0xff]  ;;  %v5345_v46 = vld [vmem:[%s6546_s30 + $0x90] sm:$0xff] }
 0x430   : > { %v1612_v29 = vsel %vm569_vm5, %v1600_v41, %v1608_v6  ;;  %v1616_v19 = vsel %vm569_vm5, %v1608_v6, %v1600_v41 }
 0x431   : > { %v1623_v24 = vmul.f32 %v1612_v29, %v6870_v31  ;;  %v1624_v39 = vmul.f32 %v1616_v19, %v6860_v9  ;;  %v5346_v29 = vld [vmem:[%s6546_s30 + $0x98] sm:$0xff] }
 0x432   : > { %5647 = vmatpush1.bf16.msra.mxu0 %v5646_v36 }
 0x433   : > { %v5650_v40 = vpack.c.bf16 %v1623_v24, %v1621_v5  ;;  %v1638_v63 = vpop.permute.xlu1 %1637  ;;  %v1632_v47 = vpop.permute.xlu0 %1631  ;;  %v5648_v38 = vpack.c.bf16 %v1624_v39, %v1622_v48  ;;  %v5342_v48 = vld [vmem:[%s6546_s30 + $0x78] sm:$0xff]  ;;  %v5349_v39 = vld [vmem:[%s6546_s30 + $0xb0] sm:$0xff] }
 0x434   : > { %v1643_v41 = vsel %vm591_vm6, %v1630_v37, %v1638_v63  ;;  %v1647_v34 = vsel %vm591_vm6, %v1638_v63, %v1630_v37 }
 0x435   : > { %5649 = vmatprep.subr.bf16.mxu0 %v5648_v38  ;;  %v1653_v55 = vmul.f32 %v1643_v41, %v6907_v0  ;;  %v1654_v28 = vmul.f32 %v1647_v34, %v6900_v7 }
 0x436   : > { %5651 = vmatpush1.bf16.msra.mxu0 %v5650_v40 }
 0x437   : > { %v1658_v2 = vpop.permute.xlu1 %1657  ;;  %v1640_v56 = vpop.permute.xlu0 %1639  ;;  %5653 = vmatprep.subr.bf16.mxu0 %v5652_v15  ;;  %v5348_v15 = vld [vmem:[%s6546_s30 + $0xa8] sm:$0xff] }
 0x438   : > { %v1644_v59 = vsel %vm591_vm6, %v1632_v47, %v1640_v56  ;;  %v1648_v33 = vsel %vm591_vm6, %v1640_v56, %v1632_v47  ;;  %v5341_v56 = vld [vmem:[%s6546_s30 + $0x70] sm:$0xff] }
 0x439   : > { %v1655_v52 = vmul.f32 %v1644_v59, %v6907_v0  ;;  %v1656_v17 = vmul.f32 %v1648_v33, %v6900_v7  ;;  %v5347_v59 = vld [vmem:[%s6546_s30 + $0xa0] sm:$0xff]  ;;  %v5350_v33 = vld [vmem:[%s6546_s30 + $0xb8] sm:$0xff] }
 0x43a   : > { %5655 = vmatpush1.bf16.msra.mxu0 %v5654_v57  ;;  %v5344_v57 = vld [vmem:[%s6546_s30 + $0x88] sm:$0xff] }
 0x43b   : > { %v5658_v14 = vpack.c.bf16 %v1655_v52, %v1653_v55  ;;  %v1666_v11 = vpop.permute.xlu1 %1665  ;;  %v1660_v45 = vpop.permute.xlu0 %1659  ;;  %v5656_v12 = vpack.c.bf16 %v1656_v17, %v1654_v28 }
 0x43c   : > { %v1673_v54 = vsel %vm613_vm7, %v1658_v2, %v1666_v11  ;;  %v1677_v30 = vsel %vm613_vm7, %v1666_v11, %v1658_v2  ;;  %v10324_v2 = vmov 0.0  }
 0x43d   : > { %5657 = vmatprep.subr.bf16.mxu0 %v5656_v12  ;;  %v1681_v61 = vmul.f32 %v1673_v54, %v6943_v23  ;;  %v1682_v4 = vmul.f32 %v1677_v30, %v10323_v60 }
 0x43e   : > { %5659 = vmatpush1.bf16.msra.mxu0 %v5658_v14 }
 0x43f   : > { %v1662_v22 = vpop.permute.xlu1 %1661  ;;  %v1668_v21 = vpop.permute.xlu0 %1667 }
 0x440   : > { %v1674_v1 = vsel %vm613_vm7, %v1660_v45, %v1668_v21  ;;  %v1678_v62 = vsel %vm613_vm7, %v1668_v21, %v1660_v45  ;;  %v10325_v21 = vld [vmem:[#allocation2_spill] sm:$0xff] }
 0x441   : > { %v1683_v36 = vmul.f32 %v1674_v1, %v6943_v23  ;;  %v1684_v5 = vmul.f32 %v1678_v62, %v10323_v60  ;;  %1766 = vmatmul.mubr.f32.vlgmr.msra.gmra.mrb[8].mxu0 %v5339_v50 }
 0x442   : > { %1771 = vmatprep.mubr.f32.mxu0 %v5343_v53 }
 0x443   : > { %v5662_v37 = vpack.c.bf16 %v1683_v36, %v1681_v61  ;;  %v1670_v6 = vpop.permute.xlu1 %1669  ;;  %v1664_v44 = vpop.permute.xlu0 %1663  ;;  %v5660_v49 = vpack.c.bf16 %v1684_v5, %v1682_v4  ;;  %v10327_v36 = vld [vmem:[#allocation3_spill] sm:$0xff] }
 0x444   : > { %v1675_v19 = vsel %vm613_vm7, %v1662_v22, %v1670_v6  ;;  %v1679_v18 = vsel %vm613_vm7, %v1670_v6, %v1662_v22 }
 0x445   : > { %1772 = vmatmul.mubr.f32.gmra.mrb[10].mxu0 %v5342_v48  ;;  %5661 = vmatprep.subr.bf16.mxu0 %v5660_v49  ;;  %v1685_v47 = vmul.f32 %v1675_v19, %v6943_v23  ;;  %v1686_v38 = vmul.f32 %v1679_v18, %v10323_v60  ;;  %v10329_v18 = vld [vmem:[#allocation4_spill] sm:$0xff] }
 0x446   : > { %5663 = vmatpush1.bf16.msra.mxu0 %v5662_v37  ;;  %1777 = vmatprep.mubr.f32.mxu0 %v5346_v29 }
 0x447   : > { %v1672_v24 = vpop.permute.xlu0 %1671 }
 0x448   : > { %v1676_v40 = vsel %vm613_vm7, %v1664_v44, %v1672_v24  ;;  %v1680_v63 = vsel %vm613_vm7, %v1672_v24, %v1664_v44 }
 0x449   : > { %v1687_v51 = vmul.f32 %v1676_v40, %v6943_v23  ;;  %v1688_v32 = vmul.f32 %v1680_v63, %v10323_v60  ;;  %1778 = vmatmul.mubr.f32.gmra.mrb[12].mxu0 %v5345_v46  ;;  %v10331_v40 = vld [vmem:[#allocation5_spill] sm:$0xff] }
 0x44a   : > { %1783 = vmatprep.mubr.f32.mxu0 %v5349_v39 }
 0x44b   : > { %v5666_v41 = vpack.c.bf16 %v1687_v51, %v1685_v47  ;;  %v5664_v34 = vpack.c.bf16 %v1688_v32, %v1686_v38 }
 0x44d   : > { %1784 = vmatmul.mubr.f32.gmra.mrb[14].mxu0 %v5348_v15  ;;  %5665 = vmatprep.subr.bf16.mxu0 %v5664_v34 }
 0x44e   : > { %5667 = vmatpush1.bf16.msra.mxu0 %v5666_v41  ;;  %1854 = vmatprep.mubr.f32.mxu0 %v10324_v2 }
 0x451   : > { %5351 = vmatmul.mubr.msk.f32.vlgmr.msra.gmra.mrb[8].mxu0 %vm1149_vm9, %v5341_v56 }
 0x452   : > { %1860 = vmatprep.mubr.f32.mxu0 %v10324_v2 }
 0x454   : > { %v1887_v55 = vpop.permute.xlu1 %1886 }
 0x455   : > { %5352 = vmatmul.mubr.msk.f32.gmra.mrb[10].mxu0 %vm1149_vm9, %v5344_v57  ;;  %v10333_v57 = vld [vmem:[#allocation6_spill] sm:$0xff] }
 0x456   : > { %1866 = vmatprep.mubr.f32.mxu0 %v10324_v2 }
 0x458   : > { %v1892_v28 = vpop.permute.xlu0 %1891  ;;  %v1920_v11 = vpop.permute.xlu1 %1919 }
 0x459   : > { %5353 = vmatmul.mubr.msk.f32.gmra.mrb[12].mxu0 %vm1149_vm9, %v5347_v59 }
 0x45a   : > { %1872 = vmatprep.mubr.f32.mxu0 %v10324_v2 }
 0x45c   : > { %v1925_v22 = vpop.permute.xlu0 %1924  ;;  %v1897_v39 = vpop.permute.xlu1 %1896 }
 0x45d   : > { %5354 = vmatmul.mubr.msk.f32.gmra.mrb[14].mxu0 %vm1149_vm9, %v5350_v33 }
 0x460   : > { %v1902_v38 = vpop.permute.xlu0 %1901  ;;  %v1930_v51 = vpop.permute.xlu1 %1929 }
 0x464   : > { %v1935_v41 = vpop.permute.xlu0 %1934 }
 0x524   : > { %v1856_v52 = vpop.f32.mrb[8].mxu0 }
 0x525   : > { %v1904_v17 = vmul.f32 %v1887_v55, %v1856_v52  ;;  %v1858_v14 = vpop.f32.mrb[9].mxu0 }
 0x526   : > { %v1905_v6 = vmul.f32 %v1887_v55, %v1858_v14 }
 0x527   : > { %v1937_v45 = vadd.f32 %v1920_v11, %v1904_v17 }
 0x528   : > { %v1862_v12 = vpop.f32.mrb[10].mxu0  ;;  %v1938_v44 = vadd.f32 %v1920_v11, %v1905_v6 }
 0x529   : > { %v1945_v54 = vmul.f32 0.1, %v1937_v45  ;;  %v1906_v30 = vmul.f32 %v1892_v28, %v1862_v12  ;;  %v1864_v50 = vpop.f32.mrb[11].mxu0  ;;  %v10337_v12 = vld [vmem:[#allocation8_spill] sm:$0xff] }
 0x52a   : > { %v1907_v49 = vmul.f32 %v1892_v28, %v1864_v50  ;;  %v1946_v29 = vmul.f32 0.1, %v1938_v44  ;;  %v10335_v28 = vld [vmem:[#allocation7_spill] sm:$0xff]  ;;  %v10339_v50 = vld [vmem:[#allocation9_spill] sm:$0xff]  ;;  %v5383_v44 = vld [vmem:[%s10271_s8 + $0x40] sm:$0xff] }
 0x52b   : > { %v7456_v53 = vadd.f32 %v1945_v54, %v10325_v21  ;;  %v1939_v1 = vadd.f32 %v1925_v22, %v1906_v30  ;;  %v5364_v21 = vld [vmem:[%s6546_s30 + $0xc8] sm:$0xff] }
 0x52c   : > { %v1868_v62 = vpop.f32.mrb[12].mxu0  ;;  %v1940_v19 = vadd.f32 %v1925_v22, %v1907_v49  ;;  %v7480_v46 = vadd.f32 %v1946_v29, %v10329_v18  ;;  %2314 = vmatprep.mubr.f32.mxu1 %v5364_v21  ;;  %v5380_v49 = vld [vmem:[%s10270_s7 + $0x48] sm:$0xff]  ;;  %v5381_v18 = vld [vmem:[%s10270_s7 + $0x50] sm:$0xff] }
 0x52d   : > { %10326 = vst [vmem:[#allocation2_spill] sm:$0xff] %v7456_v53  ;;  %v1947_v61 = vmul.f32 0.1, %v1939_v1  ;;  %1974 = vrot.lane.b32.xlu1 %v7456_v53, %s6193_s20  ;;  %v1870_v4 = vpop.f32.mrb[13].mxu0  ;;  %v1908_v47 = vmul.f32 %v1897_v39, %v1868_v62 }
 0x52e   : > { %10330 = vst [vmem:[#allocation4_spill] sm:$0xff] %v7480_v46  ;;  %v1948_v24 = vmul.f32 0.1, %v1940_v19  ;;  %v1909_v55 = vmul.f32 %v1897_v39, %v1870_v4 }
 0x52f   : > { %v7461_v5 = vadd.f32 %v1947_v61, %v10327_v36  ;;  %v1941_v32 = vadd.f32 %v1930_v51, %v1908_v47 }
 0x530   : > { %v1874_v48 = vpop.f32.mrb[14].mxu0  ;;  %v7487_v63 = vadd.f32 %v1948_v24, %v10331_v40  ;;  %v1942_v17 = vadd.f32 %v1930_v51, %v1909_v55  ;;  %v5384_v24 = vld [vmem:[%s10271_s8 + $0x48] sm:$0xff]  ;;  %v5385_v51 = vld [vmem:[%s10271_s8 + $0x50] sm:$0xff] }
 0x531   : > { %10328 = vst [vmem:[#allocation3_spill] sm:$0xff] %v7461_v5  ;;  %2006 = vrot.lane.b32.xlu1 %v7456_v53, %s6192_s19  ;;  %1976 = vrot.lane.b32.xlu0 %v7461_v5, %s6193_s20  ;;  %v1876_v37 = vpop.f32.mrb[15].mxu0  ;;  %v1910_v15 = vmul.f32 %v1902_v38, %v1874_v48  ;;  %v1949_v34 = vmul.f32 0.1, %v1941_v32  ;;  %v5379_v48 = vld [vmem:[%s10270_s7 + $0x40] sm:$0xff] }
 0x532   : > { %10332 = vst [vmem:[#allocation5_spill] sm:$0xff] %v7487_v63  ;;  %v1911_v14 = vmul.f32 %v1902_v38, %v1876_v37  ;;  %v1950_v11 = vmul.f32 0.1, %v1942_v17 }
 0x533   : > { %v1943_v56 = vadd.f32 %v1935_v41, %v1910_v15  ;;  %v7502_v59 = vadd.f32 %v1949_v34, %v10333_v57 }
 0x534   : > { %v1944_v45 = vadd.f32 %v1935_v41, %v1911_v14  ;;  %v7524_v54 = vadd.f32 %v1950_v11, %v10337_v12  ;;  %v5382_v41 = vld [vmem:[%s10270_s7 + $0x58] sm:$0xff] }
 0x535   : > { %2038 = vrot.lane.b32.xlu1 %v7456_v53, %s6194_s21  ;;  %2008 = vrot.lane.b32.xlu0 %v7461_v5, %s6192_s19  ;;  %10334 = vst [vmem:[#allocation6_spill] sm:$0xff] %v7502_v59  ;;  %v1951_v33 = vmul.f32 0.1, %v1943_v56  ;;  %v5386_v12 = vld [vmem:[%s10271_s8 + $0x58] sm:$0xff] }
 0x536   : > { %10338 = vst [vmem:[#allocation8_spill] sm:$0xff] %v7524_v54  ;;  %v1952_v30 = vmul.f32 0.1, %v1944_v45 }
 0x537   : > { %v7509_v52 = vadd.f32 %v1951_v33, %v10335_v28 }
 0x538   : > { %v7531_v22 = vadd.f32 %v1952_v30, %v10339_v50 }
 0x539   : > { %2070 = vrot.lane.b32.xlu1 %v7456_v53, %s6195_s22  ;;  %2040 = vrot.lane.b32.xlu0 %v7461_v5, %s6194_s21  ;;  %10336 = vst [vmem:[#allocation7_spill] sm:$0xff] %v7509_v52 }
 0x53a   : > { %10340 = vst [vmem:[#allocation9_spill] sm:$0xff] %v7531_v22 }
 0x53d   : > { %2110 = vrot.lane.b32.xlu1 %v7456_v53, %s6196_s23  ;;  %2072 = vrot.lane.b32.xlu0 %v7461_v5, %s6195_s22 }
 0x541   : > { %1982 = vrot.lane.b32.xlu1 %v7480_v46, %s6193_s20  ;;  %2112 = vrot.lane.b32.xlu0 %v7461_v5, %s6196_s23 }
 0x545   : > { %2014 = vrot.lane.b32.xlu1 %v7480_v46, %s6192_s19  ;;  %1984 = vrot.lane.b32.xlu0 %v7487_v63, %s6193_s20 }
 0x549   : > { %2046 = vrot.lane.b32.xlu1 %v7480_v46, %s6194_s21  ;;  %2016 = vrot.lane.b32.xlu0 %v7487_v63, %s6192_s19 }
 0x54d   : > { %2078 = vrot.lane.b32.xlu1 %v7480_v46, %s6195_s22  ;;  %2048 = vrot.lane.b32.xlu0 %v7487_v63, %s6194_s21 }
 0x551   : > { %2080 = vrot.lane.b32.xlu0 %v7487_v63, %s6195_s22  ;;  %1978 = vrot.lane.b32.xlu1 %v7502_v59, %s6193_s20 }
 0x555   : > { %2010 = vrot.lane.b32.xlu1 %v7502_v59, %s6192_s19  ;;  %1980 = vrot.lane.b32.xlu0 %v7509_v52, %s6193_s20 }
 0x559   : > { %2042 = vrot.lane.b32.xlu1 %v7502_v59, %s6194_s21  ;;  %2012 = vrot.lane.b32.xlu0 %v7509_v52, %s6192_s19 }
 0x55d   : > { %2074 = vrot.lane.b32.xlu1 %v7502_v59, %s6195_s22  ;;  %2044 = vrot.lane.b32.xlu0 %v7509_v52, %s6194_s21 }
 0x561   : > { %1986 = vrot.lane.b32.xlu1 %v7524_v54, %s6193_s20  ;;  %2076 = vrot.lane.b32.xlu0 %v7509_v52, %s6195_s22 }
 0x565   : > { %2118 = vrot.lane.b32.xlu1 %v7480_v46, %s6196_s23  ;;  %1988 = vrot.lane.b32.xlu0 %v7531_v22, %s6193_s20 }
 0x569   : > { %2018 = vrot.lane.b32.xlu1 %v7524_v54, %s6192_s19  ;;  %2120 = vrot.lane.b32.xlu0 %v7487_v63, %s6196_s23 }
 0x56d   : > { %2050 = vrot.lane.b32.xlu1 %v7524_v54, %s6194_s21  ;;  %2020 = vrot.lane.b32.xlu0 %v7531_v22, %s6192_s19 }
 0x571   : > { %2082 = vrot.lane.b32.xlu1 %v7524_v54, %s6195_s22  ;;  %2116 = vrot.lane.b32.xlu0 %v7509_v52, %s6196_s23 }
 0x575   : > { %2114 = vrot.lane.b32.xlu1 %v7502_v59, %s6196_s23  ;;  %2052 = vrot.lane.b32.xlu0 %v7531_v22, %s6194_s21 }
 0x579   : > { %2122 = vrot.lane.b32.xlu1 %v7524_v54, %s6196_s23  ;;  %2144 = vrot.lane.b32.xlu0 %v7461_v5, %s6197_s24 }
 0x57d   : > { %2142 = vrot.lane.b32.xlu1 %v7456_v53, %s6197_s24  ;;  %2084 = vrot.lane.b32.xlu0 %v7531_v22, %s6195_s22 }
 0x581   : > { %2150 = vrot.lane.b32.xlu1 %v7480_v46, %s6197_s24  ;;  %2152 = vrot.lane.b32.xlu0 %v7487_v63, %s6197_s24 }
 0x585   : > { %2146 = vrot.lane.b32.xlu1 %v7502_v59, %s6197_s24  ;;  %2148 = vrot.lane.b32.xlu0 %v7509_v52, %s6197_s24 }
 0x589   : > { %2154 = vrot.lane.b32.xlu1 %v7524_v54, %s6197_s24  ;;  %2176 = vrot.lane.b32.xlu0 %v7461_v5, %s6199_s25 }
 0x58d   : > { %2174 = vrot.lane.b32.xlu1 %v7456_v53, %s6199_s25  ;;  %2124 = vrot.lane.b32.xlu0 %v7531_v22, %s6196_s23 }
 0x591   : > { %2182 = vrot.lane.b32.xlu1 %v7480_v46, %s6199_s25  ;;  %2184 = vrot.lane.b32.xlu0 %v7487_v63, %s6199_s25 }
 0x595   : > { %2178 = vrot.lane.b32.xlu1 %v7502_v59, %s6199_s25  ;;  %2156 = vrot.lane.b32.xlu0 %v7531_v22, %s6197_s24 }
 0x599   : > { %2186 = vrot.lane.b32.xlu1 %v7524_v54, %s6199_s25  ;;  %2180 = vrot.lane.b32.xlu0 %v7509_v52, %s6199_s25 }
 0x59d   : > { %2206 = vrot.lane.b32.xlu1 %v7456_v53, %s6200_s26  ;;  %2188 = vrot.lane.b32.xlu0 %v7531_v22, %s6199_s25 }
 0x59f   : > { %v1975_v1 = vpop.permute.xlu1 %1974 }
 0x5a1   : > { %2214 = vrot.lane.b32.xlu1 %v7480_v46, %s6200_s26  ;;  %2208 = vrot.lane.b32.xlu0 %v7461_v5, %s6200_s26 }
 0x5a3   : > { %v7598_v62 = vpop.permute.xlu1 %2006  ;;  %v1977_v61 = vpop.permute.xlu0 %1976 }
 0x5a5   : > { %2210 = vrot.lane.b32.xlu1 %v7502_v59, %s6200_s26  ;;  %2216 = vrot.lane.b32.xlu0 %v7487_v63, %s6200_s26 }
 0x5a7   : > { %v7604_v4 = vpop.permute.xlu1 %2038  ;;  %v2009_v36 = vpop.permute.xlu0 %2008 }
 0x5a9   : > { %2218 = vrot.lane.b32.xlu1 %v7524_v54, %s6200_s26  ;;  %2212 = vrot.lane.b32.xlu0 %v7509_v52, %s6200_s26 }
 0x5ab   : > { %v7613_v37 = vpop.permute.xlu1 %2070  ;;  %v7615_v6 = vpop.permute.xlu0 %2040 }
 0x5ad   : > { %2435 = vperm.xlu1 %6182, %v5379_v48   ;;  %2220 = vrot.lane.b32.xlu0 %v7531_v22, %s6200_s26 }
 0x5af   : > { %v7625_v29 = vpop.permute.xlu1 %2110  ;;  %v7627_v19 = vpop.permute.xlu0 %2072 }
 0x5b1   : > { %2468 = vperm.xlu1 %6182, %v5383_v44   ;;  %2440 = vperm.xlu0 %6181, %v5380_v49  }
 0x5b3   : > { %v1983_v39 = vpop.permute.xlu1 %1982  ;;  %v7635_v40 = vpop.permute.xlu0 %2112 }
 0x5b4   : > { %v1990_v47 = vsel %vm445_vm1, %v1975_v1, %v1983_v39  ;;  %v1994_v38 = vsel %vm445_vm1, %v1983_v39, %v1975_v1 }
 0x5b5   : > { %2445 = vperm.xlu1 %6182, %v5381_v18   ;;  %2473 = vperm.xlu0 %6181, %v5384_v24   ;;  %v1998_v57 = vmul.f32 %v1994_v38, %v6617_v26  ;;  %v1999_v33 = vmul.f32 %v1990_v47, %v6606_v20 }
 0x5b7   : > { %v2015_v32 = vpop.permute.xlu1 %2014  ;;  %v1985_v15 = vpop.permute.xlu0 %1984 }
 0x5b8   : > { %v1991_v34 = vsel %vm445_vm1, %v1977_v61, %v1985_v15  ;;  %v1995_v56 = vsel %vm445_vm1, %v1985_v15, %v1977_v61 }
 0x5b9   : > { %v2000_v55 = vmul.f32 %v1995_v56, %v6617_v26  ;;  %v2001_v28 = vmul.f32 %v1991_v34, %v6606_v20  ;;  %2478 = vperm.xlu1 %6182, %v5385_v51   ;;  %2450 = vperm.xlu0 %6181, %v5382_v41   ;;  %v2022_v41 = vsel %vm466_vm0, %v7598_v62, %v2015_v32 }
 0x5bb   : > { %v5670_v17 = vpack.c.bf16 %v2000_v55, %v1998_v57  ;;  %v2047_v14 = vpop.permute.xlu1 %2046  ;;  %v2017_v11 = vpop.permute.xlu0 %2016  ;;  %v5668_v45 = vpack.c.bf16 %v2001_v28, %v1999_v33 }
 0x5bc   : > { %v2023_v38 = vsel %vm466_vm0, %v2009_v36, %v2017_v11  ;;  %v2027_v57 = vsel %vm466_vm0, %v2017_v11, %v2009_v36  ;;  %v2026_v36 = vsel %vm466_vm0, %v2015_v32, %v7598_v62  ;;  %v2031_v11 = vmul.f32 %v2022_v41, %v6653_v58 }
 0x5bd   : > { %5669 = vmatprep.subr.bf16.mxu1 %v5668_v45  ;;  %2483 = vperm.xlu0 %6181, %v5386_v12   ;;  %v2033_v33 = vmul.f32 %v2023_v38, %v6653_v58  ;;  %v2054_v41 = vsel %vm488_vm2, %v7604_v4, %v2047_v14 }
 0x5be   : > { %5671 = vmatpush1.bf16.msra.mxu1 %v5670_v17 }
 0x5bf   : > { %v7658_v30 = vpop.permute.xlu1 %2078  ;;  %v2049_v50 = vpop.permute.xlu0 %2048 }
 0x5c3   : > { %v7660_v21 = vpop.permute.xlu0 %2080  ;;  %v1979_v1 = vpop.permute.xlu1 %1978 }
 0x5c7   : > { %v2011_v61 = vpop.permute.xlu1 %2010  ;;  %v1981_v48 = vpop.permute.xlu0 %1980 }
 0x5cb   : > { %v2043_v44 = vpop.permute.xlu1 %2042  ;;  %v2013_v49 = vpop.permute.xlu0 %2012 }
 0x5cf   : > { %v7662_v18 = vpop.permute.xlu1 %2074  ;;  %v7664_v24 = vpop.permute.xlu0 %2044 }
 0x5d3   : > { %v1987_v39 = vpop.permute.xlu1 %1986  ;;  %v7666_v47 = vpop.permute.xlu0 %2076 }
 0x5d4   : > { %v1992_v51 = vsel %vm445_vm1, %v1979_v1, %v1987_v39  ;;  %v1996_v15 = vsel %vm445_vm1, %v1987_v39, %v1979_v1  ;;  %v2032_v39 = vmul.f32 %v2027_v57, %v6660_v3 }
 0x5d5   : > { %v2002_v17 = vmul.f32 %v1996_v15, %v6617_v26  ;;  %v2003_v45 = vmul.f32 %v1992_v51, %v6606_v20  ;;  %v2030_v15 = vmul.f32 %v2026_v36, %v6660_v3  ;;  %v2055_v51 = vsel %vm488_vm2, %v7615_v6, %v2049_v50 }
 0x5d7   : > { %v7677_v34 = vpop.permute.xlu1 %2118  ;;  %v1989_v56 = vpop.permute.xlu0 %1988  ;;  %v5678_v57 = vpack.c.bf16 %v2032_v39, %v2030_v15 }
 0x5d8   : > { %v1993_v55 = vsel %vm445_vm1, %v1981_v48, %v1989_v56  ;;  %v1997_v28 = vsel %vm445_vm1, %v1989_v56, %v1981_v48  ;;  %v5676_v56 = vpack.c.bf16 %v2033_v33, %v2031_v11  ;;  %v2065_v33 = vmul.f32 %v2055_v51, %v6694_v25 }
 0x5d9   : > { %v2004_v12 = vmul.f32 %v1997_v28, %v6617_v26  ;;  %v2005_v1 = vmul.f32 %v1993_v55, %v6606_v20  ;;  %v2087_v51 = vsel %vm510_vm3, %v7627_v19, %v7660_v21 }
 0x5db   : > { %v5674_v38 = vpack.c.bf16 %v2004_v12, %v2002_v17  ;;  %v2019_v2 = vpop.permute.xlu1 %2018  ;;  %v7695_v60 = vpop.permute.xlu0 %2120  ;;  %v5672_v48 = vpack.c.bf16 %v2005_v1, %v2003_v45  ;;  %v2059_v17 = vsel %vm488_vm2, %v2049_v50, %v7615_v6  ;;  %v2058_v6 = vsel %vm488_vm2, %v2047_v14, %v7604_v4 }
 0x5dc   : > { %v2024_v62 = vsel %vm466_vm0, %v2011_v61, %v2019_v2  ;;  %v2028_v32 = vsel %vm466_vm0, %v2019_v2, %v2011_v61  ;;  %v2063_v50 = vmul.f32 %v2054_v41, %v6694_v25  ;;  %v2064_v11 = vmul.f32 %v2059_v17, %v6701_v42 }
 0x5dd   : > { %5673 = vmatprep.subr.bf16.mxu1 %v5672_v48  ;;  %v2034_v61 = vmul.f32 %v2028_v32, %v6660_v3  ;;  %v2035_v12 = vmul.f32 %v2024_v62, %v6653_v58  ;;  %v2062_v15 = vmul.f32 %v2058_v6, %v6701_v42  ;;  %v2086_v62 = vsel %vm510_vm3, %v7613_v37, %v7658_v30 }
 0x5de   : > { %5675 = vmatpush1.bf16.msra.mxu1 %v5674_v38  ;;  %v2097_v17 = vmul.f32 %v2087_v51, %v6736_v27 }
 0x5df   : > { %v2051_v55 = vpop.permute.xlu1 %2050  ;;  %5677 = vmatprep.subr.bf16.mxu1 %v5676_v56  ;;  %v2021_v28 = vpop.permute.xlu0 %2020  ;;  %v5684_v56 = vpack.c.bf16 %v2065_v33, %v2063_v50  ;;  %v5686_v32 = vpack.c.bf16 %v2064_v11, %v2062_v15 }
 0x5e0   : > { %v2025_v45 = vsel %vm466_vm0, %v2013_v49, %v2021_v28  ;;  %v2029_v2 = vsel %vm466_vm0, %v2021_v28, %v2013_v49  ;;  %v2056_v4 = vsel %vm488_vm2, %v2043_v44, %v2051_v55  ;;  %v2060_v14 = vsel %vm488_vm2, %v2051_v55, %v2043_v44 }
 0x5e1   : > { %v2036_v1 = vmul.f32 %v2029_v2, %v6660_v3  ;;  %v2037_v36 = vmul.f32 %v2025_v45, %v6653_v58  ;;  %v2091_v28 = vsel %vm510_vm3, %v7660_v21, %v7627_v19  ;;  %v2066_v33 = vmul.f32 %v2060_v14, %v6701_v42 }
 0x5e2   : > { %5679 = vmatpush1.bf16.msra.mxu1 %v5678_v57  ;;  %v2067_v45 = vmul.f32 %v2056_v4, %v6694_v25  ;;  %v2090_v19 = vsel %vm510_vm3, %v7658_v30, %v7613_v37  ;;  %v2095_v21 = vmul.f32 %v2086_v62, %v6736_v27  ;;  %v2096_v6 = vmul.f32 %v2091_v28, %v6766_v13 }
 0x5e3   : > { %v5682_v39 = vpack.c.bf16 %v2036_v1, %v2034_v61  ;;  %v2083_v38 = vpop.permute.xlu1 %2082  ;;  %v7725_v49 = vpop.permute.xlu0 %2116  ;;  %v5680_v48 = vpack.c.bf16 %v2037_v36, %v2035_v12  ;;  %v2094_v11 = vmul.f32 %v2090_v19, %v6766_v13  ;;  %v2105_v4 = vmul.f32 %v7487_v63, %v6780_v16 }
 0x5e4   : > { %v5692_v50 = vpack.c.bf16 %v2097_v17, %v2095_v21  ;;  %v2092_v37 = vsel %vm510_vm3, %v2083_v38, %v7662_v18  ;;  %v2107_v21 = vmul.f32 %v7524_v54, %v6780_v16 }
 0x5e5   : > { %5681 = vmatprep.subr.bf16.mxu1 %v5680_v48  ;;  %v5694_v15 = vpack.c.bf16 %v2096_v6, %v2094_v11  ;;  %v2098_v14 = vmul.f32 %v2092_v37, %v6766_v13  ;;  %v2126_v37 = vsel %vm547_vm4, %v7625_v29, %v7677_v34 }
 0x5e6   : > { %5683 = vmatpush1.bf16.msra.mxu1 %v5682_v39  ;;  %v2088_v39 = vsel %vm510_vm3, %v7662_v18, %v2083_v38 }
 0x5e7   : > { %v7740_v41 = vpop.permute.xlu1 %2114  ;;  %5685 = vmatprep.subr.bf16.mxu1 %v5684_v56  ;;  %v2053_v57 = vpop.permute.xlu0 %2052  ;;  %v2099_v18 = vmul.f32 %v2088_v39, %v6736_v27 }
 0x5e8   : > { %v2057_v44 = vsel %vm488_vm2, %v7664_v24, %v2053_v57  ;;  %v2061_v55 = vsel %vm488_vm2, %v2053_v57, %v7664_v24 }
 0x5e9   : > { %v2068_v2 = vmul.f32 %v2061_v55, %v6701_v42  ;;  %v2069_v61 = vmul.f32 %v2057_v44, %v6694_v25  ;;  %v2103_v44 = vmul.f32 %v7480_v46, %v6780_v16 }
 0x5ea   : > { %5687 = vmatpush1.bf16.msra.mxu1 %v5686_v32 }
 0x5eb   : > { %v5690_v12 = vpack.c.bf16 %v2068_v2, %v2066_v33  ;;  %v2123_v1 = vpop.permute.xlu1 %2122  ;;  %v7762_v36 = vpop.permute.xlu0 %2144  ;;  %v5688_v24 = vpack.c.bf16 %v2069_v61, %v2067_v45  ;;  %v5700_v55 = vpack.c.bf16 %v2105_v4, %v2103_v44  ;;  %v2109_v33 = vmul.f32 %v7531_v22, %v6780_v16 }
 0x5ec   : > { %v2131_v45 = vsel %vm547_vm4, %v7695_v60, %v7635_v40  ;;  %v2102_v2 = vmul.f32 %v7456_v53, %v6804_v35  ;;  %v2132_v4 = vsel %vm547_vm4, %v2123_v1, %v7740_v41 }
 0x5ed   : > { %5689 = vmatprep.subr.bf16.mxu1 %v5688_v24  ;;  %v2127_v24 = vsel %vm547_vm4, %v7635_v40, %v7695_v60  ;;  %v2137_v11 = vmul.f32 %v2131_v45, %v6822_v43  ;;  %v5704_v39 = vpack.c.bf16 %v2109_v33, %v2107_v21 }
 0x5ee   : > { %5691 = vmatpush1.bf16.msra.mxu1 %v5690_v12  ;;  %v2130_v12 = vsel %vm547_vm4, %v7677_v34, %v7625_v29  ;;  %v2136_v60 = vmul.f32 %v2127_v24, %v6839_v8  ;;  %v2134_v34 = vmul.f32 %v2126_v37, %v6839_v8 }
 0x5ef   : > { %v2143_v30 = vpop.permute.xlu1 %2142  ;;  %5693 = vmatprep.subr.bf16.mxu1 %v5692_v50  ;;  %v2085_v48 = vpop.permute.xlu0 %2084  ;;  %v2108_v50 = vmul.f32 %v7509_v52, %v6804_v35 }
 0x5f0   : > { %v2089_v51 = vsel %vm510_vm3, %v7666_v47, %v2085_v48  ;;  %v2093_v56 = vsel %vm510_vm3, %v2085_v48, %v7666_v47  ;;  %v2104_v47 = vmul.f32 %v7461_v5, %v6804_v35  ;;  %v2106_v48 = vmul.f32 %v7502_v59, %v6804_v35 }
 0x5f1   : > { %v2100_v38 = vmul.f32 %v2093_v56, %v6766_v13  ;;  %v2101_v62 = vmul.f32 %v2089_v51, %v6736_v27  ;;  %v2128_v56 = vsel %vm547_vm4, %v7740_v41, %v2123_v1 }
 0x5f2   : > { %5695 = vmatpush1.bf16.msra.mxu1 %v5694_v15  ;;  %v5702_v6 = vpack.c.bf16 %v2104_v47, %v2102_v2  ;;  %v2135_v15 = vmul.f32 %v2130_v12, %v6822_v43  ;;  %v5706_v29 = vpack.c.bf16 %v2108_v50, %v2106_v48 }
 0x5f3   : > { %v5698_v32 = vpack.c.bf16 %v2100_v38, %v2098_v14  ;;  %v2151_v57 = vpop.permute.xlu1 %2150  ;;  %v2153_v28 = vpop.permute.xlu0 %2152  ;;  %v5696_v17 = vpack.c.bf16 %v2101_v62, %v2099_v18  ;;  %v5710_v62 = vpack.c.bf16 %v2136_v60, %v2134_v34 }
 0x5f4   : > { %v5708_v14 = vpack.c.bf16 %v2137_v11, %v2135_v15  ;;  %v2162_v18 = vsel %vm569_vm5, %v2151_v57, %v2143_v30  ;;  %v2163_v38 = vsel %vm569_vm5, %v2153_v28, %v7762_v36  ;;  %v2158_v41 = vsel %vm569_vm5, %v2143_v30, %v2151_v57 }
 0x5f5   : > { %5697 = vmatprep.subr.bf16.mxu1 %v5696_v17  ;;  %v2139_v17 = vmul.f32 %v2132_v4, %v6822_v43  ;;  %v2159_v1 = vsel %vm569_vm5, %v7762_v36, %v2153_v28  ;;  %v2167_v45 = vmul.f32 %v2162_v18, %v6860_v9  ;;  %v2169_v2 = vmul.f32 %v2163_v38, %v6860_v9 }
 0x5f6   : > { %5699 = vmatpush1.bf16.msra.mxu1 %v5698_v32  ;;  %v2138_v32 = vmul.f32 %v2128_v56, %v6839_v8  ;;  %v2166_v57 = vmul.f32 %v2158_v41, %v6870_v31  ;;  %v2168_v36 = vmul.f32 %v2159_v1, %v6870_v31 }
 0x5f7   : > { %v2147_v61 = vpop.permute.xlu1 %2146  ;;  %5701 = vmatprep.subr.bf16.mxu1 %v5700_v55  ;;  %v2149_v19 = vpop.permute.xlu0 %2148  ;;  %v5716_v11 = vpack.c.bf16 %v2169_v2, %v2167_v45 }
 0x5f8   : > { %v5718_v48 = vpack.c.bf16 %v2168_v36, %v2166_v57 }
 0x5fa   : > { %5703 = vmatpush1.bf16.msra.mxu1 %v5702_v6 }
 0x5fb   : > { %v2155_v40 = vpop.permute.xlu1 %2154  ;;  %v2177_v51 = vpop.permute.xlu0 %2176  ;;  %5705 = vmatprep.subr.bf16.mxu1 %v5704_v39 }
 0x5fc   : > { %v2164_v50 = vsel %vm569_vm5, %v2155_v40, %v2147_v61 }
 0x5fd   : > { %v2171_v60 = vmul.f32 %v2164_v50, %v6860_v9 }
 0x5fe   : > { %5707 = vmatpush1.bf16.msra.mxu1 %v5706_v29 }
 0x5ff   : > { %v2175_v44 = vpop.permute.xlu1 %2174  ;;  %v2125_v47 = vpop.permute.xlu0 %2124  ;;  %5709 = vmatprep.subr.bf16.mxu1 %v5708_v14 }
 0x600   : > { %v2129_v55 = vsel %vm547_vm4, %v7725_v49, %v2125_v47  ;;  %v2133_v33 = vsel %vm547_vm4, %v2125_v47, %v7725_v49  ;;  %v2160_v49 = vsel %vm569_vm5, %v2147_v61, %v2155_v40 }
 0x601   : > { %v2140_v21 = vmul.f32 %v2129_v55, %v6839_v8  ;;  %v2141_v30 = vmul.f32 %v2133_v33, %v6822_v43  ;;  %v2170_v15 = vmul.f32 %v2160_v49, %v6870_v31 }
 0x602   : > { %5711 = vmatpush1.bf16.msra.mxu1 %v5710_v62 }
 0x603   : > { %v5714_v28 = vpack.c.bf16 %v2140_v21, %v2138_v32  ;;  %v2183_v12 = vpop.permute.xlu1 %2182  ;;  %v2185_v24 = vpop.permute.xlu0 %2184  ;;  %v5712_v6 = vpack.c.bf16 %v2141_v30, %v2139_v17 }
 0x604   : > { %v2194_v39 = vsel %vm591_vm6, %v2183_v12, %v2175_v44  ;;  %v2195_v37 = vsel %vm591_vm6, %v2185_v24, %v2177_v51  ;;  %v2190_v61 = vsel %vm591_vm6, %v2175_v44, %v2183_v12  ;;  %v2191_v40 = vsel %vm591_vm6, %v2177_v51, %v2185_v24 }
 0x605   : > { %5713 = vmatprep.subr.bf16.mxu1 %v5712_v6  ;;  %v2199_v14 = vmul.f32 %v2194_v39, %v6900_v7  ;;  %v2201_v18 = vmul.f32 %v2195_v37, %v6900_v7  ;;  %v2198_v51 = vmul.f32 %v2190_v61, %v6907_v0  ;;  %v2200_v41 = vmul.f32 %v2191_v40, %v6907_v0  ;;  %v5363_v37 = vld [vmem:[%s6546_s30 + $0xc0] sm:$0xff] }
 0x606   : > { %5715 = vmatpush1.bf16.msra.mxu1 %v5714_v28  ;;  %v10341_v40 = vld [vmem:[#allocation10_spill] sm:$0xff] }
 0x607   : > { %v2179_v56 = vpop.permute.xlu1 %2178  ;;  %v2157_v4 = vpop.permute.xlu0 %2156  ;;  %5717 = vmatprep.subr.bf16.mxu1 %v5716_v11  ;;  %v5724_v1 = vpack.c.bf16 %v2201_v18, %v2199_v14  ;;  %v5726_v2 = vpack.c.bf16 %v2200_v41, %v2198_v51  ;;  %v5366_v18 = vld [vmem:[%s6546_s30 + $0xd8] sm:$0xff]  ;;  %v5369_v41 = vld [vmem:[%s6546_s30 + $0xf0] sm:$0xff] }
 0x608   : > { %v2161_v29 = vsel %vm569_vm5, %v2149_v19, %v2157_v4  ;;  %v2165_v34 = vsel %vm569_vm5, %v2157_v4, %v2149_v19 }
 0x609   : > { %v2172_v38 = vmul.f32 %v2161_v29, %v6870_v31  ;;  %v2173_v62 = vmul.f32 %v2165_v34, %v6860_v9 }
 0x60a   : > { %5719 = vmatpush1.bf16.msra.mxu1 %v5718_v48 }
 0x60b   : > { %v5722_v32 = vpack.c.bf16 %v2172_v38, %v2170_v15  ;;  %v2187_v17 = vpop.permute.xlu1 %2186  ;;  %v2181_v44 = vpop.permute.xlu0 %2180  ;;  %v5720_v47 = vpack.c.bf16 %v2173_v62, %v2171_v60  ;;  %v5367_v60 = vld [vmem:[%s6546_s30 + $0xe0] sm:$0xff] }
 0x60c   : > { %v2192_v19 = vsel %vm591_vm6, %v2179_v56, %v2187_v17  ;;  %v2196_v55 = vsel %vm591_vm6, %v2187_v17, %v2179_v56 }
 0x60d   : > { %5721 = vmatprep.subr.bf16.mxu1 %v5720_v47  ;;  %v2202_v57 = vmul.f32 %v2192_v19, %v6907_v0  ;;  %v2203_v36 = vmul.f32 %v2196_v55, %v6900_v7  ;;  %v5373_v19 = vld [vmem:[%s6546_s30 + $0x110] sm:$0xff] }
 0x60e   : > { %5723 = vmatpush1.bf16.msra.mxu1 %v5722_v32 }
 0x60f   : > { %v2207_v33 = vpop.permute.xlu1 %2206  ;;  %v2189_v45 = vpop.permute.xlu0 %2188  ;;  %5725 = vmatprep.subr.bf16.mxu1 %v5724_v1 }
 0x610   : > { %v2193_v21 = vsel %vm591_vm6, %v2181_v44, %v2189_v45  ;;  %v2197_v30 = vsel %vm591_vm6, %v2189_v45, %v2181_v44  ;;  %v5370_v44 = vld [vmem:[%s6546_s30 + $0xf8] sm:$0xff] }
 0x611   : > { %v2204_v28 = vmul.f32 %v2193_v21, %v6907_v0  ;;  %v2205_v12 = vmul.f32 %v2197_v30, %v6900_v7 }
 0x612   : > { %5727 = vmatpush1.bf16.msra.mxu1 %v5726_v2 }
 0x613   : > { %v5730_v24 = vpack.c.bf16 %v2204_v28, %v2202_v57  ;;  %v2215_v6 = vpop.permute.xlu1 %2214  ;;  %v2209_v49 = vpop.permute.xlu0 %2208  ;;  %v5728_v50 = vpack.c.bf16 %v2205_v12, %v2203_v36  ;;  %v5372_v57 = vld [vmem:[%s6546_s30 + $0x108] sm:$0xff]  ;;  %v10342_v12 = vmov 0.0  }
 0x614   : > { %v2222_v11 = vsel %vm613_vm7, %v2207_v33, %v2215_v6  ;;  %v2226_v39 = vsel %vm613_vm7, %v2215_v6, %v2207_v33  ;;  %v5368_v6 = vld [vmem:[%s6546_s30 + $0xe8] sm:$0xff] }
 0x615   : > { %5729 = vmatprep.subr.bf16.mxu1 %v5728_v50  ;;  %v2230_v61 = vmul.f32 %v2222_v11, %v6943_v23  ;;  %v2231_v29 = vmul.f32 %v2226_v39, %v10341_v40  ;;  %v5374_v50 = vld [vmem:[%s6546_s30 + $0x118] sm:$0xff] }
 0x616   : > { %5731 = vmatpush1.bf16.msra.mxu1 %v5730_v24  ;;  %v5365_v24 = vld [vmem:[%s6546_s30 + $0xd0] sm:$0xff] }
 0x617   : > { %v2211_v48 = vpop.permute.xlu1 %2210  ;;  %v2217_v15 = vpop.permute.xlu0 %2216 }
 0x618   : > { %v2223_v56 = vsel %vm613_vm7, %v2209_v49, %v2217_v15  ;;  %v2227_v4 = vsel %vm613_vm7, %v2217_v15, %v2209_v49  ;;  %v5371_v49 = vld [vmem:[%s6546_s30 + $0x100] sm:$0xff] }
 0x619   : > { %v2232_v34 = vmul.f32 %v2223_v56, %v6943_v23  ;;  %v2233_v14 = vmul.f32 %v2227_v4, %v10341_v40  ;;  %2315 = vmatmul.mubr.f32.vlgmr.msra.gmra.mrb[8].mxu1 %v5363_v37 }
 0x61a   : > { %2320 = vmatprep.mubr.f32.mxu1 %v5367_v60 }
 0x61b   : > { %v5734_v38 = vpack.c.bf16 %v2232_v34, %v2230_v61  ;;  %v2219_v62 = vpop.permute.xlu1 %2218  ;;  %v2213_v32 = vpop.permute.xlu0 %2212  ;;  %v5732_v17 = vpack.c.bf16 %v2233_v14, %v2231_v29 }
 0x61c   : > { %v2224_v47 = vsel %vm613_vm7, %v2211_v48, %v2219_v62  ;;  %v2228_v51 = vsel %vm613_vm7, %v2219_v62, %v2211_v48 }
 0x61d   : > { %2321 = vmatmul.mubr.f32.gmra.mrb[10].mxu1 %v5366_v18  ;;  %5733 = vmatprep.subr.bf16.mxu1 %v5732_v17  ;;  %v2234_v45 = vmul.f32 %v2224_v47, %v6943_v23  ;;  %v2235_v2 = vmul.f32 %v2228_v51, %v10341_v40 }
 0x61e   : > { %5735 = vmatpush1.bf16.msra.mxu1 %v5734_v38  ;;  %2326 = vmatprep.mubr.f32.mxu1 %v5370_v44 }
 0x61f   : > { %v2221_v1 = vpop.permute.xlu0 %2220 }
 0x620   : > { %v2225_v55 = vsel %vm613_vm7, %v2213_v32, %v2221_v1  ;;  %v2229_v33 = vsel %vm613_vm7, %v2221_v1, %v2213_v32 }
 0x621   : > { %v2236_v21 = vmul.f32 %v2225_v55, %v6943_v23  ;;  %v2237_v30 = vmul.f32 %v2229_v33, %v10341_v40  ;;  %2327 = vmatmul.mubr.f32.gmra.mrb[12].mxu1 %v5369_v41 }
 0x622   : > { %2332 = vmatprep.mubr.f32.mxu1 %v5373_v19 }
 0x623   : > { %v5738_v36 = vpack.c.bf16 %v2236_v21, %v2234_v45  ;;  %v5736_v28 = vpack.c.bf16 %v2237_v30, %v2235_v2 }
 0x625   : > { %2333 = vmatmul.mubr.f32.gmra.mrb[14].mxu1 %v5372_v57  ;;  %5737 = vmatprep.subr.bf16.mxu1 %v5736_v28 }
 0x626   : > { %5739 = vmatpush1.bf16.msra.mxu1 %v5738_v36  ;;  %2403 = vmatprep.mubr.f32.mxu1 %v10342_v12 }
 0x629   : > { %5375 = vmatmul.mubr.msk.f32.vlgmr.msra.gmra.mrb[8].mxu1 %vm1149_vm9, %v5365_v24 }
 0x62a   : > { %2409 = vmatprep.mubr.f32.mxu1 %v10342_v12 }
 0x62c   : > { %v2436_v11 = vpop.permute.xlu1 %2435 }
 0x62d   : > { %5376 = vmatmul.mubr.msk.f32.gmra.mrb[10].mxu1 %vm1149_vm9, %v5368_v6 }
 0x62e   : > { %2415 = vmatprep.mubr.f32.mxu1 %v10342_v12 }
 0x630   : > { %v2441_v39 = vpop.permute.xlu0 %2440  ;;  %v2469_v60 = vpop.permute.xlu1 %2468 }
 0x631   : > { %5377 = vmatmul.mubr.msk.f32.gmra.mrb[12].mxu1 %vm1149_vm9, %v5371_v49 }
 0x632   : > { %2421 = vmatprep.mubr.f32.mxu1 %v10342_v12 }
 0x634   : > { %v2474_v14 = vpop.permute.xlu0 %2473  ;;  %v2446_v33 = vpop.permute.xlu1 %2445 }
 0x635   : > { %5378 = vmatmul.mubr.msk.f32.gmra.mrb[14].mxu1 %vm1149_vm9, %v5374_v50 }
 0x638   : > { %v2451_v2 = vpop.permute.xlu0 %2450  ;;  %v2479_v21 = vpop.permute.xlu1 %2478 }
 0x63c   : > { %v2484_v36 = vpop.permute.xlu0 %2483 }
 0x6fc   : > { %v2405_v37 = vpop.f32.mrb[8].mxu1 }
 0x6fd   : > { %v2453_v48 = vmul.f32 %v2436_v11, %v2405_v37  ;;  %v2407_v15 = vpop.f32.mrb[9].mxu1 }
 0x6fe   : > { %v2454_v47 = vmul.f32 %v2436_v11, %v2407_v15  ;;  %v5388_v15 = vld [vmem:[%s6546_s30 + $0x128] sm:$0xff] }
 0x6ff   : > { %v2486_v56 = vadd.f32 %v2469_v60, %v2453_v48  ;;  %2855 = vmatprep.mubr.f32.mxu0 %v5388_v15 }
 0x700   : > { %v2411_v4 = vpop.f32.mrb[10].mxu1  ;;  %v2487_v51 = vadd.f32 %v2469_v60, %v2454_v47 }
 0x701   : > { %v7927_v61 = vmax.f32 %v2486_v56, 0.0  ;;  %v2455_v29 = vmul.f32 %v2441_v39, %v2411_v4  ;;  %v2413_v34 = vpop.f32.mrb[11].mxu1 }
 0x702   : > { %v2456_v41 = vmul.f32 %v2441_v39, %v2413_v34  ;;  %v7949_v1 = vmax.f32 %v2487_v51, 0.0  ;;  %v5405_v51 = vld [vmem:[%s10270_s7 + $0x70] sm:$0xff] }
 0x703   : > { %v2488_v18 = vadd.f32 %v2474_v14, %v2455_v29  ;;  %2515 = vrot.lane.b32.xlu1 %v7927_v61, %s6193_s20 }
 0x704   : > { %v2417_v38 = vpop.f32.mrb[12].mxu1  ;;  %v2489_v19 = vadd.f32 %v2474_v14, %v2456_v41  ;;  %v5403_v14 = vld [vmem:[%s10270_s7 + $0x60] sm:$0xff]  ;;  %v5408_v41 = vld [vmem:[%s10271_s8 + $0x68] sm:$0xff] }
 0x705   : > { %v7931_v62 = vmax.f32 %v2488_v18, 0.0  ;;  %v2419_v32 = vpop.f32.mrb[13].mxu1  ;;  %v2457_v45 = vmul.f32 %v2446_v33, %v2417_v38 }
 0x706   : > { %v7955_v55 = vmax.f32 %v2489_v19, 0.0  ;;  %v2458_v49 = vmul.f32 %v2446_v33, %v2419_v32  ;;  %v5407_v32 = vld [vmem:[%s10271_s8 + $0x60] sm:$0xff] }
 0x707   : > { %2547 = vrot.lane.b32.xlu1 %v7927_v61, %s6192_s19  ;;  %2517 = vrot.lane.b32.xlu0 %v7931_v62, %s6193_s20  ;;  %v2490_v30 = vadd.f32 %v2479_v21, %v2457_v45 }
 0x708   : > { %v2423_v17 = vpop.f32.mrb[14].mxu1  ;;  %v2491_v50 = vadd.f32 %v2479_v21, %v2458_v49  ;;  %v5409_v21 = vld [vmem:[%s10271_s8 + $0x70] sm:$0xff] }
 0x709   : > { %v2425_v44 = vpop.f32.mrb[15].mxu1  ;;  %v2459_v57 = vmul.f32 %v2451_v2, %v2423_v17  ;;  %v7969_v28 = vmax.f32 %v2490_v30, 0.0  ;;  %v5404_v17 = vld [vmem:[%s10270_s7 + $0x68] sm:$0xff] }
 0x70a   : > { %v2460_v11 = vmul.f32 %v2451_v2, %v2425_v44  ;;  %v7989_v39 = vmax.f32 %v2491_v50, 0.0 }
 0x70b   : > { %2579 = vrot.lane.b32.xlu1 %v7927_v61, %s6194_s21  ;;  %2549 = vrot.lane.b32.xlu0 %v7931_v62, %s6192_s19  ;;  %v2492_v24 = vadd.f32 %v2484_v36, %v2459_v57 }
 0x70c   : > { %v2493_v37 = vadd.f32 %v2484_v36, %v2460_v11  ;;  %v5406_v36 = vld [vmem:[%s10270_s7 + $0x78] sm:$0xff] }
 0x70d   : > { %v7975_v6 = vmax.f32 %v2492_v24, 0.0 }
 0x70e   : > { %v7995_v48 = vmax.f32 %v2493_v37, 0.0 }
 0x70f   : > { %2611 = vrot.lane.b32.xlu1 %v7927_v61, %s6195_s22  ;;  %2581 = vrot.lane.b32.xlu0 %v7931_v62, %s6194_s21 }
 0x713   : > { %2651 = vrot.lane.b32.xlu1 %v7927_v61, %s6196_s23  ;;  %2613 = vrot.lane.b32.xlu0 %v7931_v62, %s6195_s22 }
 0x717   : > { %2523 = vrot.lane.b32.xlu1 %v7949_v1, %s6193_s20  ;;  %2653 = vrot.lane.b32.xlu0 %v7931_v62, %s6196_s23 }
 0x71b   : > { %2555 = vrot.lane.b32.xlu1 %v7949_v1, %s6192_s19  ;;  %2525 = vrot.lane.b32.xlu0 %v7955_v55, %s6193_s20 }
 0x71f   : > { %2587 = vrot.lane.b32.xlu1 %v7949_v1, %s6194_s21  ;;  %2557 = vrot.lane.b32.xlu0 %v7955_v55, %s6192_s19 }
 0x723   : > { %2619 = vrot.lane.b32.xlu1 %v7949_v1, %s6195_s22  ;;  %2589 = vrot.lane.b32.xlu0 %v7955_v55, %s6194_s21 }
 0x727   : > { %2621 = vrot.lane.b32.xlu0 %v7955_v55, %s6195_s22  ;;  %2519 = vrot.lane.b32.xlu1 %v7969_v28, %s6193_s20 }
 0x72b   : > { %2551 = vrot.lane.b32.xlu1 %v7969_v28, %s6192_s19  ;;  %2521 = vrot.lane.b32.xlu0 %v7975_v6, %s6193_s20 }
 0x72f   : > { %2583 = vrot.lane.b32.xlu1 %v7969_v28, %s6194_s21  ;;  %2553 = vrot.lane.b32.xlu0 %v7975_v6, %s6192_s19 }
 0x733   : > { %2615 = vrot.lane.b32.xlu1 %v7969_v28, %s6195_s22  ;;  %2585 = vrot.lane.b32.xlu0 %v7975_v6, %s6194_s21 }
 0x737   : > { %2527 = vrot.lane.b32.xlu1 %v7989_v39, %s6193_s20  ;;  %2617 = vrot.lane.b32.xlu0 %v7975_v6, %s6195_s22 }
 0x73b   : > { %2659 = vrot.lane.b32.xlu1 %v7949_v1, %s6196_s23  ;;  %2529 = vrot.lane.b32.xlu0 %v7995_v48, %s6193_s20 }
 0x73f   : > { %2559 = vrot.lane.b32.xlu1 %v7989_v39, %s6192_s19  ;;  %2661 = vrot.lane.b32.xlu0 %v7955_v55, %s6196_s23 }
 0x743   : > { %2591 = vrot.lane.b32.xlu1 %v7989_v39, %s6194_s21  ;;  %2561 = vrot.lane.b32.xlu0 %v7995_v48, %s6192_s19 }
 0x747   : > { %2623 = vrot.lane.b32.xlu1 %v7989_v39, %s6195_s22  ;;  %2657 = vrot.lane.b32.xlu0 %v7975_v6, %s6196_s23 }
 0x74b   : > { %2655 = vrot.lane.b32.xlu1 %v7969_v28, %s6196_s23  ;;  %2593 = vrot.lane.b32.xlu0 %v7995_v48, %s6194_s21 }
 0x74f   : > { %2663 = vrot.lane.b32.xlu1 %v7989_v39, %s6196_s23  ;;  %2685 = vrot.lane.b32.xlu0 %v7931_v62, %s6197_s24 }
 0x753   : > { %2683 = vrot.lane.b32.xlu1 %v7927_v61, %s6197_s24  ;;  %2625 = vrot.lane.b32.xlu0 %v7995_v48, %s6195_s22 }
 0x757   : > { %2691 = vrot.lane.b32.xlu1 %v7949_v1, %s6197_s24  ;;  %2693 = vrot.lane.b32.xlu0 %v7955_v55, %s6197_s24 }
 0x75b   : > { %2687 = vrot.lane.b32.xlu1 %v7969_v28, %s6197_s24  ;;  %2689 = vrot.lane.b32.xlu0 %v7975_v6, %s6197_s24 }
 0x75f   : > { %2695 = vrot.lane.b32.xlu1 %v7989_v39, %s6197_s24  ;;  %2717 = vrot.lane.b32.xlu0 %v7931_v62, %s6199_s25 }
 0x763   : > { %2715 = vrot.lane.b32.xlu1 %v7927_v61, %s6199_s25  ;;  %2665 = vrot.lane.b32.xlu0 %v7995_v48, %s6196_s23 }
 0x767   : > { %2723 = vrot.lane.b32.xlu1 %v7949_v1, %s6199_s25  ;;  %2725 = vrot.lane.b32.xlu0 %v7955_v55, %s6199_s25 }
 0x76b   : > { %2719 = vrot.lane.b32.xlu1 %v7969_v28, %s6199_s25  ;;  %2697 = vrot.lane.b32.xlu0 %v7995_v48, %s6197_s24 }
 0x76f   : > { %2727 = vrot.lane.b32.xlu1 %v7989_v39, %s6199_s25  ;;  %2721 = vrot.lane.b32.xlu0 %v7975_v6, %s6199_s25 }
 0x773   : > { %2747 = vrot.lane.b32.xlu1 %v7927_v61, %s6200_s26  ;;  %2729 = vrot.lane.b32.xlu0 %v7995_v48, %s6199_s25 }
 0x775   : > { %v2516_v60 = vpop.permute.xlu1 %2515 }
 0x777   : > { %2755 = vrot.lane.b32.xlu1 %v7949_v1, %s6200_s26  ;;  %2749 = vrot.lane.b32.xlu0 %v7931_v62, %s6200_s26 }
 0x779   : > { %v8062_v56 = vpop.permute.xlu1 %2547  ;;  %v2518_v4 = vpop.permute.xlu0 %2517 }
 0x77b   : > { %2751 = vrot.lane.b32.xlu1 %v7969_v28, %s6200_s26  ;;  %2757 = vrot.lane.b32.xlu0 %v7955_v55, %s6200_s26 }
 0x77d   : > { %v8068_v29 = vpop.permute.xlu1 %2579  ;;  %v2550_v34 = vpop.permute.xlu0 %2549 }
 0x77f   : > { %2759 = vrot.lane.b32.xlu1 %v7989_v39, %s6200_s26  ;;  %2753 = vrot.lane.b32.xlu0 %v7975_v6, %s6200_s26 }
 0x781   : > { %v8077_v18 = vpop.permute.xlu1 %2611  ;;  %v8079_v38 = vpop.permute.xlu0 %2581 }
 0x783   : > { %2976 = vperm.xlu1 %6182, %v5403_v14   ;;  %2761 = vrot.lane.b32.xlu0 %v7995_v48, %s6200_s26 }
 0x785   : > { %v8089_v44 = vpop.permute.xlu1 %2651  ;;  %v8091_v47 = vpop.permute.xlu0 %2613 }
 0x787   : > { %3009 = vperm.xlu1 %6182, %v5407_v32   ;;  %2981 = vperm.xlu0 %6181, %v5404_v17  }
 0x789   : > { %v2524_v19 = vpop.permute.xlu1 %2523  ;;  %v8099_v33 = vpop.permute.xlu0 %2653 }
 0x78a   : > { %v2531_v45 = vsel %vm445_vm1, %v2516_v60, %v2524_v19  ;;  %v2535_v2 = vsel %vm445_vm1, %v2524_v19, %v2516_v60 }
 0x78b   : > { %2986 = vperm.xlu1 %6182, %v5405_v51   ;;  %3014 = vperm.xlu0 %6181, %v5408_v41   ;;  %v2539_v50 = vmul.f32 %v2535_v2, %v6617_v26  ;;  %v2540_v11 = vmul.f32 %v2531_v45, %v6606_v20  ;;  %v5410_v51 = vld [vmem:[%s10271_s8 + $0x78] sm:$0xff] }
 0x78d   : > { %v2556_v30 = vpop.permute.xlu1 %2555  ;;  %v2526_v57 = vpop.permute.xlu0 %2525 }
 0x78e   : > { %v2532_v24 = vsel %vm445_vm1, %v2518_v4, %v2526_v57  ;;  %v2536_v49 = vsel %vm445_vm1, %v2526_v57, %v2518_v4 }
 0x78f   : > { %v2541_v37 = vmul.f32 %v2536_v49, %v6617_v26  ;;  %v2542_v15 = vmul.f32 %v2532_v24, %v6606_v20  ;;  %3019 = vperm.xlu1 %6182, %v5409_v21   ;;  %2991 = vperm.xlu0 %6181, %v5406_v36  }
 0x791   : > { %v5742_v60 = vpack.c.bf16 %v2541_v37, %v2539_v50  ;;  %v2588_v14 = vpop.permute.xlu1 %2587  ;;  %v2558_v32 = vpop.permute.xlu0 %2557  ;;  %v5740_v17 = vpack.c.bf16 %v2542_v15, %v2540_v11 }
 0x792   : > { %v2564_v37 = vsel %vm466_vm0, %v2550_v34, %v2558_v32  ;;  %v2568_v54 = vsel %vm466_vm0, %v2558_v32, %v2550_v34  ;;  %v2567_v34 = vsel %vm466_vm0, %v2556_v30, %v8062_v56 }
 0x793   : > { %5741 = vmatprep.subr.bf16.mxu0 %v5740_v17  ;;  %3024 = vperm.xlu0 %6181, %v5410_v51   ;;  %v2563_v17 = vsel %vm466_vm0, %v8062_v56, %v2556_v30  ;;  %v2574_v52 = vmul.f32 %v2564_v37, %v6653_v58  ;;  %v2573_v37 = vmul.f32 %v2568_v54, %v6660_v3 }
 0x794   : > { %5743 = vmatpush1.bf16.msra.mxu0 %v5742_v60  ;;  %v2572_v32 = vmul.f32 %v2563_v17, %v6653_v58 }
 0x795   : > { %v8122_v4 = vpop.permute.xlu1 %2619  ;;  %v2590_v41 = vpop.permute.xlu0 %2589 }
 0x799   : > { %v8124_v19 = vpop.permute.xlu0 %2621  ;;  %v2520_v45 = vpop.permute.xlu1 %2519 }
 0x79d   : > { %v2552_v2 = vpop.permute.xlu1 %2551  ;;  %v2522_v21 = vpop.permute.xlu0 %2521 }
 0x7a1   : > { %v2584_v57 = vpop.permute.xlu1 %2583  ;;  %v2554_v36 = vpop.permute.xlu0 %2553 }
 0x7a5   : > { %v8126_v24 = vpop.permute.xlu1 %2615  ;;  %v8128_v49 = vpop.permute.xlu0 %2585 }
 0x7a9   : > { %v2528_v50 = vpop.permute.xlu1 %2527  ;;  %v8130_v11 = vpop.permute.xlu0 %2617 }
 0x7aa   : > { %v2533_v15 = vsel %vm445_vm1, %v2520_v45, %v2528_v50  ;;  %v2537_v60 = vsel %vm445_vm1, %v2528_v50, %v2520_v45 }
 0x7ab   : > { %v2543_v45 = vmul.f32 %v2537_v60, %v6617_v26  ;;  %v2544_v50 = vmul.f32 %v2533_v15, %v6606_v20  ;;  %v2600_v60 = vsel %vm488_vm2, %v2590_v41, %v8079_v38 }
 0x7ad   : > { %v8141_v51 = vpop.permute.xlu1 %2659  ;;  %v2530_v22 = vpop.permute.xlu0 %2529 }
 0x7ae   : > { %v2534_v59 = vsel %vm445_vm1, %v2522_v21, %v2530_v22  ;;  %v2538_v63 = vsel %vm445_vm1, %v2530_v22, %v2522_v21  ;;  %v2571_v21 = vmul.f32 %v2567_v34, %v6660_v3  ;;  %v2605_v34 = vmul.f32 %v2600_v60, %v6701_v42 }
 0x7af   : > { %v2545_v46 = vmul.f32 %v2538_v63, %v6617_v26  ;;  %v2546_v5 = vmul.f32 %v2534_v59, %v6606_v20  ;;  %v2596_v63 = vsel %vm488_vm2, %v8079_v38, %v2590_v41  ;;  %v5748_v59 = vpack.c.bf16 %v2574_v52, %v2572_v32 }
 0x7b0   : > { %v2606_v52 = vmul.f32 %v2596_v63, %v6694_v25  ;;  %v2599_v38 = vsel %vm488_vm2, %v2588_v14, %v8068_v29  ;;  %v2628_v63 = vsel %vm510_vm3, %v8091_v47, %v8124_v19 }
 0x7b1   : > { %v5746_v53 = vpack.c.bf16 %v2545_v46, %v2543_v45  ;;  %v2560_v12 = vpop.permute.xlu1 %2559  ;;  %v8159_v40 = vpop.permute.xlu0 %2661  ;;  %v5744_v22 = vpack.c.bf16 %v2546_v5, %v2544_v50  ;;  %v2595_v46 = vsel %vm488_vm2, %v8068_v29, %v2588_v14  ;;  %v5750_v5 = vpack.c.bf16 %v2573_v37, %v2571_v21 }
 0x7b2   : > { %v2565_v56 = vsel %vm466_vm0, %v2552_v2, %v2560_v12  ;;  %v2569_v30 = vsel %vm466_vm0, %v2560_v12, %v2552_v2  ;;  %v2604_v41 = vmul.f32 %v2595_v46, %v6694_v25  ;;  %v2603_v21 = vmul.f32 %v2599_v38, %v6701_v42 }
 0x7b3   : > { %5745 = vmatprep.subr.bf16.mxu0 %v5744_v22  ;;  %v2575_v12 = vmul.f32 %v2569_v30, %v6660_v3  ;;  %v2576_v2 = vmul.f32 %v2565_v56, %v6653_v58  ;;  %v2627_v56 = vsel %vm510_vm3, %v8077_v18, %v8122_v4  ;;  %v2638_v60 = vmul.f32 %v2628_v63, %v6736_v27 }
 0x7b4   : > { %5747 = vmatpush1.bf16.msra.mxu0 %v5746_v53  ;;  %v5758_v30 = vpack.c.bf16 %v2605_v34, %v2603_v21 }
 0x7b5   : > { %v2592_v54 = vpop.permute.xlu1 %2591  ;;  %5749 = vmatprep.subr.bf16.mxu0 %v5748_v59  ;;  %v2562_v15 = vpop.permute.xlu0 %2561  ;;  %v5756_v59 = vpack.c.bf16 %v2606_v52, %v2604_v41 }
 0x7b6   : > { %v2566_v17 = vsel %vm466_vm0, %v2554_v36, %v2562_v15  ;;  %v2570_v53 = vsel %vm466_vm0, %v2562_v15, %v2554_v36  ;;  %v2597_v29 = vsel %vm488_vm2, %v2584_v57, %v2592_v54  ;;  %v2601_v14 = vsel %vm488_vm2, %v2592_v54, %v2584_v57 }
 0x7b7   : > { %v2577_v45 = vmul.f32 %v2570_v53, %v6660_v3  ;;  %v2578_v50 = vmul.f32 %v2566_v17, %v6653_v58  ;;  %v2632_v15 = vsel %vm510_vm3, %v8124_v19, %v8091_v47  ;;  %v2607_v52 = vmul.f32 %v2601_v14, %v6701_v42 }
 0x7b8   : > { %5751 = vmatpush1.bf16.msra.mxu0 %v5750_v5  ;;  %v2608_v17 = vmul.f32 %v2597_v29, %v6694_v25  ;;  %v2631_v47 = vsel %vm510_vm3, %v8122_v4, %v8077_v18  ;;  %v2636_v19 = vmul.f32 %v2627_v56, %v6736_v27  ;;  %v2637_v38 = vmul.f32 %v2632_v15, %v6766_v13 }
 0x7b9   : > { %v5754_v32 = vpack.c.bf16 %v2577_v45, %v2575_v12  ;;  %v2624_v37 = vpop.permute.xlu1 %2623  ;;  %v8189_v36 = vpop.permute.xlu0 %2657  ;;  %v5752_v22 = vpack.c.bf16 %v2578_v50, %v2576_v2  ;;  %v2635_v34 = vmul.f32 %v2631_v47, %v6766_v13  ;;  %v2646_v29 = vmul.f32 %v7955_v55, %v6780_v16 }
 0x7ba   : > { %v5764_v41 = vpack.c.bf16 %v2638_v60, %v2636_v19  ;;  %v2633_v18 = vsel %vm510_vm3, %v2624_v37, %v8126_v24 }
 0x7bb   : > { %5753 = vmatprep.subr.bf16.mxu0 %v5752_v22  ;;  %v5766_v21 = vpack.c.bf16 %v2637_v38, %v2635_v34  ;;  %v2639_v14 = vmul.f32 %v2633_v18, %v6766_v13 }
 0x7bc   : > { %5755 = vmatpush1.bf16.msra.mxu0 %v5754_v32  ;;  %v2629_v32 = vsel %vm510_vm3, %v8126_v24, %v2624_v37 }
 0x7bd   : > { %v8204_v46 = vpop.permute.xlu1 %2655  ;;  %5757 = vmatprep.subr.bf16.mxu0 %v5756_v59  ;;  %v2594_v5 = vpop.permute.xlu0 %2593  ;;  %v2640_v24 = vmul.f32 %v2629_v32, %v6736_v27 }
 0x7be   : > { %v2598_v57 = vsel %vm488_vm2, %v8128_v49, %v2594_v5  ;;  %v2602_v54 = vsel %vm488_vm2, %v2594_v5, %v8128_v49 }
 0x7bf   : > { %v2609_v53 = vmul.f32 %v2602_v54, %v6701_v42  ;;  %v2610_v12 = vmul.f32 %v2598_v57, %v6694_v25  ;;  %v2644_v57 = vmul.f32 %v7949_v1, %v6780_v16  ;;  %v2650_v54 = vmul.f32 %v7995_v48, %v6780_v16 }
 0x7c0   : > { %5759 = vmatpush1.bf16.msra.mxu0 %v5758_v30  ;;  %v2671_v48 = vsel %vm547_vm4, %v8141_v51, %v8089_v44 }
 0x7c1   : > { %v5762_v2 = vpack.c.bf16 %v2609_v53, %v2607_v52  ;;  %v2664_v45 = vpop.permute.xlu1 %2663  ;;  %v8226_v50 = vpop.permute.xlu0 %2685  ;;  %v5760_v49 = vpack.c.bf16 %v2610_v12, %v2608_v17  ;;  %v5772_v55 = vpack.c.bf16 %v2646_v29, %v2644_v57  ;;  %v2672_v52 = vsel %vm547_vm4, %v8159_v40, %v8099_v33 }
 0x7c2   : > { %v2643_v17 = vmul.f32 %v7927_v61, %v6804_v35  ;;  %v2668_v12 = vsel %vm547_vm4, %v8099_v33, %v8159_v40  ;;  %v2649_v61 = vmul.f32 %v7975_v6, %v6804_v35  ;;  %v2678_v19 = vmul.f32 %v2672_v52, %v6822_v43 }
 0x7c3   : > { %5761 = vmatprep.subr.bf16.mxu0 %v5760_v49  ;;  %v2647_v49 = vmul.f32 %v7969_v28, %v6804_v35  ;;  %v2676_v38 = vmul.f32 %v2671_v48, %v6822_v43  ;;  %v2677_v40 = vmul.f32 %v2668_v12, %v6839_v8  ;;  %v2669_v6 = vsel %vm547_vm4, %v8204_v46, %v2664_v45 }
 0x7c4   : > { %5763 = vmatpush1.bf16.msra.mxu0 %v5762_v2  ;;  %v2673_v34 = vsel %vm547_vm4, %v2664_v45, %v8204_v46 }
 0x7c5   : > { %v2684_v4 = vpop.permute.xlu1 %2683  ;;  %5765 = vmatprep.subr.bf16.mxu0 %v5764_v41  ;;  %v2626_v22 = vpop.permute.xlu0 %2625  ;;  %v5780_v32 = vpack.c.bf16 %v2678_v19, %v2676_v38 }
 0x7c6   : > { %v2630_v63 = vsel %vm510_vm3, %v8130_v11, %v2626_v22  ;;  %v2634_v59 = vsel %vm510_vm3, %v2626_v22, %v8130_v11  ;;  %v2645_v11 = vmul.f32 %v7931_v62, %v6804_v35  ;;  %v2648_v62 = vmul.f32 %v7989_v39, %v6780_v16 }
 0x7c7   : > { %v2641_v37 = vmul.f32 %v2634_v59, %v6766_v13  ;;  %v2642_v56 = vmul.f32 %v2630_v63, %v6736_v27  ;;  %v2667_v39 = vsel %vm547_vm4, %v8089_v44, %v8141_v51  ;;  %v5778_v44 = vpack.c.bf16 %v2649_v61, %v2647_v49 }
 0x7c8   : > { %5767 = vmatpush1.bf16.msra.mxu0 %v5766_v21  ;;  %v5774_v47 = vpack.c.bf16 %v2645_v11, %v2643_v17  ;;  %v5776_v2 = vpack.c.bf16 %v2650_v54, %v2648_v62  ;;  %v2675_v51 = vmul.f32 %v2667_v39, %v6839_v8  ;;  %v2679_v21 = vmul.f32 %v2669_v6, %v6839_v8 }
 0x7c9   : > { %v5770_v30 = vpack.c.bf16 %v2641_v37, %v2639_v14  ;;  %v2692_v5 = vpop.permute.xlu1 %2691  ;;  %v2694_v15 = vpop.permute.xlu0 %2693  ;;  %v5768_v60 = vpack.c.bf16 %v2642_v56, %v2640_v24  ;;  %v2680_v63 = vmul.f32 %v2673_v34, %v6822_v43 }
 0x7ca   : > { %v2703_v28 = vsel %vm569_vm5, %v2692_v5, %v2684_v4  ;;  %v2704_v18 = vsel %vm569_vm5, %v2694_v15, %v8226_v50  ;;  %v5782_v22 = vpack.c.bf16 %v2677_v40, %v2675_v51  ;;  %v2699_v46 = vsel %vm569_vm5, %v2684_v4, %v2692_v5 }
 0x7cb   : > { %5769 = vmatprep.subr.bf16.mxu0 %v5768_v60  ;;  %v2700_v45 = vsel %vm569_vm5, %v8226_v50, %v2694_v15  ;;  %v2708_v37 = vmul.f32 %v2703_v28, %v6860_v9  ;;  %v2710_v56 = vmul.f32 %v2704_v18, %v6860_v9  ;;  %v2707_v5 = vmul.f32 %v2699_v46, %v6870_v31 }
 0x7cc   : > { %5771 = vmatpush1.bf16.msra.mxu0 %v5770_v30  ;;  %v2709_v50 = vmul.f32 %v2700_v45, %v6870_v31 }
 0x7cd   : > { %v2688_v53 = vpop.permute.xlu1 %2687  ;;  %5773 = vmatprep.subr.bf16.mxu0 %v5772_v55  ;;  %v2690_v1 = vpop.permute.xlu0 %2689  ;;  %v5788_v54 = vpack.c.bf16 %v2710_v56, %v2708_v37 }
 0x7ce   : > { %v5790_v62 = vpack.c.bf16 %v2709_v50, %v2707_v5 }
 0x7d0   : > { %5775 = vmatpush1.bf16.msra.mxu0 %v5774_v47 }
 0x7d1   : > { %v2696_v33 = vpop.permute.xlu1 %2695  ;;  %v2718_v41 = vpop.permute.xlu0 %2717  ;;  %5777 = vmatprep.subr.bf16.mxu0 %v5776_v2 }
 0x7d2   : > { %v2705_v55 = vsel %vm569_vm5, %v2696_v33, %v2688_v53 }
 0x7d3   : > { %v2712_v12 = vmul.f32 %v2705_v55, %v6860_v9 }
 0x7d4   : > { %5779 = vmatpush1.bf16.msra.mxu0 %v5778_v44 }
 0x7d5   : > { %v2716_v59 = vpop.permute.xlu1 %2715  ;;  %v2666_v29 = vpop.permute.xlu0 %2665  ;;  %5781 = vmatprep.subr.bf16.mxu0 %v5780_v32 }
 0x7d6   : > { %v2670_v14 = vsel %vm547_vm4, %v8189_v36, %v2666_v29  ;;  %v2674_v24 = vsel %vm547_vm4, %v2666_v29, %v8189_v36  ;;  %v2701_v36 = vsel %vm569_vm5, %v2688_v53, %v2696_v33 }
 0x7d7   : > { %v2681_v30 = vmul.f32 %v2670_v14, %v6839_v8  ;;  %v2682_v4 = vmul.f32 %v2674_v24, %v6822_v43  ;;  %v2711_v48 = vmul.f32 %v2701_v36, %v6870_v31 }
 0x7d8   : > { %5783 = vmatpush1.bf16.msra.mxu0 %v5782_v22 }
 0x7d9   : > { %v5786_v15 = vpack.c.bf16 %v2681_v30, %v2679_v21  ;;  %v2724_v60 = vpop.permute.xlu1 %2723  ;;  %v2726_v57 = vpop.permute.xlu0 %2725  ;;  %v5784_v11 = vpack.c.bf16 %v2682_v4, %v2680_v63 }
 0x7da   : > { %v2735_v52 = vsel %vm591_vm6, %v2724_v60, %v2716_v59  ;;  %v2736_v17 = vsel %vm591_vm6, %v2726_v57, %v2718_v41  ;;  %v2731_v53 = vsel %vm591_vm6, %v2716_v59, %v2724_v60  ;;  %v2732_v19 = vsel %vm591_vm6, %v2718_v41, %v2726_v57 }
 0x7db   : > { %5785 = vmatprep.subr.bf16.mxu0 %v5784_v11  ;;  %v2740_v49 = vmul.f32 %v2735_v52, %v6900_v7  ;;  %v2742_v38 = vmul.f32 %v2736_v17, %v6900_v7  ;;  %v2739_v41 = vmul.f32 %v2731_v53, %v6907_v0  ;;  %v2741_v32 = vmul.f32 %v2732_v19, %v6907_v0  ;;  %v5391_v11 = vld [vmem:[%s6546_s30 + $0x140] sm:$0xff] }
 0x7dc   : > { %5787 = vmatpush1.bf16.msra.mxu0 %v5786_v15  ;;  %v5387_v15 = vld [vmem:[%s6546_s30 + $0x120] sm:$0xff] }
 0x7dd   : > { %v2720_v47 = vpop.permute.xlu1 %2719  ;;  %v2698_v61 = vpop.permute.xlu0 %2697  ;;  %5789 = vmatprep.subr.bf16.mxu0 %v5788_v54  ;;  %v5796_v28 = vpack.c.bf16 %v2742_v38, %v2740_v49  ;;  %v5798_v63 = vpack.c.bf16 %v2741_v32, %v2739_v41  ;;  %v10343_v52 = vld [vmem:[#allocation10_spill] sm:$0xff]  ;;  %v5393_v38 = vld [vmem:[%s6546_s30 + $0x150] sm:$0xff] }
 0x7de   : > { %v2702_v2 = vsel %vm569_vm5, %v2690_v1, %v2698_v61  ;;  %v2706_v39 = vsel %vm569_vm5, %v2698_v61, %v2690_v1 }
 0x7df   : > { %v2713_v40 = vmul.f32 %v2702_v2, %v6870_v31  ;;  %v2714_v33 = vmul.f32 %v2706_v39, %v6860_v9  ;;  %v5394_v2 = vld [vmem:[%s6546_s30 + $0x158] sm:$0xff] }
 0x7e0   : > { %5791 = vmatpush1.bf16.msra.mxu0 %v5790_v62 }
 0x7e1   : > { %v5794_v6 = vpack.c.bf16 %v2713_v40, %v2711_v48  ;;  %v2728_v34 = vpop.permute.xlu1 %2727  ;;  %v2722_v44 = vpop.permute.xlu0 %2721  ;;  %v5792_v51 = vpack.c.bf16 %v2714_v33, %v2712_v12  ;;  %v5390_v12 = vld [vmem:[%s6546_s30 + $0x138] sm:$0xff]  ;;  %v5397_v33 = vld [vmem:[%s6546_s30 + $0x170] sm:$0xff] }
 0x7e2   : > { %v2733_v1 = vsel %vm591_vm6, %v2720_v47, %v2728_v34  ;;  %v2737_v18 = vsel %vm591_vm6, %v2728_v34, %v2720_v47 }
 0x7e3   : > { %5793 = vmatprep.subr.bf16.mxu0 %v5792_v51  ;;  %v2743_v46 = vmul.f32 %v2733_v1, %v6907_v0  ;;  %v2744_v45 = vmul.f32 %v2737_v18, %v6900_v7 }
 0x7e4   : > { %5795 = vmatpush1.bf16.msra.mxu0 %v5794_v6 }
 0x7e5   : > { %v2748_v22 = vpop.permute.xlu1 %2747  ;;  %v2730_v21 = vpop.permute.xlu0 %2729  ;;  %5797 = vmatprep.subr.bf16.mxu0 %v5796_v28  ;;  %v5396_v28 = vld [vmem:[%s6546_s30 + $0x168] sm:$0xff] }
 0x7e6   : > { %v2734_v59 = vsel %vm591_vm6, %v2722_v44, %v2730_v21  ;;  %v2738_v29 = vsel %vm591_vm6, %v2730_v21, %v2722_v44  ;;  %v5389_v21 = vld [vmem:[%s6546_s30 + $0x130] sm:$0xff] }
 0x7e7   : > { %v2745_v14 = vmul.f32 %v2734_v59, %v6907_v0  ;;  %v2746_v24 = vmul.f32 %v2738_v29, %v6900_v7  ;;  %v5395_v59 = vld [vmem:[%s6546_s30 + $0x160] sm:$0xff]  ;;  %v5398_v29 = vld [vmem:[%s6546_s30 + $0x178] sm:$0xff] }
 0x7e8   : > { %5799 = vmatpush1.bf16.msra.mxu0 %v5798_v63  ;;  %v5392_v63 = vld [vmem:[%s6546_s30 + $0x148] sm:$0xff] }
 0x7e9   : > { %v5802_v37 = vpack.c.bf16 %v2745_v14, %v2743_v46  ;;  %v2756_v56 = vpop.permute.xlu1 %2755  ;;  %v2750_v30 = vpop.permute.xlu0 %2749  ;;  %v5800_v4 = vpack.c.bf16 %v2746_v24, %v2744_v45 }
 0x7ea   : > { %v2763_v5 = vsel %vm613_vm7, %v2748_v22, %v2756_v56  ;;  %v2767_v50 = vsel %vm613_vm7, %v2756_v56, %v2748_v22  ;;  %v10344_v22 = vmov 0.0  }
 0x7eb   : > { %5801 = vmatprep.subr.bf16.mxu0 %v5800_v4  ;;  %v2771_v54 = vmul.f32 %v2763_v5, %v6943_v23  ;;  %v2772_v17 = vmul.f32 %v2767_v50, %v10343_v52 }
 0x7ec   : > { %5803 = vmatpush1.bf16.msra.mxu0 %v5802_v37 }
 0x7ed   : > { %v2752_v60 = vpop.permute.xlu1 %2751  ;;  %v2758_v57 = vpop.permute.xlu0 %2757 }
 0x7ee   : > { %v2764_v36 = vsel %vm613_vm7, %v2750_v30, %v2758_v57  ;;  %v2768_v55 = vsel %vm613_vm7, %v2758_v57, %v2750_v30  ;;  %v10345_v57 = vld [vmem:[#allocation2_spill] sm:$0xff] }
 0x7ef   : > { %v2773_v62 = vmul.f32 %v2764_v36, %v6943_v23  ;;  %v2774_v48 = vmul.f32 %v2768_v55, %v10343_v52  ;;  %2856 = vmatmul.mubr.f32.vlgmr.msra.gmra.mrb[16].mxu0 %v5387_v15 }
 0x7f0   : > { %2861 = vmatprep.mubr.f32.mxu0 %v5391_v11 }
 0x7f1   : > { %v5806_v47 = vpack.c.bf16 %v2773_v62, %v2771_v54  ;;  %v2760_v61 = vpop.permute.xlu1 %2759  ;;  %v2754_v53 = vpop.permute.xlu0 %2753  ;;  %v5804_v19 = vpack.c.bf16 %v2774_v48, %v2772_v17  ;;  %v10347_v62 = vld [vmem:[#allocation3_spill] sm:$0xff] }
 0x7f2   : > { %v2765_v39 = vsel %vm613_vm7, %v2752_v60, %v2760_v61  ;;  %v2769_v49 = vsel %vm613_vm7, %v2760_v61, %v2752_v60 }
 0x7f3   : > { %2862 = vmatmul.mubr.f32.gmra.mrb[18].mxu0 %v5390_v12  ;;  %5805 = vmatprep.subr.bf16.mxu0 %v5804_v19  ;;  %v2775_v44 = vmul.f32 %v2765_v39, %v6943_v23  ;;  %v2776_v51 = vmul.f32 %v2769_v49, %v10343_v52  ;;  %v10349_v49 = vld [vmem:[#allocation4_spill] sm:$0xff] }
 0x7f4   : > { %5807 = vmatpush1.bf16.msra.mxu0 %v5806_v47  ;;  %2867 = vmatprep.mubr.f32.mxu0 %v5394_v2 }
 0x7f5   : > { %v2762_v40 = vpop.permute.xlu0 %2761 }
 0x7f6   : > { %v2766_v6 = vsel %vm613_vm7, %v2754_v53, %v2762_v40  ;;  %v2770_v34 = vsel %vm613_vm7, %v2762_v40, %v2754_v53 }
 0x7f7   : > { %v2777_v41 = vmul.f32 %v2766_v6, %v6943_v23  ;;  %v2778_v32 = vmul.f32 %v2770_v34, %v10343_v52  ;;  %2868 = vmatmul.mubr.f32.gmra.mrb[20].mxu0 %v5393_v38  ;;  %v10351_v6 = vld [vmem:[#allocation5_spill] sm:$0xff] }
 0x7f8   : > { %2873 = vmatprep.mubr.f32.mxu0 %v5397_v33 }
 0x7f9   : > { %v5810_v1 = vpack.c.bf16 %v2777_v41, %v2775_v44  ;;  %v5808_v18 = vpack.c.bf16 %v2778_v32, %v2776_v51 }
 0x7fb   : > { %2874 = vmatmul.mubr.f32.gmra.mrb[22].mxu0 %v5396_v28  ;;  %5809 = vmatprep.subr.bf16.mxu0 %v5808_v18 }
 0x7fc   : > { %5811 = vmatpush1.bf16.msra.mxu0 %v5810_v1  ;;  %2944 = vmatprep.mubr.f32.mxu0 %v10344_v22 }
 0x7ff   : > { %5399 = vmatmul.mubr.msk.f32.vlgmr.msra.gmra.mrb[16].mxu0 %vm1149_vm9, %v5389_v21 }
 0x800   : > { %2950 = vmatprep.mubr.f32.mxu0 %v10344_v22 }
 0x802   : > { %v2977_v46 = vpop.permute.xlu1 %2976 }
 0x803   : > { %5400 = vmatmul.mubr.msk.f32.gmra.mrb[18].mxu0 %vm1149_vm9, %v5392_v63  ;;  %v10353_v63 = vld [vmem:[#allocation6_spill] sm:$0xff] }
 0x804   : > { %2956 = vmatprep.mubr.f32.mxu0 %v10344_v22 }
 0x806   : > { %v2982_v45 = vpop.permute.xlu0 %2981  ;;  %v3010_v56 = vpop.permute.xlu1 %3009 }
 0x807   : > { %5401 = vmatmul.mubr.msk.f32.gmra.mrb[20].mxu0 %vm1149_vm9, %v5395_v59 }
 0x808   : > { %2962 = vmatprep.mubr.f32.mxu0 %v10344_v22 }
 0x80a   : > { %v3015_v60 = vpop.permute.xlu0 %3014  ;;  %v2987_v33 = vpop.permute.xlu1 %2986 }
 0x80b   : > { %5402 = vmatmul.mubr.msk.f32.gmra.mrb[22].mxu0 %vm1149_vm9, %v5398_v29 }
 0x80e   : > { %v2992_v51 = vpop.permute.xlu0 %2991  ;;  %v3020_v41 = vpop.permute.xlu1 %3019 }
 0x812   : > { %v3025_v1 = vpop.permute.xlu0 %3024 }
 0x8d2   : > { %v2946_v14 = vpop.f32.mrb[16].mxu0 }
 0x8d3   : > { %v2994_v24 = vmul.f32 %v2977_v46, %v2946_v14  ;;  %v2948_v37 = vpop.f32.mrb[17].mxu0 }
 0x8d4   : > { %v2995_v61 = vmul.f32 %v2977_v46, %v2948_v37 }
 0x8d5   : > { %v3027_v30 = vadd.f32 %v3010_v56, %v2994_v24 }
 0x8d6   : > { %v2952_v4 = vpop.f32.mrb[18].mxu0  ;;  %v3028_v53 = vadd.f32 %v3010_v56, %v2995_v61 }
 0x8d7   : > { %v3035_v5 = vmul.f32 0.1, %v3027_v30  ;;  %v2996_v50 = vmul.f32 %v2982_v45, %v2952_v4  ;;  %v2954_v15 = vpop.f32.mrb[19].mxu0  ;;  %v10357_v4 = vld [vmem:[#allocation8_spill] sm:$0xff] }
 0x8d8   : > { %v2997_v19 = vmul.f32 %v2982_v45, %v2954_v15  ;;  %v3036_v2 = vmul.f32 0.1, %v3028_v53  ;;  %v10355_v45 = vld [vmem:[#allocation7_spill] sm:$0xff]  ;;  %v10359_v15 = vld [vmem:[#allocation9_spill] sm:$0xff]  ;;  %v5431_v53 = vld [vmem:[%s10271_s8 + $0x80] sm:$0xff] }
 0x8d9   : > { %v8392_v11 = vadd.f32 %v3035_v5, %v10345_v57  ;;  %v3029_v36 = vadd.f32 %v3015_v60, %v2996_v50  ;;  %v5412_v57 = vld [vmem:[%s6546_s30 + $0x188] sm:$0xff] }
 0x8da   : > { %v2958_v55 = vpop.f32.mrb[20].mxu0  ;;  %v3030_v39 = vadd.f32 %v3015_v60, %v2997_v19  ;;  %v8416_v38 = vadd.f32 %v3036_v2, %v10349_v49  ;;  %3404 = vmatprep.mubr.f32.mxu1 %v5412_v57  ;;  %v5428_v19 = vld [vmem:[%s10270_s7 + $0x88] sm:$0xff]  ;;  %v5429_v49 = vld [vmem:[%s10270_s7 + $0x90] sm:$0xff] }
 0x8db   : > { %10346 = vst [vmem:[#allocation2_spill] sm:$0xff] %v8392_v11  ;;  %v3037_v54 = vmul.f32 0.1, %v3029_v36  ;;  %3064 = vrot.lane.b32.xlu1 %v8392_v11, %s6193_s20  ;;  %v2960_v17 = vpop.f32.mrb[21].mxu0  ;;  %v2998_v44 = vmul.f32 %v2987_v33, %v2958_v55 }
 0x8dc   : > { %10350 = vst [vmem:[#allocation4_spill] sm:$0xff] %v8416_v38  ;;  %v3038_v40 = vmul.f32 0.1, %v3030_v39  ;;  %v2999_v46 = vmul.f32 %v2987_v33, %v2960_v17 }
 0x8dd   : > { %v8397_v48 = vadd.f32 %v3037_v54, %v10347_v62  ;;  %v3031_v32 = vadd.f32 %v3020_v41, %v2998_v44 }
 0x8de   : > { %v2964_v12 = vpop.f32.mrb[22].mxu0  ;;  %v8423_v34 = vadd.f32 %v3038_v40, %v10351_v6  ;;  %v3032_v24 = vadd.f32 %v3020_v41, %v2999_v46  ;;  %v5432_v40 = vld [vmem:[%s10271_s8 + $0x88] sm:$0xff]  ;;  %v5433_v41 = vld [vmem:[%s10271_s8 + $0x90] sm:$0xff] }
 0x8df   : > { %10348 = vst [vmem:[#allocation3_spill] sm:$0xff] %v8397_v48  ;;  %3096 = vrot.lane.b32.xlu1 %v8392_v11, %s6192_s19  ;;  %3066 = vrot.lane.b32.xlu0 %v8397_v48, %s6193_s20  ;;  %v2966_v47 = vpop.f32.mrb[23].mxu0  ;;  %v3000_v28 = vmul.f32 %v2992_v51, %v2964_v12  ;;  %v3039_v18 = vmul.f32 0.1, %v3031_v32  ;;  %v5427_v12 = vld [vmem:[%s10270_s7 + $0x80] sm:$0xff] }
 0x8e0   : > { %10352 = vst [vmem:[#allocation5_spill] sm:$0xff] %v8423_v34  ;;  %v3001_v37 = vmul.f32 %v2992_v51, %v2966_v47  ;;  %v3040_v56 = vmul.f32 0.1, %v3032_v24 }
 0x8e1   : > { %v3033_v21 = vadd.f32 %v3025_v1, %v3000_v28  ;;  %v8438_v59 = vadd.f32 %v3039_v18, %v10353_v63 }
 0x8e2   : > { %v3034_v30 = vadd.f32 %v3025_v1, %v3001_v37  ;;  %v8460_v5 = vadd.f32 %v3040_v56, %v10357_v4  ;;  %v5430_v1 = vld [vmem:[%s10270_s7 + $0x98] sm:$0xff] }
 0x8e3   : > { %3128 = vrot.lane.b32.xlu1 %v8392_v11, %s6194_s21  ;;  %3098 = vrot.lane.b32.xlu0 %v8397_v48, %s6192_s19  ;;  %10354 = vst [vmem:[#allocation6_spill] sm:$0xff] %v8438_v59  ;;  %v3041_v29 = vmul.f32 0.1, %v3033_v21  ;;  %v5434_v4 = vld [vmem:[%s10271_s8 + $0x98] sm:$0xff] }
 0x8e4   : > { %10358 = vst [vmem:[#allocation8_spill] sm:$0xff] %v8460_v5  ;;  %v3042_v50 = vmul.f32 0.1, %v3034_v30 }
 0x8e5   : > { %v8445_v14 = vadd.f32 %v3041_v29, %v10355_v45 }
 0x8e6   : > { %v8467_v60 = vadd.f32 %v3042_v50, %v10359_v15 }
 0x8e7   : > { %3160 = vrot.lane.b32.xlu1 %v8392_v11, %s6195_s22  ;;  %3130 = vrot.lane.b32.xlu0 %v8397_v48, %s6194_s21  ;;  %10356 = vst [vmem:[#allocation7_spill] sm:$0xff] %v8445_v14 }
 0x8e8   : > { %10360 = vst [vmem:[#allocation9_spill] sm:$0xff] %v8467_v60 }
 0x8eb   : > { %3200 = vrot.lane.b32.xlu1 %v8392_v11, %s6196_s23  ;;  %3162 = vrot.lane.b32.xlu0 %v8397_v48, %s6195_s22 }
 0x8ef   : > { %3072 = vrot.lane.b32.xlu1 %v8416_v38, %s6193_s20  ;;  %3202 = vrot.lane.b32.xlu0 %v8397_v48, %s6196_s23 }
 0x8f3   : > { %3104 = vrot.lane.b32.xlu1 %v8416_v38, %s6192_s19  ;;  %3074 = vrot.lane.b32.xlu0 %v8423_v34, %s6193_s20 }
 0x8f7   : > { %3136 = vrot.lane.b32.xlu1 %v8416_v38, %s6194_s21  ;;  %3106 = vrot.lane.b32.xlu0 %v8423_v34, %s6192_s19 }
 0x8fb   : > { %3168 = vrot.lane.b32.xlu1 %v8416_v38, %s6195_s22  ;;  %3138 = vrot.lane.b32.xlu0 %v8423_v34, %s6194_s21 }
 0x8ff   : > { %3170 = vrot.lane.b32.xlu0 %v8423_v34, %s6195_s22  ;;  %3068 = vrot.lane.b32.xlu1 %v8438_v59, %s6193_s20 }
 0x903   : > { %3100 = vrot.lane.b32.xlu1 %v8438_v59, %s6192_s19  ;;  %3070 = vrot.lane.b32.xlu0 %v8445_v14, %s6193_s20 }
 0x907   : > { %3132 = vrot.lane.b32.xlu1 %v8438_v59, %s6194_s21  ;;  %3102 = vrot.lane.b32.xlu0 %v8445_v14, %s6192_s19 }
 0x90b   : > { %3164 = vrot.lane.b32.xlu1 %v8438_v59, %s6195_s22  ;;  %3134 = vrot.lane.b32.xlu0 %v8445_v14, %s6194_s21 }
 0x90f   : > { %3076 = vrot.lane.b32.xlu1 %v8460_v5, %s6193_s20  ;;  %3166 = vrot.lane.b32.xlu0 %v8445_v14, %s6195_s22 }
 0x913   : > { %3208 = vrot.lane.b32.xlu1 %v8416_v38, %s6196_s23  ;;  %3078 = vrot.lane.b32.xlu0 %v8467_v60, %s6193_s20 }
 0x917   : > { %3108 = vrot.lane.b32.xlu1 %v8460_v5, %s6192_s19  ;;  %3210 = vrot.lane.b32.xlu0 %v8423_v34, %s6196_s23 }
 0x91b   : > { %3140 = vrot.lane.b32.xlu1 %v8460_v5, %s6194_s21  ;;  %3110 = vrot.lane.b32.xlu0 %v8467_v60, %s6192_s19 }
 0x91f   : > { %3172 = vrot.lane.b32.xlu1 %v8460_v5, %s6195_s22  ;;  %3206 = vrot.lane.b32.xlu0 %v8445_v14, %s6196_s23 }
 0x923   : > { %3204 = vrot.lane.b32.xlu1 %v8438_v59, %s6196_s23  ;;  %3142 = vrot.lane.b32.xlu0 %v8467_v60, %s6194_s21 }
 0x927   : > { %3212 = vrot.lane.b32.xlu1 %v8460_v5, %s6196_s23  ;;  %3234 = vrot.lane.b32.xlu0 %v8397_v48, %s6197_s24 }
 0x92b   : > { %3232 = vrot.lane.b32.xlu1 %v8392_v11, %s6197_s24  ;;  %3174 = vrot.lane.b32.xlu0 %v8467_v60, %s6195_s22 }
 0x92f   : > { %3240 = vrot.lane.b32.xlu1 %v8416_v38, %s6197_s24  ;;  %3242 = vrot.lane.b32.xlu0 %v8423_v34, %s6197_s24 }
 0x933   : > { %3236 = vrot.lane.b32.xlu1 %v8438_v59, %s6197_s24  ;;  %3238 = vrot.lane.b32.xlu0 %v8445_v14, %s6197_s24 }
 0x937   : > { %3244 = vrot.lane.b32.xlu1 %v8460_v5, %s6197_s24  ;;  %3266 = vrot.lane.b32.xlu0 %v8397_v48, %s6199_s25 }
 0x93b   : > { %3264 = vrot.lane.b32.xlu1 %v8392_v11, %s6199_s25  ;;  %3214 = vrot.lane.b32.xlu0 %v8467_v60, %s6196_s23 }
 0x93f   : > { %3272 = vrot.lane.b32.xlu1 %v8416_v38, %s6199_s25  ;;  %3274 = vrot.lane.b32.xlu0 %v8423_v34, %s6199_s25 }
 0x943   : > { %3268 = vrot.lane.b32.xlu1 %v8438_v59, %s6199_s25  ;;  %3246 = vrot.lane.b32.xlu0 %v8467_v60, %s6197_s24 }
 0x947   : > { %3276 = vrot.lane.b32.xlu1 %v8460_v5, %s6199_s25  ;;  %3270 = vrot.lane.b32.xlu0 %v8445_v14, %s6199_s25 }
 0x94b   : > { %3296 = vrot.lane.b32.xlu1 %v8392_v11, %s6200_s26  ;;  %3278 = vrot.lane.b32.xlu0 %v8467_v60, %s6199_s25 }
 0x94d   : > { %v3065_v36 = vpop.permute.xlu1 %3064 }
 0x94f   : > { %3304 = vrot.lane.b32.xlu1 %v8416_v38, %s6200_s26  ;;  %3298 = vrot.lane.b32.xlu0 %v8397_v48, %s6200_s26 }
 0x951   : > { %v8534_v55 = vpop.permute.xlu1 %3096  ;;  %v3067_v54 = vpop.permute.xlu0 %3066 }
 0x953   : > { %3300 = vrot.lane.b32.xlu1 %v8438_v59, %s6200_s26  ;;  %3306 = vrot.lane.b32.xlu0 %v8423_v34, %s6200_s26 }
 0x955   : > { %v8540_v17 = vpop.permute.xlu1 %3128  ;;  %v3099_v62 = vpop.permute.xlu0 %3098 }
 0x957   : > { %3308 = vrot.lane.b32.xlu1 %v8460_v5, %s6200_s26  ;;  %3302 = vrot.lane.b32.xlu0 %v8445_v14, %s6200_s26 }
 0x959   : > { %v8549_v47 = vpop.permute.xlu1 %3160  ;;  %v8551_v61 = vpop.permute.xlu0 %3130 }
 0x95b   : > { %3525 = vperm.xlu1 %6182, %v5427_v12   ;;  %3310 = vrot.lane.b32.xlu0 %v8467_v60, %s6200_s26 }
 0x95d   : > { %v8561_v2 = vpop.permute.xlu1 %3200  ;;  %v8563_v39 = vpop.permute.xlu0 %3162 }
 0x95f   : > { %3558 = vperm.xlu1 %6182, %v5431_v53   ;;  %3530 = vperm.xlu0 %6181, %v5428_v19  }
 0x961   : > { %v3073_v33 = vpop.permute.xlu1 %3072  ;;  %v8571_v6 = vpop.permute.xlu0 %3202 }
 0x962   : > { %v3080_v44 = vsel %vm445_vm1, %v3065_v36, %v3073_v33  ;;  %v3084_v51 = vsel %vm445_vm1, %v3073_v33, %v3065_v36 }
 0x963   : > { %3535 = vperm.xlu1 %6182, %v5429_v49   ;;  %3563 = vperm.xlu0 %6181, %v5432_v40   ;;  %v3088_v63 = vmul.f32 %v3084_v51, %v6617_v26  ;;  %v3089_v29 = vmul.f32 %v3080_v44, %v6606_v20 }
 0x965   : > { %v3105_v32 = vpop.permute.xlu1 %3104  ;;  %v3075_v28 = vpop.permute.xlu0 %3074 }
 0x966   : > { %v3081_v18 = vsel %vm445_vm1, %v3067_v54, %v3075_v28  ;;  %v3085_v21 = vsel %vm445_vm1, %v3075_v28, %v3067_v54 }
 0x967   : > { %v3090_v46 = vmul.f32 %v3085_v21, %v6617_v26  ;;  %v3091_v45 = vmul.f32 %v3081_v18, %v6606_v20  ;;  %3568 = vperm.xlu1 %6182, %v5433_v41   ;;  %3540 = vperm.xlu0 %6181, %v5430_v1   ;;  %v3112_v1 = vsel %vm466_vm0, %v8534_v55, %v3105_v32 }
 0x969   : > { %v5814_v24 = vpack.c.bf16 %v3090_v46, %v3088_v63  ;;  %v3137_v37 = vpop.permute.xlu1 %3136  ;;  %v3107_v56 = vpop.permute.xlu0 %3106  ;;  %v5812_v30 = vpack.c.bf16 %v3091_v45, %v3089_v29 }
 0x96a   : > { %v3113_v51 = vsel %vm466_vm0, %v3099_v62, %v3107_v56  ;;  %v3117_v63 = vsel %vm466_vm0, %v3107_v56, %v3099_v62  ;;  %v3116_v62 = vsel %vm466_vm0, %v3105_v32, %v8534_v55  ;;  %v3121_v56 = vmul.f32 %v3112_v1, %v6653_v58 }
 0x96b   : > { %5813 = vmatprep.subr.bf16.mxu1 %v5812_v30  ;;  %3573 = vperm.xlu0 %6181, %v5434_v4   ;;  %v3123_v29 = vmul.f32 %v3113_v51, %v6653_v58  ;;  %v3144_v1 = vsel %vm488_vm2, %v8540_v17, %v3137_v37 }
 0x96c   : > { %5815 = vmatpush1.bf16.msra.mxu1 %v5814_v24 }
 0x96d   : > { %v8594_v50 = vpop.permute.xlu1 %3168  ;;  %v3139_v15 = vpop.permute.xlu0 %3138 }
 0x971   : > { %v8596_v57 = vpop.permute.xlu0 %3170  ;;  %v3069_v36 = vpop.permute.xlu1 %3068 }
 0x975   : > { %v3101_v54 = vpop.permute.xlu1 %3100  ;;  %v3071_v12 = vpop.permute.xlu0 %3070 }
 0x979   : > { %v3133_v53 = vpop.permute.xlu1 %3132  ;;  %v3103_v19 = vpop.permute.xlu0 %3102 }
 0x97d   : > { %v8598_v49 = vpop.permute.xlu1 %3164  ;;  %v8600_v40 = vpop.permute.xlu0 %3134 }
 0x981   : > { %v3077_v33 = vpop.permute.xlu1 %3076  ;;  %v8602_v44 = vpop.permute.xlu0 %3166 }
 0x982   : > { %v3082_v41 = vsel %vm445_vm1, %v3069_v36, %v3077_v33  ;;  %v3086_v28 = vsel %vm445_vm1, %v3077_v33, %v3069_v36  ;;  %v3122_v33 = vmul.f32 %v3117_v63, %v6660_v3 }
 0x983   : > { %v3092_v24 = vmul.f32 %v3086_v28, %v6617_v26  ;;  %v3093_v30 = vmul.f32 %v3082_v41, %v6606_v20  ;;  %v3120_v28 = vmul.f32 %v3116_v62, %v6660_v3  ;;  %v3145_v41 = vsel %vm488_vm2, %v8551_v61, %v3139_v15 }
 0x985   : > { %v8613_v18 = vpop.permute.xlu1 %3208  ;;  %v3079_v21 = vpop.permute.xlu0 %3078  ;;  %v5822_v63 = vpack.c.bf16 %v3122_v33, %v3120_v28 }
 0x986   : > { %v3083_v46 = vsel %vm445_vm1, %v3071_v12, %v3079_v21  ;;  %v3087_v45 = vsel %vm445_vm1, %v3079_v21, %v3071_v12  ;;  %v5820_v21 = vpack.c.bf16 %v3123_v29, %v3121_v56  ;;  %v3155_v29 = vmul.f32 %v3145_v41, %v6694_v25 }
 0x987   : > { %v3094_v4 = vmul.f32 %v3087_v45, %v6617_v26  ;;  %v3095_v36 = vmul.f32 %v3083_v46, %v6606_v20  ;;  %v3177_v41 = vsel %vm510_vm3, %v8563_v39, %v8596_v57 }
 0x989   : > { %v5818_v51 = vpack.c.bf16 %v3094_v4, %v3092_v24  ;;  %v3109_v22 = vpop.permute.xlu1 %3108  ;;  %v8631_v52 = vpop.permute.xlu0 %3210  ;;  %v5816_v12 = vpack.c.bf16 %v3095_v36, %v3093_v30  ;;  %v3149_v24 = vsel %vm488_vm2, %v3139_v15, %v8551_v61  ;;  %v3148_v61 = vsel %vm488_vm2, %v3137_v37, %v8540_v17 }
 0x98a   : > { %v3114_v55 = vsel %vm466_vm0, %v3101_v54, %v3109_v22  ;;  %v3118_v32 = vsel %vm466_vm0, %v3109_v22, %v3101_v54  ;;  %v3153_v15 = vmul.f32 %v3144_v1, %v6694_v25  ;;  %v3154_v56 = vmul.f32 %v3149_v24, %v6701_v42 }
 0x98b   : > { %5817 = vmatprep.subr.bf16.mxu1 %v5816_v12  ;;  %v3124_v54 = vmul.f32 %v3118_v32, %v6660_v3  ;;  %v3125_v4 = vmul.f32 %v3114_v55, %v6653_v58  ;;  %v3152_v28 = vmul.f32 %v3148_v61, %v6701_v42  ;;  %v3176_v55 = vsel %vm510_vm3, %v8549_v47, %v8594_v50 }
 0x98c   : > { %5819 = vmatpush1.bf16.msra.mxu1 %v5818_v51  ;;  %v3187_v24 = vmul.f32 %v3177_v41, %v6736_v27 }
 0x98d   : > { %v3141_v46 = vpop.permute.xlu1 %3140  ;;  %5821 = vmatprep.subr.bf16.mxu1 %v5820_v21  ;;  %v3111_v45 = vpop.permute.xlu0 %3110  ;;  %v5828_v21 = vpack.c.bf16 %v3155_v29, %v3153_v15  ;;  %v5830_v32 = vpack.c.bf16 %v3154_v56, %v3152_v28 }
 0x98e   : > { %v3115_v30 = vsel %vm466_vm0, %v3103_v19, %v3111_v45  ;;  %v3119_v22 = vsel %vm466_vm0, %v3111_v45, %v3103_v19  ;;  %v3146_v17 = vsel %vm488_vm2, %v3133_v53, %v3141_v46  ;;  %v3150_v37 = vsel %vm488_vm2, %v3141_v46, %v3133_v53 }
 0x98f   : > { %v3126_v36 = vmul.f32 %v3119_v22, %v6660_v3  ;;  %v3127_v62 = vmul.f32 %v3115_v30, %v6653_v58  ;;  %v3181_v45 = vsel %vm510_vm3, %v8596_v57, %v8563_v39  ;;  %v3156_v29 = vmul.f32 %v3150_v37, %v6701_v42 }
 0x990   : > { %5823 = vmatpush1.bf16.msra.mxu1 %v5822_v63  ;;  %v3157_v30 = vmul.f32 %v3146_v17, %v6694_v25  ;;  %v3180_v39 = vsel %vm510_vm3, %v8594_v50, %v8549_v47  ;;  %v3185_v57 = vmul.f32 %v3176_v55, %v6736_v27  ;;  %v3186_v61 = vmul.f32 %v3181_v45, %v6766_v13 }
 0x991   : > { %v5826_v33 = vpack.c.bf16 %v3126_v36, %v3124_v54  ;;  %v3173_v51 = vpop.permute.xlu1 %3172  ;;  %v8661_v19 = vpop.permute.xlu0 %3206  ;;  %v5824_v12 = vpack.c.bf16 %v3127_v62, %v3125_v4  ;;  %v3184_v56 = vmul.f32 %v3180_v39, %v6766_v13  ;;  %v3195_v17 = vmul.f32 %v8423_v34, %v6780_v16 }
 0x992   : > { %v5836_v15 = vpack.c.bf16 %v3187_v24, %v3185_v57  ;;  %v3182_v47 = vsel %vm510_vm3, %v3173_v51, %v8598_v49  ;;  %v3197_v57 = vmul.f32 %v8460_v5, %v6780_v16 }
 0x993   : > { %5825 = vmatprep.subr.bf16.mxu1 %v5824_v12  ;;  %v5838_v28 = vpack.c.bf16 %v3186_v61, %v3184_v56  ;;  %v3188_v37 = vmul.f32 %v3182_v47, %v6766_v13  ;;  %v3216_v47 = vsel %vm547_vm4, %v8561_v2, %v8613_v18 }
 0x994   : > { %5827 = vmatpush1.bf16.msra.mxu1 %v5826_v33  ;;  %v3178_v33 = vsel %vm510_vm3, %v8598_v49, %v3173_v51 }
 0x995   : > { %v8676_v1 = vpop.permute.xlu1 %3204  ;;  %5829 = vmatprep.subr.bf16.mxu1 %v5828_v21  ;;  %v3143_v63 = vpop.permute.xlu0 %3142  ;;  %v3189_v49 = vmul.f32 %v3178_v33, %v6736_v27 }
 0x996   : > { %v3147_v53 = vsel %vm488_vm2, %v8600_v40, %v3143_v63  ;;  %v3151_v46 = vsel %vm488_vm2, %v3143_v63, %v8600_v40 }
 0x997   : > { %v3158_v22 = vmul.f32 %v3151_v46, %v6701_v42  ;;  %v3159_v54 = vmul.f32 %v3147_v53, %v6694_v25  ;;  %v3193_v53 = vmul.f32 %v8416_v38, %v6780_v16 }
 0x998   : > { %5831 = vmatpush1.bf16.msra.mxu1 %v5830_v32 }
 0x999   : > { %v5834_v4 = vpack.c.bf16 %v3158_v22, %v3156_v29  ;;  %v3213_v36 = vpop.permute.xlu1 %3212  ;;  %v8698_v62 = vpop.permute.xlu0 %3234  ;;  %v5832_v40 = vpack.c.bf16 %v3159_v54, %v3157_v30  ;;  %v5844_v46 = vpack.c.bf16 %v3195_v17, %v3193_v53  ;;  %v3199_v29 = vmul.f32 %v8467_v60, %v6780_v16 }
 0x99a   : > { %v3221_v30 = vsel %vm547_vm4, %v8631_v52, %v8571_v6  ;;  %v3192_v22 = vmul.f32 %v8392_v11, %v6804_v35  ;;  %v3222_v17 = vsel %vm547_vm4, %v3213_v36, %v8676_v1 }
 0x99b   : > { %5833 = vmatprep.subr.bf16.mxu1 %v5832_v40  ;;  %v3217_v40 = vsel %vm547_vm4, %v8571_v6, %v8631_v52  ;;  %v3227_v56 = vmul.f32 %v3221_v30, %v6822_v43  ;;  %v5848_v33 = vpack.c.bf16 %v3199_v29, %v3197_v57 }
 0x99c   : > { %5835 = vmatpush1.bf16.msra.mxu1 %v5834_v4  ;;  %v3220_v4 = vsel %vm547_vm4, %v8613_v18, %v8561_v2  ;;  %v3226_v52 = vmul.f32 %v3217_v40, %v6839_v8  ;;  %v3224_v18 = vmul.f32 %v3216_v47, %v6839_v8 }
 0x99d   : > { %v3233_v50 = vpop.permute.xlu1 %3232  ;;  %5837 = vmatprep.subr.bf16.mxu1 %v5836_v15  ;;  %v3175_v12 = vpop.permute.xlu0 %3174  ;;  %v3198_v15 = vmul.f32 %v8445_v14, %v6804_v35 }
 0x99e   : > { %v3179_v41 = vsel %vm510_vm3, %v8602_v44, %v3175_v12  ;;  %v3183_v21 = vsel %vm510_vm3, %v3175_v12, %v8602_v44  ;;  %v3194_v44 = vmul.f32 %v8397_v48, %v6804_v35  ;;  %v3196_v12 = vmul.f32 %v8438_v59, %v6804_v35 }
 0x99f   : > { %v3190_v51 = vmul.f32 %v3183_v21, %v6766_v13  ;;  %v3191_v55 = vmul.f32 %v3179_v41, %v6736_v27  ;;  %v3218_v21 = vsel %vm547_vm4, %v8676_v1, %v3213_v36 }
 0x9a0   : > { %5839 = vmatpush1.bf16.msra.mxu1 %v5838_v28  ;;  %v5846_v61 = vpack.c.bf16 %v3194_v44, %v3192_v22  ;;  %v3225_v28 = vmul.f32 %v3220_v4, %v6822_v43  ;;  %v5850_v2 = vpack.c.bf16 %v3198_v15, %v3196_v12 }
 0x9a1   : > { %v5842_v32 = vpack.c.bf16 %v3190_v51, %v3188_v37  ;;  %v3241_v63 = vpop.permute.xlu1 %3240  ;;  %v3243_v45 = vpop.permute.xlu0 %3242  ;;  %v5840_v24 = vpack.c.bf16 %v3191_v55, %v3189_v49  ;;  %v5854_v55 = vpack.c.bf16 %v3226_v52, %v3224_v18 }
 0x9a2   : > { %v5852_v37 = vpack.c.bf16 %v3227_v56, %v3225_v28  ;;  %v3252_v49 = vsel %vm569_vm5, %v3241_v63, %v3233_v50  ;;  %v3253_v51 = vsel %vm569_vm5, %v3243_v45, %v8698_v62  ;;  %v3248_v1 = vsel %vm569_vm5, %v3233_v50, %v3241_v63 }
 0x9a3   : > { %5841 = vmatprep.subr.bf16.mxu1 %v5840_v24  ;;  %v3229_v24 = vmul.f32 %v3222_v17, %v6822_v43  ;;  %v3249_v36 = vsel %vm569_vm5, %v8698_v62, %v3243_v45  ;;  %v3257_v30 = vmul.f32 %v3252_v49, %v6860_v9  ;;  %v3259_v22 = vmul.f32 %v3253_v51, %v6860_v9 }
 0x9a4   : > { %5843 = vmatpush1.bf16.msra.mxu1 %v5842_v32  ;;  %v3228_v32 = vmul.f32 %v3218_v21, %v6839_v8  ;;  %v3256_v63 = vmul.f32 %v3248_v1, %v6870_v31  ;;  %v3258_v62 = vmul.f32 %v3249_v36, %v6870_v31 }
 0x9a5   : > { %v3237_v54 = vpop.permute.xlu1 %3236  ;;  %5845 = vmatprep.subr.bf16.mxu1 %v5844_v46  ;;  %v3239_v39 = vpop.permute.xlu0 %3238  ;;  %v5860_v56 = vpack.c.bf16 %v3259_v22, %v3257_v30 }
 0x9a6   : > { %v5862_v12 = vpack.c.bf16 %v3258_v62, %v3256_v63 }
 0x9a8   : > { %5847 = vmatpush1.bf16.msra.mxu1 %v5846_v61 }
 0x9a9   : > { %v3245_v6 = vpop.permute.xlu1 %3244  ;;  %v3267_v41 = vpop.permute.xlu0 %3266  ;;  %5849 = vmatprep.subr.bf16.mxu1 %v5848_v33 }
 0x9aa   : > { %v3254_v15 = vsel %vm569_vm5, %v3245_v6, %v3237_v54 }
 0x9ab   : > { %v3261_v52 = vmul.f32 %v3254_v15, %v6860_v9 }
 0x9ac   : > { %5851 = vmatpush1.bf16.msra.mxu1 %v5850_v2 }
 0x9ad   : > { %v3265_v53 = vpop.permute.xlu1 %3264  ;;  %v3215_v44 = vpop.permute.xlu0 %3214  ;;  %5853 = vmatprep.subr.bf16.mxu1 %v5852_v37 }
 0x9ae   : > { %v3219_v46 = vsel %vm547_vm4, %v8661_v19, %v3215_v44  ;;  %v3223_v29 = vsel %vm547_vm4, %v3215_v44, %v8661_v19  ;;  %v3250_v19 = vsel %vm569_vm5, %v3237_v54, %v3245_v6 }
 0x9af   : > { %v3230_v57 = vmul.f32 %v3219_v46, %v6839_v8  ;;  %v3231_v50 = vmul.f32 %v3223_v29, %v6822_v43  ;;  %v3260_v28 = vmul.f32 %v3250_v19, %v6870_v31 }
 0x9b0   : > { %5855 = vmatpush1.bf16.msra.mxu1 %v5854_v55 }
 0x9b1   : > { %v5858_v45 = vpack.c.bf16 %v3230_v57, %v3228_v32  ;;  %v3273_v4 = vpop.permute.xlu1 %3272  ;;  %v3275_v40 = vpop.permute.xlu0 %3274  ;;  %v5856_v61 = vpack.c.bf16 %v3231_v50, %v3229_v24 }
 0x9b2   : > { %v3284_v33 = vsel %vm591_vm6, %v3273_v4, %v3265_v53  ;;  %v3285_v47 = vsel %vm591_vm6, %v3275_v40, %v3267_v41  ;;  %v3280_v54 = vsel %vm591_vm6, %v3265_v53, %v3273_v4  ;;  %v3281_v6 = vsel %vm591_vm6, %v3267_v41, %v3275_v40 }
 0x9b3   : > { %5857 = vmatprep.subr.bf16.mxu1 %v5856_v61  ;;  %v3289_v37 = vmul.f32 %v3284_v33, %v6900_v7  ;;  %v3291_v49 = vmul.f32 %v3285_v47, %v6900_v7  ;;  %v3288_v41 = vmul.f32 %v3280_v54, %v6907_v0  ;;  %v3290_v1 = vmul.f32 %v3281_v6, %v6907_v0  ;;  %v5411_v47 = vld [vmem:[%s6546_s30 + $0x180] sm:$0xff] }
 0x9b4   : > { %5859 = vmatpush1.bf16.msra.mxu1 %v5858_v45  ;;  %v10361_v6 = vld [vmem:[#allocation10_spill] sm:$0xff] }
 0x9b5   : > { %v3269_v21 = vpop.permute.xlu1 %3268  ;;  %v3247_v17 = vpop.permute.xlu0 %3246  ;;  %5861 = vmatprep.subr.bf16.mxu1 %v5860_v56  ;;  %v5868_v36 = vpack.c.bf16 %v3291_v49, %v3289_v37  ;;  %v5870_v22 = vpack.c.bf16 %v3290_v1, %v3288_v41  ;;  %v5414_v49 = vld [vmem:[%s6546_s30 + $0x198] sm:$0xff]  ;;  %v5417_v1 = vld [vmem:[%s6546_s30 + $0x1b0] sm:$0xff] }
 0x9b6   : > { %v3251_v2 = vsel %vm569_vm5, %v3239_v39, %v3247_v17  ;;  %v3255_v18 = vsel %vm569_vm5, %v3247_v17, %v3239_v39 }
 0x9b7   : > { %v3262_v51 = vmul.f32 %v3251_v2, %v6870_v31  ;;  %v3263_v55 = vmul.f32 %v3255_v18, %v6860_v9 }
 0x9b8   : > { %5863 = vmatpush1.bf16.msra.mxu1 %v5862_v12 }
 0x9b9   : > { %v5866_v32 = vpack.c.bf16 %v3262_v51, %v3260_v28  ;;  %v3277_v24 = vpop.permute.xlu1 %3276  ;;  %v3271_v53 = vpop.permute.xlu0 %3270  ;;  %v5864_v44 = vpack.c.bf16 %v3263_v55, %v3261_v52  ;;  %v5415_v52 = vld [vmem:[%s6546_s30 + $0x1a0] sm:$0xff] }
 0x9ba   : > { %v3282_v39 = vsel %vm591_vm6, %v3269_v21, %v3277_v24  ;;  %v3286_v46 = vsel %vm591_vm6, %v3277_v24, %v3269_v21 }
 0x9bb   : > { %5865 = vmatprep.subr.bf16.mxu1 %v5864_v44  ;;  %v3292_v63 = vmul.f32 %v3282_v39, %v6907_v0  ;;  %v3293_v62 = vmul.f32 %v3286_v46, %v6900_v7  ;;  %v5421_v39 = vld [vmem:[%s6546_s30 + $0x1d0] sm:$0xff] }
 0x9bc   : > { %5867 = vmatpush1.bf16.msra.mxu1 %v5866_v32 }
 0x9bd   : > { %v3297_v29 = vpop.permute.xlu1 %3296  ;;  %v3279_v30 = vpop.permute.xlu0 %3278  ;;  %5869 = vmatprep.subr.bf16.mxu1 %v5868_v36 }
 0x9be   : > { %v3283_v57 = vsel %vm591_vm6, %v3271_v53, %v3279_v30  ;;  %v3287_v50 = vsel %vm591_vm6, %v3279_v30, %v3271_v53  ;;  %v5418_v53 = vld [vmem:[%s6546_s30 + $0x1b8] sm:$0xff] }
 0x9bf   : > { %v3294_v45 = vmul.f32 %v3283_v57, %v6907_v0  ;;  %v3295_v4 = vmul.f32 %v3287_v50, %v6900_v7 }
 0x9c0   : > { %5871 = vmatpush1.bf16.msra.mxu1 %v5870_v22 }
 0x9c1   : > { %v5874_v40 = vpack.c.bf16 %v3294_v45, %v3292_v63  ;;  %v3305_v61 = vpop.permute.xlu1 %3304  ;;  %v3299_v19 = vpop.permute.xlu0 %3298  ;;  %v5872_v15 = vpack.c.bf16 %v3295_v4, %v3293_v62  ;;  %v5420_v63 = vld [vmem:[%s6546_s30 + $0x1c8] sm:$0xff]  ;;  %v10362_v4 = vmov 0.0  }
 0x9c2   : > { %v3312_v56 = vsel %vm613_vm7, %v3297_v29, %v3305_v61  ;;  %v3316_v33 = vsel %vm613_vm7, %v3305_v61, %v3297_v29  ;;  %v5416_v61 = vld [vmem:[%s6546_s30 + $0x1a8] sm:$0xff] }
 0x9c3   : > { %5873 = vmatprep.subr.bf16.mxu1 %v5872_v15  ;;  %v3320_v54 = vmul.f32 %v3312_v56, %v6943_v23  ;;  %v3321_v2 = vmul.f32 %v3316_v33, %v10361_v6  ;;  %v5422_v15 = vld [vmem:[%s6546_s30 + $0x1d8] sm:$0xff] }
 0x9c4   : > { %5875 = vmatpush1.bf16.msra.mxu1 %v5874_v40  ;;  %v5413_v40 = vld [vmem:[%s6546_s30 + $0x190] sm:$0xff] }
 0x9c5   : > { %v3301_v12 = vpop.permute.xlu1 %3300  ;;  %v3307_v28 = vpop.permute.xlu0 %3306 }
 0x9c6   : > { %v3313_v21 = vsel %vm613_vm7, %v3299_v19, %v3307_v28  ;;  %v3317_v17 = vsel %vm613_vm7, %v3307_v28, %v3299_v19  ;;  %v5419_v19 = vld [vmem:[%s6546_s30 + $0x1c0] sm:$0xff] }
 0x9c7   : > { %v3322_v18 = vmul.f32 %v3313_v21, %v6943_v23  ;;  %v3323_v37 = vmul.f32 %v3317_v17, %v10361_v6  ;;  %3405 = vmatmul.mubr.f32.vlgmr.msra.gmra.mrb[16].mxu1 %v5411_v47 }
 0x9c8   : > { %3410 = vmatprep.mubr.f32.mxu1 %v5415_v52 }
 0x9c9   : > { %v5878_v51 = vpack.c.bf16 %v3322_v18, %v3320_v54  ;;  %v3309_v55 = vpop.permute.xlu1 %3308  ;;  %v3303_v32 = vpop.permute.xlu0 %3302  ;;  %v5876_v24 = vpack.c.bf16 %v3323_v37, %v3321_v2 }
 0x9ca   : > { %v3314_v44 = vsel %vm613_vm7, %v3301_v12, %v3309_v55  ;;  %v3318_v41 = vsel %vm613_vm7, %v3309_v55, %v3301_v12 }
 0x9cb   : > { %3411 = vmatmul.mubr.f32.gmra.mrb[18].mxu1 %v5414_v49  ;;  %5877 = vmatprep.subr.bf16.mxu1 %v5876_v24  ;;  %v3324_v30 = vmul.f32 %v3314_v44, %v6943_v23  ;;  %v3325_v22 = vmul.f32 %v3318_v41, %v10361_v6 }
 0x9cc   : > { %5879 = vmatpush1.bf16.msra.mxu1 %v5878_v51  ;;  %3416 = vmatprep.mubr.f32.mxu1 %v5418_v53 }
 0x9cd   : > { %v3311_v36 = vpop.permute.xlu0 %3310 }
 0x9ce   : > { %v3315_v46 = vsel %vm613_vm7, %v3303_v32, %v3311_v36  ;;  %v3319_v29 = vsel %vm613_vm7, %v3311_v36, %v3303_v32 }
 0x9cf   : > { %v3326_v57 = vmul.f32 %v3315_v46, %v6943_v23  ;;  %v3327_v50 = vmul.f32 %v3319_v29, %v10361_v6  ;;  %3417 = vmatmul.mubr.f32.gmra.mrb[20].mxu1 %v5417_v1 }
 0x9d0   : > { %3422 = vmatprep.mubr.f32.mxu1 %v5421_v39 }
 0x9d1   : > { %v5882_v62 = vpack.c.bf16 %v3326_v57, %v3324_v30  ;;  %v5880_v45 = vpack.c.bf16 %v3327_v50, %v3325_v22 }
 0x9d3   : > { %3423 = vmatmul.mubr.f32.gmra.mrb[22].mxu1 %v5420_v63  ;;  %5881 = vmatprep.subr.bf16.mxu1 %v5880_v45 }
 0x9d4   : > { %5883 = vmatpush1.bf16.msra.mxu1 %v5882_v62  ;;  %3493 = vmatprep.mubr.f32.mxu1 %v10362_v4 }
 0x9d7   : > { %5423 = vmatmul.mubr.msk.f32.vlgmr.msra.gmra.mrb[16].mxu1 %vm1149_vm9, %v5413_v40 }
 0x9d8   : > { %3499 = vmatprep.mubr.f32.mxu1 %v10362_v4 }
 0x9da   : > { %v3526_v56 = vpop.permute.xlu1 %3525 }
 0x9db   : > { %5424 = vmatmul.mubr.msk.f32.gmra.mrb[18].mxu1 %vm1149_vm9, %v5416_v61 }
 0x9dc   : > { %3505 = vmatprep.mubr.f32.mxu1 %v10362_v4 }
 0x9de   : > { %v3531_v33 = vpop.permute.xlu0 %3530  ;;  %v3559_v52 = vpop.permute.xlu1 %3558 }
 0x9df   : > { %5425 = vmatmul.mubr.msk.f32.gmra.mrb[20].mxu1 %vm1149_vm9, %v5419_v19 }
 0x9e0   : > { %3511 = vmatprep.mubr.f32.mxu1 %v10362_v4 }
 0x9e2   : > { %v3564_v37 = vpop.permute.xlu0 %3563  ;;  %v3536_v29 = vpop.permute.xlu1 %3535 }
 0x9e3   : > { %5426 = vmatmul.mubr.msk.f32.gmra.mrb[22].mxu1 %vm1149_vm9, %v5422_v15 }
 0x9e6   : > { %v3541_v22 = vpop.permute.xlu0 %3540  ;;  %v3569_v57 = vpop.permute.xlu1 %3568 }
 0x9ea   : > { %v3574_v62 = vpop.permute.xlu0 %3573 }
 0xaaa   : > { %v3495_v47 = vpop.f32.mrb[16].mxu1 }
 0xaab   : > { %v3543_v12 = vmul.f32 %v3526_v56, %v3495_v47  ;;  %v3497_v28 = vpop.f32.mrb[17].mxu1 }
 0xaac   : > { %v3544_v44 = vmul.f32 %v3526_v56, %v3497_v28  ;;  %v5436_v28 = vld [vmem:[%s6546_s30 + $0x1e8] sm:$0xff] }
 0xaad   : > { %v3576_v21 = vadd.f32 %v3559_v52, %v3543_v12  ;;  %3945 = vmatprep.mubr.f32.mxu0 %v5436_v28 }
 0xaae   : > { %v3501_v17 = vpop.f32.mrb[18].mxu1  ;;  %v3577_v41 = vadd.f32 %v3559_v52, %v3544_v44 }
 0xaaf   : > { %v8863_v54 = vmax.f32 %v3576_v21, 0.0  ;;  %v3545_v2 = vmul.f32 %v3531_v33, %v3501_v17  ;;  %v3503_v18 = vpop.f32.mrb[19].mxu1 }
 0xab0   : > { %v3546_v1 = vmul.f32 %v3531_v33, %v3503_v18  ;;  %v8885_v36 = vmax.f32 %v3577_v41, 0.0  ;;  %v5453_v41 = vld [vmem:[%s10270_s7 + $0xb0] sm:$0xff] }
 0xab1   : > { %v3578_v49 = vadd.f32 %v3564_v37, %v3545_v2  ;;  %3605 = vrot.lane.b32.xlu1 %v8863_v54, %s6193_s20 }
 0xab2   : > { %v3507_v51 = vpop.f32.mrb[20].mxu1  ;;  %v3579_v39 = vadd.f32 %v3564_v37, %v3546_v1  ;;  %v5451_v37 = vld [vmem:[%s10270_s7 + $0xa0] sm:$0xff]  ;;  %v5456_v1 = vld [vmem:[%s10271_s8 + $0xa8] sm:$0xff] }
 0xab3   : > { %v8867_v55 = vmax.f32 %v3578_v49, 0.0  ;;  %v3509_v32 = vpop.f32.mrb[21].mxu1  ;;  %v3547_v30 = vmul.f32 %v3536_v29, %v3507_v51 }
 0xab4   : > { %v8891_v46 = vmax.f32 %v3579_v39, 0.0  ;;  %v3548_v19 = vmul.f32 %v3536_v29, %v3509_v32  ;;  %v5455_v32 = vld [vmem:[%s10271_s8 + $0xa0] sm:$0xff] }
 0xab5   : > { %3637 = vrot.lane.b32.xlu1 %v8863_v54, %s6192_s19  ;;  %3607 = vrot.lane.b32.xlu0 %v8867_v55, %s6193_s20  ;;  %v3580_v50 = vadd.f32 %v3569_v57, %v3547_v30 }
 0xab6   : > { %v3513_v24 = vpop.f32.mrb[22].mxu1  ;;  %v3581_v15 = vadd.f32 %v3569_v57, %v3548_v19  ;;  %v5457_v57 = vld [vmem:[%s10271_s8 + $0xb0] sm:$0xff] }
 0xab7   : > { %v3515_v53 = vpop.f32.mrb[23].mxu1  ;;  %v3549_v63 = vmul.f32 %v3541_v22, %v3513_v24  ;;  %v8905_v45 = vmax.f32 %v3580_v50, 0.0  ;;  %v5452_v24 = vld [vmem:[%s10270_s7 + $0xa8] sm:$0xff] }
 0xab8   : > { %v3550_v56 = vmul.f32 %v3541_v22, %v3515_v53  ;;  %v8925_v33 = vmax.f32 %v3581_v15, 0.0 }
 0xab9   : > { %3669 = vrot.lane.b32.xlu1 %v8863_v54, %s6194_s21  ;;  %3639 = vrot.lane.b32.xlu0 %v8867_v55, %s6192_s19  ;;  %v3582_v40 = vadd.f32 %v3574_v62, %v3549_v63 }
 0xaba   : > { %v3583_v47 = vadd.f32 %v3574_v62, %v3550_v56  ;;  %v5454_v62 = vld [vmem:[%s10270_s7 + $0xb8] sm:$0xff] }
 0xabb   : > { %v8911_v61 = vmax.f32 %v3582_v40, 0.0 }
 0xabc   : > { %v8931_v12 = vmax.f32 %v3583_v47, 0.0 }
 0xabd   : > { %3701 = vrot.lane.b32.xlu1 %v8863_v54, %s6195_s22  ;;  %3671 = vrot.lane.b32.xlu0 %v8867_v55, %s6194_s21 }
 0xac1   : > { %3741 = vrot.lane.b32.xlu1 %v8863_v54, %s6196_s23  ;;  %3703 = vrot.lane.b32.xlu0 %v8867_v55, %s6195_s22 }
 0xac5   : > { %3613 = vrot.lane.b32.xlu1 %v8885_v36, %s6193_s20  ;;  %3743 = vrot.lane.b32.xlu0 %v8867_v55, %s6196_s23 }
 0xac9   : > { %3645 = vrot.lane.b32.xlu1 %v8885_v36, %s6192_s19  ;;  %3615 = vrot.lane.b32.xlu0 %v8891_v46, %s6193_s20 }
 0xacd   : > { %3677 = vrot.lane.b32.xlu1 %v8885_v36, %s6194_s21  ;;  %3647 = vrot.lane.b32.xlu0 %v8891_v46, %s6192_s19 }
 0xad1   : > { %3709 = vrot.lane.b32.xlu1 %v8885_v36, %s6195_s22  ;;  %3679 = vrot.lane.b32.xlu0 %v8891_v46, %s6194_s21 }
 0xad5   : > { %3711 = vrot.lane.b32.xlu0 %v8891_v46, %s6195_s22  ;;  %3609 = vrot.lane.b32.xlu1 %v8905_v45, %s6193_s20 }
 0xad9   : > { %3641 = vrot.lane.b32.xlu1 %v8905_v45, %s6192_s19  ;;  %3611 = vrot.lane.b32.xlu0 %v8911_v61, %s6193_s20 }
 0xadd   : > { %3673 = vrot.lane.b32.xlu1 %v8905_v45, %s6194_s21  ;;  %3643 = vrot.lane.b32.xlu0 %v8911_v61, %s6192_s19 }
 0xae1   : > { %3705 = vrot.lane.b32.xlu1 %v8905_v45, %s6195_s22  ;;  %3675 = vrot.lane.b32.xlu0 %v8911_v61, %s6194_s21 }
 0xae5   : > { %3617 = vrot.lane.b32.xlu1 %v8925_v33, %s6193_s20  ;;  %3707 = vrot.lane.b32.xlu0 %v8911_v61, %s6195_s22 }
 0xae9   : > { %3749 = vrot.lane.b32.xlu1 %v8885_v36, %s6196_s23  ;;  %3619 = vrot.lane.b32.xlu0 %v8931_v12, %s6193_s20 }
 0xaed   : > { %3649 = vrot.lane.b32.xlu1 %v8925_v33, %s6192_s19  ;;  %3751 = vrot.lane.b32.xlu0 %v8891_v46, %s6196_s23 }
 0xaf1   : > { %3681 = vrot.lane.b32.xlu1 %v8925_v33, %s6194_s21  ;;  %3651 = vrot.lane.b32.xlu0 %v8931_v12, %s6192_s19 }
 0xaf5   : > { %3713 = vrot.lane.b32.xlu1 %v8925_v33, %s6195_s22  ;;  %3747 = vrot.lane.b32.xlu0 %v8911_v61, %s6196_s23 }
 0xaf9   : > { %3745 = vrot.lane.b32.xlu1 %v8905_v45, %s6196_s23  ;;  %3683 = vrot.lane.b32.xlu0 %v8931_v12, %s6194_s21 }
 0xafd   : > { %3753 = vrot.lane.b32.xlu1 %v8925_v33, %s6196_s23  ;;  %3775 = vrot.lane.b32.xlu0 %v8867_v55, %s6197_s24 }
 0xb01   : > { %3773 = vrot.lane.b32.xlu1 %v8863_v54, %s6197_s24  ;;  %3715 = vrot.lane.b32.xlu0 %v8931_v12, %s6195_s22 }
 0xb05   : > { %3781 = vrot.lane.b32.xlu1 %v8885_v36, %s6197_s24  ;;  %3783 = vrot.lane.b32.xlu0 %v8891_v46, %s6197_s24 }
 0xb09   : > { %3777 = vrot.lane.b32.xlu1 %v8905_v45, %s6197_s24  ;;  %3779 = vrot.lane.b32.xlu0 %v8911_v61, %s6197_s24 }
 0xb0d   : > { %3785 = vrot.lane.b32.xlu1 %v8925_v33, %s6197_s24  ;;  %3807 = vrot.lane.b32.xlu0 %v8867_v55, %s6199_s25 }
 0xb11   : > { %3805 = vrot.lane.b32.xlu1 %v8863_v54, %s6199_s25  ;;  %3755 = vrot.lane.b32.xlu0 %v8931_v12, %s6196_s23 }
 0xb15   : > { %3813 = vrot.lane.b32.xlu1 %v8885_v36, %s6199_s25  ;;  %3815 = vrot.lane.b32.xlu0 %v8891_v46, %s6199_s25 }
 0xb19   : > { %3809 = vrot.lane.b32.xlu1 %v8905_v45, %s6199_s25  ;;  %3787 = vrot.lane.b32.xlu0 %v8931_v12, %s6197_s24 }
 0xb1d   : > { %3817 = vrot.lane.b32.xlu1 %v8925_v33, %s6199_s25  ;;  %3811 = vrot.lane.b32.xlu0 %v8911_v61, %s6199_s25 }
 0xb21   : > { %3837 = vrot.lane.b32.xlu1 %v8863_v54, %s6200_s26  ;;  %3819 = vrot.lane.b32.xlu0 %v8931_v12, %s6199_s25 }
 0xb23   : > { %v3606_v52 = vpop.permute.xlu1 %3605 }
 0xb25   : > { %3845 = vrot.lane.b32.xlu1 %v8885_v36, %s6200_s26  ;;  %3839 = vrot.lane.b32.xlu0 %v8867_v55, %s6200_s26 }
 0xb27   : > { %v8998_v21 = vpop.permute.xlu1 %3637  ;;  %v3608_v17 = vpop.permute.xlu0 %3607 }
 0xb29   : > { %3841 = vrot.lane.b32.xlu1 %v8905_v45, %s6200_s26  ;;  %3847 = vrot.lane.b32.xlu0 %v8891_v46, %s6200_s26 }
 0xb2b   : > { %v9004_v2 = vpop.permute.xlu1 %3669  ;;  %v3640_v18 = vpop.permute.xlu0 %3639 }
 0xb2d   : > { %3849 = vrot.lane.b32.xlu1 %v8925_v33, %s6200_s26  ;;  %3843 = vrot.lane.b32.xlu0 %v8911_v61, %s6200_s26 }
 0xb2f   : > { %v9013_v49 = vpop.permute.xlu1 %3701  ;;  %v9015_v51 = vpop.permute.xlu0 %3671 }
 0xb31   : > { %4066 = vperm.xlu1 %6182, %v5451_v37   ;;  %3851 = vrot.lane.b32.xlu0 %v8931_v12, %s6200_s26 }
 0xb33   : > { %v9025_v53 = vpop.permute.xlu1 %3741  ;;  %v9027_v44 = vpop.permute.xlu0 %3703 }
 0xb35   : > { %4099 = vperm.xlu1 %6182, %v5455_v32   ;;  %4071 = vperm.xlu0 %6181, %v5452_v24  }
 0xb37   : > { %v3614_v39 = vpop.permute.xlu1 %3613  ;;  %v9035_v29 = vpop.permute.xlu0 %3743 }
 0xb38   : > { %v3621_v30 = vsel %vm445_vm1, %v3606_v52, %v3614_v39  ;;  %v3625_v22 = vsel %vm445_vm1, %v3614_v39, %v3606_v52 }
 0xb39   : > { %4076 = vperm.xlu1 %6182, %v5453_v41   ;;  %4104 = vperm.xlu0 %6181, %v5456_v1   ;;  %v3629_v15 = vmul.f32 %v3625_v22, %v6617_v26  ;;  %v3630_v56 = vmul.f32 %v3621_v30, %v6606_v20  ;;  %v5458_v41 = vld [vmem:[%s10271_s8 + $0xb8] sm:$0xff] }
 0xb3b   : > { %v3646_v50 = vpop.permute.xlu1 %3645  ;;  %v3616_v63 = vpop.permute.xlu0 %3615 }
 0xb3c   : > { %v3622_v40 = vsel %vm445_vm1, %v3608_v17, %v3616_v63  ;;  %v3626_v19 = vsel %vm445_vm1, %v3616_v63, %v3608_v17 }
 0xb3d   : > { %v3631_v47 = vmul.f32 %v3626_v19, %v6617_v26  ;;  %v3632_v28 = vmul.f32 %v3622_v40, %v6606_v20  ;;  %4109 = vperm.xlu1 %6182, %v5457_v57   ;;  %4081 = vperm.xlu0 %6181, %v5454_v62  }
 0xb3f   : > { %v5886_v52 = vpack.c.bf16 %v3631_v47, %v3629_v15  ;;  %v3678_v37 = vpop.permute.xlu1 %3677  ;;  %v3648_v32 = vpop.permute.xlu0 %3647  ;;  %v5884_v24 = vpack.c.bf16 %v3632_v28, %v3630_v56 }
 0xb40   : > { %v3654_v47 = vsel %vm466_vm0, %v3640_v18, %v3648_v32  ;;  %v3658_v5 = vsel %vm466_vm0, %v3648_v32, %v3640_v18  ;;  %v3657_v18 = vsel %vm466_vm0, %v3646_v50, %v8998_v21 }
 0xb41   : > { %5885 = vmatprep.subr.bf16.mxu0 %v5884_v24  ;;  %4114 = vperm.xlu0 %6181, %v5458_v41   ;;  %v3653_v24 = vsel %vm466_vm0, %v8998_v21, %v3646_v50  ;;  %v3664_v14 = vmul.f32 %v3654_v47, %v6653_v58  ;;  %v3663_v47 = vmul.f32 %v3658_v5, %v6660_v3 }
 0xb42   : > { %5887 = vmatpush1.bf16.msra.mxu0 %v5886_v52  ;;  %v3662_v32 = vmul.f32 %v3653_v24, %v6653_v58 }
 0xb43   : > { %v9058_v17 = vpop.permute.xlu1 %3709  ;;  %v3680_v1 = vpop.permute.xlu0 %3679 }
 0xb47   : > { %v9060_v39 = vpop.permute.xlu0 %3711  ;;  %v3610_v30 = vpop.permute.xlu1 %3609 }
 0xb4b   : > { %v3642_v22 = vpop.permute.xlu1 %3641  ;;  %v3612_v57 = vpop.permute.xlu0 %3611 }
 0xb4f   : > { %v3674_v63 = vpop.permute.xlu1 %3673  ;;  %v3644_v62 = vpop.permute.xlu0 %3643 }
 0xb53   : > { %v9062_v40 = vpop.permute.xlu1 %3705  ;;  %v9064_v19 = vpop.permute.xlu0 %3675 }
 0xb57   : > { %v3618_v15 = vpop.permute.xlu1 %3617  ;;  %v9066_v56 = vpop.permute.xlu0 %3707 }
 0xb58   : > { %v3623_v28 = vsel %vm445_vm1, %v3610_v30, %v3618_v15  ;;  %v3627_v52 = vsel %vm445_vm1, %v3618_v15, %v3610_v30 }
 0xb59   : > { %v3633_v30 = vmul.f32 %v3627_v52, %v6617_v26  ;;  %v3634_v15 = vmul.f32 %v3623_v28, %v6606_v20  ;;  %v3690_v52 = vsel %vm488_vm2, %v3680_v1, %v9015_v51 }
 0xb5b   : > { %v9077_v41 = vpop.permute.xlu1 %3749  ;;  %v3620_v60 = vpop.permute.xlu0 %3619 }
 0xb5c   : > { %v3624_v59 = vsel %vm445_vm1, %v3612_v57, %v3620_v60  ;;  %v3628_v34 = vsel %vm445_vm1, %v3620_v60, %v3612_v57  ;;  %v3661_v57 = vmul.f32 %v3657_v18, %v6660_v3  ;;  %v3695_v18 = vmul.f32 %v3690_v52, %v6701_v42 }
 0xb5d   : > { %v3635_v38 = vmul.f32 %v3628_v34, %v6617_v26  ;;  %v3636_v48 = vmul.f32 %v3624_v59, %v6606_v20  ;;  %v3686_v34 = vsel %vm488_vm2, %v9015_v51, %v3680_v1  ;;  %v5892_v59 = vpack.c.bf16 %v3664_v14, %v3662_v32 }
 0xb5e   : > { %v3696_v14 = vmul.f32 %v3686_v34, %v6694_v25  ;;  %v3689_v51 = vsel %vm488_vm2, %v3678_v37, %v9004_v2  ;;  %v3718_v34 = vsel %vm510_vm3, %v9027_v44, %v9060_v39 }
 0xb5f   : > { %v5890_v11 = vpack.c.bf16 %v3635_v38, %v3633_v30  ;;  %v3650_v4 = vpop.permute.xlu1 %3649  ;;  %v9095_v6 = vpop.permute.xlu0 %3751  ;;  %v5888_v60 = vpack.c.bf16 %v3636_v48, %v3634_v15  ;;  %v3685_v38 = vsel %vm488_vm2, %v9004_v2, %v3678_v37  ;;  %v5894_v48 = vpack.c.bf16 %v3663_v47, %v3661_v57 }
 0xb60   : > { %v3655_v21 = vsel %vm466_vm0, %v3642_v22, %v3650_v4  ;;  %v3659_v50 = vsel %vm466_vm0, %v3650_v4, %v3642_v22  ;;  %v3694_v1 = vmul.f32 %v3685_v38, %v6694_v25  ;;  %v3693_v57 = vmul.f32 %v3689_v51, %v6701_v42 }
 0xb61   : > { %5889 = vmatprep.subr.bf16.mxu0 %v5888_v60  ;;  %v3665_v4 = vmul.f32 %v3659_v50, %v6660_v3  ;;  %v3666_v22 = vmul.f32 %v3655_v21, %v6653_v58  ;;  %v3717_v21 = vsel %vm510_vm3, %v9013_v49, %v9058_v17  ;;  %v3728_v52 = vmul.f32 %v3718_v34, %v6736_v27 }
 0xb62   : > { %5891 = vmatpush1.bf16.msra.mxu0 %v5890_v11  ;;  %v5902_v50 = vpack.c.bf16 %v3695_v18, %v3693_v57 }
 0xb63   : > { %v3682_v5 = vpop.permute.xlu1 %3681  ;;  %5893 = vmatprep.subr.bf16.mxu0 %v5892_v59  ;;  %v3652_v28 = vpop.permute.xlu0 %3651  ;;  %v5900_v59 = vpack.c.bf16 %v3696_v14, %v3694_v1 }
 0xb64   : > { %v3656_v24 = vsel %vm466_vm0, %v3644_v62, %v3652_v28  ;;  %v3660_v11 = vsel %vm466_vm0, %v3652_v28, %v3644_v62  ;;  %v3687_v2 = vsel %vm488_vm2, %v3674_v63, %v3682_v5  ;;  %v3691_v37 = vsel %vm488_vm2, %v3682_v5, %v3674_v63 }
 0xb65   : > { %v3667_v30 = vmul.f32 %v3660_v11, %v6660_v3  ;;  %v3668_v15 = vmul.f32 %v3656_v24, %v6653_v58  ;;  %v3722_v28 = vsel %vm510_vm3, %v9060_v39, %v9027_v44  ;;  %v3697_v14 = vmul.f32 %v3691_v37, %v6701_v42 }
 0xb66   : > { %5895 = vmatpush1.bf16.msra.mxu0 %v5894_v48  ;;  %v3698_v24 = vmul.f32 %v3687_v2, %v6694_v25  ;;  %v3721_v44 = vsel %vm510_vm3, %v9058_v17, %v9013_v49  ;;  %v3726_v39 = vmul.f32 %v3717_v21, %v6736_v27  ;;  %v3727_v51 = vmul.f32 %v3722_v28, %v6766_v13 }
 0xb67   : > { %v5898_v32 = vpack.c.bf16 %v3667_v30, %v3665_v4  ;;  %v3714_v47 = vpop.permute.xlu1 %3713  ;;  %v9125_v62 = vpop.permute.xlu0 %3747  ;;  %v5896_v60 = vpack.c.bf16 %v3668_v15, %v3666_v22  ;;  %v3725_v18 = vmul.f32 %v3721_v44, %v6766_v13  ;;  %v3736_v2 = vmul.f32 %v8891_v46, %v6780_v16 }
 0xb68   : > { %v5908_v1 = vpack.c.bf16 %v3728_v52, %v3726_v39  ;;  %v3723_v49 = vsel %vm510_vm3, %v3714_v47, %v9062_v40 }
 0xb69   : > { %5897 = vmatprep.subr.bf16.mxu0 %v5896_v60  ;;  %v5910_v57 = vpack.c.bf16 %v3727_v51, %v3725_v18  ;;  %v3729_v37 = vmul.f32 %v3723_v49, %v6766_v13 }
 0xb6a   : > { %5899 = vmatpush1.bf16.msra.mxu0 %v5898_v32  ;;  %v3719_v32 = vsel %vm510_vm3, %v9062_v40, %v3714_v47 }
 0xb6b   : > { %v9140_v38 = vpop.permute.xlu1 %3745  ;;  %5901 = vmatprep.subr.bf16.mxu0 %v5900_v59  ;;  %v3684_v48 = vpop.permute.xlu0 %3683  ;;  %v3730_v40 = vmul.f32 %v3719_v32, %v6736_v27 }
 0xb6c   : > { %v3688_v63 = vsel %vm488_vm2, %v9064_v19, %v3684_v48  ;;  %v3692_v5 = vsel %vm488_vm2, %v3684_v48, %v9064_v19 }
 0xb6d   : > { %v3699_v11 = vmul.f32 %v3692_v5, %v6701_v42  ;;  %v3700_v4 = vmul.f32 %v3688_v63, %v6694_v25  ;;  %v3734_v63 = vmul.f32 %v8885_v36, %v6780_v16  ;;  %v3740_v5 = vmul.f32 %v8931_v12, %v6780_v16 }
 0xb6e   : > { %5903 = vmatpush1.bf16.msra.mxu0 %v5902_v50  ;;  %v3761_v12 = vsel %vm547_vm4, %v9077_v41, %v9025_v53 }
 0xb6f   : > { %v5906_v22 = vpack.c.bf16 %v3699_v11, %v3697_v14  ;;  %v3754_v30 = vpop.permute.xlu1 %3753  ;;  %v9162_v15 = vpop.permute.xlu0 %3775  ;;  %v5904_v19 = vpack.c.bf16 %v3700_v4, %v3698_v24  ;;  %v5916_v46 = vpack.c.bf16 %v3736_v2, %v3734_v63  ;;  %v3762_v14 = vsel %vm547_vm4, %v9095_v6, %v9035_v29 }
 0xb70   : > { %v3733_v24 = vmul.f32 %v8863_v54, %v6804_v35  ;;  %v3758_v4 = vsel %vm547_vm4, %v9035_v29, %v9095_v6  ;;  %v3739_v54 = vmul.f32 %v8911_v61, %v6804_v35  ;;  %v3768_v39 = vmul.f32 %v3762_v14, %v6822_v43 }
 0xb71   : > { %5905 = vmatprep.subr.bf16.mxu0 %v5904_v19  ;;  %v3737_v19 = vmul.f32 %v8905_v45, %v6804_v35  ;;  %v3766_v51 = vmul.f32 %v3761_v12, %v6822_v43  ;;  %v3767_v6 = vmul.f32 %v3758_v4, %v6839_v8  ;;  %v3759_v61 = vsel %vm547_vm4, %v9140_v38, %v3754_v30 }
 0xb72   : > { %5907 = vmatpush1.bf16.msra.mxu0 %v5906_v22  ;;  %v3763_v18 = vsel %vm547_vm4, %v3754_v30, %v9140_v38 }
 0xb73   : > { %v3774_v17 = vpop.permute.xlu1 %3773  ;;  %5909 = vmatprep.subr.bf16.mxu0 %v5908_v1  ;;  %v3716_v60 = vpop.permute.xlu0 %3715  ;;  %v5924_v32 = vpack.c.bf16 %v3768_v39, %v3766_v51 }
 0xb74   : > { %v3720_v34 = vsel %vm510_vm3, %v9066_v56, %v3716_v60  ;;  %v3724_v59 = vsel %vm510_vm3, %v3716_v60, %v9066_v56  ;;  %v3735_v56 = vmul.f32 %v8867_v55, %v6804_v35  ;;  %v3738_v55 = vmul.f32 %v8925_v33, %v6780_v16 }
 0xb75   : > { %v3731_v47 = vmul.f32 %v3724_v59, %v6766_v13  ;;  %v3732_v21 = vmul.f32 %v3720_v34, %v6736_v27  ;;  %v3757_v33 = vsel %vm547_vm4, %v9025_v53, %v9077_v41  ;;  %v5922_v53 = vpack.c.bf16 %v3739_v54, %v3737_v19 }
 0xb76   : > { %5911 = vmatpush1.bf16.msra.mxu0 %v5910_v57  ;;  %v5918_v44 = vpack.c.bf16 %v3735_v56, %v3733_v24  ;;  %v5920_v22 = vpack.c.bf16 %v3740_v5, %v3738_v55  ;;  %v3765_v41 = vmul.f32 %v3757_v33, %v6839_v8  ;;  %v3769_v57 = vmul.f32 %v3759_v61, %v6839_v8 }
 0xb77   : > { %v5914_v50 = vpack.c.bf16 %v3731_v47, %v3729_v37  ;;  %v3782_v48 = vpop.permute.xlu1 %3781  ;;  %v3784_v28 = vpop.permute.xlu0 %3783  ;;  %v5912_v52 = vpack.c.bf16 %v3732_v21, %v3730_v40  ;;  %v3770_v34 = vmul.f32 %v3763_v18, %v6822_v43 }
 0xb78   : > { %v3793_v45 = vsel %vm569_vm5, %v3782_v48, %v3774_v17  ;;  %v3794_v49 = vsel %vm569_vm5, %v3784_v28, %v9162_v15  ;;  %v5926_v60 = vpack.c.bf16 %v3767_v6, %v3765_v41  ;;  %v3789_v38 = vsel %vm569_vm5, %v3774_v17, %v3782_v48 }
 0xb79   : > { %5913 = vmatprep.subr.bf16.mxu0 %v5912_v52  ;;  %v3790_v30 = vsel %vm569_vm5, %v9162_v15, %v3784_v28  ;;  %v3798_v47 = vmul.f32 %v3793_v45, %v6860_v9  ;;  %v3800_v21 = vmul.f32 %v3794_v49, %v6860_v9  ;;  %v3797_v48 = vmul.f32 %v3789_v38, %v6870_v31 }
 0xb7a   : > { %5915 = vmatpush1.bf16.msra.mxu0 %v5914_v50  ;;  %v3799_v15 = vmul.f32 %v3790_v30, %v6870_v31 }
 0xb7b   : > { %v3778_v11 = vpop.permute.xlu1 %3777  ;;  %5917 = vmatprep.subr.bf16.mxu0 %v5916_v46  ;;  %v3780_v36 = vpop.permute.xlu0 %3779  ;;  %v5932_v5 = vpack.c.bf16 %v3800_v21, %v3798_v47 }
 0xb7c   : > { %v5934_v55 = vpack.c.bf16 %v3799_v15, %v3797_v48 }
 0xb7e   : > { %5919 = vmatpush1.bf16.msra.mxu0 %v5918_v44 }
 0xb7f   : > { %v3786_v29 = vpop.permute.xlu1 %3785  ;;  %v3808_v1 = vpop.permute.xlu0 %3807  ;;  %5921 = vmatprep.subr.bf16.mxu0 %v5920_v22 }
 0xb80   : > { %v3795_v46 = vsel %vm569_vm5, %v3786_v29, %v3778_v11 }
 0xb81   : > { %v3802_v4 = vmul.f32 %v3795_v46, %v6860_v9 }
 0xb82   : > { %5923 = vmatpush1.bf16.msra.mxu0 %v5922_v53 }
 0xb83   : > { %v3806_v59 = vpop.permute.xlu1 %3805  ;;  %v3756_v2 = vpop.permute.xlu0 %3755  ;;  %5925 = vmatprep.subr.bf16.mxu0 %v5924_v32 }
 0xb84   : > { %v3760_v37 = vsel %vm547_vm4, %v9125_v62, %v3756_v2  ;;  %v3764_v40 = vsel %vm547_vm4, %v3756_v2, %v9125_v62  ;;  %v3791_v62 = vsel %vm569_vm5, %v3778_v11, %v3786_v29 }
 0xb85   : > { %v3771_v50 = vmul.f32 %v3760_v37, %v6839_v8  ;;  %v3772_v17 = vmul.f32 %v3764_v40, %v6822_v43  ;;  %v3801_v12 = vmul.f32 %v3791_v62, %v6870_v31 }
 0xb86   : > { %5927 = vmatpush1.bf16.msra.mxu0 %v5926_v60 }
 0xb87   : > { %v5930_v28 = vpack.c.bf16 %v3771_v50, %v3769_v57  ;;  %v3814_v52 = vpop.permute.xlu1 %3813  ;;  %v3816_v63 = vpop.permute.xlu0 %3815  ;;  %v5928_v56 = vpack.c.bf16 %v3772_v17, %v3770_v34 }
 0xb88   : > { %v3825_v14 = vsel %vm591_vm6, %v3814_v52, %v3806_v59  ;;  %v3826_v24 = vsel %vm591_vm6, %v3816_v63, %v3808_v1  ;;  %v3821_v11 = vsel %vm591_vm6, %v3806_v59, %v3814_v52  ;;  %v3822_v39 = vsel %vm591_vm6, %v3808_v1, %v3816_v63 }
 0xb89   : > { %5929 = vmatprep.subr.bf16.mxu0 %v5928_v56  ;;  %v3830_v19 = vmul.f32 %v3825_v14, %v6900_v7  ;;  %v3832_v51 = vmul.f32 %v3826_v24, %v6900_v7  ;;  %v3829_v1 = vmul.f32 %v3821_v11, %v6907_v0  ;;  %v3831_v32 = vmul.f32 %v3822_v39, %v6907_v0  ;;  %v5439_v56 = vld [vmem:[%s6546_s30 + $0x200] sm:$0xff] }
 0xb8a   : > { %5931 = vmatpush1.bf16.msra.mxu0 %v5930_v28  ;;  %v5435_v28 = vld [vmem:[%s6546_s30 + $0x1e0] sm:$0xff] }
 0xb8b   : > { %v3810_v44 = vpop.permute.xlu1 %3809  ;;  %v3788_v54 = vpop.permute.xlu0 %3787  ;;  %5933 = vmatprep.subr.bf16.mxu0 %v5932_v5  ;;  %v5940_v45 = vpack.c.bf16 %v3832_v51, %v3830_v19  ;;  %v5942_v34 = vpack.c.bf16 %v3831_v32, %v3829_v1  ;;  %v10363_v14 = vld [vmem:[#allocation10_spill] sm:$0xff]  ;;  %v5441_v51 = vld [vmem:[%s6546_s30 + $0x210] sm:$0xff] }
 0xb8c   : > { %v3792_v22 = vsel %vm569_vm5, %v3780_v36, %v3788_v54  ;;  %v3796_v33 = vsel %vm569_vm5, %v3788_v54, %v3780_v36 }
 0xb8d   : > { %v3803_v6 = vmul.f32 %v3792_v22, %v6870_v31  ;;  %v3804_v29 = vmul.f32 %v3796_v33, %v6860_v9  ;;  %v5442_v22 = vld [vmem:[%s6546_s30 + $0x218] sm:$0xff] }
 0xb8e   : > { %5935 = vmatpush1.bf16.msra.mxu0 %v5934_v55 }
 0xb8f   : > { %v5938_v61 = vpack.c.bf16 %v3803_v6, %v3801_v12  ;;  %v3818_v18 = vpop.permute.xlu1 %3817  ;;  %v3812_v53 = vpop.permute.xlu0 %3811  ;;  %v5936_v41 = vpack.c.bf16 %v3804_v29, %v3802_v4  ;;  %v5438_v4 = vld [vmem:[%s6546_s30 + $0x1f8] sm:$0xff]  ;;  %v5445_v29 = vld [vmem:[%s6546_s30 + $0x230] sm:$0xff] }
 0xb90   : > { %v3823_v36 = vsel %vm591_vm6, %v3810_v44, %v3818_v18  ;;  %v3827_v49 = vsel %vm591_vm6, %v3818_v18, %v3810_v44 }
 0xb91   : > { %5937 = vmatprep.subr.bf16.mxu0 %v5936_v41  ;;  %v3833_v38 = vmul.f32 %v3823_v36, %v6907_v0  ;;  %v3834_v30 = vmul.f32 %v3827_v49, %v6900_v7 }
 0xb92   : > { %5939 = vmatpush1.bf16.msra.mxu0 %v5938_v61 }
 0xb93   : > { %v3838_v60 = vpop.permute.xlu1 %3837  ;;  %v3820_v57 = vpop.permute.xlu0 %3819  ;;  %5941 = vmatprep.subr.bf16.mxu0 %v5940_v45  ;;  %v5444_v45 = vld [vmem:[%s6546_s30 + $0x228] sm:$0xff] }
 0xb94   : > { %v3824_v59 = vsel %vm591_vm6, %v3812_v53, %v3820_v57  ;;  %v3828_v2 = vsel %vm591_vm6, %v3820_v57, %v3812_v53  ;;  %v5437_v57 = vld [vmem:[%s6546_s30 + $0x1f0] sm:$0xff] }
 0xb95   : > { %v3835_v37 = vmul.f32 %v3824_v59, %v6907_v0  ;;  %v3836_v40 = vmul.f32 %v3828_v2, %v6900_v7  ;;  %v5443_v59 = vld [vmem:[%s6546_s30 + $0x220] sm:$0xff]  ;;  %v5446_v2 = vld [vmem:[%s6546_s30 + $0x238] sm:$0xff] }
 0xb96   : > { %5943 = vmatpush1.bf16.msra.mxu0 %v5942_v34  ;;  %v5440_v34 = vld [vmem:[%s6546_s30 + $0x208] sm:$0xff] }
 0xb97   : > { %v5946_v47 = vpack.c.bf16 %v3835_v37, %v3833_v38  ;;  %v3846_v21 = vpop.permute.xlu1 %3845  ;;  %v3840_v50 = vpop.permute.xlu0 %3839  ;;  %v5944_v17 = vpack.c.bf16 %v3836_v40, %v3834_v30 }
 0xb98   : > { %v3853_v48 = vsel %vm613_vm7, %v3838_v60, %v3846_v21  ;;  %v3857_v15 = vsel %vm613_vm7, %v3846_v21, %v3838_v60  ;;  %v10364_v60 = vmov 0.0  }
 0xb99   : > { %5945 = vmatprep.subr.bf16.mxu0 %v5944_v17  ;;  %v3861_v5 = vmul.f32 %v3853_v48, %v6943_v23  ;;  %v3862_v24 = vmul.f32 %v3857_v15, %v10363_v14 }
 0xb9a   : > { %5947 = vmatpush1.bf16.msra.mxu0 %v5946_v47 }
 0xb9b   : > { %v3842_v52 = vpop.permute.xlu1 %3841  ;;  %v3848_v63 = vpop.permute.xlu0 %3847 }
 0xb9c   : > { %v3854_v62 = vsel %vm613_vm7, %v3840_v50, %v3848_v63  ;;  %v3858_v46 = vsel %vm613_vm7, %v3848_v63, %v3840_v50  ;;  %v10365_v63 = vld [vmem:[#allocation2_spill] sm:$0xff] }
 0xb9d   : > { %v3863_v55 = vmul.f32 %v3854_v62, %v6943_v23  ;;  %v3864_v12 = vmul.f32 %v3858_v46, %v10363_v14  ;;  %3946 = vmatmul.mubr.f32.vlgmr.msra.gmra.mrb[24].mxu0 %v5435_v28 }
 0xb9e   : > { %3951 = vmatprep.mubr.f32.mxu0 %v5439_v56 }
 0xb9f   : > { %v5950_v44 = vpack.c.bf16 %v3863_v55, %v3861_v5  ;;  %v3850_v54 = vpop.permute.xlu1 %3849  ;;  %v3844_v11 = vpop.permute.xlu0 %3843  ;;  %v5948_v39 = vpack.c.bf16 %v3864_v12, %v3862_v24  ;;  %v10367_v55 = vld [vmem:[#allocation3_spill] sm:$0xff] }
 0xba0   : > { %v3855_v33 = vsel %vm613_vm7, %v3842_v52, %v3850_v54  ;;  %v3859_v19 = vsel %vm613_vm7, %v3850_v54, %v3842_v52 }
 0xba1   : > { %3952 = vmatmul.mubr.f32.gmra.mrb[26].mxu0 %v5438_v4  ;;  %5949 = vmatprep.subr.bf16.mxu0 %v5948_v39  ;;  %v3865_v53 = vmul.f32 %v3855_v33, %v6943_v23  ;;  %v3866_v41 = vmul.f32 %v3859_v19, %v10363_v14  ;;  %v10368_v19 = vld [vmem:[#allocation4_spill] sm:$0xff] }
 0xba2   : > { %5951 = vmatpush1.bf16.msra.mxu0 %v5950_v44  ;;  %3957 = vmatprep.mubr.f32.mxu0 %v5442_v22 }
 0xba3   : > { %v3852_v6 = vpop.permute.xlu0 %3851 }
 0xba4   : > { %v3856_v61 = vsel %vm613_vm7, %v3844_v11, %v3852_v6  ;;  %v3860_v18 = vsel %vm613_vm7, %v3852_v6, %v3844_v11 }
 0xba5   : > { %v3867_v1 = vmul.f32 %v3856_v61, %v6943_v23  ;;  %v3868_v32 = vmul.f32 %v3860_v18, %v10363_v14  ;;  %3958 = vmatmul.mubr.f32.gmra.mrb[28].mxu0 %v5441_v51  ;;  %v10370_v61 = vld [vmem:[#allocation5_spill] sm:$0xff] }
 0xba6   : > { %3963 = vmatprep.mubr.f32.mxu0 %v5445_v29 }
 0xba7   : > { %v5954_v36 = vpack.c.bf16 %v3867_v1, %v3865_v53  ;;  %v5952_v49 = vpack.c.bf16 %v3868_v32, %v3866_v41 }
 0xba9   : > { %3964 = vmatmul.mubr.f32.gmra.mrb[30].mxu0 %v5444_v45  ;;  %5953 = vmatprep.subr.bf16.mxu0 %v5952_v49 }
 0xbaa   : > { %5955 = vmatpush1.bf16.msra.mxu0 %v5954_v36  ;;  %4034 = vmatprep.mubr.f32.mxu0 %v10364_v60 }
 0xbad   : > { %5447 = vmatmul.mubr.msk.f32.vlgmr.msra.gmra.mrb[24].mxu0 %vm1149_vm9, %v5437_v57 }
 0xbae   : > { %4040 = vmatprep.mubr.f32.mxu0 %v10364_v60 }
 0xbb0   : > { %v4067_v38 = vpop.permute.xlu1 %4066 }
 0xbb1   : > { %5448 = vmatmul.mubr.msk.f32.gmra.mrb[26].mxu0 %vm1149_vm9, %v5440_v34  ;;  %v10371_v34 = vld [vmem:[#allocation6_spill] sm:$0xff] }
 0xbb2   : > { %4046 = vmatprep.mubr.f32.mxu0 %v10364_v60 }
 0xbb4   : > { %v4072_v30 = vpop.permute.xlu0 %4071  ;;  %v4100_v21 = vpop.permute.xlu1 %4099 }
 0xbb5   : > { %5449 = vmatmul.mubr.msk.f32.gmra.mrb[28].mxu0 %vm1149_vm9, %v5443_v59 }
 0xbb6   : > { %4052 = vmatprep.mubr.f32.mxu0 %v10364_v60 }
 0xbb8   : > { %v4105_v52 = vpop.permute.xlu0 %4104  ;;  %v4077_v29 = vpop.permute.xlu1 %4076 }
 0xbb9   : > { %5450 = vmatmul.mubr.msk.f32.gmra.mrb[30].mxu0 %vm1149_vm9, %v5446_v2 }
 0xbbc   : > { %v4082_v41 = vpop.permute.xlu0 %4081  ;;  %v4110_v1 = vpop.permute.xlu1 %4109 }
 0xbc0   : > { %v4115_v36 = vpop.permute.xlu0 %4114 }
 0xc80   : > { %v4036_v37 = vpop.f32.mrb[24].mxu0 }
 0xc81   : > { %v4084_v40 = vmul.f32 %v4067_v38, %v4036_v37  ;;  %v4038_v47 = vpop.f32.mrb[25].mxu0 }
 0xc82   : > { %v4085_v54 = vmul.f32 %v4067_v38, %v4038_v47 }
 0xc83   : > { %v4117_v50 = vadd.f32 %v4100_v21, %v4084_v40 }
 0xc84   : > { %v4042_v17 = vpop.f32.mrb[26].mxu0  ;;  %v4118_v11 = vadd.f32 %v4100_v21, %v4085_v54 }
 0xc85   : > { %v4125_v48 = vmul.f32 0.1, %v4117_v50  ;;  %v4086_v15 = vmul.f32 %v4072_v30, %v4042_v17  ;;  %v4044_v28 = vpop.f32.mrb[27].mxu0  ;;  %v10373_v17 = vld [vmem:[#allocation8_spill] sm:$0xff] }
 0xc86   : > { %v4087_v39 = vmul.f32 %v4072_v30, %v4044_v28  ;;  %v4126_v22 = vmul.f32 0.1, %v4118_v11  ;;  %v10372_v30 = vld [vmem:[#allocation7_spill] sm:$0xff]  ;;  %v10374_v28 = vld [vmem:[#allocation9_spill] sm:$0xff]  ;;  %v5479_v11 = vld [vmem:[%s10271_s8 + $0xc0] sm:$0xff] }
 0xc87   : > { %v9328_v56 = vadd.f32 %v4125_v48, %v10365_v63  ;;  %v4119_v62 = vadd.f32 %v4105_v52, %v4086_v15  ;;  %v5460_v63 = vld [vmem:[%s6546_s30 + $0x248] sm:$0xff] }
 0xc88   : > { %v4048_v46 = vpop.f32.mrb[28].mxu0  ;;  %v4120_v33 = vadd.f32 %v4105_v52, %v4087_v39  ;;  %v9352_v51 = vadd.f32 %v4126_v22, %v10368_v19  ;;  %4494 = vmatprep.mubr.f32.mxu1 %v5460_v63  ;;  %v5476_v39 = vld [vmem:[%s10270_s7 + $0xc8] sm:$0xff]  ;;  %v5477_v19 = vld [vmem:[%s10270_s7 + $0xd0] sm:$0xff] }
 0xc89   : > { %10366 = vst [vmem:[#allocation2_spill] sm:$0xff] %v9328_v56  ;;  %v4127_v5 = vmul.f32 0.1, %v4119_v62  ;;  %4154 = vrot.lane.b32.xlu1 %v9328_v56, %s6193_s20  ;;  %v4050_v24 = vpop.f32.mrb[29].mxu0  ;;  %v4088_v53 = vmul.f32 %v4077_v29, %v4048_v46 }
 0xc8a   : > { %10369 = vst [vmem:[#allocation3_spill] sm:$0xff] %v9352_v51  ;;  %v4128_v6 = vmul.f32 0.1, %v4120_v33  ;;  %v4089_v38 = vmul.f32 %v4077_v29, %v4050_v24 }
 0xc8b   : > { %v9333_v12 = vadd.f32 %v4127_v5, %v10367_v55  ;;  %v4121_v32 = vadd.f32 %v4110_v1, %v4088_v53 }
 0xc8c   : > { %v4054_v4 = vpop.f32.mrb[30].mxu0  ;;  %v9359_v18 = vadd.f32 %v4128_v6, %v10370_v61  ;;  %v4122_v40 = vadd.f32 %v4110_v1, %v4089_v38  ;;  %v5480_v6 = vld [vmem:[%s10271_s8 + $0xc8] sm:$0xff]  ;;  %v5481_v1 = vld [vmem:[%s10271_s8 + $0xd0] sm:$0xff] }
 0xc8d   : > { %4186 = vrot.lane.b32.xlu1 %v9328_v56, %s6192_s19  ;;  %4156 = vrot.lane.b32.xlu0 %v9333_v12, %s6193_s20  ;;  %v4056_v44 = vpop.f32.mrb[31].mxu0  ;;  %v4090_v45 = vmul.f32 %v4082_v41, %v4054_v4  ;;  %v4129_v49 = vmul.f32 0.1, %v4121_v32  ;;  %v5475_v4 = vld [vmem:[%s10270_s7 + $0xc0] sm:$0xff] }
 0xc8e   : > { %v4091_v47 = vmul.f32 %v4082_v41, %v4056_v44  ;;  %v4130_v21 = vmul.f32 0.1, %v4122_v40 }
 0xc8f   : > { %v4123_v57 = vadd.f32 %v4115_v36, %v4090_v45  ;;  %v9374_v59 = vadd.f32 %v4129_v49, %v10371_v34 }
 0xc90   : > { %v4124_v50 = vadd.f32 %v4115_v36, %v4091_v47  ;;  %v9396_v48 = vadd.f32 %v4130_v21, %v10373_v17  ;;  %v5478_v36 = vld [vmem:[%s10270_s7 + $0xd8] sm:$0xff] }
 0xc91   : > { %4218 = vrot.lane.b32.xlu1 %v9328_v56, %s6194_s21  ;;  %4188 = vrot.lane.b32.xlu0 %v9333_v12, %s6192_s19  ;;  %v4131_v2 = vmul.f32 0.1, %v4123_v57  ;;  %v5482_v17 = vld [vmem:[%s10271_s8 + $0xd8] sm:$0xff] }
 0xc92   : > { %v4132_v15 = vmul.f32 0.1, %v4124_v50 }
 0xc93   : > { %v9381_v37 = vadd.f32 %v4131_v2, %v10372_v30 }
 0xc94   : > { %v9403_v52 = vadd.f32 %v4132_v15, %v10374_v28 }
 0xc95   : > { %4250 = vrot.lane.b32.xlu1 %v9328_v56, %s6195_s22  ;;  %4220 = vrot.lane.b32.xlu0 %v9333_v12, %s6194_s21 }
 0xc99   : > { %4290 = vrot.lane.b32.xlu1 %v9328_v56, %s6196_s23  ;;  %4252 = vrot.lane.b32.xlu0 %v9333_v12, %s6195_s22 }
 0xc9d   : > { %4162 = vrot.lane.b32.xlu1 %v9352_v51, %s6193_s20  ;;  %4292 = vrot.lane.b32.xlu0 %v9333_v12, %s6196_s23 }
 0xca1   : > { %4194 = vrot.lane.b32.xlu1 %v9352_v51, %s6192_s19  ;;  %4164 = vrot.lane.b32.xlu0 %v9359_v18, %s6193_s20 }
 0xca5   : > { %4226 = vrot.lane.b32.xlu1 %v9352_v51, %s6194_s21  ;;  %4196 = vrot.lane.b32.xlu0 %v9359_v18, %s6192_s19 }
 0xca9   : > { %4258 = vrot.lane.b32.xlu1 %v9352_v51, %s6195_s22  ;;  %4228 = vrot.lane.b32.xlu0 %v9359_v18, %s6194_s21 }
 0xcad   : > { %4260 = vrot.lane.b32.xlu0 %v9359_v18, %s6195_s22  ;;  %4158 = vrot.lane.b32.xlu1 %v9374_v59, %s6193_s20 }
 0xcb1   : > { %4190 = vrot.lane.b32.xlu1 %v9374_v59, %s6192_s19  ;;  %4160 = vrot.lane.b32.xlu0 %v9381_v37, %s6193_s20 }
 0xcb5   : > { %4222 = vrot.lane.b32.xlu1 %v9374_v59, %s6194_s21  ;;  %4192 = vrot.lane.b32.xlu0 %v9381_v37, %s6192_s19 }
 0xcb9   : > { %4254 = vrot.lane.b32.xlu1 %v9374_v59, %s6195_s22  ;;  %4224 = vrot.lane.b32.xlu0 %v9381_v37, %s6194_s21 }
 0xcbd   : > { %4166 = vrot.lane.b32.xlu1 %v9396_v48, %s6193_s20  ;;  %4256 = vrot.lane.b32.xlu0 %v9381_v37, %s6195_s22 }
 0xcc1   : > { %4298 = vrot.lane.b32.xlu1 %v9352_v51, %s6196_s23  ;;  %4168 = vrot.lane.b32.xlu0 %v9403_v52, %s6193_s20 }
 0xcc5   : > { %4198 = vrot.lane.b32.xlu1 %v9396_v48, %s6192_s19  ;;  %4300 = vrot.lane.b32.xlu0 %v9359_v18, %s6196_s23 }
 0xcc9   : > { %4230 = vrot.lane.b32.xlu1 %v9396_v48, %s6194_s21  ;;  %4200 = vrot.lane.b32.xlu0 %v9403_v52, %s6192_s19 }
 0xccd   : > { %4262 = vrot.lane.b32.xlu1 %v9396_v48, %s6195_s22  ;;  %4296 = vrot.lane.b32.xlu0 %v9381_v37, %s6196_s23 }
 0xcd1   : > { %4294 = vrot.lane.b32.xlu1 %v9374_v59, %s6196_s23  ;;  %4232 = vrot.lane.b32.xlu0 %v9403_v52, %s6194_s21 }
 0xcd5   : > { %4302 = vrot.lane.b32.xlu1 %v9396_v48, %s6196_s23  ;;  %4324 = vrot.lane.b32.xlu0 %v9333_v12, %s6197_s24 }
 0xcd9   : > { %4322 = vrot.lane.b32.xlu1 %v9328_v56, %s6197_s24  ;;  %4264 = vrot.lane.b32.xlu0 %v9403_v52, %s6195_s22 }
 0xcdd   : > { %4330 = vrot.lane.b32.xlu1 %v9352_v51, %s6197_s24  ;;  %4332 = vrot.lane.b32.xlu0 %v9359_v18, %s6197_s24 }
 0xce1   : > { %4326 = vrot.lane.b32.xlu1 %v9374_v59, %s6197_s24  ;;  %4328 = vrot.lane.b32.xlu0 %v9381_v37, %s6197_s24 }
 0xce5   : > { %4334 = vrot.lane.b32.xlu1 %v9396_v48, %s6197_s24  ;;  %4356 = vrot.lane.b32.xlu0 %v9333_v12, %s6199_s25 }
 0xce9   : > { %4354 = vrot.lane.b32.xlu1 %v9328_v56, %s6199_s25  ;;  %4304 = vrot.lane.b32.xlu0 %v9403_v52, %s6196_s23 }
 0xced   : > { %4362 = vrot.lane.b32.xlu1 %v9352_v51, %s6199_s25  ;;  %4364 = vrot.lane.b32.xlu0 %v9359_v18, %s6199_s25 }
 0xcf1   : > { %4358 = vrot.lane.b32.xlu1 %v9374_v59, %s6199_s25  ;;  %4336 = vrot.lane.b32.xlu0 %v9403_v52, %s6197_s24 }
 0xcf5   : > { %4366 = vrot.lane.b32.xlu1 %v9396_v48, %s6199_s25  ;;  %4360 = vrot.lane.b32.xlu0 %v9381_v37, %s6199_s25 }
 0xcf9   : > { %4386 = vrot.lane.b32.xlu1 %v9328_v56, %s6200_s26  ;;  %4368 = vrot.lane.b32.xlu0 %v9403_v52, %s6199_s25 }
 0xcfb   : > { %v4155_v62 = vpop.permute.xlu1 %4154 }
 0xcfd   : > { %4394 = vrot.lane.b32.xlu1 %v9352_v51, %s6200_s26  ;;  %4388 = vrot.lane.b32.xlu0 %v9333_v12, %s6200_s26 }
 0xcff   : > { %v9470_v46 = vpop.permute.xlu1 %4186  ;;  %v4157_v5 = vpop.permute.xlu0 %4156 }
 0xd01   : > { %4390 = vrot.lane.b32.xlu1 %v9374_v59, %s6200_s26  ;;  %4396 = vrot.lane.b32.xlu0 %v9359_v18, %s6200_s26 }
 0xd03   : > { %v9476_v24 = vpop.permute.xlu1 %4218  ;;  %v4189_v55 = vpop.permute.xlu0 %4188 }
 0xd05   : > { %4398 = vrot.lane.b32.xlu1 %v9396_v48, %s6200_s26  ;;  %4392 = vrot.lane.b32.xlu0 %v9381_v37, %s6200_s26 }
 0xd07   : > { %v9485_v44 = vpop.permute.xlu1 %4250  ;;  %v9487_v54 = vpop.permute.xlu0 %4220 }
 0xd09   : > { %4615 = vperm.xlu1 %6182, %v5475_v4   ;;  %4400 = vrot.lane.b32.xlu0 %v9403_v52, %s6200_s26 }
 0xd0b   : > { %v9497_v22 = vpop.permute.xlu1 %4290  ;;  %v9499_v33 = vpop.permute.xlu0 %4252 }
 0xd0d   : > { %4648 = vperm.xlu1 %6182, %v5479_v11   ;;  %4620 = vperm.xlu0 %6181, %v5476_v39  }
 0xd0f   : > { %v4163_v29 = vpop.permute.xlu1 %4162  ;;  %v9507_v61 = vpop.permute.xlu0 %4292 }
 0xd10   : > { %v4170_v53 = vsel %vm445_vm1, %v4155_v62, %v4163_v29  ;;  %v4174_v41 = vsel %vm445_vm1, %v4163_v29, %v4155_v62 }
 0xd11   : > { %4625 = vperm.xlu1 %6182, %v5477_v19   ;;  %4653 = vperm.xlu0 %6181, %v5480_v6   ;;  %v4178_v34 = vmul.f32 %v4174_v41, %v6617_v26  ;;  %v4179_v2 = vmul.f32 %v4170_v53, %v6606_v20 }
 0xd13   : > { %v4195_v32 = vpop.permute.xlu1 %4194  ;;  %v4165_v45 = vpop.permute.xlu0 %4164 }
 0xd14   : > { %v4171_v49 = vsel %vm445_vm1, %v4157_v5, %v4165_v45  ;;  %v4175_v57 = vsel %vm445_vm1, %v4165_v45, %v4157_v5 }
 0xd15   : > { %v4180_v38 = vmul.f32 %v4175_v57, %v6617_v26  ;;  %v4181_v30 = vmul.f32 %v4171_v49, %v6606_v20  ;;  %4658 = vperm.xlu1 %6182, %v5481_v1   ;;  %4630 = vperm.xlu0 %6181, %v5478_v36   ;;  %v4202_v36 = vsel %vm466_vm0, %v9470_v46, %v4195_v32 }
 0xd17   : > { %v5958_v40 = vpack.c.bf16 %v4180_v38, %v4178_v34  ;;  %v4227_v47 = vpop.permute.xlu1 %4226  ;;  %v4197_v21 = vpop.permute.xlu0 %4196  ;;  %v5956_v50 = vpack.c.bf16 %v4181_v30, %v4179_v2 }
 0xd18   : > { %v4203_v41 = vsel %vm466_vm0, %v4189_v55, %v4197_v21  ;;  %v4207_v34 = vsel %vm466_vm0, %v4197_v21, %v4189_v55  ;;  %v4206_v55 = vsel %vm466_vm0, %v4195_v32, %v9470_v46  ;;  %v4211_v21 = vmul.f32 %v4202_v36, %v6653_v58 }
 0xd19   : > { %5957 = vmatprep.subr.bf16.mxu1 %v5956_v50  ;;  %4663 = vperm.xlu0 %6181, %v5482_v17   ;;  %v4213_v2 = vmul.f32 %v4203_v41, %v6653_v58  ;;  %v4234_v36 = vsel %vm488_vm2, %v9476_v24, %v4227_v47 }
 0xd1a   : > { %5959 = vmatpush1.bf16.msra.mxu1 %v5958_v40 }
 0xd1b   : > { %v9530_v15 = vpop.permute.xlu1 %4258  ;;  %v4229_v28 = vpop.permute.xlu0 %4228 }
 0xd1f   : > { %v9532_v63 = vpop.permute.xlu0 %4260  ;;  %v4159_v62 = vpop.permute.xlu1 %4158 }
 0xd23   : > { %v4191_v5 = vpop.permute.xlu1 %4190  ;;  %v4161_v4 = vpop.permute.xlu0 %4160 }
 0xd27   : > { %v4223_v11 = vpop.permute.xlu1 %4222  ;;  %v4193_v39 = vpop.permute.xlu0 %4192 }
 0xd2b   : > { %v9534_v19 = vpop.permute.xlu1 %4254  ;;  %v9536_v6 = vpop.permute.xlu0 %4224 }
 0xd2f   : > { %v4167_v29 = vpop.permute.xlu1 %4166  ;;  %v9538_v53 = vpop.permute.xlu0 %4256 }
 0xd30   : > { %v4172_v1 = vsel %vm445_vm1, %v4159_v62, %v4167_v29  ;;  %v4176_v45 = vsel %vm445_vm1, %v4167_v29, %v4159_v62  ;;  %v4212_v29 = vmul.f32 %v4207_v34, %v6660_v3 }
 0xd31   : > { %v4182_v40 = vmul.f32 %v4176_v45, %v6617_v26  ;;  %v4183_v50 = vmul.f32 %v4172_v1, %v6606_v20  ;;  %v4210_v45 = vmul.f32 %v4206_v55, %v6660_v3  ;;  %v4235_v1 = vsel %vm488_vm2, %v9487_v54, %v4229_v28 }
 0xd33   : > { %v9549_v49 = vpop.permute.xlu1 %4298  ;;  %v4169_v57 = vpop.permute.xlu0 %4168  ;;  %v5966_v34 = vpack.c.bf16 %v4212_v29, %v4210_v45 }
 0xd34   : > { %v4173_v38 = vsel %vm445_vm1, %v4161_v4, %v4169_v57  ;;  %v4177_v30 = vsel %vm445_vm1, %v4169_v57, %v4161_v4  ;;  %v5964_v57 = vpack.c.bf16 %v4213_v2, %v4211_v21  ;;  %v4245_v2 = vmul.f32 %v4235_v1, %v6694_v25 }
 0xd35   : > { %v4184_v17 = vmul.f32 %v4177_v30, %v6617_v26  ;;  %v4185_v62 = vmul.f32 %v4173_v38, %v6606_v20  ;;  %v4267_v1 = vsel %vm510_vm3, %v9499_v33, %v9532_v63 }
 0xd37   : > { %v5962_v41 = vpack.c.bf16 %v4184_v17, %v4182_v40  ;;  %v4199_v60 = vpop.permute.xlu1 %4198  ;;  %v9567_v14 = vpop.permute.xlu0 %4300  ;;  %v5960_v4 = vpack.c.bf16 %v4185_v62, %v4183_v50  ;;  %v4239_v40 = vsel %vm488_vm2, %v4229_v28, %v9487_v54  ;;  %v4238_v54 = vsel %vm488_vm2, %v4227_v47, %v9476_v24 }
 0xd38   : > { %v4204_v46 = vsel %vm466_vm0, %v4191_v5, %v4199_v60  ;;  %v4208_v32 = vsel %vm466_vm0, %v4199_v60, %v4191_v5  ;;  %v4243_v28 = vmul.f32 %v4234_v36, %v6694_v25  ;;  %v4244_v21 = vmul.f32 %v4239_v40, %v6701_v42 }
 0xd39   : > { %5961 = vmatprep.subr.bf16.mxu1 %v5960_v4  ;;  %v4214_v5 = vmul.f32 %v4208_v32, %v6660_v3  ;;  %v4215_v17 = vmul.f32 %v4204_v46, %v6653_v58  ;;  %v4242_v45 = vmul.f32 %v4238_v54, %v6701_v42  ;;  %v4266_v46 = vsel %vm510_vm3, %v9485_v44, %v9530_v15 }
 0xd3a   : > { %5963 = vmatpush1.bf16.msra.mxu1 %v5962_v41  ;;  %v4277_v40 = vmul.f32 %v4267_v1, %v6736_v27 }
 0xd3b   : > { %v4231_v38 = vpop.permute.xlu1 %4230  ;;  %5965 = vmatprep.subr.bf16.mxu1 %v5964_v57  ;;  %v4201_v30 = vpop.permute.xlu0 %4200  ;;  %v5972_v57 = vpack.c.bf16 %v4245_v2, %v4243_v28  ;;  %v5974_v32 = vpack.c.bf16 %v4244_v21, %v4242_v45 }
 0xd3c   : > { %v4205_v50 = vsel %vm466_vm0, %v4193_v39, %v4201_v30  ;;  %v4209_v60 = vsel %vm466_vm0, %v4201_v30, %v4193_v39  ;;  %v4236_v24 = vsel %vm488_vm2, %v4223_v11, %v4231_v38  ;;  %v4240_v47 = vsel %vm488_vm2, %v4231_v38, %v4223_v11 }
 0xd3d   : > { %v4216_v62 = vmul.f32 %v4209_v60, %v6660_v3  ;;  %v4217_v55 = vmul.f32 %v4205_v50, %v6653_v58  ;;  %v4271_v30 = vsel %vm510_vm3, %v9532_v63, %v9499_v33  ;;  %v4246_v2 = vmul.f32 %v4240_v47, %v6701_v42 }
 0xd3e   : > { %5967 = vmatpush1.bf16.msra.mxu1 %v5966_v34  ;;  %v4247_v50 = vmul.f32 %v4236_v24, %v6694_v25  ;;  %v4270_v33 = vsel %vm510_vm3, %v9530_v15, %v9485_v44  ;;  %v4275_v63 = vmul.f32 %v4266_v46, %v6736_v27  ;;  %v4276_v54 = vmul.f32 %v4271_v30, %v6766_v13 }
 0xd3f   : > { %v5970_v29 = vpack.c.bf16 %v4216_v62, %v4214_v5  ;;  %v4263_v41 = vpop.permute.xlu1 %4262  ;;  %v9597_v39 = vpop.permute.xlu0 %4296  ;;  %v5968_v4 = vpack.c.bf16 %v4217_v55, %v4215_v17  ;;  %v4274_v21 = vmul.f32 %v4270_v33, %v6766_v13  ;;  %v4285_v24 = vmul.f32 %v9359_v18, %v6780_v16 }
 0xd40   : > { %v5980_v28 = vpack.c.bf16 %v4277_v40, %v4275_v63  ;;  %v4272_v44 = vsel %vm510_vm3, %v4263_v41, %v9534_v19  ;;  %v4307_v33 = vsel %vm547_vm4, %v9507_v61, %v9567_v14 }
 0xd41   : > { %5969 = vmatprep.subr.bf16.mxu1 %v5968_v4  ;;  %v5982_v45 = vpack.c.bf16 %v4276_v54, %v4274_v21  ;;  %v4278_v47 = vmul.f32 %v4272_v44, %v6766_v13 }
 0xd42   : > { %5971 = vmatpush1.bf16.msra.mxu1 %v5970_v29  ;;  %v4268_v29 = vsel %vm510_vm3, %v9534_v19, %v4263_v41 }
 0xd43   : > { %v9612_v36 = vpop.permute.xlu1 %4294  ;;  %5973 = vmatprep.subr.bf16.mxu1 %v5972_v57  ;;  %v4233_v34 = vpop.permute.xlu0 %4232  ;;  %v4279_v19 = vmul.f32 %v4268_v29, %v6736_v27 }
 0xd44   : > { %v4237_v11 = vsel %vm488_vm2, %v9536_v6, %v4233_v34  ;;  %v4241_v38 = vsel %vm488_vm2, %v4233_v34, %v9536_v6 }
 0xd45   : > { %v4248_v60 = vmul.f32 %v4241_v38, %v6701_v42  ;;  %v4249_v5 = vmul.f32 %v4237_v11, %v6694_v25  ;;  %v4283_v11 = vmul.f32 %v9352_v51, %v6780_v16  ;;  %v4289_v38 = vmul.f32 %v9403_v52, %v6780_v16 }
 0xd46   : > { %5975 = vmatpush1.bf16.msra.mxu1 %v5974_v32  ;;  %v4310_v52 = vsel %vm547_vm4, %v9549_v49, %v9497_v22 }
 0xd47   : > { %v5978_v17 = vpack.c.bf16 %v4248_v60, %v4246_v2  ;;  %v4303_v62 = vpop.permute.xlu1 %4302  ;;  %v9634_v55 = vpop.permute.xlu0 %4324  ;;  %v5976_v6 = vpack.c.bf16 %v4249_v5, %v4247_v50  ;;  %v5988_v18 = vpack.c.bf16 %v4285_v24, %v4283_v11  ;;  %v4311_v2 = vsel %vm547_vm4, %v9567_v14, %v9507_v61 }
 0xd48   : > { %v4282_v50 = vmul.f32 %v9328_v56, %v6804_v35  ;;  %v4315_v21 = vmul.f32 %v4310_v52, %v6822_v43  ;;  %v4316_v14 = vmul.f32 %v4307_v33, %v6839_v8  ;;  %v4312_v44 = vsel %vm547_vm4, %v4303_v62, %v9612_v36 }
 0xd49   : > { %5977 = vmatprep.subr.bf16.mxu1 %v5976_v6  ;;  %v4317_v6 = vmul.f32 %v4311_v2, %v6822_v43  ;;  %v4319_v24 = vmul.f32 %v4312_v44, %v6822_v43 }
 0xd4a   : > { %5979 = vmatpush1.bf16.msra.mxu1 %v5978_v17  ;;  %v4288_v17 = vmul.f32 %v9381_v37, %v6804_v35  ;;  %v4308_v37 = vsel %vm547_vm4, %v9612_v36, %v4303_v62 }
 0xd4b   : > { %v4323_v15 = vpop.permute.xlu1 %4322  ;;  %5981 = vmatprep.subr.bf16.mxu1 %v5980_v28  ;;  %v4265_v4 = vpop.permute.xlu0 %4264  ;;  %v4286_v28 = vmul.f32 %v9374_v59, %v6804_v35 }
 0xd4c   : > { %v4269_v1 = vsel %vm510_vm3, %v9538_v53, %v4265_v4  ;;  %v4273_v57 = vsel %vm510_vm3, %v4265_v4, %v9538_v53  ;;  %v4284_v53 = vmul.f32 %v9333_v12, %v6804_v35  ;;  %v4287_v12 = vmul.f32 %v9396_v48, %v6780_v16 }
 0xd4d   : > { %v4280_v41 = vmul.f32 %v4273_v57, %v6766_v13  ;;  %v4281_v46 = vmul.f32 %v4269_v1, %v6736_v27  ;;  %v4306_v48 = vsel %vm547_vm4, %v9497_v22, %v9549_v49  ;;  %v5994_v22 = vpack.c.bf16 %v4288_v17, %v4286_v28 }
 0xd4e   : > { %5983 = vmatpush1.bf16.msra.mxu1 %v5982_v45  ;;  %v5990_v63 = vpack.c.bf16 %v4284_v53, %v4282_v50  ;;  %v5992_v54 = vpack.c.bf16 %v4289_v38, %v4287_v12  ;;  %v4314_v49 = vmul.f32 %v4306_v48, %v6839_v8  ;;  %v5996_v4 = vpack.c.bf16 %v4317_v6, %v4315_v21 }
 0xd4f   : > { %v5986_v32 = vpack.c.bf16 %v4280_v41, %v4278_v47  ;;  %v4331_v34 = vpop.permute.xlu1 %4330  ;;  %v4333_v30 = vpop.permute.xlu0 %4332  ;;  %v5984_v40 = vpack.c.bf16 %v4281_v46, %v4279_v19  ;;  %v4318_v57 = vmul.f32 %v4308_v37, %v6839_v8 }
 0xd50   : > { %v4342_v59 = vsel %vm569_vm5, %v4331_v34, %v4323_v15  ;;  %v4343_v45 = vsel %vm569_vm5, %v4333_v30, %v9634_v55  ;;  %v5998_v1 = vpack.c.bf16 %v4316_v14, %v4314_v49  ;;  %v4338_v36 = vsel %vm569_vm5, %v4323_v15, %v4331_v34 }
 0xd51   : > { %5985 = vmatprep.subr.bf16.mxu1 %v5984_v40  ;;  %v4339_v62 = vsel %vm569_vm5, %v9634_v55, %v4333_v30  ;;  %v4349_v40 = vmul.f32 %v4343_v45, %v6860_v9  ;;  %v4346_v34 = vmul.f32 %v4338_v36, %v6870_v31 }
 0xd52   : > { %5987 = vmatpush1.bf16.msra.mxu1 %v5986_v32  ;;  %v4347_v32 = vmul.f32 %v4342_v59, %v6860_v9  ;;  %v4348_v55 = vmul.f32 %v4339_v62, %v6870_v31 }
 0xd53   : > { %v4327_v60 = vpop.permute.xlu1 %4326  ;;  %5989 = vmatprep.subr.bf16.mxu1 %v5988_v18  ;;  %v4329_v5 = vpop.permute.xlu0 %4328 }
 0xd54   : > { %v6004_v50 = vpack.c.bf16 %v4349_v40, %v4347_v32  ;;  %v6006_v33 = vpack.c.bf16 %v4348_v55, %v4346_v34 }
 0xd56   : > { %5991 = vmatpush1.bf16.msra.mxu1 %v5990_v63 }
 0xd57   : > { %v4335_v61 = vpop.permute.xlu1 %4334  ;;  %v4357_v29 = vpop.permute.xlu0 %4356  ;;  %5993 = vmatprep.subr.bf16.mxu1 %v5992_v54 }
 0xd58   : > { %v4344_v2 = vsel %vm569_vm5, %v4335_v61, %v4327_v60 }
 0xd59   : > { %v4351_v17 = vmul.f32 %v4344_v2, %v6860_v9  ;;  %v5463_v2 = vld [vmem:[%s6546_s30 + $0x260] sm:$0xff] }
 0xd5a   : > { %5995 = vmatpush1.bf16.msra.mxu1 %v5994_v22 }
 0xd5b   : > { %v4355_v47 = vpop.permute.xlu1 %4354  ;;  %v4305_v19 = vpop.permute.xlu0 %4304  ;;  %5997 = vmatprep.subr.bf16.mxu1 %v5996_v4 }
 0xd5c   : > { %v4309_v41 = vsel %vm547_vm4, %v9597_v39, %v4305_v19  ;;  %v4313_v46 = vsel %vm547_vm4, %v4305_v19, %v9597_v39  ;;  %v4340_v39 = vsel %vm569_vm5, %v4327_v60, %v4335_v61 }
 0xd5d   : > { %v4320_v11 = vmul.f32 %v4309_v41, %v6839_v8  ;;  %v4321_v15 = vmul.f32 %v4313_v46, %v6822_v43  ;;  %v4350_v63 = vmul.f32 %v4340_v39, %v6870_v31 }
 0xd5e   : > { %5999 = vmatpush1.bf16.msra.mxu1 %v5998_v1 }
 0xd5f   : > { %v6002_v30 = vpack.c.bf16 %v4320_v11, %v4318_v57  ;;  %v4363_v53 = vpop.permute.xlu1 %4362  ;;  %v4365_v18 = vpop.permute.xlu0 %4364  ;;  %v6000_v38 = vpack.c.bf16 %v4321_v15, %v4319_v24 }
 0xd60   : > { %v4374_v12 = vsel %vm591_vm6, %v4363_v53, %v4355_v47  ;;  %v4375_v52 = vsel %vm591_vm6, %v4365_v18, %v4357_v29  ;;  %v4370_v60 = vsel %vm591_vm6, %v4355_v47, %v4363_v53  ;;  %v4371_v48 = vsel %vm591_vm6, %v4357_v29, %v4365_v18  ;;  %v5459_v18 = vld [vmem:[%s6546_s30 + $0x240] sm:$0xff] }
 0xd61   : > { %6001 = vmatprep.subr.bf16.mxu1 %v6000_v38  ;;  %v4379_v14 = vmul.f32 %v4374_v12, %v6900_v7  ;;  %v4381_v61 = vmul.f32 %v4375_v52, %v6900_v7  ;;  %v4378_v29 = vmul.f32 %v4370_v60, %v6907_v0  ;;  %v4380_v45 = vmul.f32 %v4371_v48, %v6907_v0 }
 0xd62   : > { %6003 = vmatpush1.bf16.msra.mxu1 %v6002_v30 }
 0xd63   : > { %v4359_v6 = vpop.permute.xlu1 %4358  ;;  %v4337_v54 = vpop.permute.xlu0 %4336  ;;  %6005 = vmatprep.subr.bf16.mxu1 %v6004_v50  ;;  %v6012_v1 = vpack.c.bf16 %v4381_v61, %v4379_v14  ;;  %v6014_v19 = vpack.c.bf16 %v4380_v45, %v4378_v29  ;;  %v5466_v14 = vld [vmem:[%s6546_s30 + $0x278] sm:$0xff] }
 0xd64   : > { %v4341_v28 = vsel %vm569_vm5, %v4329_v5, %v4337_v54  ;;  %v4345_v21 = vsel %vm569_vm5, %v4337_v54, %v4329_v5  ;;  %v5462_v54 = vld [vmem:[%s6546_s30 + $0x258] sm:$0xff] }
 0xd65   : > { %v4352_v37 = vmul.f32 %v4341_v28, %v6870_v31  ;;  %v4353_v44 = vmul.f32 %v4345_v21, %v6860_v9 }
 0xd66   : > { %6007 = vmatpush1.bf16.msra.mxu1 %v6006_v33  ;;  %v10375_v33 = vld [vmem:[#allocation10_spill] sm:$0xff] }
 0xd67   : > { %v6010_v22 = vpack.c.bf16 %v4352_v37, %v4350_v63  ;;  %v4367_v49 = vpop.permute.xlu1 %4366  ;;  %v4361_v4 = vpop.permute.xlu0 %4360  ;;  %v6008_v59 = vpack.c.bf16 %v4353_v44, %v4351_v17  ;;  %v5465_v44 = vld [vmem:[%s6546_s30 + $0x270] sm:$0xff] }
 0xd68   : > { %v4372_v5 = vsel %vm591_vm6, %v4359_v6, %v4367_v49  ;;  %v4376_v57 = vsel %vm591_vm6, %v4367_v49, %v4359_v6  ;;  %v5469_v49 = vld [vmem:[%s6546_s30 + $0x290] sm:$0xff] }
 0xd69   : > { %6009 = vmatprep.subr.bf16.mxu1 %v6008_v59  ;;  %v4382_v41 = vmul.f32 %v4372_v5, %v6907_v0  ;;  %v4383_v46 = vmul.f32 %v4376_v57, %v6900_v7  ;;  %v5468_v57 = vld [vmem:[%s6546_s30 + $0x288] sm:$0xff] }
 0xd6a   : > { %6011 = vmatpush1.bf16.msra.mxu1 %v6010_v22 }
 0xd6b   : > { %v4387_v24 = vpop.permute.xlu1 %4386  ;;  %v4369_v47 = vpop.permute.xlu0 %4368  ;;  %6013 = vmatprep.subr.bf16.mxu1 %v6012_v1 }
 0xd6c   : > { %v4373_v36 = vsel %vm591_vm6, %v4361_v4, %v4369_v47  ;;  %v4377_v62 = vsel %vm591_vm6, %v4369_v47, %v4361_v4 }
 0xd6d   : > { %v4384_v32 = vmul.f32 %v4373_v36, %v6907_v0  ;;  %v4385_v40 = vmul.f32 %v4377_v62, %v6900_v7  ;;  %v5461_v36 = vld [vmem:[%s6546_s30 + $0x250] sm:$0xff]  ;;  %v5464_v62 = vld [vmem:[%s6546_s30 + $0x268] sm:$0xff] }
 0xd6e   : > { %6015 = vmatpush1.bf16.msra.mxu1 %v6014_v19  ;;  %v10376_v19 = vmov 0.0  }
 0xd6f   : > { %v6018_v11 = vpack.c.bf16 %v4384_v32, %v4382_v41  ;;  %v4395_v15 = vpop.permute.xlu1 %4394  ;;  %v4389_v34 = vpop.permute.xlu0 %4388  ;;  %v6016_v55 = vpack.c.bf16 %v4385_v40, %v4383_v46  ;;  %v5467_v41 = vld [vmem:[%s6546_s30 + $0x280] sm:$0xff]  ;;  %v5470_v46 = vld [vmem:[%s6546_s30 + $0x298] sm:$0xff] }
 0xd70   : > { %v4402_v30 = vsel %vm613_vm7, %v4387_v24, %v4395_v15  ;;  %v4406_v53 = vsel %vm613_vm7, %v4395_v15, %v4387_v24 }
 0xd71   : > { %6017 = vmatprep.subr.bf16.mxu1 %v6016_v55  ;;  %v4410_v52 = vmul.f32 %v4402_v30, %v6943_v23  ;;  %v4411_v63 = vmul.f32 %v4406_v53, %v10375_v33 }
 0xd72   : > { %6019 = vmatpush1.bf16.msra.mxu1 %v6018_v11 }
 0xd73   : > { %v4391_v38 = vpop.permute.xlu1 %4390  ;;  %v4397_v39 = vpop.permute.xlu0 %4396 }
 0xd74   : > { %v4403_v50 = vsel %vm613_vm7, %v4389_v34, %v4397_v39  ;;  %v4407_v12 = vsel %vm613_vm7, %v4397_v39, %v4389_v34 }
 0xd75   : > { %v4412_v17 = vmul.f32 %v4403_v50, %v6943_v23  ;;  %v4413_v6 = vmul.f32 %v4407_v12, %v10375_v33  ;;  %4495 = vmatmul.mubr.f32.vlgmr.msra.gmra.mrb[24].mxu1 %v5459_v18 }
 0xd76   : > { %4500 = vmatprep.mubr.f32.mxu1 %v5463_v2 }
 0xd77   : > { %v6022_v60 = vpack.c.bf16 %v4412_v17, %v4410_v52  ;;  %v4399_v48 = vpop.permute.xlu1 %4398  ;;  %v4393_v28 = vpop.permute.xlu0 %4392  ;;  %v6020_v21 = vpack.c.bf16 %v4413_v6, %v4411_v63 }
 0xd78   : > { %v4404_v61 = vsel %vm613_vm7, %v4391_v38, %v4399_v48  ;;  %v4408_v37 = vsel %vm613_vm7, %v4399_v48, %v4391_v38 }
 0xd79   : > { %4501 = vmatmul.mubr.f32.gmra.mrb[26].mxu1 %v5462_v54  ;;  %6021 = vmatprep.subr.bf16.mxu1 %v6020_v21  ;;  %v4414_v29 = vmul.f32 %v4404_v61, %v6943_v23  ;;  %v4415_v45 = vmul.f32 %v4408_v37, %v10375_v33 }
 0xd7a   : > { %6023 = vmatpush1.bf16.msra.mxu1 %v6022_v60  ;;  %4506 = vmatprep.mubr.f32.mxu1 %v5466_v14 }
 0xd7b   : > { %v4401_v22 = vpop.permute.xlu0 %4400 }
 0xd7c   : > { %v4405_v4 = vsel %vm613_vm7, %v4393_v28, %v4401_v22  ;;  %v4409_v59 = vsel %vm613_vm7, %v4401_v22, %v4393_v28 }
 0xd7d   : > { %v4416_v1 = vmul.f32 %v4405_v4, %v6943_v23  ;;  %v4417_v5 = vmul.f32 %v4409_v59, %v10375_v33  ;;  %4507 = vmatmul.mubr.f32.gmra.mrb[28].mxu1 %v5465_v44 }
 0xd7e   : > { %4512 = vmatprep.mubr.f32.mxu1 %v5469_v49 }
 0xd7f   : > { %v6026_v24 = vpack.c.bf16 %v4416_v1, %v4414_v29  ;;  %v6024_v47 = vpack.c.bf16 %v4417_v5, %v4415_v45 }
 0xd81   : > { %4513 = vmatmul.mubr.f32.gmra.mrb[30].mxu1 %v5468_v57  ;;  %6025 = vmatprep.subr.bf16.mxu1 %v6024_v47 }
 0xd82   : > { %6027 = vmatpush1.bf16.msra.mxu1 %v6026_v24  ;;  %4583 = vmatprep.mubr.f32.mxu1 %v10376_v19 }
 0xd85   : > { %5471 = vmatmul.mubr.msk.f32.vlgmr.msra.gmra.mrb[24].mxu1 %vm1149_vm9, %v5461_v36 }
 0xd86   : > { %4589 = vmatprep.mubr.f32.mxu1 %v10376_v19 }
 0xd88   : > { %v4616_v32 = vpop.permute.xlu1 %4615 }
 0xd89   : > { %5472 = vmatmul.mubr.msk.f32.gmra.mrb[26].mxu1 %vm1149_vm9, %v5464_v62 }
 0xd8a   : > { %4595 = vmatprep.mubr.f32.mxu1 %v10376_v19 }
 0xd8c   : > { %v4621_v40 = vpop.permute.xlu0 %4620  ;;  %v4649_v55 = vpop.permute.xlu1 %4648 }
 0xd8d   : > { %5473 = vmatmul.mubr.msk.f32.gmra.mrb[28].mxu1 %vm1149_vm9, %v5467_v41  ;;  %v5484_v41 = vld [vmem:[%s6546_s30 + $0x2a8] sm:$0xff] }
 0xd8e   : > { %4601 = vmatprep.mubr.f32.mxu1 %v10376_v19  ;;  %5035 = vmatprep.mubr.f32.mxu0 %v5484_v41 }
 0xd90   : > { %v4654_v2 = vpop.permute.xlu0 %4653  ;;  %v4626_v61 = vpop.permute.xlu1 %4625 }
 0xd91   : > { %5474 = vmatmul.mubr.msk.f32.gmra.mrb[30].mxu1 %vm1149_vm9, %v5470_v46 }
 0xd92   : > { %5128 = vmatprep.mubr.f32.mxu1 %v10376_v19 }
 0xd94   : > { %v4631_v44 = vpop.permute.xlu0 %4630  ;;  %v4659_v22 = vpop.permute.xlu1 %4658 }
 0xd98   : > { %v4664_v59 = vpop.permute.xlu0 %4663 }
 0xe58   : > { %v4585_v11 = vpop.f32.mrb[24].mxu1 }
 0xe59   : > { %v4633_v15 = vmul.f32 %v4616_v32, %v4585_v11  ;;  %v4587_v34 = vpop.f32.mrb[25].mxu1 }
 0xe5a   : > { %v4634_v54 = vmul.f32 %v4616_v32, %v4587_v34  ;;  %v5499_v34 = vld [vmem:[%s10270_s7 + $0xe0] sm:$0xff] }
 0xe5b   : > { %v4666_v30 = vadd.f32 %v4649_v55, %v4633_v15 }
 0xe5c   : > { %v4591_v53 = vpop.f32.mrb[26].mxu1  ;;  %v4667_v60 = vadd.f32 %v4649_v55, %v4634_v54 }
 0xe5d   : > { %v9800_v18 = vmax.f32 %v4666_v30, 0.0  ;;  %v4635_v38 = vmul.f32 %v4621_v40, %v4591_v53  ;;  %v4593_v39 = vpop.f32.mrb[27].mxu1  ;;  %v5500_v53 = vld [vmem:[%s10271_s8 + $0xe0] sm:$0xff] }
 0xe5e   : > { %v4636_v48 = vmul.f32 %v4621_v40, %v4593_v39  ;;  %v9822_v28 = vmax.f32 %v4667_v60, 0.0 }
 0xe5f   : > { %v4668_v50 = vadd.f32 %v4654_v2, %v4635_v38  ;;  %4695 = vrot.lane.b32.xlu1 %v9800_v18, %s6193_s20 }
 0xe60   : > { %v4597_v12 = vpop.f32.mrb[28].mxu1  ;;  %v4669_v21 = vadd.f32 %v4654_v2, %v4636_v48 }
 0xe61   : > { %v9804_v52 = vmax.f32 %v4668_v50, 0.0  ;;  %v4599_v63 = vpop.f32.mrb[29].mxu1  ;;  %v4637_v37 = vmul.f32 %v4626_v61, %v4597_v12 }
 0xe62   : > { %v9828_v14 = vmax.f32 %v4669_v21, 0.0  ;;  %v4638_v5 = vmul.f32 %v4626_v61, %v4599_v63 }
 0xe63   : > { %4727 = vrot.lane.b32.xlu1 %v9800_v18, %s6192_s19  ;;  %4697 = vrot.lane.b32.xlu0 %v9804_v52, %s6193_s20  ;;  %v4670_v49 = vadd.f32 %v4659_v22, %v4637_v37 }
 0xe64   : > { %v4603_v17 = vpop.f32.mrb[30].mxu1  ;;  %v4671_v57 = vadd.f32 %v4659_v22, %v4638_v5 }
 0xe65   : > { %v4605_v6 = vpop.f32.mrb[31].mxu1  ;;  %v4639_v4 = vmul.f32 %v4631_v44, %v4603_v17  ;;  %v9842_v29 = vmax.f32 %v4670_v49, 0.0 }
 0xe66   : > { %v4640_v24 = vmul.f32 %v4631_v44, %v4605_v6  ;;  %v9862_v47 = vmax.f32 %v4671_v57, 0.0 }
 0xe67   : > { %4759 = vrot.lane.b32.xlu1 %v9800_v18, %s6194_s21  ;;  %4729 = vrot.lane.b32.xlu0 %v9804_v52, %s6192_s19  ;;  %v4672_v45 = vadd.f32 %v4664_v59, %v4639_v4 }
 0xe68   : > { %v4673_v36 = vadd.f32 %v4664_v59, %v4640_v24 }
 0xe69   : > { %v9848_v1 = vmax.f32 %v4672_v45, 0.0 }
 0xe6a   : > { %v9868_v62 = vmax.f32 %v4673_v36, 0.0 }
 0xe6b   : > { %4791 = vrot.lane.b32.xlu1 %v9800_v18, %s6195_s22  ;;  %4761 = vrot.lane.b32.xlu0 %v9804_v52, %s6194_s21 }
 0xe6f   : > { %4831 = vrot.lane.b32.xlu1 %v9800_v18, %s6196_s23  ;;  %4793 = vrot.lane.b32.xlu0 %v9804_v52, %s6195_s22 }
 0xe73   : > { %4703 = vrot.lane.b32.xlu1 %v9822_v28, %s6193_s20  ;;  %4833 = vrot.lane.b32.xlu0 %v9804_v52, %s6196_s23 }
 0xe77   : > { %4735 = vrot.lane.b32.xlu1 %v9822_v28, %s6192_s19  ;;  %4705 = vrot.lane.b32.xlu0 %v9828_v14, %s6193_s20 }
 0xe7b   : > { %4767 = vrot.lane.b32.xlu1 %v9822_v28, %s6194_s21  ;;  %4737 = vrot.lane.b32.xlu0 %v9828_v14, %s6192_s19 }
 0xe7f   : > { %4799 = vrot.lane.b32.xlu1 %v9822_v28, %s6195_s22  ;;  %4769 = vrot.lane.b32.xlu0 %v9828_v14, %s6194_s21 }
 0xe83   : > { %4801 = vrot.lane.b32.xlu0 %v9828_v14, %s6195_s22  ;;  %4699 = vrot.lane.b32.xlu1 %v9842_v29, %s6193_s20 }
 0xe87   : > { %4731 = vrot.lane.b32.xlu1 %v9842_v29, %s6192_s19  ;;  %4701 = vrot.lane.b32.xlu0 %v9848_v1, %s6193_s20 }
 0xe8b   : > { %4763 = vrot.lane.b32.xlu1 %v9842_v29, %s6194_s21  ;;  %4733 = vrot.lane.b32.xlu0 %v9848_v1, %s6192_s19 }
 0xe8f   : > { %4795 = vrot.lane.b32.xlu1 %v9842_v29, %s6195_s22  ;;  %4765 = vrot.lane.b32.xlu0 %v9848_v1, %s6194_s21 }
 0xe93   : > { %4707 = vrot.lane.b32.xlu1 %v9862_v47, %s6193_s20  ;;  %4797 = vrot.lane.b32.xlu0 %v9848_v1, %s6195_s22 }
 0xe97   : > { %4839 = vrot.lane.b32.xlu1 %v9822_v28, %s6196_s23  ;;  %4709 = vrot.lane.b32.xlu0 %v9868_v62, %s6193_s20 }
 0xe9b   : > { %4739 = vrot.lane.b32.xlu1 %v9862_v47, %s6192_s19  ;;  %4841 = vrot.lane.b32.xlu0 %v9828_v14, %s6196_s23 }
 0xe9f   : > { %4771 = vrot.lane.b32.xlu1 %v9862_v47, %s6194_s21  ;;  %4741 = vrot.lane.b32.xlu0 %v9868_v62, %s6192_s19 }
 0xea3   : > { %4803 = vrot.lane.b32.xlu1 %v9862_v47, %s6195_s22  ;;  %4837 = vrot.lane.b32.xlu0 %v9848_v1, %s6196_s23 }
 0xea7   : > { %4835 = vrot.lane.b32.xlu1 %v9842_v29, %s6196_s23  ;;  %4773 = vrot.lane.b32.xlu0 %v9868_v62, %s6194_s21 }
 0xeab   : > { %4843 = vrot.lane.b32.xlu1 %v9862_v47, %s6196_s23  ;;  %4865 = vrot.lane.b32.xlu0 %v9804_v52, %s6197_s24 }
 0xeaf   : > { %4863 = vrot.lane.b32.xlu1 %v9800_v18, %s6197_s24  ;;  %4805 = vrot.lane.b32.xlu0 %v9868_v62, %s6195_s22 }
 0xeb3   : > { %4871 = vrot.lane.b32.xlu1 %v9822_v28, %s6197_s24  ;;  %4873 = vrot.lane.b32.xlu0 %v9828_v14, %s6197_s24 }
 0xeb7   : > { %4867 = vrot.lane.b32.xlu1 %v9842_v29, %s6197_s24  ;;  %4869 = vrot.lane.b32.xlu0 %v9848_v1, %s6197_s24 }
 0xebb   : > { %4875 = vrot.lane.b32.xlu1 %v9862_v47, %s6197_s24  ;;  %4897 = vrot.lane.b32.xlu0 %v9804_v52, %s6199_s25 }
 0xebf   : > { %4895 = vrot.lane.b32.xlu1 %v9800_v18, %s6199_s25  ;;  %4845 = vrot.lane.b32.xlu0 %v9868_v62, %s6196_s23  ;;  %s10244_s23 = sshll.u32 %s10380_s14, 3 }
 0xec0   : > { %s432_s17 = scalar_lea.vmem %s10273_s10, %s10244_s23  ;;  %s427_s28 = scalar_lea.vmem %s10272_s9, %s10244_s23 }
 0xec3   : > { %4903 = vrot.lane.b32.xlu1 %v9822_v28, %s6199_s25  ;;  %4905 = vrot.lane.b32.xlu0 %v9828_v14, %s6199_s25 }
 0xec7   : > { %4899 = vrot.lane.b32.xlu1 %v9842_v29, %s6199_s25  ;;  %4877 = vrot.lane.b32.xlu0 %v9868_v62, %s6197_s24 }
 0xecb   : > { %4907 = vrot.lane.b32.xlu1 %v9862_v47, %s6199_s25  ;;  %4901 = vrot.lane.b32.xlu0 %v9848_v1, %s6199_s25 }
 0xecf   : > { %4927 = vrot.lane.b32.xlu1 %v9800_v18, %s6200_s26  ;;  %4909 = vrot.lane.b32.xlu0 %v9868_v62, %s6199_s25 }
 0xed1   : > { %v4696_v46 = vpop.permute.xlu1 %4695 }
 0xed3   : > { %4935 = vrot.lane.b32.xlu1 %v9822_v28, %s6200_s26  ;;  %4929 = vrot.lane.b32.xlu0 %v9804_v52, %s6200_s26 }
 0xed5   : > { %v4728_v32 = vpop.permute.xlu1 %4727  ;;  %v4698_v40 = vpop.permute.xlu0 %4697 }
 0xed7   : > { %4931 = vrot.lane.b32.xlu1 %v9842_v29, %s6200_s26  ;;  %4937 = vrot.lane.b32.xlu0 %v9828_v14, %s6200_s26 }
 0xed9   : > { %v9939_v11 = vpop.permute.xlu1 %4759  ;;  %v4730_v15 = vpop.permute.xlu0 %4729 }
 0xedb   : > { %4939 = vrot.lane.b32.xlu1 %v9862_v47, %s6200_s26  ;;  %4933 = vrot.lane.b32.xlu0 %v9848_v1, %s6200_s26 }
 0xedd   : > { %v9948_v55 = vpop.permute.xlu1 %4791  ;;  %v9950_v30 = vpop.permute.xlu0 %4761 }
 0xedf   : > { %5141 = vperm.xlu1 %6182, %v5499_v34   ;;  %4941 = vrot.lane.b32.xlu0 %v9868_v62, %s6200_s26  ;;  %s412_s26 = scalar_lea.vmem %s10264_s1, %s10244_s23 }
 0xee1   : > { %v4832_v38 = vpop.permute.xlu1 %4831  ;;  %v9957_v39 = vpop.permute.xlu0 %4793 }
 0xee3   : > { %5150 = vperm.xlu0 %6181, %v5500_v53  }
 0xee5   : > { %v4704_v2 = vpop.permute.xlu1 %4703  ;;  %v4834_v50 = vpop.permute.xlu0 %4833 }
 0xee6   : > { %v4711_v12 = vsel %vm445_vm1, %v4696_v46, %v4704_v2  ;;  %v4715_v63 = vsel %vm445_vm1, %v4704_v2, %v4696_v46 }
 0xee7   : > { %v4719_v48 = vmul.f32 %v4715_v63, %v6617_v26  ;;  %v4720_v21 = vmul.f32 %v4711_v12, %v6606_v20 }
 0xee9   : > { %v4736_v17 = vpop.permute.xlu1 %4735  ;;  %v4706_v6 = vpop.permute.xlu0 %4705 }
 0xeea   : > { %v4712_v54 = vsel %vm445_vm1, %v4698_v40, %v4706_v6  ;;  %v4716_v60 = vsel %vm445_vm1, %v4706_v6, %v4698_v40 }
 0xeeb   : > { %v4721_v61 = vmul.f32 %v4716_v60, %v6617_v26  ;;  %v4722_v37 = vmul.f32 %v4712_v54, %v6606_v20  ;;  %v4743_v54 = vsel %vm466_vm0, %v4728_v32, %v4736_v17  ;;  %v4747_v60 = vsel %vm466_vm0, %v4736_v17, %v4728_v32 }
 0xeec   : > { %v4752_v17 = vmul.f32 %v4743_v54, %v6653_v58 }
 0xeed   : > { %v6030_v44 = vpack.c.bf16 %v4721_v61, %v4719_v48  ;;  %v9971_v22 = vpop.permute.xlu1 %4767  ;;  %v4738_v49 = vpop.permute.xlu0 %4737  ;;  %v6028_v4 = vpack.c.bf16 %v4722_v37, %v4720_v21 }
 0xeee   : > { %v4744_v12 = vsel %vm466_vm0, %v4730_v15, %v4738_v49  ;;  %v4748_v61 = vsel %vm466_vm0, %v4738_v49, %v4730_v15 }
 0xeef   : > { %6029 = vmatprep.subr.bf16.mxu0 %v6028_v4  ;;  %v4754_v37 = vmul.f32 %v4744_v12, %v6653_v58  ;;  %v4751_v12 = vmul.f32 %v4747_v60, %v6660_v3 }
 0xef0   : > { %6031 = vmatpush1.bf16.msra.mxu0 %v6030_v44 }
 0xef1   : > { %v9973_v59 = vpop.permute.xlu1 %4799  ;;  %v4770_v45 = vpop.permute.xlu0 %4769 }
 0xef5   : > { %v9975_v5 = vpop.permute.xlu0 %4801  ;;  %v4700_v57 = vpop.permute.xlu1 %4699 }
 0xef9   : > { %v4732_v24 = vpop.permute.xlu1 %4731  ;;  %v4702_v36 = vpop.permute.xlu0 %4701 }
 0xefd   : > { %v9977_v41 = vpop.permute.xlu1 %4763  ;;  %v4734_v46 = vpop.permute.xlu0 %4733 }
 0xf01   : > { %v9979_v40 = vpop.permute.xlu1 %4795  ;;  %v9981_v34 = vpop.permute.xlu0 %4765 }
 0xf05   : > { %v4708_v53 = vpop.permute.xlu1 %4707  ;;  %v9983_v2 = vpop.permute.xlu0 %4797 }
 0xf06   : > { %v4713_v63 = vsel %vm445_vm1, %v4700_v57, %v4708_v53  ;;  %v4717_v6 = vsel %vm445_vm1, %v4708_v53, %v4700_v57 }
 0xf07   : > { %v4723_v57 = vmul.f32 %v4717_v6, %v6617_v26  ;;  %v4724_v53 = vmul.f32 %v4713_v63, %v6606_v20 }
 0xf09   : > { %v4840_v48 = vpop.permute.xlu1 %4839  ;;  %v4710_v21 = vpop.permute.xlu0 %4709 }
 0xf0a   : > { %v4714_v44 = vsel %vm445_vm1, %v4702_v36, %v4710_v21  ;;  %v4718_v4 = vsel %vm445_vm1, %v4710_v21, %v4702_v36  ;;  %v4847_v15 = vsel %vm547_vm4, %v4832_v38, %v4840_v48  ;;  %v4851_v49 = vsel %vm547_vm4, %v4840_v48, %v4832_v38 }
 0xf0b   : > { %v4725_v51 = vmul.f32 %v4718_v4, %v6617_v26  ;;  %v4726_v32 = vmul.f32 %v4714_v44, %v6606_v20  ;;  %v4753_v36 = vmul.f32 %v4748_v61, %v6660_v3  ;;  %v4776_v20 = vsel %vm488_vm2, %v9950_v30, %v4770_v45 }
 0xf0c   : > { %v6036_v44 = vpack.c.bf16 %v4754_v37, %v4752_v17  ;;  %v10021_v38 = vmul.f32 %v4847_v15, %v6839_v8  ;;  %v10024_v60 = vmul.f32 %v4851_v49, %v6822_v43  ;;  %v4786_v17 = vmul.f32 %v4776_v20, %v6694_v25 }
 0xf0d   : > { %v6034_v21 = vpack.c.bf16 %v4725_v51, %v4723_v57  ;;  %v4740_v6 = vpop.permute.xlu1 %4739  ;;  %v4842_v56 = vpop.permute.xlu0 %4841  ;;  %v6032_v63 = vpack.c.bf16 %v4726_v32, %v4724_v53  ;;  %v6038_v37 = vpack.c.bf16 %v4753_v36, %v4751_v12 }
 0xf0e   : > { %v4848_v26 = vsel %vm547_vm4, %v4834_v50, %v4842_v56  ;;  %v4852_v54 = vsel %vm547_vm4, %v4842_v56, %v4834_v50  ;;  %v4745_v61 = vsel %vm466_vm0, %v4732_v24, %v4740_v6  ;;  %v4749_v56 = vsel %vm466_vm0, %v4740_v6, %v4732_v24 }
 0xf0f   : > { %v10027_v51 = vmul.f32 %v4848_v26, %v6839_v8  ;;  %v10030_v48 = vmul.f32 %v4852_v54, %v6822_v43  ;;  %6033 = vmatprep.subr.bf16.mxu0 %v6032_v63  ;;  %v4775_v50 = vsel %vm488_vm2, %v9939_v11, %v9971_v22  ;;  %v4780_v24 = vsel %vm488_vm2, %v4770_v45, %v9950_v30 }
 0xf10   : > { %6035 = vmatpush1.bf16.msra.mxu0 %v6034_v21  ;;  %v4755_v12 = vmul.f32 %v4749_v56, %v6660_v3  ;;  %v4756_v36 = vmul.f32 %v4745_v61, %v6653_v58  ;;  %v4779_v30 = vsel %vm488_vm2, %v9971_v22, %v9939_v11  ;;  %v4784_v45 = vmul.f32 %v4775_v50, %v6694_v25 }
 0xf11   : > { %v6070_v4 = vpack.c.bf16 %v10027_v51, %v10021_v38  ;;  %v4772_v57 = vpop.permute.xlu1 %4771  ;;  %6037 = vmatprep.subr.bf16.mxu0 %v6036_v44  ;;  %v4742_v53 = vpop.permute.xlu0 %4741  ;;  %v6068_v32 = vpack.c.bf16 %v10030_v48, %v10024_v60  ;;  %v4785_v63 = vmul.f32 %v4780_v24, %v6701_v42  ;;  %v4783_v44 = vmul.f32 %v4779_v30, %v6701_v42 }
 0xf12   : > { %v4746_v15 = vsel %vm466_vm0, %v4734_v46, %v4742_v53  ;;  %v4750_v49 = vsel %vm466_vm0, %v4742_v53, %v4734_v46  ;;  %v4777_v11 = vsel %vm488_vm2, %v9977_v41, %v4772_v57  ;;  %v4781_v22 = vsel %vm488_vm2, %v4772_v57, %v9977_v41 }
 0xf13   : > { %v4757_v21 = vmul.f32 %v4750_v49, %v6660_v3  ;;  %v4758_v6 = vmul.f32 %v4746_v15, %v6653_v58  ;;  %v4808_v58 = vsel %vm510_vm3, %v9957_v39, %v9975_v5  ;;  %v6044_v3 = vpack.c.bf16 %v4786_v17, %v4784_v45 }
 0xf14   : > { %6039 = vmatpush1.bf16.msra.mxu0 %v6038_v37  ;;  %v4807_v61 = vsel %vm510_vm3, %v9948_v55, %v9973_v59  ;;  %v6046_v56 = vpack.c.bf16 %v4785_v63, %v4783_v44  ;;  %v4812_v53 = vsel %vm510_vm3, %v9975_v5, %v9957_v39  ;;  %v4818_v24 = vmul.f32 %v4808_v58, %v6736_v27 }
 0xf15   : > { %v6042_v20 = vpack.c.bf16 %v4757_v21, %v4755_v12  ;;  %v4804_v46 = vpop.permute.xlu1 %4803  ;;  %v10062_v26 = vpop.permute.xlu0 %4837  ;;  %v6040_v54 = vpack.c.bf16 %v4758_v6, %v4756_v36  ;;  %v4787_v17 = vmul.f32 %v4781_v22, %v6701_v42  ;;  %v4788_v15 = vmul.f32 %v4777_v11, %v6694_v25 }
 0xf16   : > { %v4811_v39 = vsel %vm510_vm3, %v9973_v59, %v9948_v55  ;;  %v4816_v5 = vmul.f32 %v4807_v61, %v6736_v27  ;;  %v4817_v30 = vmul.f32 %v4812_v53, %v6766_v13  ;;  %v4813_v55 = vsel %vm510_vm3, %v4804_v46, %v9979_v40 }
 0xf17   : > { %6041 = vmatprep.subr.bf16.mxu0 %v6040_v54  ;;  %v4826_v58 = vmul.f32 %v9828_v14, %v6780_v16  ;;  %v4824_v53 = vmul.f32 %v9822_v28, %v6780_v16  ;;  %v4829_v28 = vmul.f32 %v9848_v1, %v6804_v35 }
 0xf18   : > { %6043 = vmatpush1.bf16.msra.mxu0 %v6042_v20  ;;  %v6052_v45 = vpack.c.bf16 %v4818_v24, %v4816_v5  ;;  %v4830_v24 = vmul.f32 %v9868_v62, %v6780_v16 }
 0xf19   : > { %v4836_v50 = vpop.permute.xlu1 %4835  ;;  %6045 = vmatprep.subr.bf16.mxu0 %v6044_v3  ;;  %v4774_v37 = vpop.permute.xlu0 %4773  ;;  %v4819_v3 = vmul.f32 %v4813_v55, %v6766_v13  ;;  %v6060_v14 = vpack.c.bf16 %v4826_v58, %v4824_v53 }
 0xf1a   : > { %v4778_v41 = vsel %vm488_vm2, %v9981_v34, %v4774_v37  ;;  %v4782_v57 = vsel %vm488_vm2, %v4774_v37, %v9981_v34 }
 0xf1b   : > { %v4789_v49 = vmul.f32 %v4782_v57, %v6701_v42  ;;  %v4790_v12 = vmul.f32 %v4778_v41, %v6694_v25  ;;  %v4815_v42 = vmul.f32 %v4811_v39, %v6766_v13  ;;  %v4809_v25 = vsel %vm510_vm3, %v9979_v40, %v4804_v46 }
 0xf1c   : > { %6047 = vmatpush1.bf16.msra.mxu0 %v6046_v56  ;;  %v4820_v40 = vmul.f32 %v4809_v25, %v6736_v27  ;;  %v4828_v57 = vmul.f32 %v9862_v47, %v6780_v16 }
 0xf1d   : > { %v6050_v36 = vpack.c.bf16 %v4789_v49, %v4787_v17  ;;  %v4844_v21 = vpop.permute.xlu1 %4843  ;;  %v4866_v6 = vpop.permute.xlu0 %4865  ;;  %v6048_v34 = vpack.c.bf16 %v4790_v12, %v4788_v15  ;;  %v6054_v20 = vpack.c.bf16 %v4817_v30, %v4815_v42  ;;  %v4827_v15 = vmul.f32 %v9842_v29, %v6804_v35 }
 0xf1e   : > { %v4853_v12 = vsel %vm547_vm4, %v4844_v21, %v4836_v50 }
 0xf1f   : > { %6049 = vmatprep.subr.bf16.mxu0 %v6048_v34  ;;  %v6066_v39 = vpack.c.bf16 %v4829_v28, %v4827_v15 }
 0xf20   : > { %6051 = vmatpush1.bf16.msra.mxu0 %v6050_v36 }
 0xf21   : > { %v4864_v59 = vpop.permute.xlu1 %4863  ;;  %6053 = vmatprep.subr.bf16.mxu0 %v6052_v45  ;;  %v4806_v63 = vpop.permute.xlu0 %4805 }
 0xf22   : > { %v4810_v54 = vsel %vm510_vm3, %v9983_v2, %v4806_v63  ;;  %v4814_v44 = vsel %vm510_vm3, %v4806_v63, %v9983_v2  ;;  %v4825_v2 = vmul.f32 %v9804_v52, %v6804_v35  ;;  %v6064_v52 = vpack.c.bf16 %v4830_v24, %v4828_v57 }
 0xf23   : > { %v4821_v46 = vmul.f32 %v4814_v44, %v6766_v13  ;;  %v4822_v11 = vmul.f32 %v4810_v54, %v6736_v27  ;;  %v4823_v27 = vmul.f32 %v9800_v18, %v6804_v35  ;;  %v4849_v18 = vsel %vm547_vm4, %v4836_v50, %v4844_v21 }
 0xf24   : > { %6055 = vmatpush1.bf16.msra.mxu0 %v6054_v20  ;;  %v4859_v47 = vmul.f32 %v4849_v18, %v6839_v8  ;;  %v4860_v35 = vmul.f32 %v4853_v12, %v6822_v43 }
 0xf25   : > { %v6058_v22 = vpack.c.bf16 %v4821_v46, %v4819_v3  ;;  %v4872_v61 = vpop.permute.xlu1 %4871  ;;  %v4874_v56 = vpop.permute.xlu0 %4873  ;;  %v6056_v37 = vpack.c.bf16 %v4822_v11, %v4820_v40  ;;  %v6062_v17 = vpack.c.bf16 %v4825_v2, %v4823_v27 }
 0xf26   : > { %v4883_v16 = vsel %vm569_vm5, %v4872_v61, %v4864_v59  ;;  %v4884_v1 = vsel %vm569_vm5, %v4874_v56, %v4866_v6  ;;  %v4879_v50 = vsel %vm569_vm5, %v4864_v59, %v4872_v61  ;;  %v4880_v36 = vsel %vm569_vm5, %v4866_v6, %v4874_v56 }
 0xf27   : > { %6057 = vmatprep.subr.bf16.mxu0 %v6056_v37  ;;  %v4888_v30 = vmul.f32 %v4883_v16, %v6860_v9  ;;  %v4890_v45 = vmul.f32 %v4884_v1, %v6860_v9  ;;  %v4889_v6 = vmul.f32 %v4880_v36, %v6870_v31 }
 0xf28   : > { %6059 = vmatpush1.bf16.msra.mxu0 %v6058_v22 }
 0xf29   : > { %v4868_v13 = vpop.permute.xlu1 %4867  ;;  %6061 = vmatprep.subr.bf16.mxu0 %v6060_v14  ;;  %v4870_v41 = vpop.permute.xlu0 %4869 }
 0xf2c   : > { %6063 = vmatpush1.bf16.msra.mxu0 %v6062_v17 }
 0xf2d   : > { %v4876_v62 = vpop.permute.xlu1 %4875  ;;  %v4898_v49 = vpop.permute.xlu0 %4897  ;;  %6065 = vmatprep.subr.bf16.mxu0 %v6064_v52 }
 0xf2e   : > { %v4881_v59 = vsel %vm569_vm5, %v4868_v13, %v4876_v62 }
 0xf2f   : > { %v4891_v63 = vmul.f32 %v4881_v59, %v6870_v31  ;;  %v5489_v59 = vld [vmem:[%s6546_s30 + $0x2d0] sm:$0xff] }
 0xf30   : > { %6067 = vmatpush1.bf16.msra.mxu0 %v6066_v39 }
 0xf31   : > { %v4896_v29 = vpop.permute.xlu1 %4895  ;;  %v4846_v5 = vpop.permute.xlu0 %4845  ;;  %6069 = vmatprep.subr.bf16.mxu0 %v6068_v32  ;;  %v4887_v32 = vmul.f32 %v4879_v50, %v6870_v31  ;;  %v5487_v50 = vld [vmem:[%s6546_s30 + $0x2c0] sm:$0xff] }
 0xf32   : > { %v4850_v21 = vsel %vm547_vm4, %v10062_v26, %v4846_v5  ;;  %v4854_v34 = vsel %vm547_vm4, %v4846_v5, %v10062_v26 }
 0xf33   : > { %v4861_v60 = vmul.f32 %v4850_v21, %v6839_v8  ;;  %v4862_v48 = vmul.f32 %v4854_v34, %v6822_v43  ;;  %v4885_v8 = vsel %vm569_vm5, %v4876_v62, %v4868_v13  ;;  %v6076_v43 = vpack.c.bf16 %v4890_v45, %v4888_v30 }
 0xf34   : > { %6071 = vmatpush1.bf16.msra.mxu0 %v6070_v4  ;;  %v6078_v4 = vpack.c.bf16 %v4889_v6, %v4887_v32  ;;  %v4892_v20 = vmul.f32 %v4885_v8, %v6860_v9 }
 0xf35   : > { %v6074_v42 = vpack.c.bf16 %v4861_v60, %v4859_v47  ;;  %v4904_v25 = vpop.permute.xlu1 %4903  ;;  %v4906_v55 = vpop.permute.xlu0 %4905  ;;  %v6072_v26 = vpack.c.bf16 %v4862_v48, %v4860_v35  ;;  %v5486_v60 = vld [vmem:[%s6546_s30 + $0x2b8] sm:$0xff] }
 0xf36   : > { %v4915_v38 = vsel %vm591_vm6, %v4904_v25, %v4896_v29  ;;  %v4916_v51 = vsel %vm591_vm6, %v4906_v55, %v4898_v49  ;;  %v4911_v58 = vsel %vm591_vm6, %v4896_v29, %v4904_v25  ;;  %v4912_v3 = vsel %vm591_vm6, %v4898_v49, %v4906_v55  ;;  %v5483_v29 = vld [vmem:[%s6546_s30 + $0x2a0] sm:$0xff]  ;;  %v5490_v25 = vld [vmem:[%s6546_s30 + $0x2d8] sm:$0xff] }
 0xf37   : > { %6073 = vmatprep.subr.bf16.mxu0 %v6072_v26  ;;  %v4920_v11 = vmul.f32 %v4915_v38, %v6900_v7  ;;  %v4922_v22 = vmul.f32 %v4916_v51, %v6900_v7  ;;  %v4919_v24 = vmul.f32 %v4911_v58, %v6907_v0  ;;  %v4921_v27 = vmul.f32 %v4912_v3, %v6907_v0 }
 0xf38   : > { %6075 = vmatpush1.bf16.msra.mxu0 %v6074_v42 }
 0xf39   : > { %v4900_v54 = vpop.permute.xlu1 %4899  ;;  %v4878_v44 = vpop.permute.xlu0 %4877  ;;  %6077 = vmatprep.subr.bf16.mxu0 %v6076_v43  ;;  %v6084_v13 = vpack.c.bf16 %v4922_v22, %v4920_v11  ;;  %v6086_v17 = vpack.c.bf16 %v4921_v27, %v4919_v24  ;;  %v5493_v43 = vld [vmem:[%s6546_s30 + $0x2f0] sm:$0xff] }
 0xf3a   : > { %v4882_v40 = vsel %vm569_vm5, %v4870_v41, %v4878_v44  ;;  %v4886_v46 = vsel %vm569_vm5, %v4878_v44, %v4870_v41  ;;  %v5492_v44 = vld [vmem:[%s6546_s30 + $0x2e8] sm:$0xff] }
 0xf3b   : > { %v4893_v61 = vmul.f32 %v4882_v40, %v6870_v31  ;;  %v4894_v56 = vmul.f32 %v4886_v46, %v6860_v9  ;;  %v5491_v40 = vld [vmem:[%s6546_s30 + $0x2e0] sm:$0xff] }
 0xf3c   : > { %6079 = vmatpush1.bf16.msra.mxu0 %v6078_v4 }
 0xf3d   : > { %v6082_v37 = vpack.c.bf16 %v4893_v61, %v4891_v63  ;;  %v4908_v53 = vpop.permute.xlu1 %4907  ;;  %v4902_v2 = vpop.permute.xlu0 %4901  ;;  %v6080_v14 = vpack.c.bf16 %v4894_v56, %v4892_v20 }
 0xf3e   : > { %v4913_v41 = vsel %vm591_vm6, %v4900_v54, %v4908_v53  ;;  %v4917_v57 = vsel %vm591_vm6, %v4908_v53, %v4900_v54 }
 0xf3f   : > { %6081 = vmatprep.subr.bf16.mxu0 %v6080_v14  ;;  %v4923_v15 = vmul.f32 %v4913_v41, %v6907_v0  ;;  %v4924_v62 = vmul.f32 %v4917_v57, %v6900_v7 }
 0xf40   : > { %6083 = vmatpush1.bf16.msra.mxu0 %v6082_v37 }
 0xf41   : > { %v4928_v31 = vpop.permute.xlu1 %4927  ;;  %v4910_v9 = vpop.permute.xlu0 %4909  ;;  %6085 = vmatprep.subr.bf16.mxu0 %v6084_v13 }
 0xf42   : > { %v4914_v28 = vsel %vm591_vm6, %v4902_v2, %v4910_v9  ;;  %v4918_v52 = vsel %vm591_vm6, %v4910_v9, %v4902_v2 }
 0xf43   : > { %v4925_v49 = vmul.f32 %v4914_v28, %v6907_v0  ;;  %v4926_v18 = vmul.f32 %v4918_v52, %v6900_v7 }
 0xf44   : > { %6087 = vmatpush1.bf16.msra.mxu0 %v6086_v17 }
 0xf45   : > { %v6090_v12 = vpack.c.bf16 %v4925_v49, %v4923_v15  ;;  %v4936_v39 = vpop.permute.xlu1 %4935  ;;  %v4930_v16 = vpop.permute.xlu0 %4929  ;;  %v6088_v1 = vpack.c.bf16 %v4926_v18, %v4924_v62 }
 0xf46   : > { %v4943_v47 = vsel %vm613_vm7, %v4928_v31, %v4936_v39  ;;  %v4947_v35 = vsel %vm613_vm7, %v4936_v39, %v4928_v31  ;;  %v5164_v31 = vld [vmem:[%s412_s26] sm:$0x77] }
 0xf47   : > { %6089 = vmatprep.subr.bf16.mxu0 %v6088_v1  ;;  %v4951_v21 = vmul.f32 %v4943_v47, %v6943_v23  ;;  %v4952_v34 = vmul.f32 %v4947_v35, %v10375_v33  ;;  %v5166_v49 = vcombine.high %v5164_v31, %v5164_v31 }
 0xf48   : > { %6091 = vmatpush1.bf16.msra.mxu0 %v6090_v12  ;;  %v10377_v12 = vld [vmem:[#allocation2_spill] sm:$0xff] }
 0xf49   : > { %v4932_v5 = vpop.permute.xlu1 %4931  ;;  %v4938_v0 = vpop.permute.xlu0 %4937 }
 0xf4a   : > { %v4944_v7 = vsel %vm613_vm7, %v4930_v16, %v4938_v0  ;;  %v4948_v36 = vsel %vm613_vm7, %v4938_v0, %v4930_v16  ;;  %v10378_v16 = vld [vmem:[#allocation3_spill] sm:$0xff] }
 0xf4b   : > { %v4953_v30 = vmul.f32 %v4944_v7, %v6943_v23  ;;  %v4954_v45 = vmul.f32 %v4948_v36, %v10375_v33  ;;  %5036 = vmatmul.mubr.f32.vlgmr.msra.gmra.mrb[32].mxu0 %v5483_v29 }
 0xf4c   : > { %5041 = vmatprep.mubr.f32.mxu0 %v5487_v50 }
 0xf4d   : > { %v6094_v48 = vpack.c.bf16 %v4953_v30, %v4951_v21  ;;  %v4940_v32 = vpop.permute.xlu1 %4939  ;;  %v4934_v6 = vpop.permute.xlu0 %4933  ;;  %v6092_v42 = vpack.c.bf16 %v4954_v45, %v4952_v34 }
 0xf4e   : > { %v4945_v55 = vsel %vm613_vm7, %v4932_v5, %v4940_v32  ;;  %v4949_v26 = vsel %vm613_vm7, %v4940_v32, %v4932_v5 }
 0xf4f   : > { %5042 = vmatmul.mubr.f32.gmra.mrb[34].mxu0 %v5486_v60  ;;  %6093 = vmatprep.subr.bf16.mxu0 %v6092_v42  ;;  %v4955_v4 = vmul.f32 %v4945_v55, %v6943_v23  ;;  %v4956_v63 = vmul.f32 %v4949_v26, %v10375_v33 }
 0xf50   : > { %6100 = vmatprep.subr.bf16.mxu1 %v6092_v42  ;;  %6095 = vmatpush1.bf16.msra.mxu0 %v6094_v48 }
 0xf51   : > { %6102 = vmatpush1.bf16.msra.mxu1 %v6094_v48  ;;  %v4942_v8 = vpop.permute.xlu0 %4941  ;;  %5045 = vmatprep.mubr.f32.mxu0 %v5490_v25 }
 0xf52   : > { %v4946_v38 = vsel %vm613_vm7, %v4934_v6, %v4942_v8  ;;  %v4950_v51 = vsel %vm613_vm7, %v4942_v8, %v4934_v6 }
 0xf53   : > { %v4957_v20 = vmul.f32 %v4946_v38, %v6943_v23  ;;  %v4958_v54 = vmul.f32 %v4950_v51, %v10375_v33  ;;  %5046 = vmatmul.mubr.f32.gmra.mrb[36].mxu0 %v5489_v59  ;;  %v5488_v23 = vld [vmem:[%s6546_s30 + $0x2c8] sm:$0xff]  ;;  %v5494_v33 = vld [vmem:[%s6546_s30 + $0x2f8] sm:$0xff] }
 0xf54   : > { %5049 = vmatprep.mubr.f32.mxu0 %v5493_v43 }
 0xf55   : > { %v6098_v58 = vpack.c.bf16 %v4957_v20, %v4955_v4  ;;  %v6096_v3 = vpack.c.bf16 %v4958_v54, %v4956_v63 }
 0xf57   : > { %5050 = vmatmul.mubr.f32.gmra.mrb[38].mxu0 %v5492_v44  ;;  %6097 = vmatprep.subr.bf16.mxu0 %v6096_v3 }
 0xf58   : > { %6101 = vmatprep.subr.bf16.mxu1 %v6096_v3  ;;  %6099 = vmatpush1.bf16.msra.mxu0 %v6098_v58 }
 0xf59   : > { %6103 = vmatpush1.bf16.msra.mxu1 %v6098_v58  ;;  %5118 = vmatprep.mubr.f32.mxu0 %v10376_v19 }
 0xf5b   : > { %5495 = vmatmul.mubr.msk.f32.vlgmr.msra.gmra.mrb[32].mxu0 %vm1149_vm9, %v5485_v10 }
 0xf5c   : > { %5497 = vmatmul.mubr.msk.f32.vlgmr.msra.gmra.mrb[32].mxu1 %vm1149_vm9, %v5491_v40  ;;  %5124 = vmatprep.mubr.f32.mxu0 %v10376_v19 }
 0xf5d   : > { %5132 = vmatprep.mubr.f32.mxu1 %v10376_v19 }
 0xf5e   : > { %v5142_v53 = vpop.permute.xlu1 %5141 }
 0xf5f   : > { %5496 = vmatmul.mubr.msk.f32.gmra.mrb[40].mxu0 %vm1149_vm9, %v5488_v23 }
 0xf60   : > { %5498 = vmatmul.mubr.msk.f32.gmra.mrb[34].mxu1 %vm1149_vm9, %v5494_v33 }
 0xf62   : > { %v5151_v27 = vpop.permute.xlu0 %5150 }
0x1022   : > { %v5043_v46 = vpop.f32.mrb[34].mxu0 }
0x1023   : > { %v5044_v11 = vpop.f32.mrb[35].mxu0 }
0x1026   : > { %v5047_v22 = vpop.f32.mrb[36].mxu0 }
0x1027   : > { %v5048_v61 = vpop.f32.mrb[37].mxu0 }
0x102a   : > { %v5051_v56 = vpop.f32.mrb[38].mxu0 }
0x102b   : > { %v5052_v37 = vpop.f32.mrb[39].mxu0 }
0x102e   : > { %v5120_v19 = vpop.f32.mrb[32].mxu0 }
0x102f   : > { %v5144_v2 = vmul.f32 %v5142_v53, %v5120_v19  ;;  %v5122_v14 = vpop.f32.mrb[33].mxu0  ;;  %v5130_v24 = vpop.f32.mrb[32].mxu1 }
0x1030   : > { %v5145_v13 = vmul.f32 %v5142_v53, %v5122_v14  ;;  %v5131_v41 = vpop.f32.mrb[33].mxu1 }
0x1031   : > { %v5153_v57 = vadd.f32 %v5151_v27, %v5144_v2 }
0x1032   : > { %v5154_v9 = vadd.f32 %v5151_v27, %v5145_v13  ;;  %v5126_v17 = vpop.f32.mrb[40].mxu0 }
0x1033   : > { %v5155_v28 = vmul.f32 0.1, %v5153_v57  ;;  %v5134_v52 = vpop.f32.mrb[34].mxu1  ;;  %v5127_v15 = vpop.f32.mrb[41].mxu0 }
0x1034   : > { %v5156_v62 = vmul.f32 0.1, %v5154_v9  ;;  %v5135_v18 = vpop.f32.mrb[35].mxu1 }
0x1035   : > { %v5157_v39 = vadd.f32 %v5155_v28, %v10377_v12 }
0x1036   : > { %v5158_v1 = vadd.f32 %v5156_v62, %v10378_v16 }
0x1037   : > { %v5168_v47 = vadd.f32 %v5164_v31, %v5157_v39 }
0x1038   : > { %v5161_v35 = vcombine.low %v5157_v39, %v5158_v1  ;;  %v5169_v29 = vadd.f32 %v5166_v49, %v5158_v1 }
0x103a   : > { %5163 = vst [vmem:[%s432_s17] sm:$0x77] %v5161_v35  ;;  %v5172_v5 = vcombine.low %v5168_v47, %v5169_v29 }
0x103c   : > { %5174 = vst [vmem:[%s427_s28] sm:$0x77] %v5172_v5 }
0x103d PF: > { %s21_s13 = sadd.s32 1, %s6190_s13  }
0x103e   : > { %p18_p4 = scmp.ge.s32.totalorder %s21_s13, 4  }
0x1040   :  { %20 = sbr.rel (!%p18_p4) target bundleno = 1 (0x1), region = 144 }

</bundles_post_ra>
